<compile_context>
chip_gen: v7x
topology: tpu7x:2x2x1
jax: 0.10.0
libtpu: 0.0.40
codegen_flags: <defaults>
</compile_context>

<pallas_src>
import functools
import math

import jax
import jax.numpy as jnp
from jax.experimental import pallas as pl
from jax.experimental.pallas import tpu as pltpu  # noqa: F401  (imported per template)

# ----------------- model hyper-parameters (small, synthetic) -----------------
D_MODEL = 32
N_HEADS = 4
D_K = D_MODEL // N_HEADS
D_FF = 64
N_LAYERS = 2
SRC_VOCAB = 32
TGT_VOCAB = 32
MAX_LEN = 64
EPS = 1e-6
NEG_INF = -1e9
_SCALE = 1.0 / math.sqrt(D_K)

HEAD_BAND = 128                    # each head's q/k/vo gets its own 128-lane band
BAND = N_HEADS * HEAD_BAND         # 512 = slab lane width (lane dense, multiple of 128)
VOCAB_PAD = 128                    # generator output padded to a full lane group


# ------------------------------ fused kernel ---------------------------------

def _transformer_kernel(src_ref, tgt_ref, encb_ref, decb_ref, crossb_ref,
                        slab_ref, out_ref, *, offs):
    """Single invocation (no grid).  Batch folded into rows; all parameters live in
    one lane-dense VMEM slab, addressed with static row offsets `offs`."""

    def vec(name, c):                         # (1, c) row view of the slab
        o = offs[name]
        return slab_ref[o:o + 1, :c]

    def mat(name, r, c):                      # (r, c) view of the slab
        o = offs[name]
        return slab_ref[o:o + r, :c]

    def layer_norm(x, name):
        # Annotated-Transformer LayerNorm: a * (x - mean) / (std + eps) + b,
        # unbiased std (torch.Tensor.std default).  Divide -> reciprocal multiply.
        a = vec(name + "_a", D_MODEL)
        b = vec(name + "_b", D_MODEL)
        mean = jnp.mean(x, axis=-1, keepdims=True)
        d = x - mean
        var = jnp.sum(d * d, axis=-1, keepdims=True) * (1.0 / (D_MODEL - 1))
        inv = pl.reciprocal(jnp.sqrt(var) + EPS, approx=False)
        return a * (d * inv) + b

    def attention(xq, xkv, bias, name):
        # Head-banded projections: head h's real q/k columns live at lanes
        # [h*128 : h*128+D_K] (zero elsewhere) so every per-head slice below is a
        # 128-aligned vreg slice and the zero lanes contract away in the score matmul.
        # The V and output projections are fused host-side into WvO (per-head (D, D)
        # block at lanes [h*128 : h*128+D]); the V bias is folded into the output bias.
        q = jnp.dot(xq, mat(name + "_wq", D_MODEL, BAND),
                    preferred_element_type=jnp.float32) + vec(name + "_bq", BAND)
        k = jnp.dot(xkv, mat(name + "_wk", D_MODEL, BAND),
                    preferred_element_type=jnp.float32) + vec(name + "_bk", BAND)
        vo = jnp.dot(xkv, mat(name + "_wvo", D_MODEL, BAND),
                     preferred_element_type=jnp.float32)
        out = None
        for h in range(N_HEADS):
            lo = h * HEAD_BAND
            qh = q[:, lo:lo + HEAD_BAND]
            kh = k[:, lo:lo + HEAD_BAND]
            voh = vo[:, lo:lo + HEAD_BAND]
            s = jax.lax.dot_general(qh, kh, (((1,), (1,)), ((), ())),
                                    preferred_element_type=jnp.float32) * _SCALE + bias
            s = s - jnp.max(s, axis=-1, keepdims=True)
            e = jnp.exp(s)
            p = e * pl.reciprocal(jnp.sum(e, axis=-1, keepdims=True), approx=True)
            oh = jnp.dot(p, voh, preferred_element_type=jnp.float32)   # (Lq, 128)
            out = oh if out is None else out + oh
        return out[:, :D_MODEL] + vec(name + "_bo", D_MODEL)

    def feed_forward(x, name):
        h = jnp.dot(x, mat(name + "_w1", D_MODEL, D_FF),
                    preferred_element_type=jnp.float32) + vec(name + "_b1", D_FF)
        h = jnp.maximum(h, 0.0)
        return jnp.dot(h, mat(name + "_w2", D_FF, D_MODEL),
                       preferred_element_type=jnp.float32) + vec(name + "_b2", D_MODEL)

    # TODO(synk): dropout layers are identity (eval mode); training-time dropout not implemented.

    enc_bias = encb_ref[...]          # (B*Ls, B*Ls) additive block-diagonal bias
    dec_bias = decb_ref[...]          # (B*Lt, B*Lt)
    cross_bias = crossb_ref[...]      # (B*Lt, B*Ls)

    # ------------------------------ encoder ------------------------------
    x = src_ref[...]                                            # (B*Ls, D)
    for l in range(N_LAYERS):
        pfx = f"enc{l}"
        n1 = layer_norm(x, pfx + "_ln1")
        x = x + attention(n1, n1, enc_bias, pfx + "_sa")
        n2 = layer_norm(x, pfx + "_ln2")
        x = x + feed_forward(n2, pfx + "_ff")
    memory = layer_norm(x, "enc_norm")                          # (B*Ls, D)

    # ------------------------------ decoder ------------------------------
    y = tgt_ref[...]                                            # (B*Lt, D)
    for l in range(N_LAYERS):
        pfx = f"dec{l}"
        n1 = layer_norm(y, pfx + "_ln1")
        y = y + attention(n1, n1, dec_bias, pfx + "_sa")
        n2 = layer_norm(y, pfx + "_ln2")
        y = y + attention(n2, memory, cross_bias, pfx + "_ca")
        n3 = layer_norm(y, pfx + "_ln3")
        y = y + feed_forward(n3, pfx + "_ff")
    y = layer_norm(y, "dec_norm")

    # generator: log_softmax(Linear(y)); vocab padded to 128 lanes (pad bias = -1e9,
    # pad weights = 0) so the padded logits vanish under exp and the store is lane-dense.
    logits = jnp.dot(y, mat("gen_w", D_MODEL, VOCAB_PAD),
                     preferred_element_type=jnp.float32) + vec("gen_b", VOCAB_PAD)
    s = logits - jnp.max(logits, axis=-1, keepdims=True)
    lse = jnp.log(jnp.sum(jnp.exp(s), axis=-1, keepdims=True))
    out_ref[...] = s - lse


# --------------------------- parameter packing --------------------------------

def _pack_params(params):
    """Pack every parameter into ONE lane-dense (rows, 512) f32 slab (single DMA).

    Matrices (row counts are multiples of 8) go first; 1-row vector params go last.
    Returns (slab, offs) where offs maps name -> static row offset."""
    mats, vecs = [], []

    def add_mat(name, a):
        mats.append((name, jnp.asarray(a, jnp.float32)))

    def add_vec(name, a):
        vecs.append((name, jnp.asarray(a, jnp.float32)))

    def qk_band(w):                 # (D, D) -> (D, BAND): head h -> lanes [h*128, h*128+D_K)
        out = jnp.zeros((D_MODEL, BAND), jnp.float32)
        for h in range(N_HEADS):
            out = out.at[:, h * HEAD_BAND:h * HEAD_BAND + D_K].set(
                w[:, h * D_K:(h + 1) * D_K])
        return out

    def qk_band_bias(b):            # (D,) -> (BAND,)
        out = jnp.zeros((BAND,), jnp.float32)
        for h in range(N_HEADS):
            out = out.at[h * HEAD_BAND:h * HEAD_BAND + D_K].set(
                b[h * D_K:(h + 1) * D_K])
        return out

    def vo_band(wv, wo):            # fused per-head V@O -> (D, BAND)
        out = jnp.zeros((D_MODEL, BAND), jnp.float32)
        for h in range(N_HEADS):
            out = out.at[:, h * HEAD_BAND:h * HEAD_BAND + D_MODEL].set(
                wv[:, h * D_K:(h + 1) * D_K] @ wo[h * D_K:(h + 1) * D_K, :])
        return out

    def add_attn(name, blk):
        add_mat(name + "_wq", qk_band(blk["q"]["w"]))
        add_mat(name + "_wk", qk_band(blk["k"]["w"]))
        add_mat(name + "_wvo", vo_band(blk["v"]["w"], blk["o"]["w"]))
        add_vec(name + "_bq", qk_band_bias(blk["q"]["b"]))
        add_vec(name + "_bk", qk_band_bias(blk["k"]["b"]))
        # V bias folds through softmax (row-sum == 1) and Wo into the output bias.
        add_vec(name + "_bo", blk["o"]["b"] + blk["v"]["b"] @ blk["o"]["w"])

    def add_ln(name, ln):
        add_vec(name + "_a", ln["a"])
        add_vec(name + "_b", ln["b"])

    def add_ff(name, ff):
        add_mat(name + "_w1", ff["w1"]["w"])
        add_vec(name + "_b1", ff["w1"]["b"])
        add_mat(name + "_w2", ff["w2"]["w"])
        add_vec(name + "_b2", ff["w2"]["b"])

    for l, lp in enumerate(params["encoder"]["layers"]):
        add_attn(f"enc{l}_sa", lp["self_attn"])
        add_ff(f"enc{l}_ff", lp["ff"])
        add_ln(f"enc{l}_ln1", lp["ln1"])
        add_ln(f"enc{l}_ln2", lp["ln2"])
    add_ln("enc_norm", params["encoder"]["norm"])

    for l, lp in enumerate(params["decoder"]["layers"]):
        add_attn(f"dec{l}_sa", lp["self_attn"])
        add_attn(f"dec{l}_ca", lp["src_attn"])
        add_ff(f"dec{l}_ff", lp["ff"])
        add_ln(f"dec{l}_ln1", lp["ln1"])
        add_ln(f"dec{l}_ln2", lp["ln2"])
        add_ln(f"dec{l}_ln3", lp["ln3"])
    add_ln("dec_norm", params["decoder"]["norm"])

    gen_w = jnp.zeros((D_MODEL, VOCAB_PAD), jnp.float32).at[:, :TGT_VOCAB].set(
        params["generator"]["w"])
    gen_b = jnp.full((VOCAB_PAD,), NEG_INF, jnp.float32).at[:TGT_VOCAB].set(
        params["generator"]["b"])
    add_mat("gen_w", gen_w)
    add_vec("gen_b", gen_b)

    n_mat_rows = sum(int(a.shape[0]) for _, a in mats)
    assert n_mat_rows % 8 == 0, "matrix region must stay sublane-aligned"
    total_rows = n_mat_rows + len(vecs)
    rows = ((total_rows + 7) // 8) * 8

    slab = jnp.zeros((rows, BAND), jnp.float32)
    offs = {}
    r = 0
    for name, a in mats:
        rr, cc = a.shape
        slab = slab.at[r:r + rr, :cc].set(a)
        offs[name] = r
        r += rr
    for name, a in vecs:
        cc = a.shape[0]
        slab = slab.at[r, :cc].set(a)
        offs[name] = r
        r += 1
    return slab, offs


# ------------------------------ forward wrapper --------------------------------

def _positional_encoding():
    pos = jnp.arange(MAX_LEN, dtype=jnp.float32)[:, None]
    div = jnp.exp(jnp.arange(0, D_MODEL, 2, dtype=jnp.float32)
                  * (-math.log(10000.0) / D_MODEL))
    pe = jnp.zeros((MAX_LEN, D_MODEL), jnp.float32)
    pe = pe.at[:, 0::2].set(jnp.sin(pos * div))
    pe = pe.at[:, 1::2].set(jnp.cos(pos * div))
    return pe


POS_ENCODING = _positional_encoding()


def _embed(table, ids):
    # Embeddings: lut(x) * sqrt(d_model) + sinusoidal positional encoding (JAX glue).
    x = jnp.take(table, ids, axis=0) * math.sqrt(D_MODEL)
    return x + POS_ENCODING[None, : ids.shape[1], :]


def _block_diag_bias(mask):
    """mask: (B, Lq, Lk) of 1.0/0.0 -> (B*Lq, B*Lk) additive bias.

    Cross-batch blocks are fully masked, so attention over the batch-folded rows
    is equivalent to independent per-batch attention."""
    B, Lq, Lk = mask.shape
    eye = jnp.eye(B, dtype=jnp.float32)
    allowed = (eye[:, None, :, None] * mask[:, :, None, :]).reshape(B * Lq, B * Lk)
    return (1.0 - allowed) * NEG_INF


def encoder_decoder_forward(packed, src, tgt, src_mask, tgt_mask, *, offs):
    B, Ls = src.shape
    Lt = tgt.shape[1]

    src_x = _embed(packed["src_emb"], src).reshape(B * Ls, D_MODEL)
    tgt_x = _embed(packed["tgt_emb"], tgt).reshape(B * Lt, D_MODEL)

    sm = src_mask.astype(jnp.float32)                        # (B, 1, Ls)
    tm = tgt_mask.astype(jnp.float32)                        # (B, Lt, Lt)
    enc_bias = _block_diag_bias(jnp.broadcast_to(sm, (B, Ls, Ls)))
    dec_bias = _block_diag_bias(tm)
    cross_bias = _block_diag_bias(jnp.broadcast_to(sm, (B, Lt, Ls)))

    out = pl.pallas_call(
        functools.partial(_transformer_kernel, offs=offs),
        out_shape=jax.ShapeDtypeStruct((B * Lt, VOCAB_PAD), jnp.float32),
    )(src_x, tgt_x, enc_bias, dec_bias, cross_bias, packed["slab"])

    return out.reshape(B, Lt, VOCAB_PAD)[:, :, :TGT_VOCAB]


# --------------------------- pure-JAX reference --------------------------------

def _reference_forward(params, src, tgt, src_mask, tgt_mask):
    def ln(x, p):
        mean = x.mean(-1, keepdims=True)
        d = x - mean
        var = (d * d).sum(-1, keepdims=True) / (D_MODEL - 1)
        return p["a"] * d / (jnp.sqrt(var) + EPS) + p["b"]

    def linear(x, p):
        return x @ p["w"] + p["b"]

    def attn(xq, xkv, mask, p):
        def split(t):
            Bb, L, _ = t.shape
            return t.reshape(Bb, L, N_HEADS, D_K).transpose(0, 2, 1, 3)
        q, k, v = split(linear(xq, p["q"])), split(linear(xkv, p["k"])), split(linear(xkv, p["v"]))
        s = jnp.einsum("bhqd,bhkd->bhqk", q, k) * _SCALE
        s = jnp.where(mask[:, None, :, :] == 0.0, NEG_INF, s)
        w = jax.nn.softmax(s, axis=-1)
        o = jnp.einsum("bhqk,bhkd->bhqd", w, v)
        o = o.transpose(0, 2, 1, 3).reshape(xq.shape[0], xq.shape[1], D_MODEL)
        return linear(o, p["o"])

    def ff(x, p):
        return linear(jnp.maximum(linear(x, p["w1"]), 0.0), p["w2"])

    sm = src_mask.astype(jnp.float32)
    tm = tgt_mask.astype(jnp.float32)

    x = _embed(params["src_emb"], src)
    for lp in params["encoder"]["layers"]:
        n1 = ln(x, lp["ln1"])
        x = x + attn(n1, n1, sm, lp["self_attn"])
        x = x + ff(ln(x, lp["ln2"]), lp["ff"])
    memory = ln(x, params["encoder"]["norm"])

    y = _embed(params["tgt_emb"], tgt)
    for lp in params["decoder"]["layers"]:
        n1 = ln(y, lp["ln1"])
        y = y + attn(n1, n1, tm, lp["self_attn"])
        y = y + attn(ln(y, lp["ln2"]), memory, sm, lp["src_attn"])
        y = y + ff(ln(y, lp["ln3"]), lp["ff"])
    y = ln(y, params["decoder"]["norm"])
    return jax.nn.log_softmax(linear(y, params["generator"]), axis=-1)


# ----------------------------- parameters ------------------------------------

def init_params(key):
    keys = iter(jax.random.split(key, 256))

    def dense(din, dout):
        return {"w": 0.05 * jax.random.normal(next(keys), (din, dout), jnp.float32),
                "b": jnp.zeros((dout,), jnp.float32)}

    def ln():
        return {"a": jnp.ones((D_MODEL,), jnp.float32),
                "b": jnp.zeros((D_MODEL,), jnp.float32)}

    def attn_block():
        return {"q": dense(D_MODEL, D_MODEL), "k": dense(D_MODEL, D_MODEL),
                "v": dense(D_MODEL, D_MODEL), "o": dense(D_MODEL, D_MODEL)}

    def ff_block():
        return {"w1": dense(D_MODEL, D_FF), "w2": dense(D_FF, D_MODEL)}

    enc_layers = [{"self_attn": attn_block(), "ff": ff_block(), "ln1": ln(), "ln2": ln()}
                  for _ in range(N_LAYERS)]
    dec_layers = [{"self_attn": attn_block(), "src_attn": attn_block(), "ff": ff_block(),
                   "ln1": ln(), "ln2": ln(), "ln3": ln()} for _ in range(N_LAYERS)]

    return {
        "src_emb": 0.05 * jax.random.normal(next(keys), (SRC_VOCAB, D_MODEL), jnp.float32),
        "tgt_emb": 0.05 * jax.random.normal(next(keys), (TGT_VOCAB, D_MODEL), jnp.float32),
        "encoder": {"layers": enc_layers, "norm": ln()},
        "decoder": {"layers": dec_layers, "norm": ln()},
        "generator": dense(D_MODEL, TGT_VOCAB),
    }


# --------------------------------- main ---------------------------------------

if __name__ == "__main__":
    key = jax.random.PRNGKey(0)
    kp, ks, kt = jax.random.split(key, 3)

    B, Ls, Lt = 2, 8, 8
    params = init_params(kp)
    src = jax.random.randint(ks, (B, Ls), 0, SRC_VOCAB, dtype=jnp.int32)
    tgt = jax.random.randint(kt, (B, Lt), 0, TGT_VOCAB, dtype=jnp.int32)
    src_mask = jnp.ones((B, 1, Ls), dtype=jnp.float32)                     # all source visible
    tgt_mask = jnp.broadcast_to(jnp.tril(jnp.ones((Lt, Lt), jnp.float32)), (B, Lt, Lt))

    # One-time host-side packing into a single lane-dense slab (single DMA at run time).
    slab, offs = _pack_params(params)
    packed = {"slab": slab, "src_emb": params["src_emb"], "tgt_emb": params["tgt_emb"]}

    fwd = jax.jit(functools.partial(encoder_decoder_forward, offs=offs))
    out = fwd(packed, src, tgt, src_mask, tgt_mask)                        # (B, Lt, TGT_VOCAB)
    jax.block_until_ready(out)

    assert out.shape == (B, Lt, TGT_VOCAB)
    # rows of log_softmax must exp-sum to 1
    assert bool(jnp.allclose(jnp.exp(out).sum(-1), 1.0, atol=1e-4))
    # cross-check against a pure-JAX reference of the same forward
    ref = _reference_forward(params, src, tgt, src_mask, tgt_mask)
    assert bool(jnp.allclose(out, ref, atol=2e-2)), float(jnp.max(jnp.abs(out - ref)))
    print("KERNEL_OK")
</pallas_src>

<mosaic_0001>
module attributes {stable_mosaic.version = 11 : i64} {
  func.func @_transformer_kernel(%arg0: memref<16x32xf32, #tpu.memory_space<vmem>>, %arg1: memref<16x32xf32, #tpu.memory_space<vmem>>, %arg2: memref<16x16xf32, #tpu.memory_space<vmem>>, %arg3: memref<16x16xf32, #tpu.memory_space<vmem>>, %arg4: memref<16x16xf32, #tpu.memory_space<vmem>>, %arg5: memref<1048x512xf32, #tpu.memory_space<vmem>>, %arg6: memref<16x128xf32, #tpu.memory_space<vmem>>) attributes {dimension_semantics = [], scalar_prefetch = 0 : i64, scratch_operands = 0 : i64, tpu.core_type = #tpu.core_type<tc>} {
    %c0 = arith.constant 0 : index
    %c0_0 = arith.constant 0 : index
    %0 = vector.load %arg2[%c0, %c0_0] : memref<16x16xf32, #tpu.memory_space<vmem>>, vector<16x16xf32>
    %c0_1 = arith.constant 0 : index
    %c0_2 = arith.constant 0 : index
    %1 = vector.load %arg3[%c0_1, %c0_2] : memref<16x16xf32, #tpu.memory_space<vmem>>, vector<16x16xf32>
    %c0_3 = arith.constant 0 : index
    %c0_4 = arith.constant 0 : index
    %2 = vector.load %arg4[%c0_3, %c0_4] : memref<16x16xf32, #tpu.memory_space<vmem>>, vector<16x16xf32>
    %c0_5 = arith.constant 0 : index
    %c0_6 = arith.constant 0 : index
    %3 = vector.load %arg0[%c0_5, %c0_6] : memref<16x32xf32, #tpu.memory_space<vmem>>, vector<16x32xf32>
    %c997 = arith.constant 997 : index
    %c0_7 = arith.constant 0 : index
    %4 = vector.load %arg5[%c997, %c0_7] : memref<1048x512xf32, #tpu.memory_space<vmem>>, vector<1x32xf32>
    %c998 = arith.constant 998 : index
    %c0_8 = arith.constant 0 : index
    %5 = vector.load %arg5[%c998, %c0_8] : memref<1048x512xf32, #tpu.memory_space<vmem>>, vector<1x32xf32>
    %cst = arith.constant dense<0.000000e+00> : vector<16xf32>
    %6 = vector.multi_reduction <add>, %3, %cst [1] : vector<16x32xf32> to vector<16xf32>
    %7 = vector.shape_cast %6 : vector<16xf32> to vector<16x1xf32>
    %cst_9 = arith.constant 3.200000e+01 : f32
    %8 = vector.broadcast %cst_9 : f32 to vector<16x1xf32>
    %9 = arith.divf %7, %8 : vector<16x1xf32>
    %10 = vector.broadcast %9 : vector<16x1xf32> to vector<16x32xf32>
    %11 = arith.subf %3, %10 : vector<16x32xf32>
    %12 = arith.mulf %11, %11 : vector<16x32xf32>
    %cst_10 = arith.constant dense<0.000000e+00> : vector<16xf32>
    %13 = vector.multi_reduction <add>, %12, %cst_10 [1] : vector<16x32xf32> to vector<16xf32>
    %14 = vector.shape_cast %13 : vector<16xf32> to vector<16x1xf32>
    %cst_11 = arith.constant 0.0322580636 : f32
    %15 = vector.broadcast %cst_11 : f32 to vector<16x1xf32>
    %16 = arith.mulf %14, %15 : vector<16x1xf32>
    %17 = math.sqrt %16 : vector<16x1xf32>
    %cst_12 = arith.constant 9.99999997E-7 : f32
    %18 = vector.broadcast %cst_12 : f32 to vector<16x1xf32>
    %19 = arith.addf %17, %18 : vector<16x1xf32>
    %20 = tpu.reciprocal %19 : vector<16x1xf32> -> vector<16x1xf32>
    %21 = vector.broadcast %20 : vector<16x1xf32> to vector<16x32xf32>
    %22 = arith.mulf %11, %21 : vector<16x32xf32>
    %23 = vector.broadcast %4 : vector<1x32xf32> to vector<16x32xf32>
    %24 = arith.mulf %23, %22 : vector<16x32xf32>
    %25 = vector.broadcast %5 : vector<1x32xf32> to vector<16x32xf32>
    %26 = arith.addf %24, %25 : vector<16x32xf32>
    %c0_13 = arith.constant 0 : index
    %c0_14 = arith.constant 0 : index
    %27 = vector.load %arg5[%c0_13, %c0_14] : memref<1048x512xf32, #tpu.memory_space<vmem>>, vector<32x512xf32>
    %cst_15 = arith.constant dense<0.000000e+00> : vector<16x512xf32>
    %28 = tpu.matmul %26, %27, %cst_15 {dimension_numbers = #tpu.dot_dimension_numbers<[1], [0], [0], [1], [0, 0, 1, 1], [], []>} : vector<16x32xf32>, vector<32x512xf32>, vector<16x512xf32> -> vector<16x512xf32>
    %c992 = arith.constant 992 : index
    %c0_16 = arith.constant 0 : index
    %29 = vector.load %arg5[%c992, %c0_16] : memref<1048x512xf32, #tpu.memory_space<vmem>>, vector<1x512xf32>
    %30 = vector.broadcast %29 : vector<1x512xf32> to vector<16x512xf32>
    %31 = arith.addf %28, %30 : vector<16x512xf32>
    %c32 = arith.constant 32 : index
    %c0_17 = arith.constant 0 : index
    %32 = vector.load %arg5[%c32, %c0_17] : memref<1048x512xf32, #tpu.memory_space<vmem>>, vector<32x512xf32>
    %cst_18 = arith.constant dense<0.000000e+00> : vector<16x512xf32>
    %33 = tpu.matmul %26, %32, %cst_18 {dimension_numbers = #tpu.dot_dimension_numbers<[1], [0], [0], [1], [0, 0, 1, 1], [], []>} : vector<16x32xf32>, vector<32x512xf32>, vector<16x512xf32> -> vector<16x512xf32>
    %c993 = arith.constant 993 : index
    %c0_19 = arith.constant 0 : index
    %34 = vector.load %arg5[%c993, %c0_19] : memref<1048x512xf32, #tpu.memory_space<vmem>>, vector<1x512xf32>
    %35 = vector.broadcast %34 : vector<1x512xf32> to vector<16x512xf32>
    %36 = arith.addf %33, %35 : vector<16x512xf32>
    %c64 = arith.constant 64 : index
    %c0_20 = arith.constant 0 : index
    %37 = vector.load %arg5[%c64, %c0_20] : memref<1048x512xf32, #tpu.memory_space<vmem>>, vector<32x512xf32>
    %cst_21 = arith.constant dense<0.000000e+00> : vector<16x512xf32>
    %38 = tpu.matmul %26, %37, %cst_21 {dimension_numbers = #tpu.dot_dimension_numbers<[1], [0], [0], [1], [0, 0, 1, 1], [], []>} : vector<16x32xf32>, vector<32x512xf32>, vector<16x512xf32> -> vector<16x512xf32>
    %39 = vector.extract_strided_slice %31 {offsets = [0, 0], sizes = [16, 128], strides = [1, 1]} : vector<16x512xf32> to vector<16x128xf32>
    %40 = vector.extract_strided_slice %36 {offsets = [0, 0], sizes = [16, 128], strides = [1, 1]} : vector<16x512xf32> to vector<16x128xf32>
    %41 = vector.extract_strided_slice %38 {offsets = [0, 0], sizes = [16, 128], strides = [1, 1]} : vector<16x512xf32> to vector<16x128xf32>
    %cst_22 = arith.constant dense<0.000000e+00> : vector<16x16xf32>
    %42 = tpu.matmul %39, %40, %cst_22 {dimension_numbers = #tpu.dot_dimension_numbers<[1], [1], [0], [0], [0, 0, 1, 0], [], []>} : vector<16x128xf32>, vector<16x128xf32>, vector<16x16xf32> -> vector<16x16xf32>
    %cst_23 = arith.constant 0.353553385 : f32
    %43 = vector.broadcast %cst_23 : f32 to vector<16x16xf32>
    %44 = arith.mulf %42, %43 : vector<16x16xf32>
    %45 = arith.addf %44, %0 : vector<16x16xf32>
    %cst_24 = arith.constant dense<0xFF800000> : vector<16xf32>
    %46 = vector.multi_reduction <maximumf>, %45, %cst_24 [1] : vector<16x16xf32> to vector<16xf32>
    %47 = vector.shape_cast %46 : vector<16xf32> to vector<16x1xf32>
    %48 = vector.broadcast %47 : vector<16x1xf32> to vector<16x16xf32>
    %49 = arith.subf %45, %48 : vector<16x16xf32>
    %50 = math.exp %49 : vector<16x16xf32>
    %cst_25 = arith.constant dense<0.000000e+00> : vector<16xf32>
    %51 = vector.multi_reduction <add>, %50, %cst_25 [1] : vector<16x16xf32> to vector<16xf32>
    %52 = vector.shape_cast %51 : vector<16xf32> to vector<16x1xf32>
    %53 = tpu.reciprocal %52 {approx = true} : vector<16x1xf32> -> vector<16x1xf32>
    %54 = vector.broadcast %53 : vector<16x1xf32> to vector<16x16xf32>
    %55 = arith.mulf %50, %54 : vector<16x16xf32>
    %cst_26 = arith.constant dense<0.000000e+00> : vector<16x128xf32>
    %56 = tpu.matmul %55, %41, %cst_26 {dimension_numbers = #tpu.dot_dimension_numbers<[1], [0], [0], [1], [0, 0, 1, 1], [], []>} : vector<16x16xf32>, vector<16x128xf32>, vector<16x128xf32> -> vector<16x128xf32>
    %57 = vector.extract_strided_slice %31 {offsets = [0, 128], sizes = [16, 128], strides = [1, 1]} : vector<16x512xf32> to vector<16x128xf32>
    %58 = vector.extract_strided_slice %36 {offsets = [0, 128], sizes = [16, 128], strides = [1, 1]} : vector<16x512xf32> to vector<16x128xf32>
    %59 = vector.extract_strided_slice %38 {offsets = [0, 128], sizes = [16, 128], strides = [1, 1]} : vector<16x512xf32> to vector<16x128xf32>
    %cst_27 = arith.constant dense<0.000000e+00> : vector<16x16xf32>
    %60 = tpu.matmul %57, %58, %cst_27 {dimension_numbers = #tpu.dot_dimension_numbers<[1], [1], [0], [0], [0, 0, 1, 0], [], []>} : vector<16x128xf32>, vector<16x128xf32>, vector<16x16xf32> -> vector<16x16xf32>
    %cst_28 = arith.constant 0.353553385 : f32
    %61 = vector.broadcast %cst_28 : f32 to vector<16x16xf32>
    %62 = arith.mulf %60, %61 : vector<16x16xf32>
    %63 = arith.addf %62, %0 : vector<16x16xf32>
    %cst_29 = arith.constant dense<0xFF800000> : vector<16xf32>
    %64 = vector.multi_reduction <maximumf>, %63, %cst_29 [1] : vector<16x16xf32> to vector<16xf32>
    %65 = vector.shape_cast %64 : vector<16xf32> to vector<16x1xf32>
    %66 = vector.broadcast %65 : vector<16x1xf32> to vector<16x16xf32>
    %67 = arith.subf %63, %66 : vector<16x16xf32>
    %68 = math.exp %67 : vector<16x16xf32>
    %cst_30 = arith.constant dense<0.000000e+00> : vector<16xf32>
    %69 = vector.multi_reduction <add>, %68, %cst_30 [1] : vector<16x16xf32> to vector<16xf32>
    %70 = vector.shape_cast %69 : vector<16xf32> to vector<16x1xf32>
    %71 = tpu.reciprocal %70 {approx = true} : vector<16x1xf32> -> vector<16x1xf32>
    %72 = vector.broadcast %71 : vector<16x1xf32> to vector<16x16xf32>
    %73 = arith.mulf %68, %72 : vector<16x16xf32>
    %cst_31 = arith.constant dense<0.000000e+00> : vector<16x128xf32>
    %74 = tpu.matmul %73, %59, %cst_31 {dimension_numbers = #tpu.dot_dimension_numbers<[1], [0], [0], [1], [0, 0, 1, 1], [], []>} : vector<16x16xf32>, vector<16x128xf32>, vector<16x128xf32> -> vector<16x128xf32>
    %75 = arith.addf %56, %74 : vector<16x128xf32>
    %76 = vector.extract_strided_slice %31 {offsets = [0, 256], sizes = [16, 128], strides = [1, 1]} : vector<16x512xf32> to vector<16x128xf32>
    %77 = vector.extract_strided_slice %36 {offsets = [0, 256], sizes = [16, 128], strides = [1, 1]} : vector<16x512xf32> to vector<16x128xf32>
    %78 = vector.extract_strided_slice %38 {offsets = [0, 256], sizes = [16, 128], strides = [1, 1]} : vector<16x512xf32> to vector<16x128xf32>
    %cst_32 = arith.constant dense<0.000000e+00> : vector<16x16xf32>
    %79 = tpu.matmul %76, %77, %cst_32 {dimension_numbers = #tpu.dot_dimension_numbers<[1], [1], [0], [0], [0, 0, 1, 0], [], []>} : vector<16x128xf32>, vector<16x128xf32>, vector<16x16xf32> -> vector<16x16xf32>
    %cst_33 = arith.constant 0.353553385 : f32
    %80 = vector.broadcast %cst_33 : f32 to vector<16x16xf32>
    %81 = arith.mulf %79, %80 : vector<16x16xf32>
    %82 = arith.addf %81, %0 : vector<16x16xf32>
    %cst_34 = arith.constant dense<0xFF800000> : vector<16xf32>
    %83 = vector.multi_reduction <maximumf>, %82, %cst_34 [1] : vector<16x16xf32> to vector<16xf32>
    %84 = vector.shape_cast %83 : vector<16xf32> to vector<16x1xf32>
    %85 = vector.broadcast %84 : vector<16x1xf32> to vector<16x16xf32>
    %86 = arith.subf %82, %85 : vector<16x16xf32>
    %87 = math.exp %86 : vector<16x16xf32>
    %cst_35 = arith.constant dense<0.000000e+00> : vector<16xf32>
    %88 = vector.multi_reduction <add>, %87, %cst_35 [1] : vector<16x16xf32> to vector<16xf32>
    %89 = vector.shape_cast %88 : vector<16xf32> to vector<16x1xf32>
    %90 = tpu.reciprocal %89 {approx = true} : vector<16x1xf32> -> vector<16x1xf32>
    %91 = vector.broadcast %90 : vector<16x1xf32> to vector<16x16xf32>
    %92 = arith.mulf %87, %91 : vector<16x16xf32>
    %cst_36 = arith.constant dense<0.000000e+00> : vector<16x128xf32>
    %93 = tpu.matmul %92, %78, %cst_36 {dimension_numbers = #tpu.dot_dimension_numbers<[1], [0], [0], [1], [0, 0, 1, 1], [], []>} : vector<16x16xf32>, vector<16x128xf32>, vector<16x128xf32> -> vector<16x128xf32>
    %94 = arith.addf %75, %93 : vector<16x128xf32>
    %95 = vector.extract_strided_slice %31 {offsets = [0, 384], sizes = [16, 128], strides = [1, 1]} : vector<16x512xf32> to vector<16x128xf32>
    %96 = vector.extract_strided_slice %36 {offsets = [0, 384], sizes = [16, 128], strides = [1, 1]} : vector<16x512xf32> to vector<16x128xf32>
    %97 = vector.extract_strided_slice %38 {offsets = [0, 384], sizes = [16, 128], strides = [1, 1]} : vector<16x512xf32> to vector<16x128xf32>
    %cst_37 = arith.constant dense<0.000000e+00> : vector<16x16xf32>
    %98 = tpu.matmul %95, %96, %cst_37 {dimension_numbers = #tpu.dot_dimension_numbers<[1], [1], [0], [0], [0, 0, 1, 0], [], []>} : vector<16x128xf32>, vector<16x128xf32>, vector<16x16xf32> -> vector<16x16xf32>
    %cst_38 = arith.constant 0.353553385 : f32
    %99 = vector.broadcast %cst_38 : f32 to vector<16x16xf32>
    %100 = arith.mulf %98, %99 : vector<16x16xf32>
    %101 = arith.addf %100, %0 : vector<16x16xf32>
    %cst_39 = arith.constant dense<0xFF800000> : vector<16xf32>
    %102 = vector.multi_reduction <maximumf>, %101, %cst_39 [1] : vector<16x16xf32> to vector<16xf32>
    %103 = vector.shape_cast %102 : vector<16xf32> to vector<16x1xf32>
    %104 = vector.broadcast %103 : vector<16x1xf32> to vector<16x16xf32>
    %105 = arith.subf %101, %104 : vector<16x16xf32>
    %106 = math.exp %105 : vector<16x16xf32>
    %cst_40 = arith.constant dense<0.000000e+00> : vector<16xf32>
    %107 = vector.multi_reduction <add>, %106, %cst_40 [1] : vector<16x16xf32> to vector<16xf32>
    %108 = vector.shape_cast %107 : vector<16xf32> to vector<16x1xf32>
    %109 = tpu.reciprocal %108 {approx = true} : vector<16x1xf32> -> vector<16x1xf32>
    %110 = vector.broadcast %109 : vector<16x1xf32> to vector<16x16xf32>
    %111 = arith.mulf %106, %110 : vector<16x16xf32>
    %cst_41 = arith.constant dense<0.000000e+00> : vector<16x128xf32>
    %112 = tpu.matmul %111, %97, %cst_41 {dimension_numbers = #tpu.dot_dimension_numbers<[1], [0], [0], [1], [0, 0, 1, 1], [], []>} : vector<16x16xf32>, vector<16x128xf32>, vector<16x128xf32> -> vector<16x128xf32>
    %113 = arith.addf %94, %112 : vector<16x128xf32>
    %114 = vector.extract_strided_slice %113 {offsets = [0, 0], sizes = [16, 32], strides = [1, 1]} : vector<16x128xf32> to vector<16x32xf32>
    %c994 = arith.constant 994 : index
    %c0_42 = arith.constant 0 : index
    %115 = vector.load %arg5[%c994, %c0_42] : memref<1048x512xf32, #tpu.memory_space<vmem>>, vector<1x32xf32>
    %116 = vector.broadcast %115 : vector<1x32xf32> to vector<16x32xf32>
    %117 = arith.addf %114, %116 : vector<16x32xf32>
    %118 = arith.addf %3, %117 : vector<16x32xf32>
    %c999 = arith.constant 999 : index
    %c0_43 = arith.constant 0 : index
    %119 = vector.load %arg5[%c999, %c0_43] : memref<1048x512xf32, #tpu.memory_space<vmem>>, vector<1x32xf32>
    %c1000 = arith.constant 1000 : index
    %c0_44 = arith.constant 0 : index
    %120 = vector.load %arg5[%c1000, %c0_44] : memref<1048x512xf32, #tpu.memory_space<vmem>>, vector<1x32xf32>
    %cst_45 = arith.constant dense<0.000000e+00> : vector<16xf32>
    %121 = vector.multi_reduction <add>, %118, %cst_45 [1] : vector<16x32xf32> to vector<16xf32>
    %122 = vector.shape_cast %121 : vector<16xf32> to vector<16x1xf32>
    %cst_46 = arith.constant 3.200000e+01 : f32
    %123 = vector.broadcast %cst_46 : f32 to vector<16x1xf32>
    %124 = arith.divf %122, %123 : vector<16x1xf32>
    %125 = vector.broadcast %124 : vector<16x1xf32> to vector<16x32xf32>
    %126 = arith.subf %118, %125 : vector<16x32xf32>
    %127 = arith.mulf %126, %126 : vector<16x32xf32>
    %cst_47 = arith.constant dense<0.000000e+00> : vector<16xf32>
    %128 = vector.multi_reduction <add>, %127, %cst_47 [1] : vector<16x32xf32> to vector<16xf32>
    %129 = vector.shape_cast %128 : vector<16xf32> to vector<16x1xf32>
    %cst_48 = arith.constant 0.0322580636 : f32
    %130 = vector.broadcast %cst_48 : f32 to vector<16x1xf32>
    %131 = arith.mulf %129, %130 : vector<16x1xf32>
    %132 = math.sqrt %131 : vector<16x1xf32>
    %cst_49 = arith.constant 9.99999997E-7 : f32
    %133 = vector.broadcast %cst_49 : f32 to vector<16x1xf32>
    %134 = arith.addf %132, %133 : vector<16x1xf32>
    %135 = tpu.reciprocal %134 : vector<16x1xf32> -> vector<16x1xf32>
    %136 = vector.broadcast %135 : vector<16x1xf32> to vector<16x32xf32>
    %137 = arith.mulf %126, %136 : vector<16x32xf32>
    %138 = vector.broadcast %119 : vector<1x32xf32> to vector<16x32xf32>
    %139 = arith.mulf %138, %137 : vector<16x32xf32>
    %140 = vector.broadcast %120 : vector<1x32xf32> to vector<16x32xf32>
    %141 = arith.addf %139, %140 : vector<16x32xf32>
    %c96 = arith.constant 96 : index
    %c0_50 = arith.constant 0 : index
    %142 = vector.load %arg5[%c96, %c0_50] : memref<1048x512xf32, #tpu.memory_space<vmem>>, vector<32x64xf32>
    %cst_51 = arith.constant dense<0.000000e+00> : vector<16x64xf32>
    %143 = tpu.matmul %141, %142, %cst_51 {dimension_numbers = #tpu.dot_dimension_numbers<[1], [0], [0], [1], [0, 0, 1, 1], [], []>} : vector<16x32xf32>, vector<32x64xf32>, vector<16x64xf32> -> vector<16x64xf32>
    %c995 = arith.constant 995 : index
    %c0_52 = arith.constant 0 : index
    %144 = vector.load %arg5[%c995, %c0_52] : memref<1048x512xf32, #tpu.memory_space<vmem>>, vector<1x64xf32>
    %145 = vector.broadcast %144 : vector<1x64xf32> to vector<16x64xf32>
    %146 = arith.addf %143, %145 : vector<16x64xf32>
    %cst_53 = arith.constant 0.000000e+00 : f32
    %147 = vector.broadcast %cst_53 : f32 to vector<16x64xf32>
    %148 = arith.maximumf %146, %147 : vector<16x64xf32>
    %c128 = arith.constant 128 : index
    %c0_54 = arith.constant 0 : index
    %149 = vector.load %arg5[%c128, %c0_54] : memref<1048x512xf32, #tpu.memory_space<vmem>>, vector<64x32xf32>
    %cst_55 = arith.constant dense<0.000000e+00> : vector<16x32xf32>
    %150 = tpu.matmul %148, %149, %cst_55 {dimension_numbers = #tpu.dot_dimension_numbers<[1], [0], [0], [1], [0, 0, 1, 1], [], []>} : vector<16x64xf32>, vector<64x32xf32>, vector<16x32xf32> -> vector<16x32xf32>
    %c996 = arith.constant 996 : index
    %c0_56 = arith.constant 0 : index
    %151 = vector.load %arg5[%c996, %c0_56] : memref<1048x512xf32, #tpu.memory_space<vmem>>, vector<1x32xf32>
    %152 = vector.broadcast %151 : vector<1x32xf32> to vector<16x32xf32>
    %153 = arith.addf %150, %152 : vector<16x32xf32>
    %154 = arith.addf %118, %153 : vector<16x32xf32>
    %c1006 = arith.constant 1006 : index
    %c0_57 = arith.constant 0 : index
    %155 = vector.load %arg5[%c1006, %c0_57] : memref<1048x512xf32, #tpu.memory_space<vmem>>, vector<1x32xf32>
    %c1007 = arith.constant 1007 : index
    %c0_58 = arith.constant 0 : index
    %156 = vector.load %arg5[%c1007, %c0_58] : memref<1048x512xf32, #tpu.memory_space<vmem>>, vector<1x32xf32>
    %cst_59 = arith.constant dense<0.000000e+00> : vector<16xf32>
    %157 = vector.multi_reduction <add>, %154, %cst_59 [1] : vector<16x32xf32> to vector<16xf32>
    %158 = vector.shape_cast %157 : vector<16xf32> to vector<16x1xf32>
    %cst_60 = arith.constant 3.200000e+01 : f32
    %159 = vector.broadcast %cst_60 : f32 to vector<16x1xf32>
    %160 = arith.divf %158, %159 : vector<16x1xf32>
    %161 = vector.broadcast %160 : vector<16x1xf32> to vector<16x32xf32>
    %162 = arith.subf %154, %161 : vector<16x32xf32>
    %163 = arith.mulf %162, %162 : vector<16x32xf32>
    %cst_61 = arith.constant dense<0.000000e+00> : vector<16xf32>
    %164 = vector.multi_reduction <add>, %163, %cst_61 [1] : vector<16x32xf32> to vector<16xf32>
    %165 = vector.shape_cast %164 : vector<16xf32> to vector<16x1xf32>
    %cst_62 = arith.constant 0.0322580636 : f32
    %166 = vector.broadcast %cst_62 : f32 to vector<16x1xf32>
    %167 = arith.mulf %165, %166 : vector<16x1xf32>
    %168 = math.sqrt %167 : vector<16x1xf32>
    %cst_63 = arith.constant 9.99999997E-7 : f32
    %169 = vector.broadcast %cst_63 : f32 to vector<16x1xf32>
    %170 = arith.addf %168, %169 : vector<16x1xf32>
    %171 = tpu.reciprocal %170 : vector<16x1xf32> -> vector<16x1xf32>
    %172 = vector.broadcast %171 : vector<16x1xf32> to vector<16x32xf32>
    %173 = arith.mulf %162, %172 : vector<16x32xf32>
    %174 = vector.broadcast %155 : vector<1x32xf32> to vector<16x32xf32>
    %175 = arith.mulf %174, %173 : vector<16x32xf32>
    %176 = vector.broadcast %156 : vector<1x32xf32> to vector<16x32xf32>
    %177 = arith.addf %175, %176 : vector<16x32xf32>
    %c192 = arith.constant 192 : index
    %c0_64 = arith.constant 0 : index
    %178 = vector.load %arg5[%c192, %c0_64] : memref<1048x512xf32, #tpu.memory_space<vmem>>, vector<32x512xf32>
    %cst_65 = arith.constant dense<0.000000e+00> : vector<16x512xf32>
    %179 = tpu.matmul %177, %178, %cst_65 {dimension_numbers = #tpu.dot_dimension_numbers<[1], [0], [0], [1], [0, 0, 1, 1], [], []>} : vector<16x32xf32>, vector<32x512xf32>, vector<16x512xf32> -> vector<16x512xf32>
    %c1001 = arith.constant 1001 : index
    %c0_66 = arith.constant 0 : index
    %180 = vector.load %arg5[%c1001, %c0_66] : memref<1048x512xf32, #tpu.memory_space<vmem>>, vector<1x512xf32>
    %181 = vector.broadcast %180 : vector<1x512xf32> to vector<16x512xf32>
    %182 = arith.addf %179, %181 : vector<16x512xf32>
    %c224 = arith.constant 224 : index
    %c0_67 = arith.constant 0 : index
    %183 = vector.load %arg5[%c224, %c0_67] : memref<1048x512xf32, #tpu.memory_space<vmem>>, vector<32x512xf32>
    %cst_68 = arith.constant dense<0.000000e+00> : vector<16x512xf32>
    %184 = tpu.matmul %177, %183, %cst_68 {dimension_numbers = #tpu.dot_dimension_numbers<[1], [0], [0], [1], [0, 0, 1, 1], [], []>} : vector<16x32xf32>, vector<32x512xf32>, vector<16x512xf32> -> vector<16x512xf32>
    %c1002 = arith.constant 1002 : index
    %c0_69 = arith.constant 0 : index
    %185 = vector.load %arg5[%c1002, %c0_69] : memref<1048x512xf32, #tpu.memory_space<vmem>>, vector<1x512xf32>
    %186 = vector.broadcast %185 : vector<1x512xf32> to vector<16x512xf32>
    %187 = arith.addf %184, %186 : vector<16x512xf32>
    %c256 = arith.constant 256 : index
    %c0_70 = arith.constant 0 : index
    %188 = vector.load %arg5[%c256, %c0_70] : memref<1048x512xf32, #tpu.memory_space<vmem>>, vector<32x512xf32>
    %cst_71 = arith.constant dense<0.000000e+00> : vector<16x512xf32>
    %189 = tpu.matmul %177, %188, %cst_71 {dimension_numbers = #tpu.dot_dimension_numbers<[1], [0], [0], [1], [0, 0, 1, 1], [], []>} : vector<16x32xf32>, vector<32x512xf32>, vector<16x512xf32> -> vector<16x512xf32>
    %190 = vector.extract_strided_slice %182 {offsets = [0, 0], sizes = [16, 128], strides = [1, 1]} : vector<16x512xf32> to vector<16x128xf32>
    %191 = vector.extract_strided_slice %187 {offsets = [0, 0], sizes = [16, 128], strides = [1, 1]} : vector<16x512xf32> to vector<16x128xf32>
    %192 = vector.extract_strided_slice %189 {offsets = [0, 0], sizes = [16, 128], strides = [1, 1]} : vector<16x512xf32> to vector<16x128xf32>
    %cst_72 = arith.constant dense<0.000000e+00> : vector<16x16xf32>
    %193 = tpu.matmul %190, %191, %cst_72 {dimension_numbers = #tpu.dot_dimension_numbers<[1], [1], [0], [0], [0, 0, 1, 0], [], []>} : vector<16x128xf32>, vector<16x128xf32>, vector<16x16xf32> -> vector<16x16xf32>
    %cst_73 = arith.constant 0.353553385 : f32
    %194 = vector.broadcast %cst_73 : f32 to vector<16x16xf32>
    %195 = arith.mulf %193, %194 : vector<16x16xf32>
    %196 = arith.addf %195, %0 : vector<16x16xf32>
    %cst_74 = arith.constant dense<0xFF800000> : vector<16xf32>
    %197 = vector.multi_reduction <maximumf>, %196, %cst_74 [1] : vector<16x16xf32> to vector<16xf32>
    %198 = vector.shape_cast %197 : vector<16xf32> to vector<16x1xf32>
    %199 = vector.broadcast %198 : vector<16x1xf32> to vector<16x16xf32>
    %200 = arith.subf %196, %199 : vector<16x16xf32>
    %201 = math.exp %200 : vector<16x16xf32>
    %cst_75 = arith.constant dense<0.000000e+00> : vector<16xf32>
    %202 = vector.multi_reduction <add>, %201, %cst_75 [1] : vector<16x16xf32> to vector<16xf32>
    %203 = vector.shape_cast %202 : vector<16xf32> to vector<16x1xf32>
    %204 = tpu.reciprocal %203 {approx = true} : vector<16x1xf32> -> vector<16x1xf32>
    %205 = vector.broadcast %204 : vector<16x1xf32> to vector<16x16xf32>
    %206 = arith.mulf %201, %205 : vector<16x16xf32>
    %cst_76 = arith.constant dense<0.000000e+00> : vector<16x128xf32>
    %207 = tpu.matmul %206, %192, %cst_76 {dimension_numbers = #tpu.dot_dimension_numbers<[1], [0], [0], [1], [0, 0, 1, 1], [], []>} : vector<16x16xf32>, vector<16x128xf32>, vector<16x128xf32> -> vector<16x128xf32>
    %208 = vector.extract_strided_slice %182 {offsets = [0, 128], sizes = [16, 128], strides = [1, 1]} : vector<16x512xf32> to vector<16x128xf32>
    %209 = vector.extract_strided_slice %187 {offsets = [0, 128], sizes = [16, 128], strides = [1, 1]} : vector<16x512xf32> to vector<16x128xf32>
    %210 = vector.extract_strided_slice %189 {offsets = [0, 128], sizes = [16, 128], strides = [1, 1]} : vector<16x512xf32> to vector<16x128xf32>
    %cst_77 = arith.constant dense<0.000000e+00> : vector<16x16xf32>
    %211 = tpu.matmul %208, %209, %cst_77 {dimension_numbers = #tpu.dot_dimension_numbers<[1], [1], [0], [0], [0, 0, 1, 0], [], []>} : vector<16x128xf32>, vector<16x128xf32>, vector<16x16xf32> -> vector<16x16xf32>
    %cst_78 = arith.constant 0.353553385 : f32
    %212 = vector.broadcast %cst_78 : f32 to vector<16x16xf32>
    %213 = arith.mulf %211, %212 : vector<16x16xf32>
    %214 = arith.addf %213, %0 : vector<16x16xf32>
    %cst_79 = arith.constant dense<0xFF800000> : vector<16xf32>
    %215 = vector.multi_reduction <maximumf>, %214, %cst_79 [1] : vector<16x16xf32> to vector<16xf32>
    %216 = vector.shape_cast %215 : vector<16xf32> to vector<16x1xf32>
    %217 = vector.broadcast %216 : vector<16x1xf32> to vector<16x16xf32>
    %218 = arith.subf %214, %217 : vector<16x16xf32>
    %219 = math.exp %218 : vector<16x16xf32>
    %cst_80 = arith.constant dense<0.000000e+00> : vector<16xf32>
    %220 = vector.multi_reduction <add>, %219, %cst_80 [1] : vector<16x16xf32> to vector<16xf32>
    %221 = vector.shape_cast %220 : vector<16xf32> to vector<16x1xf32>
    %222 = tpu.reciprocal %221 {approx = true} : vector<16x1xf32> -> vector<16x1xf32>
    %223 = vector.broadcast %222 : vector<16x1xf32> to vector<16x16xf32>
    %224 = arith.mulf %219, %223 : vector<16x16xf32>
    %cst_81 = arith.constant dense<0.000000e+00> : vector<16x128xf32>
    %225 = tpu.matmul %224, %210, %cst_81 {dimension_numbers = #tpu.dot_dimension_numbers<[1], [0], [0], [1], [0, 0, 1, 1], [], []>} : vector<16x16xf32>, vector<16x128xf32>, vector<16x128xf32> -> vector<16x128xf32>
    %226 = arith.addf %207, %225 : vector<16x128xf32>
    %227 = vector.extract_strided_slice %182 {offsets = [0, 256], sizes = [16, 128], strides = [1, 1]} : vector<16x512xf32> to vector<16x128xf32>
    %228 = vector.extract_strided_slice %187 {offsets = [0, 256], sizes = [16, 128], strides = [1, 1]} : vector<16x512xf32> to vector<16x128xf32>
    %229 = vector.extract_strided_slice %189 {offsets = [0, 256], sizes = [16, 128], strides = [1, 1]} : vector<16x512xf32> to vector<16x128xf32>
    %cst_82 = arith.constant dense<0.000000e+00> : vector<16x16xf32>
    %230 = tpu.matmul %227, %228, %cst_82 {dimension_numbers = #tpu.dot_dimension_numbers<[1], [1], [0], [0], [0, 0, 1, 0], [], []>} : vector<16x128xf32>, vector<16x128xf32>, vector<16x16xf32> -> vector<16x16xf32>
    %cst_83 = arith.constant 0.353553385 : f32
    %231 = vector.broadcast %cst_83 : f32 to vector<16x16xf32>
    %232 = arith.mulf %230, %231 : vector<16x16xf32>
    %233 = arith.addf %232, %0 : vector<16x16xf32>
    %cst_84 = arith.constant dense<0xFF800000> : vector<16xf32>
    %234 = vector.multi_reduction <maximumf>, %233, %cst_84 [1] : vector<16x16xf32> to vector<16xf32>
    %235 = vector.shape_cast %234 : vector<16xf32> to vector<16x1xf32>
    %236 = vector.broadcast %235 : vector<16x1xf32> to vector<16x16xf32>
    %237 = arith.subf %233, %236 : vector<16x16xf32>
    %238 = math.exp %237 : vector<16x16xf32>
    %cst_85 = arith.constant dense<0.000000e+00> : vector<16xf32>
    %239 = vector.multi_reduction <add>, %238, %cst_85 [1] : vector<16x16xf32> to vector<16xf32>
    %240 = vector.shape_cast %239 : vector<16xf32> to vector<16x1xf32>
    %241 = tpu.reciprocal %240 {approx = true} : vector<16x1xf32> -> vector<16x1xf32>
    %242 = vector.broadcast %241 : vector<16x1xf32> to vector<16x16xf32>
    %243 = arith.mulf %238, %242 : vector<16x16xf32>
    %cst_86 = arith.constant dense<0.000000e+00> : vector<16x128xf32>
    %244 = tpu.matmul %243, %229, %cst_86 {dimension_numbers = #tpu.dot_dimension_numbers<[1], [0], [0], [1], [0, 0, 1, 1], [], []>} : vector<16x16xf32>, vector<16x128xf32>, vector<16x128xf32> -> vector<16x128xf32>
    %245 = arith.addf %226, %244 : vector<16x128xf32>
    %246 = vector.extract_strided_slice %182 {offsets = [0, 384], sizes = [16, 128], strides = [1, 1]} : vector<16x512xf32> to vector<16x128xf32>
    %247 = vector.extract_strided_slice %187 {offsets = [0, 384], sizes = [16, 128], strides = [1, 1]} : vector<16x512xf32> to vector<16x128xf32>
    %248 = vector.extract_strided_slice %189 {offsets = [0, 384], sizes = [16, 128], strides = [1, 1]} : vector<16x512xf32> to vector<16x128xf32>
    %cst_87 = arith.constant dense<0.000000e+00> : vector<16x16xf32>
    %249 = tpu.matmul %246, %247, %cst_87 {dimension_numbers = #tpu.dot_dimension_numbers<[1], [1], [0], [0], [0, 0, 1, 0], [], []>} : vector<16x128xf32>, vector<16x128xf32>, vector<16x16xf32> -> vector<16x16xf32>
    %cst_88 = arith.constant 0.353553385 : f32
    %250 = vector.broadcast %cst_88 : f32 to vector<16x16xf32>
    %251 = arith.mulf %249, %250 : vector<16x16xf32>
    %252 = arith.addf %251, %0 : vector<16x16xf32>
    %cst_89 = arith.constant dense<0xFF800000> : vector<16xf32>
    %253 = vector.multi_reduction <maximumf>, %252, %cst_89 [1] : vector<16x16xf32> to vector<16xf32>
    %254 = vector.shape_cast %253 : vector<16xf32> to vector<16x1xf32>
    %255 = vector.broadcast %254 : vector<16x1xf32> to vector<16x16xf32>
    %256 = arith.subf %252, %255 : vector<16x16xf32>
    %257 = math.exp %256 : vector<16x16xf32>
    %cst_90 = arith.constant dense<0.000000e+00> : vector<16xf32>
    %258 = vector.multi_reduction <add>, %257, %cst_90 [1] : vector<16x16xf32> to vector<16xf32>
    %259 = vector.shape_cast %258 : vector<16xf32> to vector<16x1xf32>
    %260 = tpu.reciprocal %259 {approx = true} : vector<16x1xf32> -> vector<16x1xf32>
    %261 = vector.broadcast %260 : vector<16x1xf32> to vector<16x16xf32>
    %262 = arith.mulf %257, %261 : vector<16x16xf32>
    %cst_91 = arith.constant dense<0.000000e+00> : vector<16x128xf32>
    %263 = tpu.matmul %262, %248, %cst_91 {dimension_numbers = #tpu.dot_dimension_numbers<[1], [0], [0], [1], [0, 0, 1, 1], [], []>} : vector<16x16xf32>, vector<16x128xf32>, vector<16x128xf32> -> vector<16x128xf32>
    %264 = arith.addf %245, %263 : vector<16x128xf32>
    %265 = vector.extract_strided_slice %264 {offsets = [0, 0], sizes = [16, 32], strides = [1, 1]} : vector<16x128xf32> to vector<16x32xf32>
    %c1003 = arith.constant 1003 : index
    %c0_92 = arith.constant 0 : index
    %266 = vector.load %arg5[%c1003, %c0_92] : memref<1048x512xf32, #tpu.memory_space<vmem>>, vector<1x32xf32>
    %267 = vector.broadcast %266 : vector<1x32xf32> to vector<16x32xf32>
    %268 = arith.addf %265, %267 : vector<16x32xf32>
    %269 = arith.addf %154, %268 : vector<16x32xf32>
    %c1008 = arith.constant 1008 : index
    %c0_93 = arith.constant 0 : index
    %270 = vector.load %arg5[%c1008, %c0_93] : memref<1048x512xf32, #tpu.memory_space<vmem>>, vector<1x32xf32>
    %c1009 = arith.constant 1009 : index
    %c0_94 = arith.constant 0 : index
    %271 = vector.load %arg5[%c1009, %c0_94] : memref<1048x512xf32, #tpu.memory_space<vmem>>, vector<1x32xf32>
    %cst_95 = arith.constant dense<0.000000e+00> : vector<16xf32>
    %272 = vector.multi_reduction <add>, %269, %cst_95 [1] : vector<16x32xf32> to vector<16xf32>
    %273 = vector.shape_cast %272 : vector<16xf32> to vector<16x1xf32>
    %cst_96 = arith.constant 3.200000e+01 : f32
    %274 = vector.broadcast %cst_96 : f32 to vector<16x1xf32>
    %275 = arith.divf %273, %274 : vector<16x1xf32>
    %276 = vector.broadcast %275 : vector<16x1xf32> to vector<16x32xf32>
    %277 = arith.subf %269, %276 : vector<16x32xf32>
    %278 = arith.mulf %277, %277 : vector<16x32xf32>
    %cst_97 = arith.constant dense<0.000000e+00> : vector<16xf32>
    %279 = vector.multi_reduction <add>, %278, %cst_97 [1] : vector<16x32xf32> to vector<16xf32>
    %280 = vector.shape_cast %279 : vector<16xf32> to vector<16x1xf32>
    %cst_98 = arith.constant 0.0322580636 : f32
    %281 = vector.broadcast %cst_98 : f32 to vector<16x1xf32>
    %282 = arith.mulf %280, %281 : vector<16x1xf32>
    %283 = math.sqrt %282 : vector<16x1xf32>
    %cst_99 = arith.constant 9.99999997E-7 : f32
    %284 = vector.broadcast %cst_99 : f32 to vector<16x1xf32>
    %285 = arith.addf %283, %284 : vector<16x1xf32>
    %286 = tpu.reciprocal %285 : vector<16x1xf32> -> vector<16x1xf32>
    %287 = vector.broadcast %286 : vector<16x1xf32> to vector<16x32xf32>
    %288 = arith.mulf %277, %287 : vector<16x32xf32>
    %289 = vector.broadcast %270 : vector<1x32xf32> to vector<16x32xf32>
    %290 = arith.mulf %289, %288 : vector<16x32xf32>
    %291 = vector.broadcast %271 : vector<1x32xf32> to vector<16x32xf32>
    %292 = arith.addf %290, %291 : vector<16x32xf32>
    %c288 = arith.constant 288 : index
    %c0_100 = arith.constant 0 : index
    %293 = vector.load %arg5[%c288, %c0_100] : memref<1048x512xf32, #tpu.memory_space<vmem>>, vector<32x64xf32>
    %cst_101 = arith.constant dense<0.000000e+00> : vector<16x64xf32>
    %294 = tpu.matmul %292, %293, %cst_101 {dimension_numbers = #tpu.dot_dimension_numbers<[1], [0], [0], [1], [0, 0, 1, 1], [], []>} : vector<16x32xf32>, vector<32x64xf32>, vector<16x64xf32> -> vector<16x64xf32>
    %c1004 = arith.constant 1004 : index
    %c0_102 = arith.constant 0 : index
    %295 = vector.load %arg5[%c1004, %c0_102] : memref<1048x512xf32, #tpu.memory_space<vmem>>, vector<1x64xf32>
    %296 = vector.broadcast %295 : vector<1x64xf32> to vector<16x64xf32>
    %297 = arith.addf %294, %296 : vector<16x64xf32>
    %cst_103 = arith.constant 0.000000e+00 : f32
    %298 = vector.broadcast %cst_103 : f32 to vector<16x64xf32>
    %299 = arith.maximumf %297, %298 : vector<16x64xf32>
    %c320 = arith.constant 320 : index
    %c0_104 = arith.constant 0 : index
    %300 = vector.load %arg5[%c320, %c0_104] : memref<1048x512xf32, #tpu.memory_space<vmem>>, vector<64x32xf32>
    %cst_105 = arith.constant dense<0.000000e+00> : vector<16x32xf32>
    %301 = tpu.matmul %299, %300, %cst_105 {dimension_numbers = #tpu.dot_dimension_numbers<[1], [0], [0], [1], [0, 0, 1, 1], [], []>} : vector<16x64xf32>, vector<64x32xf32>, vector<16x32xf32> -> vector<16x32xf32>
    %c1005 = arith.constant 1005 : index
    %c0_106 = arith.constant 0 : index
    %302 = vector.load %arg5[%c1005, %c0_106] : memref<1048x512xf32, #tpu.memory_space<vmem>>, vector<1x32xf32>
    %303 = vector.broadcast %302 : vector<1x32xf32> to vector<16x32xf32>
    %304 = arith.addf %301, %303 : vector<16x32xf32>
    %305 = arith.addf %269, %304 : vector<16x32xf32>
    %c1010 = arith.constant 1010 : index
    %c0_107 = arith.constant 0 : index
    %306 = vector.load %arg5[%c1010, %c0_107] : memref<1048x512xf32, #tpu.memory_space<vmem>>, vector<1x32xf32>
    %c1011 = arith.constant 1011 : index
    %c0_108 = arith.constant 0 : index
    %307 = vector.load %arg5[%c1011, %c0_108] : memref<1048x512xf32, #tpu.memory_space<vmem>>, vector<1x32xf32>
    %cst_109 = arith.constant dense<0.000000e+00> : vector<16xf32>
    %308 = vector.multi_reduction <add>, %305, %cst_109 [1] : vector<16x32xf32> to vector<16xf32>
    %309 = vector.shape_cast %308 : vector<16xf32> to vector<16x1xf32>
    %cst_110 = arith.constant 3.200000e+01 : f32
    %310 = vector.broadcast %cst_110 : f32 to vector<16x1xf32>
    %311 = arith.divf %309, %310 : vector<16x1xf32>
    %312 = vector.broadcast %311 : vector<16x1xf32> to vector<16x32xf32>
    %313 = arith.subf %305, %312 : vector<16x32xf32>
    %314 = arith.mulf %313, %313 : vector<16x32xf32>
    %cst_111 = arith.constant dense<0.000000e+00> : vector<16xf32>
    %315 = vector.multi_reduction <add>, %314, %cst_111 [1] : vector<16x32xf32> to vector<16xf32>
    %316 = vector.shape_cast %315 : vector<16xf32> to vector<16x1xf32>
    %cst_112 = arith.constant 0.0322580636 : f32
    %317 = vector.broadcast %cst_112 : f32 to vector<16x1xf32>
    %318 = arith.mulf %316, %317 : vector<16x1xf32>
    %319 = math.sqrt %318 : vector<16x1xf32>
    %cst_113 = arith.constant 9.99999997E-7 : f32
    %320 = vector.broadcast %cst_113 : f32 to vector<16x1xf32>
    %321 = arith.addf %319, %320 : vector<16x1xf32>
    %322 = tpu.reciprocal %321 : vector<16x1xf32> -> vector<16x1xf32>
    %323 = vector.broadcast %322 : vector<16x1xf32> to vector<16x32xf32>
    %324 = arith.mulf %313, %323 : vector<16x32xf32>
    %325 = vector.broadcast %306 : vector<1x32xf32> to vector<16x32xf32>
    %326 = arith.mulf %325, %324 : vector<16x32xf32>
    %327 = vector.broadcast %307 : vector<1x32xf32> to vector<16x32xf32>
    %328 = arith.addf %326, %327 : vector<16x32xf32>
    %c0_114 = arith.constant 0 : index
    %c0_115 = arith.constant 0 : index
    %329 = vector.load %arg1[%c0_114, %c0_115] : memref<16x32xf32, #tpu.memory_space<vmem>>, vector<16x32xf32>
    %c1020 = arith.constant 1020 : index
    %c0_116 = arith.constant 0 : index
    %330 = vector.load %arg5[%c1020, %c0_116] : memref<1048x512xf32, #tpu.memory_space<vmem>>, vector<1x32xf32>
    %c1021 = arith.constant 1021 : index
    %c0_117 = arith.constant 0 : index
    %331 = vector.load %arg5[%c1021, %c0_117] : memref<1048x512xf32, #tpu.memory_space<vmem>>, vector<1x32xf32>
    %cst_118 = arith.constant dense<0.000000e+00> : vector<16xf32>
    %332 = vector.multi_reduction <add>, %329, %cst_118 [1] : vector<16x32xf32> to vector<16xf32>
    %333 = vector.shape_cast %332 : vector<16xf32> to vector<16x1xf32>
    %cst_119 = arith.constant 3.200000e+01 : f32
    %334 = vector.broadcast %cst_119 : f32 to vector<16x1xf32>
    %335 = arith.divf %333, %334 : vector<16x1xf32>
    %336 = vector.broadcast %335 : vector<16x1xf32> to vector<16x32xf32>
    %337 = arith.subf %329, %336 : vector<16x32xf32>
    %338 = arith.mulf %337, %337 : vector<16x32xf32>
    %cst_120 = arith.constant dense<0.000000e+00> : vector<16xf32>
    %339 = vector.multi_reduction <add>, %338, %cst_120 [1] : vector<16x32xf32> to vector<16xf32>
    %340 = vector.shape_cast %339 : vector<16xf32> to vector<16x1xf32>
    %cst_121 = arith.constant 0.0322580636 : f32
    %341 = vector.broadcast %cst_121 : f32 to vector<16x1xf32>
    %342 = arith.mulf %340, %341 : vector<16x1xf32>
    %343 = math.sqrt %342 : vector<16x1xf32>
    %cst_122 = arith.constant 9.99999997E-7 : f32
    %344 = vector.broadcast %cst_122 : f32 to vector<16x1xf32>
    %345 = arith.addf %343, %344 : vector<16x1xf32>
    %346 = tpu.reciprocal %345 : vector<16x1xf32> -> vector<16x1xf32>
    %347 = vector.broadcast %346 : vector<16x1xf32> to vector<16x32xf32>
    %348 = arith.mulf %337, %347 : vector<16x32xf32>
    %349 = vector.broadcast %330 : vector<1x32xf32> to vector<16x32xf32>
    %350 = arith.mulf %349, %348 : vector<16x32xf32>
    %351 = vector.broadcast %331 : vector<1x32xf32> to vector<16x32xf32>
    %352 = arith.addf %350, %351 : vector<16x32xf32>
    %c384 = arith.constant 384 : index
    %c0_123 = arith.constant 0 : index
    %353 = vector.load %arg5[%c384, %c0_123] : memref<1048x512xf32, #tpu.memory_space<vmem>>, vector<32x512xf32>
    %cst_124 = arith.constant dense<0.000000e+00> : vector<16x512xf32>
    %354 = tpu.matmul %352, %353, %cst_124 {dimension_numbers = #tpu.dot_dimension_numbers<[1], [0], [0], [1], [0, 0, 1, 1], [], []>} : vector<16x32xf32>, vector<32x512xf32>, vector<16x512xf32> -> vector<16x512xf32>
    %c1012 = arith.constant 1012 : index
    %c0_125 = arith.constant 0 : index
    %355 = vector.load %arg5[%c1012, %c0_125] : memref<1048x512xf32, #tpu.memory_space<vmem>>, vector<1x512xf32>
    %356 = vector.broadcast %355 : vector<1x512xf32> to vector<16x512xf32>
    %357 = arith.addf %354, %356 : vector<16x512xf32>
    %c416 = arith.constant 416 : index
    %c0_126 = arith.constant 0 : index
    %358 = vector.load %arg5[%c416, %c0_126] : memref<1048x512xf32, #tpu.memory_space<vmem>>, vector<32x512xf32>
    %cst_127 = arith.constant dense<0.000000e+00> : vector<16x512xf32>
    %359 = tpu.matmul %352, %358, %cst_127 {dimension_numbers = #tpu.dot_dimension_numbers<[1], [0], [0], [1], [0, 0, 1, 1], [], []>} : vector<16x32xf32>, vector<32x512xf32>, vector<16x512xf32> -> vector<16x512xf32>
    %c1013 = arith.constant 1013 : index
    %c0_128 = arith.constant 0 : index
    %360 = vector.load %arg5[%c1013, %c0_128] : memref<1048x512xf32, #tpu.memory_space<vmem>>, vector<1x512xf32>
    %361 = vector.broadcast %360 : vector<1x512xf32> to vector<16x512xf32>
    %362 = arith.addf %359, %361 : vector<16x512xf32>
    %c448 = arith.constant 448 : index
    %c0_129 = arith.constant 0 : index
    %363 = vector.load %arg5[%c448, %c0_129] : memref<1048x512xf32, #tpu.memory_space<vmem>>, vector<32x512xf32>
    %cst_130 = arith.constant dense<0.000000e+00> : vector<16x512xf32>
    %364 = tpu.matmul %352, %363, %cst_130 {dimension_numbers = #tpu.dot_dimension_numbers<[1], [0], [0], [1], [0, 0, 1, 1], [], []>} : vector<16x32xf32>, vector<32x512xf32>, vector<16x512xf32> -> vector<16x512xf32>
    %365 = vector.extract_strided_slice %357 {offsets = [0, 0], sizes = [16, 128], strides = [1, 1]} : vector<16x512xf32> to vector<16x128xf32>
    %366 = vector.extract_strided_slice %362 {offsets = [0, 0], sizes = [16, 128], strides = [1, 1]} : vector<16x512xf32> to vector<16x128xf32>
    %367 = vector.extract_strided_slice %364 {offsets = [0, 0], sizes = [16, 128], strides = [1, 1]} : vector<16x512xf32> to vector<16x128xf32>
    %cst_131 = arith.constant dense<0.000000e+00> : vector<16x16xf32>
    %368 = tpu.matmul %365, %366, %cst_131 {dimension_numbers = #tpu.dot_dimension_numbers<[1], [1], [0], [0], [0, 0, 1, 0], [], []>} : vector<16x128xf32>, vector<16x128xf32>, vector<16x16xf32> -> vector<16x16xf32>
    %cst_132 = arith.constant 0.353553385 : f32
    %369 = vector.broadcast %cst_132 : f32 to vector<16x16xf32>
    %370 = arith.mulf %368, %369 : vector<16x16xf32>
    %371 = arith.addf %370, %1 : vector<16x16xf32>
    %cst_133 = arith.constant dense<0xFF800000> : vector<16xf32>
    %372 = vector.multi_reduction <maximumf>, %371, %cst_133 [1] : vector<16x16xf32> to vector<16xf32>
    %373 = vector.shape_cast %372 : vector<16xf32> to vector<16x1xf32>
    %374 = vector.broadcast %373 : vector<16x1xf32> to vector<16x16xf32>
    %375 = arith.subf %371, %374 : vector<16x16xf32>
    %376 = math.exp %375 : vector<16x16xf32>
    %cst_134 = arith.constant dense<0.000000e+00> : vector<16xf32>
    %377 = vector.multi_reduction <add>, %376, %cst_134 [1] : vector<16x16xf32> to vector<16xf32>
    %378 = vector.shape_cast %377 : vector<16xf32> to vector<16x1xf32>
    %379 = tpu.reciprocal %378 {approx = true} : vector<16x1xf32> -> vector<16x1xf32>
    %380 = vector.broadcast %379 : vector<16x1xf32> to vector<16x16xf32>
    %381 = arith.mulf %376, %380 : vector<16x16xf32>
    %cst_135 = arith.constant dense<0.000000e+00> : vector<16x128xf32>
    %382 = tpu.matmul %381, %367, %cst_135 {dimension_numbers = #tpu.dot_dimension_numbers<[1], [0], [0], [1], [0, 0, 1, 1], [], []>} : vector<16x16xf32>, vector<16x128xf32>, vector<16x128xf32> -> vector<16x128xf32>
    %383 = vector.extract_strided_slice %357 {offsets = [0, 128], sizes = [16, 128], strides = [1, 1]} : vector<16x512xf32> to vector<16x128xf32>
    %384 = vector.extract_strided_slice %362 {offsets = [0, 128], sizes = [16, 128], strides = [1, 1]} : vector<16x512xf32> to vector<16x128xf32>
    %385 = vector.extract_strided_slice %364 {offsets = [0, 128], sizes = [16, 128], strides = [1, 1]} : vector<16x512xf32> to vector<16x128xf32>
    %cst_136 = arith.constant dense<0.000000e+00> : vector<16x16xf32>
    %386 = tpu.matmul %383, %384, %cst_136 {dimension_numbers = #tpu.dot_dimension_numbers<[1], [1], [0], [0], [0, 0, 1, 0], [], []>} : vector<16x128xf32>, vector<16x128xf32>, vector<16x16xf32> -> vector<16x16xf32>
    %cst_137 = arith.constant 0.353553385 : f32
    %387 = vector.broadcast %cst_137 : f32 to vector<16x16xf32>
    %388 = arith.mulf %386, %387 : vector<16x16xf32>
    %389 = arith.addf %388, %1 : vector<16x16xf32>
    %cst_138 = arith.constant dense<0xFF800000> : vector<16xf32>
    %390 = vector.multi_reduction <maximumf>, %389, %cst_138 [1] : vector<16x16xf32> to vector<16xf32>
    %391 = vector.shape_cast %390 : vector<16xf32> to vector<16x1xf32>
    %392 = vector.broadcast %391 : vector<16x1xf32> to vector<16x16xf32>
    %393 = arith.subf %389, %392 : vector<16x16xf32>
    %394 = math.exp %393 : vector<16x16xf32>
    %cst_139 = arith.constant dense<0.000000e+00> : vector<16xf32>
    %395 = vector.multi_reduction <add>, %394, %cst_139 [1] : vector<16x16xf32> to vector<16xf32>
    %396 = vector.shape_cast %395 : vector<16xf32> to vector<16x1xf32>
    %397 = tpu.reciprocal %396 {approx = true} : vector<16x1xf32> -> vector<16x1xf32>
    %398 = vector.broadcast %397 : vector<16x1xf32> to vector<16x16xf32>
    %399 = arith.mulf %394, %398 : vector<16x16xf32>
    %cst_140 = arith.constant dense<0.000000e+00> : vector<16x128xf32>
    %400 = tpu.matmul %399, %385, %cst_140 {dimension_numbers = #tpu.dot_dimension_numbers<[1], [0], [0], [1], [0, 0, 1, 1], [], []>} : vector<16x16xf32>, vector<16x128xf32>, vector<16x128xf32> -> vector<16x128xf32>
    %401 = arith.addf %382, %400 : vector<16x128xf32>
    %402 = vector.extract_strided_slice %357 {offsets = [0, 256], sizes = [16, 128], strides = [1, 1]} : vector<16x512xf32> to vector<16x128xf32>
    %403 = vector.extract_strided_slice %362 {offsets = [0, 256], sizes = [16, 128], strides = [1, 1]} : vector<16x512xf32> to vector<16x128xf32>
    %404 = vector.extract_strided_slice %364 {offsets = [0, 256], sizes = [16, 128], strides = [1, 1]} : vector<16x512xf32> to vector<16x128xf32>
    %cst_141 = arith.constant dense<0.000000e+00> : vector<16x16xf32>
    %405 = tpu.matmul %402, %403, %cst_141 {dimension_numbers = #tpu.dot_dimension_numbers<[1], [1], [0], [0], [0, 0, 1, 0], [], []>} : vector<16x128xf32>, vector<16x128xf32>, vector<16x16xf32> -> vector<16x16xf32>
    %cst_142 = arith.constant 0.353553385 : f32
    %406 = vector.broadcast %cst_142 : f32 to vector<16x16xf32>
    %407 = arith.mulf %405, %406 : vector<16x16xf32>
    %408 = arith.addf %407, %1 : vector<16x16xf32>
    %cst_143 = arith.constant dense<0xFF800000> : vector<16xf32>
    %409 = vector.multi_reduction <maximumf>, %408, %cst_143 [1] : vector<16x16xf32> to vector<16xf32>
    %410 = vector.shape_cast %409 : vector<16xf32> to vector<16x1xf32>
    %411 = vector.broadcast %410 : vector<16x1xf32> to vector<16x16xf32>
    %412 = arith.subf %408, %411 : vector<16x16xf32>
    %413 = math.exp %412 : vector<16x16xf32>
    %cst_144 = arith.constant dense<0.000000e+00> : vector<16xf32>
    %414 = vector.multi_reduction <add>, %413, %cst_144 [1] : vector<16x16xf32> to vector<16xf32>
    %415 = vector.shape_cast %414 : vector<16xf32> to vector<16x1xf32>
    %416 = tpu.reciprocal %415 {approx = true} : vector<16x1xf32> -> vector<16x1xf32>
    %417 = vector.broadcast %416 : vector<16x1xf32> to vector<16x16xf32>
    %418 = arith.mulf %413, %417 : vector<16x16xf32>
    %cst_145 = arith.constant dense<0.000000e+00> : vector<16x128xf32>
    %419 = tpu.matmul %418, %404, %cst_145 {dimension_numbers = #tpu.dot_dimension_numbers<[1], [0], [0], [1], [0, 0, 1, 1], [], []>} : vector<16x16xf32>, vector<16x128xf32>, vector<16x128xf32> -> vector<16x128xf32>
    %420 = arith.addf %401, %419 : vector<16x128xf32>
    %421 = vector.extract_strided_slice %357 {offsets = [0, 384], sizes = [16, 128], strides = [1, 1]} : vector<16x512xf32> to vector<16x128xf32>
    %422 = vector.extract_strided_slice %362 {offsets = [0, 384], sizes = [16, 128], strides = [1, 1]} : vector<16x512xf32> to vector<16x128xf32>
    %423 = vector.extract_strided_slice %364 {offsets = [0, 384], sizes = [16, 128], strides = [1, 1]} : vector<16x512xf32> to vector<16x128xf32>
    %cst_146 = arith.constant dense<0.000000e+00> : vector<16x16xf32>
    %424 = tpu.matmul %421, %422, %cst_146 {dimension_numbers = #tpu.dot_dimension_numbers<[1], [1], [0], [0], [0, 0, 1, 0], [], []>} : vector<16x128xf32>, vector<16x128xf32>, vector<16x16xf32> -> vector<16x16xf32>
    %cst_147 = arith.constant 0.353553385 : f32
    %425 = vector.broadcast %cst_147 : f32 to vector<16x16xf32>
    %426 = arith.mulf %424, %425 : vector<16x16xf32>
    %427 = arith.addf %426, %1 : vector<16x16xf32>
    %cst_148 = arith.constant dense<0xFF800000> : vector<16xf32>
    %428 = vector.multi_reduction <maximumf>, %427, %cst_148 [1] : vector<16x16xf32> to vector<16xf32>
    %429 = vector.shape_cast %428 : vector<16xf32> to vector<16x1xf32>
    %430 = vector.broadcast %429 : vector<16x1xf32> to vector<16x16xf32>
    %431 = arith.subf %427, %430 : vector<16x16xf32>
    %432 = math.exp %431 : vector<16x16xf32>
    %cst_149 = arith.constant dense<0.000000e+00> : vector<16xf32>
    %433 = vector.multi_reduction <add>, %432, %cst_149 [1] : vector<16x16xf32> to vector<16xf32>
    %434 = vector.shape_cast %433 : vector<16xf32> to vector<16x1xf32>
    %435 = tpu.reciprocal %434 {approx = true} : vector<16x1xf32> -> vector<16x1xf32>
    %436 = vector.broadcast %435 : vector<16x1xf32> to vector<16x16xf32>
    %437 = arith.mulf %432, %436 : vector<16x16xf32>
    %cst_150 = arith.constant dense<0.000000e+00> : vector<16x128xf32>
    %438 = tpu.matmul %437, %423, %cst_150 {dimension_numbers = #tpu.dot_dimension_numbers<[1], [0], [0], [1], [0, 0, 1, 1], [], []>} : vector<16x16xf32>, vector<16x128xf32>, vector<16x128xf32> -> vector<16x128xf32>
    %439 = arith.addf %420, %438 : vector<16x128xf32>
    %440 = vector.extract_strided_slice %439 {offsets = [0, 0], sizes = [16, 32], strides = [1, 1]} : vector<16x128xf32> to vector<16x32xf32>
    %c1014 = arith.constant 1014 : index
    %c0_151 = arith.constant 0 : index
    %441 = vector.load %arg5[%c1014, %c0_151] : memref<1048x512xf32, #tpu.memory_space<vmem>>, vector<1x32xf32>
    %442 = vector.broadcast %441 : vector<1x32xf32> to vector<16x32xf32>
    %443 = arith.addf %440, %442 : vector<16x32xf32>
    %444 = arith.addf %329, %443 : vector<16x32xf32>
    %c1022 = arith.constant 1022 : index
    %c0_152 = arith.constant 0 : index
    %445 = vector.load %arg5[%c1022, %c0_152] : memref<1048x512xf32, #tpu.memory_space<vmem>>, vector<1x32xf32>
    %c1023 = arith.constant 1023 : index
    %c0_153 = arith.constant 0 : index
    %446 = vector.load %arg5[%c1023, %c0_153] : memref<1048x512xf32, #tpu.memory_space<vmem>>, vector<1x32xf32>
    %cst_154 = arith.constant dense<0.000000e+00> : vector<16xf32>
    %447 = vector.multi_reduction <add>, %444, %cst_154 [1] : vector<16x32xf32> to vector<16xf32>
    %448 = vector.shape_cast %447 : vector<16xf32> to vector<16x1xf32>
    %cst_155 = arith.constant 3.200000e+01 : f32
    %449 = vector.broadcast %cst_155 : f32 to vector<16x1xf32>
    %450 = arith.divf %448, %449 : vector<16x1xf32>
    %451 = vector.broadcast %450 : vector<16x1xf32> to vector<16x32xf32>
    %452 = arith.subf %444, %451 : vector<16x32xf32>
    %453 = arith.mulf %452, %452 : vector<16x32xf32>
    %cst_156 = arith.constant dense<0.000000e+00> : vector<16xf32>
    %454 = vector.multi_reduction <add>, %453, %cst_156 [1] : vector<16x32xf32> to vector<16xf32>
    %455 = vector.shape_cast %454 : vector<16xf32> to vector<16x1xf32>
    %cst_157 = arith.constant 0.0322580636 : f32
    %456 = vector.broadcast %cst_157 : f32 to vector<16x1xf32>
    %457 = arith.mulf %455, %456 : vector<16x1xf32>
    %458 = math.sqrt %457 : vector<16x1xf32>
    %cst_158 = arith.constant 9.99999997E-7 : f32
    %459 = vector.broadcast %cst_158 : f32 to vector<16x1xf32>
    %460 = arith.addf %458, %459 : vector<16x1xf32>
    %461 = tpu.reciprocal %460 : vector<16x1xf32> -> vector<16x1xf32>
    %462 = vector.broadcast %461 : vector<16x1xf32> to vector<16x32xf32>
    %463 = arith.mulf %452, %462 : vector<16x32xf32>
    %464 = vector.broadcast %445 : vector<1x32xf32> to vector<16x32xf32>
    %465 = arith.mulf %464, %463 : vector<16x32xf32>
    %466 = vector.broadcast %446 : vector<1x32xf32> to vector<16x32xf32>
    %467 = arith.addf %465, %466 : vector<16x32xf32>
    %c480 = arith.constant 480 : index
    %c0_159 = arith.constant 0 : index
    %468 = vector.load %arg5[%c480, %c0_159] : memref<1048x512xf32, #tpu.memory_space<vmem>>, vector<32x512xf32>
    %cst_160 = arith.constant dense<0.000000e+00> : vector<16x512xf32>
    %469 = tpu.matmul %467, %468, %cst_160 {dimension_numbers = #tpu.dot_dimension_numbers<[1], [0], [0], [1], [0, 0, 1, 1], [], []>} : vector<16x32xf32>, vector<32x512xf32>, vector<16x512xf32> -> vector<16x512xf32>
    %c1015 = arith.constant 1015 : index
    %c0_161 = arith.constant 0 : index
    %470 = vector.load %arg5[%c1015, %c0_161] : memref<1048x512xf32, #tpu.memory_space<vmem>>, vector<1x512xf32>
    %471 = vector.broadcast %470 : vector<1x512xf32> to vector<16x512xf32>
    %472 = arith.addf %469, %471 : vector<16x512xf32>
    %c512 = arith.constant 512 : index
    %c0_162 = arith.constant 0 : index
    %473 = vector.load %arg5[%c512, %c0_162] : memref<1048x512xf32, #tpu.memory_space<vmem>>, vector<32x512xf32>
    %cst_163 = arith.constant dense<0.000000e+00> : vector<16x512xf32>
    %474 = tpu.matmul %328, %473, %cst_163 {dimension_numbers = #tpu.dot_dimension_numbers<[1], [0], [0], [1], [0, 0, 1, 1], [], []>} : vector<16x32xf32>, vector<32x512xf32>, vector<16x512xf32> -> vector<16x512xf32>
    %c1016 = arith.constant 1016 : index
    %c0_164 = arith.constant 0 : index
    %475 = vector.load %arg5[%c1016, %c0_164] : memref<1048x512xf32, #tpu.memory_space<vmem>>, vector<1x512xf32>
    %476 = vector.broadcast %475 : vector<1x512xf32> to vector<16x512xf32>
    %477 = arith.addf %474, %476 : vector<16x512xf32>
    %c544 = arith.constant 544 : index
    %c0_165 = arith.constant 0 : index
    %478 = vector.load %arg5[%c544, %c0_165] : memref<1048x512xf32, #tpu.memory_space<vmem>>, vector<32x512xf32>
    %cst_166 = arith.constant dense<0.000000e+00> : vector<16x512xf32>
    %479 = tpu.matmul %328, %478, %cst_166 {dimension_numbers = #tpu.dot_dimension_numbers<[1], [0], [0], [1], [0, 0, 1, 1], [], []>} : vector<16x32xf32>, vector<32x512xf32>, vector<16x512xf32> -> vector<16x512xf32>
    %480 = vector.extract_strided_slice %472 {offsets = [0, 0], sizes = [16, 128], strides = [1, 1]} : vector<16x512xf32> to vector<16x128xf32>
    %481 = vector.extract_strided_slice %477 {offsets = [0, 0], sizes = [16, 128], strides = [1, 1]} : vector<16x512xf32> to vector<16x128xf32>
    %482 = vector.extract_strided_slice %479 {offsets = [0, 0], sizes = [16, 128], strides = [1, 1]} : vector<16x512xf32> to vector<16x128xf32>
    %cst_167 = arith.constant dense<0.000000e+00> : vector<16x16xf32>
    %483 = tpu.matmul %480, %481, %cst_167 {dimension_numbers = #tpu.dot_dimension_numbers<[1], [1], [0], [0], [0, 0, 1, 0], [], []>} : vector<16x128xf32>, vector<16x128xf32>, vector<16x16xf32> -> vector<16x16xf32>
    %cst_168 = arith.constant 0.353553385 : f32
    %484 = vector.broadcast %cst_168 : f32 to vector<16x16xf32>
    %485 = arith.mulf %483, %484 : vector<16x16xf32>
    %486 = arith.addf %485, %2 : vector<16x16xf32>
    %cst_169 = arith.constant dense<0xFF800000> : vector<16xf32>
    %487 = vector.multi_reduction <maximumf>, %486, %cst_169 [1] : vector<16x16xf32> to vector<16xf32>
    %488 = vector.shape_cast %487 : vector<16xf32> to vector<16x1xf32>
    %489 = vector.broadcast %488 : vector<16x1xf32> to vector<16x16xf32>
    %490 = arith.subf %486, %489 : vector<16x16xf32>
    %491 = math.exp %490 : vector<16x16xf32>
    %cst_170 = arith.constant dense<0.000000e+00> : vector<16xf32>
    %492 = vector.multi_reduction <add>, %491, %cst_170 [1] : vector<16x16xf32> to vector<16xf32>
    %493 = vector.shape_cast %492 : vector<16xf32> to vector<16x1xf32>
    %494 = tpu.reciprocal %493 {approx = true} : vector<16x1xf32> -> vector<16x1xf32>
    %495 = vector.broadcast %494 : vector<16x1xf32> to vector<16x16xf32>
    %496 = arith.mulf %491, %495 : vector<16x16xf32>
    %cst_171 = arith.constant dense<0.000000e+00> : vector<16x128xf32>
    %497 = tpu.matmul %496, %482, %cst_171 {dimension_numbers = #tpu.dot_dimension_numbers<[1], [0], [0], [1], [0, 0, 1, 1], [], []>} : vector<16x16xf32>, vector<16x128xf32>, vector<16x128xf32> -> vector<16x128xf32>
    %498 = vector.extract_strided_slice %472 {offsets = [0, 128], sizes = [16, 128], strides = [1, 1]} : vector<16x512xf32> to vector<16x128xf32>
    %499 = vector.extract_strided_slice %477 {offsets = [0, 128], sizes = [16, 128], strides = [1, 1]} : vector<16x512xf32> to vector<16x128xf32>
    %500 = vector.extract_strided_slice %479 {offsets = [0, 128], sizes = [16, 128], strides = [1, 1]} : vector<16x512xf32> to vector<16x128xf32>
    %cst_172 = arith.constant dense<0.000000e+00> : vector<16x16xf32>
    %501 = tpu.matmul %498, %499, %cst_172 {dimension_numbers = #tpu.dot_dimension_numbers<[1], [1], [0], [0], [0, 0, 1, 0], [], []>} : vector<16x128xf32>, vector<16x128xf32>, vector<16x16xf32> -> vector<16x16xf32>
    %cst_173 = arith.constant 0.353553385 : f32
    %502 = vector.broadcast %cst_173 : f32 to vector<16x16xf32>
    %503 = arith.mulf %501, %502 : vector<16x16xf32>
    %504 = arith.addf %503, %2 : vector<16x16xf32>
    %cst_174 = arith.constant dense<0xFF800000> : vector<16xf32>
    %505 = vector.multi_reduction <maximumf>, %504, %cst_174 [1] : vector<16x16xf32> to vector<16xf32>
    %506 = vector.shape_cast %505 : vector<16xf32> to vector<16x1xf32>
    %507 = vector.broadcast %506 : vector<16x1xf32> to vector<16x16xf32>
    %508 = arith.subf %504, %507 : vector<16x16xf32>
    %509 = math.exp %508 : vector<16x16xf32>
    %cst_175 = arith.constant dense<0.000000e+00> : vector<16xf32>
    %510 = vector.multi_reduction <add>, %509, %cst_175 [1] : vector<16x16xf32> to vector<16xf32>
    %511 = vector.shape_cast %510 : vector<16xf32> to vector<16x1xf32>
    %512 = tpu.reciprocal %511 {approx = true} : vector<16x1xf32> -> vector<16x1xf32>
    %513 = vector.broadcast %512 : vector<16x1xf32> to vector<16x16xf32>
    %514 = arith.mulf %509, %513 : vector<16x16xf32>
    %cst_176 = arith.constant dense<0.000000e+00> : vector<16x128xf32>
    %515 = tpu.matmul %514, %500, %cst_176 {dimension_numbers = #tpu.dot_dimension_numbers<[1], [0], [0], [1], [0, 0, 1, 1], [], []>} : vector<16x16xf32>, vector<16x128xf32>, vector<16x128xf32> -> vector<16x128xf32>
    %516 = arith.addf %497, %515 : vector<16x128xf32>
    %517 = vector.extract_strided_slice %472 {offsets = [0, 256], sizes = [16, 128], strides = [1, 1]} : vector<16x512xf32> to vector<16x128xf32>
    %518 = vector.extract_strided_slice %477 {offsets = [0, 256], sizes = [16, 128], strides = [1, 1]} : vector<16x512xf32> to vector<16x128xf32>
    %519 = vector.extract_strided_slice %479 {offsets = [0, 256], sizes = [16, 128], strides = [1, 1]} : vector<16x512xf32> to vector<16x128xf32>
    %cst_177 = arith.constant dense<0.000000e+00> : vector<16x16xf32>
    %520 = tpu.matmul %517, %518, %cst_177 {dimension_numbers = #tpu.dot_dimension_numbers<[1], [1], [0], [0], [0, 0, 1, 0], [], []>} : vector<16x128xf32>, vector<16x128xf32>, vector<16x16xf32> -> vector<16x16xf32>
    %cst_178 = arith.constant 0.353553385 : f32
    %521 = vector.broadcast %cst_178 : f32 to vector<16x16xf32>
    %522 = arith.mulf %520, %521 : vector<16x16xf32>
    %523 = arith.addf %522, %2 : vector<16x16xf32>
    %cst_179 = arith.constant dense<0xFF800000> : vector<16xf32>
    %524 = vector.multi_reduction <maximumf>, %523, %cst_179 [1] : vector<16x16xf32> to vector<16xf32>
    %525 = vector.shape_cast %524 : vector<16xf32> to vector<16x1xf32>
    %526 = vector.broadcast %525 : vector<16x1xf32> to vector<16x16xf32>
    %527 = arith.subf %523, %526 : vector<16x16xf32>
    %528 = math.exp %527 : vector<16x16xf32>
    %cst_180 = arith.constant dense<0.000000e+00> : vector<16xf32>
    %529 = vector.multi_reduction <add>, %528, %cst_180 [1] : vector<16x16xf32> to vector<16xf32>
    %530 = vector.shape_cast %529 : vector<16xf32> to vector<16x1xf32>
    %531 = tpu.reciprocal %530 {approx = true} : vector<16x1xf32> -> vector<16x1xf32>
    %532 = vector.broadcast %531 : vector<16x1xf32> to vector<16x16xf32>
    %533 = arith.mulf %528, %532 : vector<16x16xf32>
    %cst_181 = arith.constant dense<0.000000e+00> : vector<16x128xf32>
    %534 = tpu.matmul %533, %519, %cst_181 {dimension_numbers = #tpu.dot_dimension_numbers<[1], [0], [0], [1], [0, 0, 1, 1], [], []>} : vector<16x16xf32>, vector<16x128xf32>, vector<16x128xf32> -> vector<16x128xf32>
    %535 = arith.addf %516, %534 : vector<16x128xf32>
    %536 = vector.extract_strided_slice %472 {offsets = [0, 384], sizes = [16, 128], strides = [1, 1]} : vector<16x512xf32> to vector<16x128xf32>
    %537 = vector.extract_strided_slice %477 {offsets = [0, 384], sizes = [16, 128], strides = [1, 1]} : vector<16x512xf32> to vector<16x128xf32>
    %538 = vector.extract_strided_slice %479 {offsets = [0, 384], sizes = [16, 128], strides = [1, 1]} : vector<16x512xf32> to vector<16x128xf32>
    %cst_182 = arith.constant dense<0.000000e+00> : vector<16x16xf32>
    %539 = tpu.matmul %536, %537, %cst_182 {dimension_numbers = #tpu.dot_dimension_numbers<[1], [1], [0], [0], [0, 0, 1, 0], [], []>} : vector<16x128xf32>, vector<16x128xf32>, vector<16x16xf32> -> vector<16x16xf32>
    %cst_183 = arith.constant 0.353553385 : f32
    %540 = vector.broadcast %cst_183 : f32 to vector<16x16xf32>
    %541 = arith.mulf %539, %540 : vector<16x16xf32>
    %542 = arith.addf %541, %2 : vector<16x16xf32>
    %cst_184 = arith.constant dense<0xFF800000> : vector<16xf32>
    %543 = vector.multi_reduction <maximumf>, %542, %cst_184 [1] : vector<16x16xf32> to vector<16xf32>
    %544 = vector.shape_cast %543 : vector<16xf32> to vector<16x1xf32>
    %545 = vector.broadcast %544 : vector<16x1xf32> to vector<16x16xf32>
    %546 = arith.subf %542, %545 : vector<16x16xf32>
    %547 = math.exp %546 : vector<16x16xf32>
    %cst_185 = arith.constant dense<0.000000e+00> : vector<16xf32>
    %548 = vector.multi_reduction <add>, %547, %cst_185 [1] : vector<16x16xf32> to vector<16xf32>
    %549 = vector.shape_cast %548 : vector<16xf32> to vector<16x1xf32>
    %550 = tpu.reciprocal %549 {approx = true} : vector<16x1xf32> -> vector<16x1xf32>
    %551 = vector.broadcast %550 : vector<16x1xf32> to vector<16x16xf32>
    %552 = arith.mulf %547, %551 : vector<16x16xf32>
    %cst_186 = arith.constant dense<0.000000e+00> : vector<16x128xf32>
    %553 = tpu.matmul %552, %538, %cst_186 {dimension_numbers = #tpu.dot_dimension_numbers<[1], [0], [0], [1], [0, 0, 1, 1], [], []>} : vector<16x16xf32>, vector<16x128xf32>, vector<16x128xf32> -> vector<16x128xf32>
    %554 = arith.addf %535, %553 : vector<16x128xf32>
    %555 = vector.extract_strided_slice %554 {offsets = [0, 0], sizes = [16, 32], strides = [1, 1]} : vector<16x128xf32> to vector<16x32xf32>
    %c1017 = arith.constant 1017 : index
    %c0_187 = arith.constant 0 : index
    %556 = vector.load %arg5[%c1017, %c0_187] : memref<1048x512xf32, #tpu.memory_space<vmem>>, vector<1x32xf32>
    %557 = vector.broadcast %556 : vector<1x32xf32> to vector<16x32xf32>
    %558 = arith.addf %555, %557 : vector<16x32xf32>
    %559 = arith.addf %444, %558 : vector<16x32xf32>
    %c1024 = arith.constant 1024 : index
    %c0_188 = arith.constant 0 : index
    %560 = vector.load %arg5[%c1024, %c0_188] : memref<1048x512xf32, #tpu.memory_space<vmem>>, vector<1x32xf32>
    %c1025 = arith.constant 1025 : index
    %c0_189 = arith.constant 0 : index
    %561 = vector.load %arg5[%c1025, %c0_189] : memref<1048x512xf32, #tpu.memory_space<vmem>>, vector<1x32xf32>
    %cst_190 = arith.constant dense<0.000000e+00> : vector<16xf32>
    %562 = vector.multi_reduction <add>, %559, %cst_190 [1] : vector<16x32xf32> to vector<16xf32>
    %563 = vector.shape_cast %562 : vector<16xf32> to vector<16x1xf32>
    %cst_191 = arith.constant 3.200000e+01 : f32
    %564 = vector.broadcast %cst_191 : f32 to vector<16x1xf32>
    %565 = arith.divf %563, %564 : vector<16x1xf32>
    %566 = vector.broadcast %565 : vector<16x1xf32> to vector<16x32xf32>
    %567 = arith.subf %559, %566 : vector<16x32xf32>
    %568 = arith.mulf %567, %567 : vector<16x32xf32>
    %cst_192 = arith.constant dense<0.000000e+00> : vector<16xf32>
    %569 = vector.multi_reduction <add>, %568, %cst_192 [1] : vector<16x32xf32> to vector<16xf32>
    %570 = vector.shape_cast %569 : vector<16xf32> to vector<16x1xf32>
    %cst_193 = arith.constant 0.0322580636 : f32
    %571 = vector.broadcast %cst_193 : f32 to vector<16x1xf32>
    %572 = arith.mulf %570, %571 : vector<16x1xf32>
    %573 = math.sqrt %572 : vector<16x1xf32>
    %cst_194 = arith.constant 9.99999997E-7 : f32
    %574 = vector.broadcast %cst_194 : f32 to vector<16x1xf32>
    %575 = arith.addf %573, %574 : vector<16x1xf32>
    %576 = tpu.reciprocal %575 : vector<16x1xf32> -> vector<16x1xf32>
    %577 = vector.broadcast %576 : vector<16x1xf32> to vector<16x32xf32>
    %578 = arith.mulf %567, %577 : vector<16x32xf32>
    %579 = vector.broadcast %560 : vector<1x32xf32> to vector<16x32xf32>
    %580 = arith.mulf %579, %578 : vector<16x32xf32>
    %581 = vector.broadcast %561 : vector<1x32xf32> to vector<16x32xf32>
    %582 = arith.addf %580, %581 : vector<16x32xf32>
    %c576 = arith.constant 576 : index
    %c0_195 = arith.constant 0 : index
    %583 = vector.load %arg5[%c576, %c0_195] : memref<1048x512xf32, #tpu.memory_space<vmem>>, vector<32x64xf32>
    %cst_196 = arith.constant dense<0.000000e+00> : vector<16x64xf32>
    %584 = tpu.matmul %582, %583, %cst_196 {dimension_numbers = #tpu.dot_dimension_numbers<[1], [0], [0], [1], [0, 0, 1, 1], [], []>} : vector<16x32xf32>, vector<32x64xf32>, vector<16x64xf32> -> vector<16x64xf32>
    %c1018 = arith.constant 1018 : index
    %c0_197 = arith.constant 0 : index
    %585 = vector.load %arg5[%c1018, %c0_197] : memref<1048x512xf32, #tpu.memory_space<vmem>>, vector<1x64xf32>
    %586 = vector.broadcast %585 : vector<1x64xf32> to vector<16x64xf32>
    %587 = arith.addf %584, %586 : vector<16x64xf32>
    %cst_198 = arith.constant 0.000000e+00 : f32
    %588 = vector.broadcast %cst_198 : f32 to vector<16x64xf32>
    %589 = arith.maximumf %587, %588 : vector<16x64xf32>
    %c608 = arith.constant 608 : index
    %c0_199 = arith.constant 0 : index
    %590 = vector.load %arg5[%c608, %c0_199] : memref<1048x512xf32, #tpu.memory_space<vmem>>, vector<64x32xf32>
    %cst_200 = arith.constant dense<0.000000e+00> : vector<16x32xf32>
    %591 = tpu.matmul %589, %590, %cst_200 {dimension_numbers = #tpu.dot_dimension_numbers<[1], [0], [0], [1], [0, 0, 1, 1], [], []>} : vector<16x64xf32>, vector<64x32xf32>, vector<16x32xf32> -> vector<16x32xf32>
    %c1019 = arith.constant 1019 : index
    %c0_201 = arith.constant 0 : index
    %592 = vector.load %arg5[%c1019, %c0_201] : memref<1048x512xf32, #tpu.memory_space<vmem>>, vector<1x32xf32>
    %593 = vector.broadcast %592 : vector<1x32xf32> to vector<16x32xf32>
    %594 = arith.addf %591, %593 : vector<16x32xf32>
    %595 = arith.addf %559, %594 : vector<16x32xf32>
    %c1034 = arith.constant 1034 : index
    %c0_202 = arith.constant 0 : index
    %596 = vector.load %arg5[%c1034, %c0_202] : memref<1048x512xf32, #tpu.memory_space<vmem>>, vector<1x32xf32>
    %c1035 = arith.constant 1035 : index
    %c0_203 = arith.constant 0 : index
    %597 = vector.load %arg5[%c1035, %c0_203] : memref<1048x512xf32, #tpu.memory_space<vmem>>, vector<1x32xf32>
    %cst_204 = arith.constant dense<0.000000e+00> : vector<16xf32>
    %598 = vector.multi_reduction <add>, %595, %cst_204 [1] : vector<16x32xf32> to vector<16xf32>
    %599 = vector.shape_cast %598 : vector<16xf32> to vector<16x1xf32>
    %cst_205 = arith.constant 3.200000e+01 : f32
    %600 = vector.broadcast %cst_205 : f32 to vector<16x1xf32>
    %601 = arith.divf %599, %600 : vector<16x1xf32>
    %602 = vector.broadcast %601 : vector<16x1xf32> to vector<16x32xf32>
    %603 = arith.subf %595, %602 : vector<16x32xf32>
    %604 = arith.mulf %603, %603 : vector<16x32xf32>
    %cst_206 = arith.constant dense<0.000000e+00> : vector<16xf32>
    %605 = vector.multi_reduction <add>, %604, %cst_206 [1] : vector<16x32xf32> to vector<16xf32>
    %606 = vector.shape_cast %605 : vector<16xf32> to vector<16x1xf32>
    %cst_207 = arith.constant 0.0322580636 : f32
    %607 = vector.broadcast %cst_207 : f32 to vector<16x1xf32>
    %608 = arith.mulf %606, %607 : vector<16x1xf32>
    %609 = math.sqrt %608 : vector<16x1xf32>
    %cst_208 = arith.constant 9.99999997E-7 : f32
    %610 = vector.broadcast %cst_208 : f32 to vector<16x1xf32>
    %611 = arith.addf %609, %610 : vector<16x1xf32>
    %612 = tpu.reciprocal %611 : vector<16x1xf32> -> vector<16x1xf32>
    %613 = vector.broadcast %612 : vector<16x1xf32> to vector<16x32xf32>
    %614 = arith.mulf %603, %613 : vector<16x32xf32>
    %615 = vector.broadcast %596 : vector<1x32xf32> to vector<16x32xf32>
    %616 = arith.mulf %615, %614 : vector<16x32xf32>
    %617 = vector.broadcast %597 : vector<1x32xf32> to vector<16x32xf32>
    %618 = arith.addf %616, %617 : vector<16x32xf32>
    %c672 = arith.constant 672 : index
    %c0_209 = arith.constant 0 : index
    %619 = vector.load %arg5[%c672, %c0_209] : memref<1048x512xf32, #tpu.memory_space<vmem>>, vector<32x512xf32>
    %cst_210 = arith.constant dense<0.000000e+00> : vector<16x512xf32>
    %620 = tpu.matmul %618, %619, %cst_210 {dimension_numbers = #tpu.dot_dimension_numbers<[1], [0], [0], [1], [0, 0, 1, 1], [], []>} : vector<16x32xf32>, vector<32x512xf32>, vector<16x512xf32> -> vector<16x512xf32>
    %c1026 = arith.constant 1026 : index
    %c0_211 = arith.constant 0 : index
    %621 = vector.load %arg5[%c1026, %c0_211] : memref<1048x512xf32, #tpu.memory_space<vmem>>, vector<1x512xf32>
    %622 = vector.broadcast %621 : vector<1x512xf32> to vector<16x512xf32>
    %623 = arith.addf %620, %622 : vector<16x512xf32>
    %c704 = arith.constant 704 : index
    %c0_212 = arith.constant 0 : index
    %624 = vector.load %arg5[%c704, %c0_212] : memref<1048x512xf32, #tpu.memory_space<vmem>>, vector<32x512xf32>
    %cst_213 = arith.constant dense<0.000000e+00> : vector<16x512xf32>
    %625 = tpu.matmul %618, %624, %cst_213 {dimension_numbers = #tpu.dot_dimension_numbers<[1], [0], [0], [1], [0, 0, 1, 1], [], []>} : vector<16x32xf32>, vector<32x512xf32>, vector<16x512xf32> -> vector<16x512xf32>
    %c1027 = arith.constant 1027 : index
    %c0_214 = arith.constant 0 : index
    %626 = vector.load %arg5[%c1027, %c0_214] : memref<1048x512xf32, #tpu.memory_space<vmem>>, vector<1x512xf32>
    %627 = vector.broadcast %626 : vector<1x512xf32> to vector<16x512xf32>
    %628 = arith.addf %625, %627 : vector<16x512xf32>
    %c736 = arith.constant 736 : index
    %c0_215 = arith.constant 0 : index
    %629 = vector.load %arg5[%c736, %c0_215] : memref<1048x512xf32, #tpu.memory_space<vmem>>, vector<32x512xf32>
    %cst_216 = arith.constant dense<0.000000e+00> : vector<16x512xf32>
    %630 = tpu.matmul %618, %629, %cst_216 {dimension_numbers = #tpu.dot_dimension_numbers<[1], [0], [0], [1], [0, 0, 1, 1], [], []>} : vector<16x32xf32>, vector<32x512xf32>, vector<16x512xf32> -> vector<16x512xf32>
    %631 = vector.extract_strided_slice %623 {offsets = [0, 0], sizes = [16, 128], strides = [1, 1]} : vector<16x512xf32> to vector<16x128xf32>
    %632 = vector.extract_strided_slice %628 {offsets = [0, 0], sizes = [16, 128], strides = [1, 1]} : vector<16x512xf32> to vector<16x128xf32>
    %633 = vector.extract_strided_slice %630 {offsets = [0, 0], sizes = [16, 128], strides = [1, 1]} : vector<16x512xf32> to vector<16x128xf32>
    %cst_217 = arith.constant dense<0.000000e+00> : vector<16x16xf32>
    %634 = tpu.matmul %631, %632, %cst_217 {dimension_numbers = #tpu.dot_dimension_numbers<[1], [1], [0], [0], [0, 0, 1, 0], [], []>} : vector<16x128xf32>, vector<16x128xf32>, vector<16x16xf32> -> vector<16x16xf32>
    %cst_218 = arith.constant 0.353553385 : f32
    %635 = vector.broadcast %cst_218 : f32 to vector<16x16xf32>
    %636 = arith.mulf %634, %635 : vector<16x16xf32>
    %637 = arith.addf %636, %1 : vector<16x16xf32>
    %cst_219 = arith.constant dense<0xFF800000> : vector<16xf32>
    %638 = vector.multi_reduction <maximumf>, %637, %cst_219 [1] : vector<16x16xf32> to vector<16xf32>
    %639 = vector.shape_cast %638 : vector<16xf32> to vector<16x1xf32>
    %640 = vector.broadcast %639 : vector<16x1xf32> to vector<16x16xf32>
    %641 = arith.subf %637, %640 : vector<16x16xf32>
    %642 = math.exp %641 : vector<16x16xf32>
    %cst_220 = arith.constant dense<0.000000e+00> : vector<16xf32>
    %643 = vector.multi_reduction <add>, %642, %cst_220 [1] : vector<16x16xf32> to vector<16xf32>
    %644 = vector.shape_cast %643 : vector<16xf32> to vector<16x1xf32>
    %645 = tpu.reciprocal %644 {approx = true} : vector<16x1xf32> -> vector<16x1xf32>
    %646 = vector.broadcast %645 : vector<16x1xf32> to vector<16x16xf32>
    %647 = arith.mulf %642, %646 : vector<16x16xf32>
    %cst_221 = arith.constant dense<0.000000e+00> : vector<16x128xf32>
    %648 = tpu.matmul %647, %633, %cst_221 {dimension_numbers = #tpu.dot_dimension_numbers<[1], [0], [0], [1], [0, 0, 1, 1], [], []>} : vector<16x16xf32>, vector<16x128xf32>, vector<16x128xf32> -> vector<16x128xf32>
    %649 = vector.extract_strided_slice %623 {offsets = [0, 128], sizes = [16, 128], strides = [1, 1]} : vector<16x512xf32> to vector<16x128xf32>
    %650 = vector.extract_strided_slice %628 {offsets = [0, 128], sizes = [16, 128], strides = [1, 1]} : vector<16x512xf32> to vector<16x128xf32>
    %651 = vector.extract_strided_slice %630 {offsets = [0, 128], sizes = [16, 128], strides = [1, 1]} : vector<16x512xf32> to vector<16x128xf32>
    %cst_222 = arith.constant dense<0.000000e+00> : vector<16x16xf32>
    %652 = tpu.matmul %649, %650, %cst_222 {dimension_numbers = #tpu.dot_dimension_numbers<[1], [1], [0], [0], [0, 0, 1, 0], [], []>} : vector<16x128xf32>, vector<16x128xf32>, vector<16x16xf32> -> vector<16x16xf32>
    %cst_223 = arith.constant 0.353553385 : f32
    %653 = vector.broadcast %cst_223 : f32 to vector<16x16xf32>
    %654 = arith.mulf %652, %653 : vector<16x16xf32>
    %655 = arith.addf %654, %1 : vector<16x16xf32>
    %cst_224 = arith.constant dense<0xFF800000> : vector<16xf32>
    %656 = vector.multi_reduction <maximumf>, %655, %cst_224 [1] : vector<16x16xf32> to vector<16xf32>
    %657 = vector.shape_cast %656 : vector<16xf32> to vector<16x1xf32>
    %658 = vector.broadcast %657 : vector<16x1xf32> to vector<16x16xf32>
    %659 = arith.subf %655, %658 : vector<16x16xf32>
    %660 = math.exp %659 : vector<16x16xf32>
    %cst_225 = arith.constant dense<0.000000e+00> : vector<16xf32>
    %661 = vector.multi_reduction <add>, %660, %cst_225 [1] : vector<16x16xf32> to vector<16xf32>
    %662 = vector.shape_cast %661 : vector<16xf32> to vector<16x1xf32>
    %663 = tpu.reciprocal %662 {approx = true} : vector<16x1xf32> -> vector<16x1xf32>
    %664 = vector.broadcast %663 : vector<16x1xf32> to vector<16x16xf32>
    %665 = arith.mulf %660, %664 : vector<16x16xf32>
    %cst_226 = arith.constant dense<0.000000e+00> : vector<16x128xf32>
    %666 = tpu.matmul %665, %651, %cst_226 {dimension_numbers = #tpu.dot_dimension_numbers<[1], [0], [0], [1], [0, 0, 1, 1], [], []>} : vector<16x16xf32>, vector<16x128xf32>, vector<16x128xf32> -> vector<16x128xf32>
    %667 = arith.addf %648, %666 : vector<16x128xf32>
    %668 = vector.extract_strided_slice %623 {offsets = [0, 256], sizes = [16, 128], strides = [1, 1]} : vector<16x512xf32> to vector<16x128xf32>
    %669 = vector.extract_strided_slice %628 {offsets = [0, 256], sizes = [16, 128], strides = [1, 1]} : vector<16x512xf32> to vector<16x128xf32>
    %670 = vector.extract_strided_slice %630 {offsets = [0, 256], sizes = [16, 128], strides = [1, 1]} : vector<16x512xf32> to vector<16x128xf32>
    %cst_227 = arith.constant dense<0.000000e+00> : vector<16x16xf32>
    %671 = tpu.matmul %668, %669, %cst_227 {dimension_numbers = #tpu.dot_dimension_numbers<[1], [1], [0], [0], [0, 0, 1, 0], [], []>} : vector<16x128xf32>, vector<16x128xf32>, vector<16x16xf32> -> vector<16x16xf32>
    %cst_228 = arith.constant 0.353553385 : f32
    %672 = vector.broadcast %cst_228 : f32 to vector<16x16xf32>
    %673 = arith.mulf %671, %672 : vector<16x16xf32>
    %674 = arith.addf %673, %1 : vector<16x16xf32>
    %cst_229 = arith.constant dense<0xFF800000> : vector<16xf32>
    %675 = vector.multi_reduction <maximumf>, %674, %cst_229 [1] : vector<16x16xf32> to vector<16xf32>
    %676 = vector.shape_cast %675 : vector<16xf32> to vector<16x1xf32>
    %677 = vector.broadcast %676 : vector<16x1xf32> to vector<16x16xf32>
    %678 = arith.subf %674, %677 : vector<16x16xf32>
    %679 = math.exp %678 : vector<16x16xf32>
    %cst_230 = arith.constant dense<0.000000e+00> : vector<16xf32>
    %680 = vector.multi_reduction <add>, %679, %cst_230 [1] : vector<16x16xf32> to vector<16xf32>
    %681 = vector.shape_cast %680 : vector<16xf32> to vector<16x1xf32>
    %682 = tpu.reciprocal %681 {approx = true} : vector<16x1xf32> -> vector<16x1xf32>
    %683 = vector.broadcast %682 : vector<16x1xf32> to vector<16x16xf32>
    %684 = arith.mulf %679, %683 : vector<16x16xf32>
    %cst_231 = arith.constant dense<0.000000e+00> : vector<16x128xf32>
    %685 = tpu.matmul %684, %670, %cst_231 {dimension_numbers = #tpu.dot_dimension_numbers<[1], [0], [0], [1], [0, 0, 1, 1], [], []>} : vector<16x16xf32>, vector<16x128xf32>, vector<16x128xf32> -> vector<16x128xf32>
    %686 = arith.addf %667, %685 : vector<16x128xf32>
    %687 = vector.extract_strided_slice %623 {offsets = [0, 384], sizes = [16, 128], strides = [1, 1]} : vector<16x512xf32> to vector<16x128xf32>
    %688 = vector.extract_strided_slice %628 {offsets = [0, 384], sizes = [16, 128], strides = [1, 1]} : vector<16x512xf32> to vector<16x128xf32>
    %689 = vector.extract_strided_slice %630 {offsets = [0, 384], sizes = [16, 128], strides = [1, 1]} : vector<16x512xf32> to vector<16x128xf32>
    %cst_232 = arith.constant dense<0.000000e+00> : vector<16x16xf32>
    %690 = tpu.matmul %687, %688, %cst_232 {dimension_numbers = #tpu.dot_dimension_numbers<[1], [1], [0], [0], [0, 0, 1, 0], [], []>} : vector<16x128xf32>, vector<16x128xf32>, vector<16x16xf32> -> vector<16x16xf32>
    %cst_233 = arith.constant 0.353553385 : f32
    %691 = vector.broadcast %cst_233 : f32 to vector<16x16xf32>
    %692 = arith.mulf %690, %691 : vector<16x16xf32>
    %693 = arith.addf %692, %1 : vector<16x16xf32>
    %cst_234 = arith.constant dense<0xFF800000> : vector<16xf32>
    %694 = vector.multi_reduction <maximumf>, %693, %cst_234 [1] : vector<16x16xf32> to vector<16xf32>
    %695 = vector.shape_cast %694 : vector<16xf32> to vector<16x1xf32>
    %696 = vector.broadcast %695 : vector<16x1xf32> to vector<16x16xf32>
    %697 = arith.subf %693, %696 : vector<16x16xf32>
    %698 = math.exp %697 : vector<16x16xf32>
    %cst_235 = arith.constant dense<0.000000e+00> : vector<16xf32>
    %699 = vector.multi_reduction <add>, %698, %cst_235 [1] : vector<16x16xf32> to vector<16xf32>
    %700 = vector.shape_cast %699 : vector<16xf32> to vector<16x1xf32>
    %701 = tpu.reciprocal %700 {approx = true} : vector<16x1xf32> -> vector<16x1xf32>
    %702 = vector.broadcast %701 : vector<16x1xf32> to vector<16x16xf32>
    %703 = arith.mulf %698, %702 : vector<16x16xf32>
    %cst_236 = arith.constant dense<0.000000e+00> : vector<16x128xf32>
    %704 = tpu.matmul %703, %689, %cst_236 {dimension_numbers = #tpu.dot_dimension_numbers<[1], [0], [0], [1], [0, 0, 1, 1], [], []>} : vector<16x16xf32>, vector<16x128xf32>, vector<16x128xf32> -> vector<16x128xf32>
    %705 = arith.addf %686, %704 : vector<16x128xf32>
    %706 = vector.extract_strided_slice %705 {offsets = [0, 0], sizes = [16, 32], strides = [1, 1]} : vector<16x128xf32> to vector<16x32xf32>
    %c1028 = arith.constant 1028 : index
    %c0_237 = arith.constant 0 : index
    %707 = vector.load %arg5[%c1028, %c0_237] : memref<1048x512xf32, #tpu.memory_space<vmem>>, vector<1x32xf32>
    %708 = vector.broadcast %707 : vector<1x32xf32> to vector<16x32xf32>
    %709 = arith.addf %706, %708 : vector<16x32xf32>
    %710 = arith.addf %595, %709 : vector<16x32xf32>
    %c1036 = arith.constant 1036 : index
    %c0_238 = arith.constant 0 : index
    %711 = vector.load %arg5[%c1036, %c0_238] : memref<1048x512xf32, #tpu.memory_space<vmem>>, vector<1x32xf32>
    %c1037 = arith.constant 1037 : index
    %c0_239 = arith.constant 0 : index
    %712 = vector.load %arg5[%c1037, %c0_239] : memref<1048x512xf32, #tpu.memory_space<vmem>>, vector<1x32xf32>
    %cst_240 = arith.constant dense<0.000000e+00> : vector<16xf32>
    %713 = vector.multi_reduction <add>, %710, %cst_240 [1] : vector<16x32xf32> to vector<16xf32>
    %714 = vector.shape_cast %713 : vector<16xf32> to vector<16x1xf32>
    %cst_241 = arith.constant 3.200000e+01 : f32
    %715 = vector.broadcast %cst_241 : f32 to vector<16x1xf32>
    %716 = arith.divf %714, %715 : vector<16x1xf32>
    %717 = vector.broadcast %716 : vector<16x1xf32> to vector<16x32xf32>
    %718 = arith.subf %710, %717 : vector<16x32xf32>
    %719 = arith.mulf %718, %718 : vector<16x32xf32>
    %cst_242 = arith.constant dense<0.000000e+00> : vector<16xf32>
    %720 = vector.multi_reduction <add>, %719, %cst_242 [1] : vector<16x32xf32> to vector<16xf32>
    %721 = vector.shape_cast %720 : vector<16xf32> to vector<16x1xf32>
    %cst_243 = arith.constant 0.0322580636 : f32
    %722 = vector.broadcast %cst_243 : f32 to vector<16x1xf32>
    %723 = arith.mulf %721, %722 : vector<16x1xf32>
    %724 = math.sqrt %723 : vector<16x1xf32>
    %cst_244 = arith.constant 9.99999997E-7 : f32
    %725 = vector.broadcast %cst_244 : f32 to vector<16x1xf32>
    %726 = arith.addf %724, %725 : vector<16x1xf32>
    %727 = tpu.reciprocal %726 : vector<16x1xf32> -> vector<16x1xf32>
    %728 = vector.broadcast %727 : vector<16x1xf32> to vector<16x32xf32>
    %729 = arith.mulf %718, %728 : vector<16x32xf32>
    %730 = vector.broadcast %711 : vector<1x32xf32> to vector<16x32xf32>
    %731 = arith.mulf %730, %729 : vector<16x32xf32>
    %732 = vector.broadcast %712 : vector<1x32xf32> to vector<16x32xf32>
    %733 = arith.addf %731, %732 : vector<16x32xf32>
    %c768 = arith.constant 768 : index
    %c0_245 = arith.constant 0 : index
    %734 = vector.load %arg5[%c768, %c0_245] : memref<1048x512xf32, #tpu.memory_space<vmem>>, vector<32x512xf32>
    %cst_246 = arith.constant dense<0.000000e+00> : vector<16x512xf32>
    %735 = tpu.matmul %733, %734, %cst_246 {dimension_numbers = #tpu.dot_dimension_numbers<[1], [0], [0], [1], [0, 0, 1, 1], [], []>} : vector<16x32xf32>, vector<32x512xf32>, vector<16x512xf32> -> vector<16x512xf32>
    %c1029 = arith.constant 1029 : index
    %c0_247 = arith.constant 0 : index
    %736 = vector.load %arg5[%c1029, %c0_247] : memref<1048x512xf32, #tpu.memory_space<vmem>>, vector<1x512xf32>
    %737 = vector.broadcast %736 : vector<1x512xf32> to vector<16x512xf32>
    %738 = arith.addf %735, %737 : vector<16x512xf32>
    %c800 = arith.constant 800 : index
    %c0_248 = arith.constant 0 : index
    %739 = vector.load %arg5[%c800, %c0_248] : memref<1048x512xf32, #tpu.memory_space<vmem>>, vector<32x512xf32>
    %cst_249 = arith.constant dense<0.000000e+00> : vector<16x512xf32>
    %740 = tpu.matmul %328, %739, %cst_249 {dimension_numbers = #tpu.dot_dimension_numbers<[1], [0], [0], [1], [0, 0, 1, 1], [], []>} : vector<16x32xf32>, vector<32x512xf32>, vector<16x512xf32> -> vector<16x512xf32>
    %c1030 = arith.constant 1030 : index
    %c0_250 = arith.constant 0 : index
    %741 = vector.load %arg5[%c1030, %c0_250] : memref<1048x512xf32, #tpu.memory_space<vmem>>, vector<1x512xf32>
    %742 = vector.broadcast %741 : vector<1x512xf32> to vector<16x512xf32>
    %743 = arith.addf %740, %742 : vector<16x512xf32>
    %c832 = arith.constant 832 : index
    %c0_251 = arith.constant 0 : index
    %744 = vector.load %arg5[%c832, %c0_251] : memref<1048x512xf32, #tpu.memory_space<vmem>>, vector<32x512xf32>
    %cst_252 = arith.constant dense<0.000000e+00> : vector<16x512xf32>
    %745 = tpu.matmul %328, %744, %cst_252 {dimension_numbers = #tpu.dot_dimension_numbers<[1], [0], [0], [1], [0, 0, 1, 1], [], []>} : vector<16x32xf32>, vector<32x512xf32>, vector<16x512xf32> -> vector<16x512xf32>
    %746 = vector.extract_strided_slice %738 {offsets = [0, 0], sizes = [16, 128], strides = [1, 1]} : vector<16x512xf32> to vector<16x128xf32>
    %747 = vector.extract_strided_slice %743 {offsets = [0, 0], sizes = [16, 128], strides = [1, 1]} : vector<16x512xf32> to vector<16x128xf32>
    %748 = vector.extract_strided_slice %745 {offsets = [0, 0], sizes = [16, 128], strides = [1, 1]} : vector<16x512xf32> to vector<16x128xf32>
    %cst_253 = arith.constant dense<0.000000e+00> : vector<16x16xf32>
    %749 = tpu.matmul %746, %747, %cst_253 {dimension_numbers = #tpu.dot_dimension_numbers<[1], [1], [0], [0], [0, 0, 1, 0], [], []>} : vector<16x128xf32>, vector<16x128xf32>, vector<16x16xf32> -> vector<16x16xf32>
    %cst_254 = arith.constant 0.353553385 : f32
    %750 = vector.broadcast %cst_254 : f32 to vector<16x16xf32>
    %751 = arith.mulf %749, %750 : vector<16x16xf32>
    %752 = arith.addf %751, %2 : vector<16x16xf32>
    %cst_255 = arith.constant dense<0xFF800000> : vector<16xf32>
    %753 = vector.multi_reduction <maximumf>, %752, %cst_255 [1] : vector<16x16xf32> to vector<16xf32>
    %754 = vector.shape_cast %753 : vector<16xf32> to vector<16x1xf32>
    %755 = vector.broadcast %754 : vector<16x1xf32> to vector<16x16xf32>
    %756 = arith.subf %752, %755 : vector<16x16xf32>
    %757 = math.exp %756 : vector<16x16xf32>
    %cst_256 = arith.constant dense<0.000000e+00> : vector<16xf32>
    %758 = vector.multi_reduction <add>, %757, %cst_256 [1] : vector<16x16xf32> to vector<16xf32>
    %759 = vector.shape_cast %758 : vector<16xf32> to vector<16x1xf32>
    %760 = tpu.reciprocal %759 {approx = true} : vector<16x1xf32> -> vector<16x1xf32>
    %761 = vector.broadcast %760 : vector<16x1xf32> to vector<16x16xf32>
    %762 = arith.mulf %757, %761 : vector<16x16xf32>
    %cst_257 = arith.constant dense<0.000000e+00> : vector<16x128xf32>
    %763 = tpu.matmul %762, %748, %cst_257 {dimension_numbers = #tpu.dot_dimension_numbers<[1], [0], [0], [1], [0, 0, 1, 1], [], []>} : vector<16x16xf32>, vector<16x128xf32>, vector<16x128xf32> -> vector<16x128xf32>
    %764 = vector.extract_strided_slice %738 {offsets = [0, 128], sizes = [16, 128], strides = [1, 1]} : vector<16x512xf32> to vector<16x128xf32>
    %765 = vector.extract_strided_slice %743 {offsets = [0, 128], sizes = [16, 128], strides = [1, 1]} : vector<16x512xf32> to vector<16x128xf32>
    %766 = vector.extract_strided_slice %745 {offsets = [0, 128], sizes = [16, 128], strides = [1, 1]} : vector<16x512xf32> to vector<16x128xf32>
    %cst_258 = arith.constant dense<0.000000e+00> : vector<16x16xf32>
    %767 = tpu.matmul %764, %765, %cst_258 {dimension_numbers = #tpu.dot_dimension_numbers<[1], [1], [0], [0], [0, 0, 1, 0], [], []>} : vector<16x128xf32>, vector<16x128xf32>, vector<16x16xf32> -> vector<16x16xf32>
    %cst_259 = arith.constant 0.353553385 : f32
    %768 = vector.broadcast %cst_259 : f32 to vector<16x16xf32>
    %769 = arith.mulf %767, %768 : vector<16x16xf32>
    %770 = arith.addf %769, %2 : vector<16x16xf32>
    %cst_260 = arith.constant dense<0xFF800000> : vector<16xf32>
    %771 = vector.multi_reduction <maximumf>, %770, %cst_260 [1] : vector<16x16xf32> to vector<16xf32>
    %772 = vector.shape_cast %771 : vector<16xf32> to vector<16x1xf32>
    %773 = vector.broadcast %772 : vector<16x1xf32> to vector<16x16xf32>
    %774 = arith.subf %770, %773 : vector<16x16xf32>
    %775 = math.exp %774 : vector<16x16xf32>
    %cst_261 = arith.constant dense<0.000000e+00> : vector<16xf32>
    %776 = vector.multi_reduction <add>, %775, %cst_261 [1] : vector<16x16xf32> to vector<16xf32>
    %777 = vector.shape_cast %776 : vector<16xf32> to vector<16x1xf32>
    %778 = tpu.reciprocal %777 {approx = true} : vector<16x1xf32> -> vector<16x1xf32>
    %779 = vector.broadcast %778 : vector<16x1xf32> to vector<16x16xf32>
    %780 = arith.mulf %775, %779 : vector<16x16xf32>
    %cst_262 = arith.constant dense<0.000000e+00> : vector<16x128xf32>
    %781 = tpu.matmul %780, %766, %cst_262 {dimension_numbers = #tpu.dot_dimension_numbers<[1], [0], [0], [1], [0, 0, 1, 1], [], []>} : vector<16x16xf32>, vector<16x128xf32>, vector<16x128xf32> -> vector<16x128xf32>
    %782 = arith.addf %763, %781 : vector<16x128xf32>
    %783 = vector.extract_strided_slice %738 {offsets = [0, 256], sizes = [16, 128], strides = [1, 1]} : vector<16x512xf32> to vector<16x128xf32>
    %784 = vector.extract_strided_slice %743 {offsets = [0, 256], sizes = [16, 128], strides = [1, 1]} : vector<16x512xf32> to vector<16x128xf32>
    %785 = vector.extract_strided_slice %745 {offsets = [0, 256], sizes = [16, 128], strides = [1, 1]} : vector<16x512xf32> to vector<16x128xf32>
    %cst_263 = arith.constant dense<0.000000e+00> : vector<16x16xf32>
    %786 = tpu.matmul %783, %784, %cst_263 {dimension_numbers = #tpu.dot_dimension_numbers<[1], [1], [0], [0], [0, 0, 1, 0], [], []>} : vector<16x128xf32>, vector<16x128xf32>, vector<16x16xf32> -> vector<16x16xf32>
    %cst_264 = arith.constant 0.353553385 : f32
    %787 = vector.broadcast %cst_264 : f32 to vector<16x16xf32>
    %788 = arith.mulf %786, %787 : vector<16x16xf32>
    %789 = arith.addf %788, %2 : vector<16x16xf32>
    %cst_265 = arith.constant dense<0xFF800000> : vector<16xf32>
    %790 = vector.multi_reduction <maximumf>, %789, %cst_265 [1] : vector<16x16xf32> to vector<16xf32>
    %791 = vector.shape_cast %790 : vector<16xf32> to vector<16x1xf32>
    %792 = vector.broadcast %791 : vector<16x1xf32> to vector<16x16xf32>
    %793 = arith.subf %789, %792 : vector<16x16xf32>
    %794 = math.exp %793 : vector<16x16xf32>
    %cst_266 = arith.constant dense<0.000000e+00> : vector<16xf32>
    %795 = vector.multi_reduction <add>, %794, %cst_266 [1] : vector<16x16xf32> to vector<16xf32>
    %796 = vector.shape_cast %795 : vector<16xf32> to vector<16x1xf32>
    %797 = tpu.reciprocal %796 {approx = true} : vector<16x1xf32> -> vector<16x1xf32>
    %798 = vector.broadcast %797 : vector<16x1xf32> to vector<16x16xf32>
    %799 = arith.mulf %794, %798 : vector<16x16xf32>
    %cst_267 = arith.constant dense<0.000000e+00> : vector<16x128xf32>
    %800 = tpu.matmul %799, %785, %cst_267 {dimension_numbers = #tpu.dot_dimension_numbers<[1], [0], [0], [1], [0, 0, 1, 1], [], []>} : vector<16x16xf32>, vector<16x128xf32>, vector<16x128xf32> -> vector<16x128xf32>
    %801 = arith.addf %782, %800 : vector<16x128xf32>
    %802 = vector.extract_strided_slice %738 {offsets = [0, 384], sizes = [16, 128], strides = [1, 1]} : vector<16x512xf32> to vector<16x128xf32>
    %803 = vector.extract_strided_slice %743 {offsets = [0, 384], sizes = [16, 128], strides = [1, 1]} : vector<16x512xf32> to vector<16x128xf32>
    %804 = vector.extract_strided_slice %745 {offsets = [0, 384], sizes = [16, 128], strides = [1, 1]} : vector<16x512xf32> to vector<16x128xf32>
    %cst_268 = arith.constant dense<0.000000e+00> : vector<16x16xf32>
    %805 = tpu.matmul %802, %803, %cst_268 {dimension_numbers = #tpu.dot_dimension_numbers<[1], [1], [0], [0], [0, 0, 1, 0], [], []>} : vector<16x128xf32>, vector<16x128xf32>, vector<16x16xf32> -> vector<16x16xf32>
    %cst_269 = arith.constant 0.353553385 : f32
    %806 = vector.broadcast %cst_269 : f32 to vector<16x16xf32>
    %807 = arith.mulf %805, %806 : vector<16x16xf32>
    %808 = arith.addf %807, %2 : vector<16x16xf32>
    %cst_270 = arith.constant dense<0xFF800000> : vector<16xf32>
    %809 = vector.multi_reduction <maximumf>, %808, %cst_270 [1] : vector<16x16xf32> to vector<16xf32>
    %810 = vector.shape_cast %809 : vector<16xf32> to vector<16x1xf32>
    %811 = vector.broadcast %810 : vector<16x1xf32> to vector<16x16xf32>
    %812 = arith.subf %808, %811 : vector<16x16xf32>
    %813 = math.exp %812 : vector<16x16xf32>
    %cst_271 = arith.constant dense<0.000000e+00> : vector<16xf32>
    %814 = vector.multi_reduction <add>, %813, %cst_271 [1] : vector<16x16xf32> to vector<16xf32>
    %815 = vector.shape_cast %814 : vector<16xf32> to vector<16x1xf32>
    %816 = tpu.reciprocal %815 {approx = true} : vector<16x1xf32> -> vector<16x1xf32>
    %817 = vector.broadcast %816 : vector<16x1xf32> to vector<16x16xf32>
    %818 = arith.mulf %813, %817 : vector<16x16xf32>
    %cst_272 = arith.constant dense<0.000000e+00> : vector<16x128xf32>
    %819 = tpu.matmul %818, %804, %cst_272 {dimension_numbers = #tpu.dot_dimension_numbers<[1], [0], [0], [1], [0, 0, 1, 1], [], []>} : vector<16x16xf32>, vector<16x128xf32>, vector<16x128xf32> -> vector<16x128xf32>
    %820 = arith.addf %801, %819 : vector<16x128xf32>
    %821 = vector.extract_strided_slice %820 {offsets = [0, 0], sizes = [16, 32], strides = [1, 1]} : vector<16x128xf32> to vector<16x32xf32>
    %c1031 = arith.constant 1031 : index
    %c0_273 = arith.constant 0 : index
    %822 = vector.load %arg5[%c1031, %c0_273] : memref<1048x512xf32, #tpu.memory_space<vmem>>, vector<1x32xf32>
    %823 = vector.broadcast %822 : vector<1x32xf32> to vector<16x32xf32>
    %824 = arith.addf %821, %823 : vector<16x32xf32>
    %825 = arith.addf %710, %824 : vector<16x32xf32>
    %c1038 = arith.constant 1038 : index
    %c0_274 = arith.constant 0 : index
    %826 = vector.load %arg5[%c1038, %c0_274] : memref<1048x512xf32, #tpu.memory_space<vmem>>, vector<1x32xf32>
    %c1039 = arith.constant 1039 : index
    %c0_275 = arith.constant 0 : index
    %827 = vector.load %arg5[%c1039, %c0_275] : memref<1048x512xf32, #tpu.memory_space<vmem>>, vector<1x32xf32>
    %cst_276 = arith.constant dense<0.000000e+00> : vector<16xf32>
    %828 = vector.multi_reduction <add>, %825, %cst_276 [1] : vector<16x32xf32> to vector<16xf32>
    %829 = vector.shape_cast %828 : vector<16xf32> to vector<16x1xf32>
    %cst_277 = arith.constant 3.200000e+01 : f32
    %830 = vector.broadcast %cst_277 : f32 to vector<16x1xf32>
    %831 = arith.divf %829, %830 : vector<16x1xf32>
    %832 = vector.broadcast %831 : vector<16x1xf32> to vector<16x32xf32>
    %833 = arith.subf %825, %832 : vector<16x32xf32>
    %834 = arith.mulf %833, %833 : vector<16x32xf32>
    %cst_278 = arith.constant dense<0.000000e+00> : vector<16xf32>
    %835 = vector.multi_reduction <add>, %834, %cst_278 [1] : vector<16x32xf32> to vector<16xf32>
    %836 = vector.shape_cast %835 : vector<16xf32> to vector<16x1xf32>
    %cst_279 = arith.constant 0.0322580636 : f32
    %837 = vector.broadcast %cst_279 : f32 to vector<16x1xf32>
    %838 = arith.mulf %836, %837 : vector<16x1xf32>
    %839 = math.sqrt %838 : vector<16x1xf32>
    %cst_280 = arith.constant 9.99999997E-7 : f32
    %840 = vector.broadcast %cst_280 : f32 to vector<16x1xf32>
    %841 = arith.addf %839, %840 : vector<16x1xf32>
    %842 = tpu.reciprocal %841 : vector<16x1xf32> -> vector<16x1xf32>
    %843 = vector.broadcast %842 : vector<16x1xf32> to vector<16x32xf32>
    %844 = arith.mulf %833, %843 : vector<16x32xf32>
    %845 = vector.broadcast %826 : vector<1x32xf32> to vector<16x32xf32>
    %846 = arith.mulf %845, %844 : vector<16x32xf32>
    %847 = vector.broadcast %827 : vector<1x32xf32> to vector<16x32xf32>
    %848 = arith.addf %846, %847 : vector<16x32xf32>
    %c864 = arith.constant 864 : index
    %c0_281 = arith.constant 0 : index
    %849 = vector.load %arg5[%c864, %c0_281] : memref<1048x512xf32, #tpu.memory_space<vmem>>, vector<32x64xf32>
    %cst_282 = arith.constant dense<0.000000e+00> : vector<16x64xf32>
    %850 = tpu.matmul %848, %849, %cst_282 {dimension_numbers = #tpu.dot_dimension_numbers<[1], [0], [0], [1], [0, 0, 1, 1], [], []>} : vector<16x32xf32>, vector<32x64xf32>, vector<16x64xf32> -> vector<16x64xf32>
    %c1032 = arith.constant 1032 : index
    %c0_283 = arith.constant 0 : index
    %851 = vector.load %arg5[%c1032, %c0_283] : memref<1048x512xf32, #tpu.memory_space<vmem>>, vector<1x64xf32>
    %852 = vector.broadcast %851 : vector<1x64xf32> to vector<16x64xf32>
    %853 = arith.addf %850, %852 : vector<16x64xf32>
    %cst_284 = arith.constant 0.000000e+00 : f32
    %854 = vector.broadcast %cst_284 : f32 to vector<16x64xf32>
    %855 = arith.maximumf %853, %854 : vector<16x64xf32>
    %c896 = arith.constant 896 : index
    %c0_285 = arith.constant 0 : index
    %856 = vector.load %arg5[%c896, %c0_285] : memref<1048x512xf32, #tpu.memory_space<vmem>>, vector<64x32xf32>
    %cst_286 = arith.constant dense<0.000000e+00> : vector<16x32xf32>
    %857 = tpu.matmul %855, %856, %cst_286 {dimension_numbers = #tpu.dot_dimension_numbers<[1], [0], [0], [1], [0, 0, 1, 1], [], []>} : vector<16x64xf32>, vector<64x32xf32>, vector<16x32xf32> -> vector<16x32xf32>
    %c1033 = arith.constant 1033 : index
    %c0_287 = arith.constant 0 : index
    %858 = vector.load %arg5[%c1033, %c0_287] : memref<1048x512xf32, #tpu.memory_space<vmem>>, vector<1x32xf32>
    %859 = vector.broadcast %858 : vector<1x32xf32> to vector<16x32xf32>
    %860 = arith.addf %857, %859 : vector<16x32xf32>
    %861 = arith.addf %825, %860 : vector<16x32xf32>
    %c1040 = arith.constant 1040 : index
    %c0_288 = arith.constant 0 : index
    %862 = vector.load %arg5[%c1040, %c0_288] : memref<1048x512xf32, #tpu.memory_space<vmem>>, vector<1x32xf32>
    %c1041 = arith.constant 1041 : index
    %c0_289 = arith.constant 0 : index
    %863 = vector.load %arg5[%c1041, %c0_289] : memref<1048x512xf32, #tpu.memory_space<vmem>>, vector<1x32xf32>
    %cst_290 = arith.constant dense<0.000000e+00> : vector<16xf32>
    %864 = vector.multi_reduction <add>, %861, %cst_290 [1] : vector<16x32xf32> to vector<16xf32>
    %865 = vector.shape_cast %864 : vector<16xf32> to vector<16x1xf32>
    %cst_291 = arith.constant 3.200000e+01 : f32
    %866 = vector.broadcast %cst_291 : f32 to vector<16x1xf32>
    %867 = arith.divf %865, %866 : vector<16x1xf32>
    %868 = vector.broadcast %867 : vector<16x1xf32> to vector<16x32xf32>
    %869 = arith.subf %861, %868 : vector<16x32xf32>
    %870 = arith.mulf %869, %869 : vector<16x32xf32>
    %cst_292 = arith.constant dense<0.000000e+00> : vector<16xf32>
    %871 = vector.multi_reduction <add>, %870, %cst_292 [1] : vector<16x32xf32> to vector<16xf32>
    %872 = vector.shape_cast %871 : vector<16xf32> to vector<16x1xf32>
    %cst_293 = arith.constant 0.0322580636 : f32
    %873 = vector.broadcast %cst_293 : f32 to vector<16x1xf32>
    %874 = arith.mulf %872, %873 : vector<16x1xf32>
    %875 = math.sqrt %874 : vector<16x1xf32>
    %cst_294 = arith.constant 9.99999997E-7 : f32
    %876 = vector.broadcast %cst_294 : f32 to vector<16x1xf32>
    %877 = arith.addf %875, %876 : vector<16x1xf32>
    %878 = tpu.reciprocal %877 : vector<16x1xf32> -> vector<16x1xf32>
    %879 = vector.broadcast %878 : vector<16x1xf32> to vector<16x32xf32>
    %880 = arith.mulf %869, %879 : vector<16x32xf32>
    %881 = vector.broadcast %862 : vector<1x32xf32> to vector<16x32xf32>
    %882 = arith.mulf %881, %880 : vector<16x32xf32>
    %883 = vector.broadcast %863 : vector<1x32xf32> to vector<16x32xf32>
    %884 = arith.addf %882, %883 : vector<16x32xf32>
    %c960 = arith.constant 960 : index
    %c0_295 = arith.constant 0 : index
    %885 = vector.load %arg5[%c960, %c0_295] : memref<1048x512xf32, #tpu.memory_space<vmem>>, vector<32x128xf32>
    %cst_296 = arith.constant dense<0.000000e+00> : vector<16x128xf32>
    %886 = tpu.matmul %884, %885, %cst_296 {dimension_numbers = #tpu.dot_dimension_numbers<[1], [0], [0], [1], [0, 0, 1, 1], [], []>} : vector<16x32xf32>, vector<32x128xf32>, vector<16x128xf32> -> vector<16x128xf32>
    %c1042 = arith.constant 1042 : index
    %c0_297 = arith.constant 0 : index
    %887 = vector.load %arg5[%c1042, %c0_297] : memref<1048x512xf32, #tpu.memory_space<vmem>>, vector<1x128xf32>
    %888 = vector.broadcast %887 : vector<1x128xf32> to vector<16x128xf32>
    %889 = arith.addf %886, %888 : vector<16x128xf32>
    %cst_298 = arith.constant dense<0xFF800000> : vector<16xf32>
    %890 = vector.multi_reduction <maximumf>, %889, %cst_298 [1] : vector<16x128xf32> to vector<16xf32>
    %891 = vector.shape_cast %890 : vector<16xf32> to vector<16x1xf32>
    %892 = vector.broadcast %891 : vector<16x1xf32> to vector<16x128xf32>
    %893 = arith.subf %889, %892 : vector<16x128xf32>
    %894 = math.exp %893 : vector<16x128xf32>
    %cst_299 = arith.constant dense<0.000000e+00> : vector<16xf32>
    %895 = vector.multi_reduction <add>, %894, %cst_299 [1] : vector<16x128xf32> to vector<16xf32>
    %896 = vector.shape_cast %895 : vector<16xf32> to vector<16x1xf32>
    %897 = math.log %896 : vector<16x1xf32>
    %898 = vector.broadcast %897 : vector<16x1xf32> to vector<16x128xf32>
    %899 = arith.subf %893, %898 : vector<16x128xf32>
    %c0_300 = arith.constant 0 : index
    %c0_301 = arith.constant 0 : index
    %900 = vector.load %arg6[%c0_300, %c0_301] : memref<16x128xf32, #tpu.memory_space<vmem>>, vector<16x128xf32>
    tpu.vector_store %arg6[%c0_300, %c0_301], %899 {strides = array<i32>} : memref<16x128xf32, #tpu.memory_space<vmem>>, vector<16x128xf32>,
    return
  }
}

</mosaic_0001>

<bundles_post_ra>
// kernel: encoder_decoder_forward.1
= control target key start
LH: loop header
LB: loop body
LE: loop exit
PB: predicated region body
PF: predicated region fallthrough
CT: control target
= control target key end

     0   :  { %11 = vsyncpa [#allocation3], 0  ;;  %s12078_s0 = inlined_call_operand.vmem [shape: f32[16,32], index: 0, kind: input, shape index: {}]   ;;  %s12079_s1 = inlined_call_operand.vmem [shape: f32[16,32], index: 1, kind: input, shape index: {}]   ;;  %s12080_s2 = inlined_call_operand.vmem [shape: f32[16,16], index: 2, kind: input, shape index: {}, may-alias: {2,4}]   ;;  %s12081_s3 = inlined_call_operand.vmem [shape: f32[16,16], index: 3, kind: input, shape index: {}]   ;;  %s12082_s4 = inlined_call_operand.vmem [shape: f32[16,16], index: 4, kind: input, shape index: {}, may-alias: {2,4}]   ;;  %s12083_s5 = inlined_call_operand.hbm [shape: f32[1048,512], index: 5, kind: input, shape index: {}]   ;;  %s12084_s6 = inlined_call_operand.hbm [shape: f32[16,128], index: 6, kind: output, shape index: {}]  }
   0x1   :  { %12 = vsyncpa [#allocation4], 0  ;;  %s11093_s21 = smov [#allocation2]   ;;  %s11045_s25 = scalar_lea.hbm %s12083_s5, 67072 }
   0x2   :  { %s28_s22 = sshll.u32 %s11093_s21, 4  ;;  %p11046_p0 = scmp.ne.s32.totalorder %s12083_s5, %s11045_s25  ;;  %s29_s22 = int_to_ptr.vmem [resolvable:$true] %s28_s22 }
   0x3   :  { %p11049_p1 = scmp.lt.u32.totalorder %s11045_s25, %s12083_s5 }
   0x5   :  { %p11051_p2 = pnand %p11049_p1, %p11046_p0 }
   0x7   :  { %11054 = shalt.err (!%p11051_p2)
}
   0x8   :  { %s11055_s30 = scalar_lea.vmem %s29_s22, 67072  ;;  %p11060_p4 = scmp.lt.s32.totalorder %s29_s22, %s29_s22 }
   0x9   :  { %p11056_p3 = scmp.ne.s32.totalorder %s29_s22, %s11055_s30  ;;  %p11061_p5 = scmp.lt.s32.totalorder %s11055_s30, %s11055_s30 }
   0xb   :  { %p11062_p6 = por %p11061_p5, %p11060_p4 }
   0xd   :  { %p11063_p7 = pnand %p11062_p6, %p11056_p3 }
   0xf   :  { %11066 = shalt.err (!%p11063_p7)
}
  0x10   :  { %s11094_s7 = smov 512   ;;  %s11095_s8 = smov 32  }
  0x11   :  { %34 = dma.hbm_to_vmem [thread:$0]  %s12083_s5, 67072, %s29_s22, [#allocation3], %s11094_s7, %s11094_s7, %s11095_s8  }
  0x12   :  { %11089 = dma.done.wait [#allocation3], 67072  }
  0x13   :  { %11090 = vsyncadd [#allocation3], 4294900224  ;;  %vm48_vm0 = vcmask 261120   ;;  %v11150_v0 = vld [vmem:[%s12078_s0] sm:$0xff]  ;;  %v11155_v1 = vld [vmem:[%s12078_s0 + $0x8] sm:$0xff]  ;;  %v11096_v21 = vmov 0.0  }
  0x14   :  { %v49_v2 = vsel %vm48_vm0, %v11150_v0, 0.0  ;;  %v52_v3 = vsel %vm48_vm0, %v11155_v1, 0.0  ;;  %v95_v14 = vld [vmem:[#allocation2 + $0x8] sm:$0xff]  ;;  %v97_v16 = vld [vmem:[#allocation2 + $0x18] sm:$0xff]  ;;  %v94_v19 = vld [vmem:[#allocation2] sm:$0xff]  ;;  %203 = vmatprep.mubr.f32.mxu0 %v11096_v21  ;;  %280 = vmatprep.mubr.f32.mxu1 %v11096_v21  ;;  %vm735_vm5 = vcmask 130048  }
  0x15   :  { %50 = vadd.xlane.f32.xlu0 %v49_v2  ;;  %v99_v15 = vld [vmem:[#allocation2 + $0x28] sm:$0xff]  ;;  %v101_v18 = vld [vmem:[#allocation2 + $0x38] sm:$0xff]  ;;  %v98_v20 = vld [vmem:[#allocation2 + $0x20] sm:$0xff]  ;;  %vm1537_vm10 = vcmask 523264  }
  0x16   :  { %v10116_v17 = vpack.c.bf16 %v99_v15, %v95_v14  ;;  %v10124_v22 = vpack.c.bf16 %v101_v18, %v97_v16  ;;  %v10118_v23 = vpack.c.bf16 %v98_v20, %v94_v19  ;;  %v96_v24 = vld [vmem:[#allocation2 + $0x10] sm:$0xff]  ;;  %v103_v26 = vld [vmem:[#allocation2 + $0x48] sm:$0xff]  ;;  %v105_v29 = vld [vmem:[#allocation2 + $0x58] sm:$0xff] }
  0x17   :  { %v100_v25 = vld [vmem:[#allocation2 + $0x30] sm:$0xff]  ;;  %v107_v28 = vld [vmem:[#allocation2 + $0x68] sm:$0xff]  ;;  %v109_v30 = vld [vmem:[#allocation2 + $0x78] sm:$0xff] }
  0x18   :  { %10117 = vmatprep.subr.bf16.mxu0 %v10116_v17  ;;  %v10126_v27 = vpack.c.bf16 %v100_v25, %v96_v24  ;;  %10125 = vmatprep.subr.bf16.mxu1 %v10124_v22  ;;  %v10120_v31 = vpack.c.bf16 %v107_v28, %v103_v26  ;;  %v10128_v32 = vpack.c.bf16 %v109_v30, %v105_v29  ;;  %v102_v33 = vld [vmem:[#allocation2 + $0x40] sm:$0xff]  ;;  %v104_v35 = vld [vmem:[#allocation2 + $0x50] sm:$0xff]  ;;  %v294_v39 = vld [vmem:[#allocation2 + $0x88] sm:$0xff] }
  0x19   :  { %53 = vadd.xlane.f32.xlu0 %v52_v3  ;;  %10119 = vmatpush1.bf16.msra.mxu0 %v10118_v23  ;;  %v106_v34 = vld [vmem:[#allocation2 + $0x60] sm:$0xff]  ;;  %v108_v37 = vld [vmem:[#allocation2 + $0x70] sm:$0xff]  ;;  %v298_v40 = vld [vmem:[#allocation2 + $0xa8] sm:$0xff] }
  0x1a   :  { %10127 = vmatpush1.bf16.msra.mxu1 %v10126_v27  ;;  %v10122_v36 = vpack.c.bf16 %v106_v34, %v102_v33  ;;  %10121 = vmatprep.subr.bf16.mxu0 %v10120_v31  ;;  %v10130_v38 = vpack.c.bf16 %v108_v37, %v104_v35  ;;  %v296_v41 = vld [vmem:[#allocation2 + $0x98] sm:$0xff]  ;;  %v10132_v42 = vpack.c.bf16 %v298_v40, %v294_v39  ;;  %v46_v62 = vld [vmem:[#allocation2 + $0xf85] ss:$0 sm:$0xff]  ;;  %v303_v22 = vld [vmem:[#allocation2 + $0xd0] sm:$0xff] }
  0x1b   :  { %10129 = vmatprep.subr.bf16.mxu1 %v10128_v32  ;;  %v300_v43 = vld [vmem:[#allocation2 + $0xb8] sm:$0xff]  ;;  %v293_v63 = vld [vmem:[#allocation2 + $0x80] sm:$0xff]  ;;  %v487_v25 = vld [vmem:[#allocation2 + $0x108] sm:$0xff] }
  0x1c   :  { %v10140_v44 = vpack.c.bf16 %v300_v43, %v296_v41  ;;  %v297_v3 = vld [vmem:[#allocation2 + $0xa0] sm:$0xff]  ;;  %v491_v27 = vld [vmem:[#allocation2 + $0x128] sm:$0xff]  ;;  %v489_v28 = vld [vmem:[#allocation2 + $0x118] sm:$0xff] }
  0x1d   :  { %10123 = vmatpush1.bf16.msra.mxu0 %v10122_v36  ;;  %v10134_v15 = vpack.c.bf16 %v297_v3, %v293_v63  ;;  %v301_v17 = vld [vmem:[#allocation2 + $0xc0] sm:$0xff]  ;;  %v493_v29 = vld [vmem:[#allocation2 + $0x138] sm:$0xff]  ;;  %v488_v34 = vld [vmem:[#allocation2 + $0x110] sm:$0xff]  ;;  %v10148_v36 = vpack.c.bf16 %v491_v27, %v487_v25 }
  0x1e   :  { %10131 = vmatpush1.bf16.msra.mxu1 %v10130_v38  ;;  %10133 = vmatprep.subr.bf16.mxu0 %v10132_v42  ;;  %v305_v20 = vld [vmem:[#allocation2 + $0xe0] sm:$0xff]  ;;  %v492_v35 = vld [vmem:[#allocation2 + $0x130] sm:$0xff]  ;;  %v10156_v37 = vpack.c.bf16 %v493_v29, %v489_v28  ;;  %v495_v38 = vld [vmem:[#allocation2 + $0x148] sm:$0xff] }
  0x1f   :  { %10141 = vmatprep.subr.bf16.mxu1 %v10140_v44  ;;  %v10138_v30 = vpack.c.bf16 %v305_v20, %v301_v17  ;;  %v486_v31 = vld [vmem:[#allocation2 + $0x100] sm:$0xff]  ;;  %v499_v39 = vld [vmem:[#allocation2 + $0x168] sm:$0xff]  ;;  %v497_v40 = vld [vmem:[#allocation2 + $0x158] sm:$0xff]  ;;  %v10158_v43 = vpack.c.bf16 %v492_v35, %v488_v34 }
  0x20   :  { %v490_v33 = vld [vmem:[#allocation2 + $0x120] sm:$0xff]  ;;  %v501_v41 = vld [vmem:[#allocation2 + $0x178] sm:$0xff] }
  0x21   :  { %v10150_v42 = vpack.c.bf16 %v490_v33, %v486_v31  ;;  %v494_v44 = vld [vmem:[#allocation2 + $0x140] sm:$0xff] }
  0x22   :  { %v310_v3 = vld [vmem:[#allocation2 + $0xf81] ss:$8 sm:$0xf] }
  0xa2   :  { %v51_v4 = vpop.xlane.xlu0 %50 }
  0xa3   :  { %v56_v5 = vmul.f32 0.03125, %v51_v4  ;;  %v295_v4 = vld [vmem:[#allocation2 + $0x90] sm:$0xff] }
  0xa5   :  { %v11162_v6 = vsub.f32 %v11150_v0, %v56_v5  ;;  %v299_v5 = vld [vmem:[#allocation2 + $0xb0] sm:$0xff] }
  0xa6   :  { %v54_v7 = vpop.xlane.xlu0 %53  ;;  %v10142_v16 = vpack.c.bf16 %v299_v5, %v295_v4 }
  0xa7   :  { %v57_v8 = vmul.f32 0.03125, %v54_v7  ;;  %v60_v9 = vmul.f32 %v11162_v6, %v11162_v6  ;;  %v47_v7 = vld [vmem:[#allocation2 + $0xf86] ss:$0 sm:$0xff] }
  0xa9   :  { %v11167_v10 = vsub.f32 %v11155_v1, %v57_v8  ;;  %v62_v11 = vsel %vm48_vm0, %v60_v9, 0.0  ;;  %v302_v8 = vld [vmem:[#allocation2 + $0xc8] sm:$0xff] }
  0xaa   :  { %63 = vadd.xlane.f32.xlu1 %v62_v11  ;;  %v306_v11 = vld [vmem:[#allocation2 + $0xe8] sm:$0xff] }
  0xab   :  { %v61_v12 = vmul.f32 %v11167_v10, %v11167_v10  ;;  %v10136_v23 = vpack.c.bf16 %v306_v11, %v302_v8 }
  0xad   :  { %v65_v13 = vsel %vm48_vm0, %v61_v12, 0.0  ;;  %v304_v12 = vld [vmem:[#allocation2 + $0xd8] sm:$0xff] }
  0xae   :  { %66 = vadd.xlane.f32.xlu1 %v65_v13  ;;  %v308_v13 = vld [vmem:[#allocation2 + $0xf8] sm:$0xff] }
  0xaf   :  { %v10144_v24 = vpack.c.bf16 %v308_v13, %v304_v12 }
 0x137   :  { %v64_v45 = vpop.xlane.xlu1 %63 }
 0x138   :  { %v68_v46 = vmul.f32 0.032258064, %v64_v45  ;;  %v498_v45 = vld [vmem:[#allocation2 + $0x160] sm:$0xff] }
 0x13a   :  { %10743 = vrsqrt.f32 %v68_v46  ;;  %vm72_vm1 = vcmp.eq.f32.partialorder %v68_v46, inf  ;;  %v75_v51 = vand.u32 2147483648, %v68_v46  ;;  %vm74_vm2 = vcmp.eq.f32.partialorder %v68_v46, 0.0 }
 0x13b   :  { %v67_v47 = vpop.xlane.xlu1 %66 }
 0x13c   :  { %v69_v48 = vmul.f32 0.032258064, %v67_v47  ;;  %v500_v47 = vld [vmem:[#allocation2 + $0x170] sm:$0xff] }
 0x13e   :  { %10745 = vrsqrt.f32 %v69_v48  ;;  %vm79_vm3 = vcmp.eq.f32.partialorder %v69_v48, inf  ;;  %v82_v57 = vand.u32 2147483648, %v69_v48  ;;  %vm81_vm4 = vcmp.eq.f32.partialorder %v69_v48, 0.0 }
 0x144   :  { %v10744_v49 = vpop.eup %10743 }
 0x145   :  { %v71_v50 = vmul.f32 %v10744_v49, %v68_v46  ;;  %v10160_v49 = vpack.c.bf16 %v501_v41, %v497_v40 }
 0x147   :  { %v73_v52 = vsel %vm72_vm1, %v68_v46, %v71_v50  ;;  %v496_v46 = vld [vmem:[#allocation2 + $0x150] sm:$0xff]  ;;  %v10154_v50 = vpack.c.bf16 %v498_v45, %v494_v44 }
 0x148   :  { %v10746_v53 = vpop.eup %10745  ;;  %v76_v54 = vsel %vm74_vm2, %v75_v51, %v73_v52  ;;  %v10162_v51 = vpack.c.bf16 %v500_v47, %v496_v46  ;;  %v113_v52 = vlaneseq }
 0x149   :  { %v84_v55 = vadd.f32 1e-06, %v76_v54  ;;  %v78_v56 = vmul.f32 %v10746_v53, %v69_v48 }
 0x14a   :  { %v114_v53 = vshrl.u32 %v113_v52, 7  ;;  %v11246_v52 = vld [vmem:[%s12080_s2 + $0x8] sm:$0xff] }
 0x14b   :  { %10747 = vrcp.f32 %v84_v55  ;;  %v80_v58 = vsel %vm79_vm3, %v69_v48, %v78_v56  ;;  %v10152_v48 = vpack.c.bf16 %v499_v39, %v495_v38  ;;  %v11209_v55 = vld [vmem:[#allocation2 + $0xf80] ss:$8 sm:$0xf] }
 0x14c   :  { %v83_v59 = vsel %vm81_vm4, %v82_v57, %v80_v58  ;;  %v11207_v54 = vsub.s32 0, %v114_v53  ;;  %v11211_v56 = vsub.s32 1, %v114_v53  ;;  %v11221_v4 = vsub.s32 3, %v114_v53 }
 0x14d   :  { %v85_v60 = vadd.f32 1e-06, %v83_v59  ;;  %v11228_v12 = vsub.s32 2, %v114_v53 }
 0x14e   :  { %v116_v57 = vrot.slane %v11209_v55, %v11207_v54  ;;  %v120_v58 = vrot.slane %v11209_v55, %v11211_v56  ;;  %v327_v11 = vrot.slane %v310_v3, %v11221_v4 }
 0x14f   :  { %10749 = vrcp.f32 %v85_v60 }
 0x155   :  { %v10748_v61 = vpop.eup %10747 }
 0x156   :  { %v88_v2 = vmul.f32 %v10748_v61, %v11162_v6  ;;  %v307_v6 = vld [vmem:[#allocation2 + $0xf0] sm:$0xff] }
 0x158   :  { %v90_v9 = vmul.f32 %v88_v2, %v46_v62 }
 0x159   :  { %v10750_v14 = vpop.eup %10749 }
 0x15a   :  { %v11176_v18 = vadd.f32 %v90_v9, %v47_v7  ;;  %v89_v19 = vmul.f32 %v10750_v14, %v11167_v10  ;;  %v10146_v10 = vpack.c.bf16 %v307_v6, %v303_v22 }
 0x15c   :  { %9249 = vmatmul.mubr.msk.f32.vlgmr.msra.gmra.mrb[0].mxu0 %vm48_vm0, %v11176_v18  ;;  %9251 = vmatmul.mubr.msk.f32.vlgmr.msra.gmra.mrb[0].mxu1 %vm48_vm0, %v11176_v18  ;;  %v91_v26 = vmul.f32 %v89_v19, %v46_v62  ;;  %v319_v19 = vrot.slane %v310_v3, %v11211_v56 }
 0x15d   :  { %10135 = vmatpush1.bf16.msra.mxu0 %v10134_v15  ;;  %10143 = vmatpush1.bf16.msra.mxu1 %v10142_v16  ;;  %v315_v15 = vrot.slane %v310_v3, %v11207_v54  ;;  %v323_v16 = vrot.slane %v310_v3, %v11228_v12 }
 0x15e   :  { %209 = vmatprep.mubr.f32.mxu0 %v11096_v21  ;;  %286 = vmatprep.mubr.f32.mxu1 %v11096_v21  ;;  %v93_v32 = vadd.f32 %v91_v26, %v47_v7 }
 0x15f   :  { %10137 = vmatprep.subr.bf16.mxu0 %v10136_v23  ;;  %10145 = vmatprep.subr.bf16.mxu1 %v10144_v24 }
 0x160   :  { %9250 = vmatmul.mubr.msk.f32.gmra.mrb[2].mxu0 %vm48_vm0, %v93_v32  ;;  %9252 = vmatmul.mubr.msk.f32.gmra.mrb[2].mxu1 %vm48_vm0, %v93_v32 }
 0x161   :  { %10139 = vmatpush1.bf16.msra.mxu0 %v10138_v30  ;;  %10147 = vmatpush1.bf16.msra.mxu1 %v10146_v10 }
 0x162   :  { %396 = vmatprep.mubr.f32.mxu0 %v11096_v21  ;;  %473 = vmatprep.mubr.f32.mxu1 %v11096_v21 }
 0x163   :  { %10149 = vmatprep.subr.bf16.mxu0 %v10148_v36  ;;  %10157 = vmatprep.subr.bf16.mxu1 %v10156_v37 }
 0x164   :  { %9253 = vmatmul.mubr.msk.f32.vlgmr.msra.gmra.mrb[4].mxu0 %vm48_vm0, %v11176_v18  ;;  %9255 = vmatmul.mubr.msk.f32.vlgmr.msra.gmra.mrb[4].mxu1 %vm48_vm0, %v11176_v18 }
 0x165   :  { %10151 = vmatpush1.bf16.msra.mxu0 %v10150_v42  ;;  %10159 = vmatpush1.bf16.msra.mxu1 %v10158_v43 }
 0x166   :  { %402 = vmatprep.mubr.f32.mxu0 %v11096_v21  ;;  %479 = vmatprep.mubr.f32.mxu1 %v11096_v21 }
 0x167   :  { %10153 = vmatprep.subr.bf16.mxu0 %v10152_v48  ;;  %10161 = vmatprep.subr.bf16.mxu1 %v10160_v49 }
 0x168   :  { %9254 = vmatmul.mubr.msk.f32.gmra.mrb[6].mxu0 %vm48_vm0, %v93_v32  ;;  %9256 = vmatmul.mubr.msk.f32.gmra.mrb[6].mxu1 %vm48_vm0, %v93_v32 }
 0x169   :  { %10155 = vmatpush1.bf16.msra.mxu0 %v10154_v50  ;;  %10163 = vmatpush1.bf16.msra.mxu1 %v10162_v51 }
 0x16a   :  { %566 = vmatprep.mubr.f32.mxu0 %v11096_v21  ;;  %643 = vmatprep.mubr.f32.mxu1 %v11096_v21 }
 0x16c   :  { %9257 = vmatmul.mubr.msk.f32.vlgmr.msra.gmra.mrb[8].mxu0 %vm48_vm0, %v11176_v18  ;;  %9259 = vmatmul.mubr.msk.f32.vlgmr.msra.gmra.mrb[8].mxu1 %vm48_vm0, %v11176_v18 }
 0x16d   :  { %572 = vmatprep.mubr.f32.mxu0 %v11096_v21  ;;  %649 = vmatprep.mubr.f32.mxu1 %v11096_v21 }
 0x170   :  { %9258 = vmatmul.mubr.msk.f32.gmra.mrb[10].mxu0 %vm48_vm0, %v93_v32  ;;  %9260 = vmatmul.mubr.msk.f32.gmra.mrb[10].mxu1 %vm48_vm0, %v93_v32 }
 0x22f   :  { %v205_v59 = vpop.f32.mrb[0].mxu0  ;;  %v11217_v60 = vpop.f32.mrb[0].mxu1 }
 0x230   :  { %v206_v61 = vadd.f32 %v205_v59, %v116_v57  ;;  %v207_v62 = vpop.f32.mrb[1].mxu0  ;;  %v11219_v63 = vpop.f32.mrb[1].mxu1 }
 0x231   :  { %v208_v2 = vadd.f32 %v207_v62, %v120_v58 }
 0x232   :  { %9653 = vmatprep.mubr.f32.mxu0 %v206_v61 }
 0x233   :  { %v211_v5 = vpop.f32.mrb[2].mxu0  ;;  %v11223_v7 = vpop.f32.mrb[2].mxu1  ;;  %9660 = vmatprep.mubr.f32.mxu1 %v208_v2 }
 0x234   :  { %v213_v8 = vpop.f32.mrb[3].mxu0  ;;  %v11225_v9 = vpop.f32.mrb[3].mxu1  ;;  %v212_v47 = vadd.f32 %v211_v5, %v116_v57 }
 0x235   :  { %v214_v48 = vadd.f32 %v213_v8, %v120_v58  ;;  %v11251_v58 = vld [vmem:[%s12080_s2] sm:$0xff] }
 0x237   :  { %v398_v13 = vpop.f32.mrb[4].mxu0  ;;  %v475_v14 = vpop.f32.mrb[4].mxu1 }
 0x238   :  { %v400_v17 = vpop.f32.mrb[5].mxu0  ;;  %v477_v18 = vpop.f32.mrb[5].mxu1  ;;  %v399_v23 = vadd.f32 %v398_v13, %v315_v15  ;;  %v476_v24 = vadd.f32 %v475_v14, %v323_v16 }
 0x239   :  { %v478_v20 = vadd.f32 %v477_v18, %v327_v11  ;;  %v401_v29 = vadd.f32 %v400_v17, %v319_v19 }
 0x23b   :  { %v404_v22 = vpop.f32.mrb[6].mxu0  ;;  %v481_v6 = vpop.f32.mrb[6].mxu1 }
 0x23c   :  { %v405_v25 = vadd.f32 %v404_v22, %v315_v15  ;;  %v482_v26 = vadd.f32 %v481_v6, %v323_v16  ;;  %v406_v27 = vpop.f32.mrb[7].mxu0  ;;  %v483_v28 = vpop.f32.mrb[7].mxu1 }
 0x23d   :  { %v407_v30 = vadd.f32 %v406_v27, %v319_v19  ;;  %v484_v10 = vadd.f32 %v483_v28, %v327_v11 }
 0x23e   :  { %v10164_v31 = vpack.c.bf16 %v405_v25, %v399_v23  ;;  %v11233_v32 = vpack.c.bf16 %v482_v26, %v476_v24 }
 0x23f   :  { %v10168_v33 = vpack.c.bf16 %v407_v30, %v401_v29  ;;  %v11235_v34 = vpack.c.bf16 %v484_v10, %v478_v20  ;;  %v568_v35 = vpop.f32.mrb[8].mxu0  ;;  %v645_v36 = vpop.f32.mrb[8].mxu1  ;;  %v124_v29 = vrot.slane %v11209_v55, %v11228_v12 }
 0x240   :  { %v570_v37 = vpop.f32.mrb[9].mxu0  ;;  %v647_v38 = vpop.f32.mrb[9].mxu1  ;;  %10165 = vmatprep.subr.bf16.mxu0 %v10164_v31 }
 0x241   :  { %10167 = vmatpush3.bf16.xpose.msra.mxu0 %v10164_v31  ;;  %10169 = vmatprep.subr.bf16.mxu1 %v10168_v33 }
 0x242   :  { %10171 = vmatpush3.bf16.xpose.msra.mxu1 %v10168_v33  ;;  %v283_v33 = vadd.f32 %v11217_v60, %v124_v29 }
 0x243   :  { %v574_v39 = vpop.f32.mrb[10].mxu0  ;;  %v651_v40 = vpop.f32.mrb[10].mxu1 }
 0x244   :  { %v10176_v41 = vpack.c.bf16 %v574_v39, %v568_v35  ;;  %v11237_v42 = vpack.c.bf16 %v651_v40, %v645_v36  ;;  %v576_v43 = vpop.f32.mrb[11].mxu0  ;;  %v653_v44 = vpop.f32.mrb[11].mxu1  ;;  %v128_v35 = vrot.slane %v11209_v55, %v11221_v4  ;;  %v289_v36 = vadd.f32 %v11223_v7, %v124_v29 }
 0x245   :  { %v10172_v45 = vpack.c.bf16 %v576_v43, %v570_v37  ;;  %v11239_v46 = vpack.c.bf16 %v653_v44, %v647_v38 }
 0x246   :  { %10177 = vmatprep.subr.bf16.mxu0 %v10176_v41  ;;  %v285_v37 = vadd.f32 %v11219_v63, %v128_v35  ;;  %v291_v60 = vadd.f32 %v11225_v9, %v128_v35 }
 0x247   :  { %10173 = vmatprep.subr.bf16.mxu1 %v10172_v45 }
 0x248   :  { %9654 = vmatmul.mubr.f32.vlgmr.msra.gmra.mrb[12].mxu0 %v212_v47 }
 0x249   :  { %9661 = vmatmul.mubr.f32.vlgmr.msra.gmra.mrb[12].mxu1 %v214_v48  ;;  %10179 = vmatpush3.bf16.msra.mxu0 %v10176_v41 }
 0x24a   :  { %10175 = vmatpush3.bf16.msra.mxu1 %v10172_v45  ;;  %10185 = vmatprep.subr.bf16.mxu0 %v11237_v42 }
 0x24b   :  { %10181 = vmatprep.subr.bf16.mxu1 %v11233_v32 }
 0x31b   :  { %v9655_v49 = vpop.f32.mrb[12].mxu0 }
 0x31c   :  { %v722_v50 = vpop.f32.mrb[13].mxu0  ;;  %v9662_v51 = vpop.f32.mrb[12].mxu1  ;;  %v732_v16 = vmul.f32 0.35355338, %v9655_v49 }
 0x31d   :  { %v834_v53 = vmul.f32 0.35355338, %v9662_v51  ;;  %v824_v57 = vpop.f32.mrb[13].mxu1  ;;  %v731_v17 = vmul.f32 0.35355338, %v722_v50 }
 0x31e   :  { %v833_v59 = vmul.f32 0.35355338, %v824_v57  ;;  %v734_v22 = vadd.f32 %v732_v16, %v11246_v52 }
 0x31f   :  { %v836_v61 = vadd.f32 %v834_v53, %v11246_v52  ;;  %v733_v23 = vadd.f32 %v731_v17, %v11251_v58 }
 0x320   :  { %v835_v62 = vadd.f32 %v833_v59, %v11251_v58  ;;  %v739_v24 = vsel %vm735_vm5, %v734_v22, -inf }
 0x321   :  { %v840_v2 = vsel %vm735_vm5, %v836_v61, -inf  ;;  %v736_v25 = vsel %vm735_vm5, %v733_v23, -inf }
 0x322   :  { %841 = vmax.xlane.f32.xlu1 %v840_v2  ;;  %v837_v3 = vsel %vm735_vm5, %v835_v62, -inf }
 0x323   :  { %838 = vmax.xlane.f32.xlu0 %v837_v3 }
 0x3af   :  { %v842_v5 = vpop.xlane.xlu1 %841 }
 0x3b0   :  { %v844_v8 = vsub.f32 %v836_v61, %v842_v5  ;;  %v839_v11 = vpop.xlane.xlu0 %838 }
 0x3b1   :  { %v843_v13 = vsub.f32 %v835_v62, %v839_v11 }
 0x3b2   :  { %v847_v14 = vmul.f32 1.442695, %v844_v8 }
 0x3b3   :  { %v845_v15 = vmul.f32 1.442695, %v843_v13 }
 0x3b4   :  { %10751 = vpow2.f32 %v847_v14 }
 0x3b5   :  { %10753 = vpow2.f32 %v845_v15 }
 0x3be   :  { %v10752_v18 = vpop.eup %10751 }
 0x3bf   :  { %v10754_v19 = vpop.eup %10753  ;;  %v852_v20 = vsel %vm735_vm5, %v10752_v18, 0.0 }
 0x3c0   :  { %853 = vadd.xlane.f32.xlu1 %v852_v20  ;;  %v849_v6 = vsel %vm735_vm5, %v10754_v19, 0.0 }
 0x3c1   :  { %850 = vadd.xlane.f32.xlu0 %v849_v6 }
 0x3c4   :  { %740 = vmax.xlane.f32.xlu1 %v739_v24 }
 0x3c5   :  { %737 = vmax.xlane.f32.xlu0 %v736_v25 }
 0x44d   :  { %v854_v26 = vpop.xlane.xlu1 %853 }
 0x44e   :  { %10755 = vrcp.f32 %v854_v26  ;;  %v851_v27 = vpop.xlane.xlu0 %850 }
 0x44f   :  { %10757 = vrcp.f32 %v851_v27 }
 0x452   :  { %v738_v40 = vpop.xlane.xlu0 %737 }
 0x453   :  { %v742_v43 = vsub.f32 %v733_v23, %v738_v40 }
 0x455   :  { %v744_v7 = vmul.f32 1.442695, %v742_v43 }
 0x458   :  { %v10756_v28 = vpop.eup %10755 }
 0x459   :  { %v10758_v30 = vpop.eup %10757  ;;  %v858_v31 = vmul.f32 %v10756_v28, %v10752_v18 }
 0x45a   :  { %v857_v10 = vmul.f32 %v10758_v30, %v10754_v19 }
 0x45c   :  { %9667 = vmatprep.mubr.msk.f32.mxu1 %vm735_vm5, %v857_v10 }
 0x45d   :  { %9668 = vmatmul.mubr.msk.f32.vlgmr.msra.gmra.mrb[14].mxu1 %vm735_vm5, %v858_v31 }
 0x45e   :  { %10183 = vmatpush3.bf16.xpose.msra.mxu1 %v11233_v32  ;;  %9681 = vmatprep.mubr.f32.mxu1 %v283_v33  ;;  %v741_v32 = vpop.xlane.xlu1 %740 }
 0x45f   :  { %10189 = vmatprep.subr.bf16.mxu1 %v11235_v34  ;;  %v743_v41 = vsub.f32 %v734_v22, %v741_v32 }
 0x461   :  { %v746_v55 = vmul.f32 1.442695, %v743_v41 }
 0x463   :  { %10759 = vpow2.f32 %v746_v55 }
 0x464   :  { %10761 = vpow2.f32 %v744_v7 }
 0x465   :  { %9682 = vmatmul.mubr.f32.vlgmr.msra.gmra.mrb[16].mxu1 %v289_v36 }
 0x466   :  { %10191 = vmatpush3.bf16.xpose.msra.mxu1 %v11235_v34  ;;  %9695 = vmatprep.mubr.f32.mxu1 %v285_v37 }
 0x46d   :  { %9696 = vmatmul.mubr.f32.vlgmr.msra.gmra.mrb[18].mxu1 %v291_v60  ;;  %v10760_v2 = vpop.eup %10759 }
 0x46e   :  { %v10762_v5 = vpop.eup %10761  ;;  %v751_v8 = vsel %vm735_vm5, %v10760_v2, 0.0 }
 0x46f   :  { %v748_v11 = vsel %vm735_vm5, %v10762_v5, 0.0 }
 0x530   :  { %v11276_v38 = vpop.f32.mrb[14].mxu1 }
 0x531   :  { %v11278_v39 = vpop.f32.mrb[15].mxu1 }
 0x538   :  { %v9683_v44 = vpop.f32.mrb[16].mxu1 }
 0x539   :  { %v1097_v45 = vmul.f32 0.35355338, %v9683_v44  ;;  %v1087_v63 = vpop.f32.mrb[17].mxu1 }
 0x53a   :  { %v1096_v47 = vmul.f32 0.35355338, %v1087_v63 }
 0x53b   :  { %v1099_v34 = vadd.f32 %v1097_v45, %v11246_v52 }
 0x53c   :  { %v1098_v9 = vadd.f32 %v1096_v47, %v11251_v58 }
 0x53d   :  { %v1103_v48 = vsel %vm735_vm5, %v1099_v34, -inf }
 0x53e   :  { %1104 = vmax.xlane.f32.xlu1 %v1103_v48  ;;  %v1100_v49 = vsel %vm735_vm5, %v1098_v9, -inf }
 0x53f   :  { %1101 = vmax.xlane.f32.xlu0 %v1100_v49  ;;  %v1389_v49 = vld [vmem:[#allocation2 + $0xf82] ss:$0 sm:$0xff] }
 0x540   :  { %v9697_v50 = vpop.f32.mrb[18].mxu1 }
 0x541   :  { %v1281_v51 = vmul.f32 0.35355338, %v9697_v50  ;;  %v1271_v53 = vpop.f32.mrb[19].mxu1 }
 0x542   :  { %v1280_v57 = vmul.f32 0.35355338, %v1271_v53 }
 0x543   :  { %v1283_v59 = vadd.f32 %v1281_v51, %v11246_v52 }
 0x544   :  { %v1282_v61 = vadd.f32 %v1280_v57, %v11251_v58 }
 0x545   :  { %v1287_v62 = vsel %vm735_vm5, %v1283_v59, -inf }
 0x546   :  { %1288 = vmax.xlane.f32.xlu1 %v1287_v62  ;;  %v1284_v3 = vsel %vm735_vm5, %v1282_v61, -inf }
 0x547   :  { %1285 = vmax.xlane.f32.xlu0 %v1284_v3 }
 0x54a   :  { %752 = vadd.xlane.f32.xlu1 %v751_v8 }
 0x54b   :  { %749 = vadd.xlane.f32.xlu0 %v748_v11 }
 0x5cb   :  { %v1105_v13 = vpop.xlane.xlu1 %1104 }
 0x5cc   :  { %v1107_v14 = vsub.f32 %v1099_v34, %v1105_v13  ;;  %v1102_v15 = vpop.xlane.xlu0 %1101 }
 0x5cd   :  { %v1106_v16 = vsub.f32 %v1098_v9, %v1102_v15  ;;  %v1440_v15 = vld [vmem:[#allocation2 + $0x180] sm:$0xff] }
 0x5ce   :  { %v1110_v17 = vmul.f32 1.442695, %v1107_v14 }
 0x5cf   :  { %v1108_v18 = vmul.f32 1.442695, %v1106_v16  ;;  %v1441_v16 = vld [vmem:[#allocation2 + $0x1a0] sm:$0xff] }
 0x5d0   :  { %10763 = vpow2.f32 %v1110_v17  ;;  %v1442_v17 = vld [vmem:[#allocation2 + $0x1c0] sm:$0xff] }
 0x5d1   :  { %10765 = vpow2.f32 %v1108_v18  ;;  %v10196_v18 = vpack.c.bf16 %v1441_v16, %v1440_v15 }
 0x5d3   :  { %v1289_v19 = vpop.xlane.xlu1 %1288 }
 0x5d4   :  { %v1291_v20 = vsub.f32 %v1283_v59, %v1289_v19  ;;  %v1286_v22 = vpop.xlane.xlu0 %1285  ;;  %v1443_v19 = vld [vmem:[#allocation2 + $0x1e0] sm:$0xff] }
 0x5d5   :  { %v1290_v6 = vsub.f32 %v1282_v61, %v1286_v22  ;;  %v1528_v22 = vld [vmem:[#allocation2 + $0x200] sm:$0xff] }
 0x5d6   :  { %v1294_v23 = vmul.f32 1.442695, %v1291_v20  ;;  %v10200_v20 = vpack.c.bf16 %v1443_v19, %v1442_v17 }
 0x5d7   :  { %v1292_v24 = vmul.f32 1.442695, %v1290_v6  ;;  %v753_v25 = vpop.xlane.xlu1 %752  ;;  %v1529_v6 = vld [vmem:[#allocation2 + $0x220] sm:$0xff] }
 0x5d8   :  { %10767 = vpow2.f32 %v1294_v23  ;;  %v750_v26 = vpop.xlane.xlu0 %749  ;;  %v1530_v23 = vld [vmem:[#allocation2 + $0x240] sm:$0xff] }
 0x5d9   :  { %10769 = vpow2.f32 %v1292_v24  ;;  %v10204_v24 = vpack.c.bf16 %v1529_v6, %v1528_v22 }
 0x5da   :  { %v10764_v27 = vpop.eup %10763  ;;  %10771 = vrcp.f32 %v753_v25  ;;  %v1531_v25 = vld [vmem:[#allocation2 + $0x260] sm:$0xff] }
 0x5db   :  { %v10766_v28 = vpop.eup %10765  ;;  %10773 = vrcp.f32 %v750_v26  ;;  %v1115_v29 = vsel %vm735_vm5, %v10764_v27, 0.0  ;;  %v10208_v26 = vpack.c.bf16 %v1531_v25, %v1530_v23  ;;  %10205 = vmatprep.subr.bf16.mxu1 %v10204_v24 }
 0x5dc   :  { %1116 = vadd.xlane.f32.xlu1 %v1115_v29  ;;  %v1112_v30 = vsel %vm735_vm5, %v10766_v28, 0.0  ;;  %10207 = vmatpush3.bf16.msra.mxu1 %v10204_v24 }
 0x5dd   :  { %1113 = vadd.xlane.f32.xlu0 %v1112_v30  ;;  %10209 = vmatprep.subr.bf16.mxu1 %v10208_v26 }
 0x5e0   :  { %10211 = vmatpush3.bf16.msra.mxu1 %v10208_v26 }
 0x5e2   :  { %v10768_v10 = vpop.eup %10767 }
 0x5e3   :  { %v10770_v31 = vpop.eup %10769  ;;  %v1299_v33 = vsel %vm735_vm5, %v10768_v10, 0.0 }
 0x5e4   :  { %v10772_v35 = vpop.eup %10771  ;;  %1300 = vadd.xlane.f32.xlu1 %v1299_v33  ;;  %v1296_v36 = vsel %vm735_vm5, %v10770_v31, 0.0 }
 0x5e5   :  { %v10774_v37 = vpop.eup %10773  ;;  %1297 = vadd.xlane.f32.xlu0 %v1296_v36  ;;  %v757_v32 = vmul.f32 %v10772_v35, %v10760_v2 }
 0x5e6   :  { %v756_v60 = vmul.f32 %v10774_v37, %v10762_v5 }
 0x5e8   :  { %9674 = vmatprep.mubr.msk.f32.mxu0 %vm735_vm5, %v756_v60 }
 0x5e9   :  { %9675 = vmatmul.mubr.msk.f32.vlgmr.msra.gmra.mrb[14].mxu0 %vm735_vm5, %v757_v32 }
 0x5ea   :  { %10187 = vmatpush3.bf16.msra.mxu0 %v11237_v42 }
 0x5eb   :  { %10193 = vmatprep.subr.bf16.mxu0 %v11239_v46 }
 0x669   :  { %v1117_v40 = vpop.xlane.xlu1 %1116 }
 0x66a   :  { %10775 = vrcp.f32 %v1117_v40  ;;  %v1114_v41 = vpop.xlane.xlu0 %1113 }
 0x66b   :  { %10777 = vrcp.f32 %v1114_v41 }
 0x671   :  { %v1301_v43 = vpop.xlane.xlu1 %1300 }
 0x672   :  { %10779 = vrcp.f32 %v1301_v43  ;;  %v1298_v55 = vpop.xlane.xlu0 %1297 }
 0x673   :  { %10781 = vrcp.f32 %v1298_v55 }
 0x674   :  { %v10776_v44 = vpop.eup %10775 }
 0x675   :  { %v10778_v7 = vpop.eup %10777  ;;  %v1121_v63 = vmul.f32 %v10776_v44, %v10764_v27  ;;  %v1532_v27 = vld [vmem:[#allocation2 + $0x280] sm:$0xff] }
 0x676   :  { %v1120_v45 = vmul.f32 %v10778_v7, %v10766_v28  ;;  %v1533_v28 = vld [vmem:[#allocation2 + $0x2a0] sm:$0xff] }
 0x677   :  { %v10212_v29 = vpack.c.bf16 %v1533_v28, %v1532_v27  ;;  %v1668_v28 = vld [vmem:[#allocation2 + $0x308] sm:$0xff] }
 0x678   :  { %9688 = vmatprep.mubr.msk.f32.mxu0 %vm735_vm5, %v1120_v45 }
 0x679   :  { %9689 = vmatmul.mubr.msk.f32.vlgmr.msra.gmra.mrb[14].mxu0 %vm735_vm5, %v1121_v63  ;;  %10213 = vmatprep.subr.bf16.mxu1 %v10212_v29 }
 0x67a   :  { %10195 = vmatpush3.bf16.msra.mxu0 %v11239_v46  ;;  %10215 = vmatpush3.bf16.msra.mxu1 %v10212_v29  ;;  %v1672_v29 = vld [vmem:[#allocation2 + $0x328] sm:$0xff] }
 0x67b   :  { %10197 = vmatprep.subr.bf16.mxu0 %v10196_v18 }
 0x67c   :  { %v10780_v42 = vpop.eup %10779 }
 0x67d   :  { %v10782_v47 = vpop.eup %10781  ;;  %v1305_v9 = vmul.f32 %v10780_v42, %v10768_v10  ;;  %v1394_v42 = vld [vmem:[#allocation2 + $0xf87] ss:$0 sm:$0xff] }
 0x67e   :  { %v1304_v34 = vmul.f32 %v10782_v47, %v10770_v31 }
 0x680   :  { %9702 = vmatprep.mubr.msk.f32.mxu0 %vm735_vm5, %v1304_v34 }
 0x681   :  { %9703 = vmatmul.mubr.msk.f32.vlgmr.msra.gmra.mrb[14].mxu0 %vm735_vm5, %v1305_v9 }
 0x682   :  { %10199 = vmatpush3.bf16.msra.mxu0 %v10196_v18 }
 0x683   :  { %10201 = vmatprep.subr.bf16.mxu0 %v10200_v20 }
 0x686   :  { %10203 = vmatpush3.bf16.msra.mxu0 %v10200_v20 }
 0x754   :  { %v9704_v48 = vpop.f32.mrb[14].mxu0 }
 0x755   :  { %v10700_v50 = vadd.f32 %v9704_v48, %v11276_v38  ;;  %v1378_v51 = vpop.f32.mrb[15].mxu0  ;;  %v1395_v48 = vld [vmem:[#allocation2 + $0xfa0] ss:$0 sm:$0xff] }
 0x756   :  { %v10701_v53 = vadd.f32 %v1378_v51, %v11278_v39 }
 0x757   :  { %v1391_v57 = vadd.f32 %v10700_v50, %v1389_v49 }
 0x758   :  { %v1390_v59 = vadd.f32 %v10701_v53, %v1389_v49 }
 0x759   :  { %v11306_v61 = vadd.f32 %v1391_v57, %v11155_v1  ;;  %v1534_v57 = vld [vmem:[#allocation2 + $0x2c0] sm:$0xff] }
 0x75a   :  { %v11309_v46 = vadd.f32 %v1390_v59, %v11150_v0  ;;  %v1535_v59 = vld [vmem:[#allocation2 + $0x2e0] sm:$0xff] }
 0x75b   :  { %v1399_v62 = vsel %vm48_vm0, %v11306_v61, 0.0 }
 0x75c   :  { %1400 = vadd.xlane.f32.xlu1 %v1399_v62  ;;  %v1396_v2 = vsel %vm48_vm0, %v11309_v46, 0.0  ;;  %v10216_v62 = vpack.c.bf16 %v1535_v59, %v1534_v57  ;;  %v2064_v57 = vld [vmem:[#allocation2 + $0x428] sm:$0xff] }
 0x75d   :  { %1397 = vadd.xlane.f32.xlu0 %v1396_v2  ;;  %v1444_v2 = vld [vmem:[#allocation2 + $0xf83] ss:$0 sm:$0xff] }
 0x75e   :  { %10217 = vmatprep.subr.bf16.mxu1 %v10216_v62 }
 0x75f   :  { %10219 = vmatpush3.bf16.msra.mxu1 %v10216_v62 }
 0x7e9   :  { %v1401_v38 = vpop.xlane.xlu1 %1400 }
 0x7ea   :  { %v1403_v3 = vmul.f32 0.03125, %v1401_v38  ;;  %v1398_v5 = vpop.xlane.xlu0 %1397 }
 0x7eb   :  { %v1402_v39 = vmul.f32 0.03125, %v1398_v5 }
 0x7ec   :  { %v1405_v8 = vsub.f32 %v11306_v61, %v1403_v3 }
 0x7ed   :  { %v1404_v1 = vsub.f32 %v11309_v46, %v1402_v39 }
 0x7ee   :  { %v1407_v11 = vmul.f32 %v1405_v8, %v1405_v8 }
 0x7ef   :  { %v1406_v13 = vmul.f32 %v1404_v1, %v1404_v1 }
 0x7f0   :  { %v1411_v0 = vsel %vm48_vm0, %v1407_v11, 0.0  ;;  %v1536_v11 = vld [vmem:[#allocation2 + $0xf84] ss:$0 sm:$0xff] }
 0x7f1   :  { %1412 = vadd.xlane.f32.xlu1 %v1411_v0  ;;  %v1408_v14 = vsel %vm48_vm0, %v1406_v13, 0.0 }
 0x7f2   :  { %1409 = vadd.xlane.f32.xlu0 %v1408_v14 }
 0x87e   :  { %v1413_v30 = vpop.xlane.xlu1 %1412 }
 0x87f   :  { %v1415_v10 = vmul.f32 0.032258064, %v1413_v30  ;;  %v1410_v31 = vpop.xlane.xlu0 %1409  ;;  %v1867_v30 = vld [vmem:[#allocation2 + $0x388] sm:$0xff] }
 0x880   :  { %v1414_v33 = vmul.f32 0.032258064, %v1410_v31  ;;  %v1871_v31 = vld [vmem:[#allocation2 + $0x3a8] sm:$0xff] }
 0x881   :  { %10783 = vrsqrt.f32 %v1415_v10  ;;  %vm1425_vm6 = vcmp.eq.f32.partialorder %v1415_v10, inf  ;;  %v1428_v60 = vand.u32 2147483648, %v1415_v10  ;;  %vm1427_vm7 = vcmp.eq.f32.partialorder %v1415_v10, 0.0 }
 0x882   :  { %10785 = vrsqrt.f32 %v1414_v33  ;;  %vm1418_vm8 = vcmp.eq.f32.partialorder %v1414_v33, inf  ;;  %v1421_v41 = vand.u32 2147483648, %v1414_v33  ;;  %vm1420_vm9 = vcmp.eq.f32.partialorder %v1414_v33, 0.0 }
 0x88b   :  { %v10784_v35 = vpop.eup %10783 }
 0x88c   :  { %v10786_v36 = vpop.eup %10785  ;;  %v1424_v37 = vmul.f32 %v10784_v35, %v1415_v10  ;;  %v1671_v35 = vld [vmem:[#allocation2 + $0x320] sm:$0xff] }
 0x88d   :  { %v1417_v32 = vmul.f32 %v10786_v36, %v1414_v33  ;;  %v10236_v36 = vpack.c.bf16 %v1871_v31, %v1867_v30  ;;  %v1622_v30 = vld [vmem:[#allocation2 + $0xfa7] ss:$0 sm:$0xff] }
 0x88e   :  { %v1426_v40 = vsel %vm1425_vm6, %v1415_v10, %v1424_v37  ;;  %v10220_v10 = vpack.c.bf16 %v1672_v29, %v1668_v28  ;;  %v2063_v28 = vld [vmem:[#allocation2 + $0x420] sm:$0xff] }
 0x88f   :  { %v1429_v43 = vsel %vm1427_vm7, %v1428_v60, %v1426_v40  ;;  %v1419_v55 = vsel %vm1418_vm8, %v1414_v33, %v1417_v32  ;;  %v1667_v33 = vld [vmem:[#allocation2 + $0x300] sm:$0xff]  ;;  %v1676_v40 = vld [vmem:[#allocation2 + $0x348] sm:$0xff]  ;;  %10237 = vmatprep.subr.bf16.mxu1 %v10236_v36 }
 0x890   :  { %v1431_v44 = vadd.f32 1e-06, %v1429_v43  ;;  %v1422_v7 = vsel %vm1420_vm9, %v1421_v41, %v1419_v55  ;;  %v10222_v37 = vpack.c.bf16 %v1671_v35, %v1667_v33  ;;  %v1866_v60 = vld [vmem:[#allocation2 + $0x380] sm:$0xff]  ;;  %10221 = vmatprep.subr.bf16.mxu0 %v10220_v10  ;;  %v1680_v43 = vld [vmem:[#allocation2 + $0x368] sm:$0xff]  ;;  %v1678_v10 = vld [vmem:[#allocation2 + $0x358] sm:$0xff] }
 0x891   :  { %v1430_v45 = vadd.f32 1e-06, %v1422_v7  ;;  %v1870_v32 = vld [vmem:[#allocation2 + $0x3a0] sm:$0xff]  ;;  %v1875_v55 = vld [vmem:[#allocation2 + $0x3c8] sm:$0xff]  ;;  %v10224_v7 = vpack.c.bf16 %v1680_v43, %v1676_v40  ;;  %v1682_v33 = vld [vmem:[#allocation2 + $0x378] sm:$0xff] }
 0x892   :  { %10787 = vrcp.f32 %v1431_v44  ;;  %v10238_v41 = vpack.c.bf16 %v1870_v32, %v1866_v60  ;;  %v1879_v44 = vld [vmem:[#allocation2 + $0x3e8] sm:$0xff]  ;;  %v1677_v32 = vld [vmem:[#allocation2 + $0x350] sm:$0xff] }
 0x893   :  { %10789 = vrcp.f32 %v1430_v45  ;;  %v10240_v45 = vpack.c.bf16 %v1879_v44, %v1875_v55  ;;  %v2068_v35 = vld [vmem:[#allocation2 + $0x448] sm:$0xff]  ;;  %v1681_v43 = vld [vmem:[#allocation2 + $0x370] sm:$0xff]  ;;  %v2067_v55 = vld [vmem:[#allocation2 + $0x440] sm:$0xff]  ;;  %v10232_v44 = vpack.c.bf16 %v1682_v33, %v1678_v10 }
 0x894   :  { %v2072_v36 = vld [vmem:[#allocation2 + $0x468] sm:$0xff] }
 0x89c   :  { %v10788_v63 = vpop.eup %10787 }
 0x89d   :  { %v10790_v47 = vpop.eup %10789  ;;  %v1435_v34 = vmul.f32 %v10788_v63, %v1405_v8  ;;  %v1675_v63 = vld [vmem:[#allocation2 + $0x340] sm:$0xff] }
 0x89e   :  { %v1434_v9 = vmul.f32 %v10790_v47, %v1404_v1  ;;  %v1874_v47 = vld [vmem:[#allocation2 + $0x3c0] sm:$0xff] }
 0x89f   :  { %v1437_v49 = vmul.f32 %v1435_v34, %v1394_v42 }
 0x8a0   :  { %v1436_v50 = vmul.f32 %v1434_v9, %v1394_v42  ;;  %v1679_v42 = vld [vmem:[#allocation2 + $0x360] sm:$0xff] }
 0x8a1   :  { %v1439_v53 = vadd.f32 %v1437_v49, %v1395_v48  ;;  %v10226_v34 = vpack.c.bf16 %v1679_v42, %v1675_v63  ;;  %v1878_v9 = vld [vmem:[#allocation2 + $0x3e0] sm:$0xff]  ;;  %v1670_v49 = vld [vmem:[#allocation2 + $0x318] sm:$0xff]  ;;  %v10234_v63 = vpack.c.bf16 %v1681_v43, %v1677_v32 }
 0x8a2   :  { %v1438_v51 = vadd.f32 %v1436_v50, %v1395_v48  ;;  %v10242_v48 = vpack.c.bf16 %v1878_v9, %v1874_v47  ;;  %v1674_v50 = vld [vmem:[#allocation2 + $0x338] sm:$0xff]  ;;  %v1872_v9 = vld [vmem:[#allocation2 + $0x3b0] sm:$0xff] }
 0x8a4   :  { %9713 = vmatprep.mubr.msk.f32.mxu0 %vm48_vm0, %v1438_v51  ;;  %v2060_v51 = vld [vmem:[#allocation2 + $0x408] sm:$0xff] }
 0x8a5   :  { %9714 = vmatmul.mubr.msk.f32.vlgmr.msra.gmra.mrb[16].mxu0 %vm48_vm0, %v1439_v53  ;;  %v10228_v53 = vpack.c.bf16 %v1674_v50, %v1670_v49  ;;  %v10252_v59 = vpack.c.bf16 %v2064_v57, %v2060_v51  ;;  %v1877_v49 = vld [vmem:[#allocation2 + $0x3d8] sm:$0xff]  ;;  %v1876_v57 = vld [vmem:[#allocation2 + $0x3d0] sm:$0xff] }
 0x8a6   :  { %1776 = vmatprep.mubr.f32.mxu0 %v11096_v21  ;;  %10223 = vmatpush1.bf16.msra.mxu0 %v10222_v37  ;;  %v1881_v50 = vld [vmem:[#allocation2 + $0x3f8] sm:$0xff] }
 0x8a7   :  { %10225 = vmatprep.subr.bf16.mxu0 %v10224_v7  ;;  %v10256_v7 = vpack.c.bf16 %v2072_v36, %v2068_v35 }
 0x8aa   :  { %10227 = vmatpush1.bf16.msra.mxu0 %v10226_v34  ;;  %v1868_v34 = vld [vmem:[#allocation2 + $0x390] sm:$0xff] }
 0x8ab   :  { %10229 = vmatprep.subr.bf16.mxu0 %v10228_v53  ;;  %v10246_v51 = vpack.c.bf16 %v1872_v9, %v1868_v34  ;;  %v10248_v53 = vpack.c.bf16 %v1881_v50, %v1877_v49 }
 0x978   :  { %v9715_v38 = vpop.f32.mrb[16].mxu0 }
 0x979   :  { %v1523_v3 = vadd.f32 %v9715_v38, %v1444_v2  ;;  %v1517_v5 = vpop.f32.mrb[17].mxu0 }
 0x97a   :  { %v1518_v39 = vadd.f32 %v1517_v5, %v1444_v2 }
 0x97b   :  { %v1527_v1 = vmax.f32 %v1523_v3, 0.0 }
 0x97c   :  { %v1526_v8 = vmax.f32 %v1518_v39, 0.0 }
 0x97e   :  { %9732 = vmatprep.mubr.msk.f32.mxu1 %vm1537_vm10, %v1526_v8 }
 0x97f   :  { %9733 = vmatmul.mubr.msk.f32.vlgmr.msra.gmra.mrb[20].mxu1 %vm1537_vm10, %v1527_v1 }
 0x980   :  { %1969 = vmatprep.mubr.f32.mxu1 %v11096_v21  ;;  %10239 = vmatpush1.bf16.msra.mxu1 %v10238_v41 }
 0x981   :  { %10241 = vmatprep.subr.bf16.mxu1 %v10240_v45  ;;  %v1873_v45 = vld [vmem:[#allocation2 + $0x3b8] sm:$0xff] }
 0x984   :  { %10243 = vmatpush1.bf16.msra.mxu1 %v10242_v48 }
 0x985   :  { %10253 = vmatprep.subr.bf16.mxu1 %v10252_v59  ;;  %v1880_v59 = vld [vmem:[#allocation2 + $0x3f0] sm:$0xff] }
 0xa52   :  { %v9734_v13 = vpop.f32.mrb[20].mxu1 }
 0xa53   :  { %v1616_v0 = vadd.f32 %v9734_v13, %v1536_v11  ;;  %v1610_v14 = vpop.f32.mrb[21].mxu1 }
 0xa54   :  { %v1611_v15 = vadd.f32 %v1610_v14, %v1536_v11 }
 0xa55   :  { %v11326_v16 = vadd.f32 %v1616_v0, %v11306_v61 }
 0xa56   :  { %v11329_v17 = vadd.f32 %v1611_v15, %v11309_v46 }
 0xa57   :  { %v1626_v18 = vsel %vm48_vm0, %v11326_v16, 0.0 }
 0xa58   :  { %1627 = vadd.xlane.f32.xlu1 %v1626_v18  ;;  %v1623_v19 = vsel %vm48_vm0, %v11329_v17, 0.0 }
 0xa59   :  { %1624 = vadd.xlane.f32.xlu0 %v1623_v19 }
 0xae5   :  { %v1628_v20 = vpop.xlane.xlu1 %1627 }
 0xae6   :  { %v1630_v22 = vmul.f32 0.03125, %v1628_v20  ;;  %v1625_v6 = vpop.xlane.xlu0 %1624 }
 0xae7   :  { %v1629_v23 = vmul.f32 0.03125, %v1625_v6 }
 0xae8   :  { %v11336_v24 = vsub.f32 %v11326_v16, %v1630_v22 }
 0xae9   :  { %v11339_v61 = vsub.f32 %v11329_v17, %v1629_v23  ;;  %v1621_v23 = vld [vmem:[#allocation2 + $0xfa6] ss:$0 sm:$0xff] }
 0xaea   :  { %v1634_v46 = vmul.f32 %v11336_v24, %v11336_v24 }
 0xaeb   :  { %v1633_v25 = vmul.f32 %v11339_v61, %v11339_v61 }
 0xaec   :  { %v1638_v26 = vsel %vm48_vm0, %v1634_v46, 0.0  ;;  %v1669_v46 = vld [vmem:[#allocation2 + $0x310] sm:$0xff] }
 0xaed   :  { %1639 = vadd.xlane.f32.xlu1 %v1638_v26  ;;  %v1635_v27 = vsel %vm48_vm0, %v1633_v25, 0.0  ;;  %v1673_v26 = vld [vmem:[#allocation2 + $0x330] sm:$0xff] }
 0xaee   :  { %1636 = vadd.xlane.f32.xlu0 %v1635_v27  ;;  %v2059_v27 = vld [vmem:[#allocation2 + $0x400] sm:$0xff]  ;;  %v10230_v37 = vpack.c.bf16 %v1673_v26, %v1669_v46 }
 0xaef   :  { %v10254_v60 = vpack.c.bf16 %v2063_v28, %v2059_v27 }
 0xb7a   :  { %v1640_v62 = vpop.xlane.xlu1 %1639 }
 0xb7b   :  { %v1642_v2 = vmul.f32 0.032258064, %v1640_v62  ;;  %v1637_v38 = vpop.xlane.xlu0 %1636  ;;  %v2062_v62 = vld [vmem:[#allocation2 + $0x418] sm:$0xff] }
 0xb7c   :  { %v1641_v3 = vmul.f32 0.032258064, %v1637_v38  ;;  %v10250_v38 = vpack.c.bf16 %v1880_v59, %v1876_v57 }
 0xb7d   :  { %10791 = vrsqrt.f32 %v1642_v2  ;;  %vm1652_vm11 = vcmp.eq.f32.partialorder %v1642_v2, inf  ;;  %v1655_v1 = vand.u32 2147483648, %v1642_v2  ;;  %vm1654_vm12 = vcmp.eq.f32.partialorder %v1642_v2, 0.0 }
 0xb7e   :  { %10793 = vrsqrt.f32 %v1641_v3  ;;  %vm1645_vm13 = vcmp.eq.f32.partialorder %v1641_v3, inf  ;;  %v1648_v0 = vand.u32 2147483648, %v1641_v3  ;;  %vm1647_vm14 = vcmp.eq.f32.partialorder %v1641_v3, 0.0 }
 0xb87   :  { %v10792_v5 = vpop.eup %10791 }
 0xb88   :  { %v10794_v39 = vpop.eup %10793  ;;  %v1651_v8 = vmul.f32 %v10792_v5, %v1642_v2  ;;  %v2061_v5 = vld [vmem:[#allocation2 + $0x410] sm:$0xff] }
 0xb89   :  { %v1644_v11 = vmul.f32 %v10794_v39, %v1641_v3  ;;  %v2065_v39 = vld [vmem:[#allocation2 + $0x430] sm:$0xff] }
 0xb8a   :  { %v1653_v13 = vsel %vm1652_vm11, %v1642_v2, %v1651_v8  ;;  %v2066_v2 = vld [vmem:[#allocation2 + $0x438] sm:$0xff] }
 0xb8b   :  { %v1656_v14 = vsel %vm1654_vm12, %v1655_v1, %v1653_v13  ;;  %v1646_v15 = vsel %vm1645_vm13, %v1641_v3, %v1644_v11  ;;  %v10260_v3 = vpack.c.bf16 %v2066_v2, %v2062_v62  ;;  %v2070_v8 = vld [vmem:[#allocation2 + $0x458] sm:$0xff]  ;;  %v10262_v11 = vpack.c.bf16 %v2065_v39, %v2061_v5 }
 0xb8c   :  { %v1658_v18 = vadd.f32 1e-06, %v1656_v14  ;;  %v1649_v19 = vsel %vm1647_vm14, %v1648_v0, %v1646_v15  ;;  %v2074_v1 = vld [vmem:[#allocation2 + $0x478] sm:$0xff]  ;;  %v2069_v0 = vld [vmem:[#allocation2 + $0x450] sm:$0xff] }
 0xb8d   :  { %v1657_v20 = vadd.f32 1e-06, %v1649_v19  ;;  %v10264_v13 = vpack.c.bf16 %v2074_v1, %v2070_v8  ;;  %v2073_v14 = vld [vmem:[#allocation2 + $0x470] sm:$0xff] }
 0xb8e   :  { %10795 = vrcp.f32 %v1658_v18  ;;  %v10266_v15 = vpack.c.bf16 %v2073_v14, %v2069_v0  ;;  %v11379_v18 = vld [vmem:[#allocation2 + $0xfa1] ss:$8 sm:$0xf] }
 0xb8f   :  { %10797 = vrcp.f32 %v1657_v20  ;;  %v1689_v19 = vrot.slane %v11379_v18, %v11207_v54  ;;  %v1883_v20 = vld [vmem:[#allocation2 + $0xfa2] ss:$8 sm:$0xf] }
 0xb90   :  { %v1900_v34 = vrot.slane %v1883_v20, %v11221_v4 }
 0xb98   :  { %v10796_v22 = vpop.eup %10795 }
 0xb99   :  { %v10798_v6 = vpop.eup %10797  ;;  %v1662_v29 = vmul.f32 %v10796_v22, %v11336_v24  ;;  %v1869_v24 = vld [vmem:[#allocation2 + $0x398] sm:$0xff]  ;;  %v1693_v22 = vrot.slane %v11379_v18, %v11211_v56 }
 0xb9a   :  { %v1661_v25 = vmul.f32 %v10798_v6, %v11339_v61  ;;  %v2071_v61 = vld [vmem:[#allocation2 + $0x460] sm:$0xff]  ;;  %v10244_v48 = vpack.c.bf16 %v1873_v45, %v1869_v24  ;;  %v1697_v24 = vrot.slane %v11379_v18, %v11228_v12 }
 0xb9b   :  { %v1664_v41 = vmul.f32 %v1662_v29, %v1621_v23  ;;  %v10258_v42 = vpack.c.bf16 %v2071_v61, %v2067_v55  ;;  %v1892_v29 = vrot.slane %v1883_v20, %v11211_v56 }
 0xb9c   :  { %v1663_v31 = vmul.f32 %v1661_v25, %v1621_v23  ;;  %v1888_v25 = vrot.slane %v1883_v20, %v11207_v54 }
 0xb9d   :  { %v1666_v47 = vadd.f32 %v1664_v41, %v1622_v30 }
 0xb9e   :  { %v11349_v40 = vadd.f32 %v1663_v31, %v1622_v30 }
 0xba0   :  { %9273 = vmatmul.mubr.msk.f32.vlgmr.msra.gmra.mrb[18].mxu0 %vm48_vm0, %v11349_v40  ;;  %9277 = vmatmul.mubr.msk.f32.vlgmr.msra.gmra.mrb[22].mxu1 %vm48_vm0, %v11349_v40 }
 0xba1   :  { %10231 = vmatpush1.bf16.msra.mxu0 %v10230_v37  ;;  %10255 = vmatpush1.bf16.msra.mxu1 %v10254_v60 }
 0xba2   :  { %1782 = vmatprep.mubr.f32.mxu0 %v11096_v21  ;;  %1975 = vmatprep.mubr.f32.mxu1 %v11096_v21 }
 0xba3   :  { %10233 = vmatprep.subr.bf16.mxu0 %v10232_v44  ;;  %10257 = vmatprep.subr.bf16.mxu1 %v10256_v7 }
 0xba4   :  { %9274 = vmatmul.mubr.msk.f32.gmra.mrb[20].mxu0 %vm48_vm0, %v1666_v47  ;;  %9278 = vmatmul.mubr.msk.f32.gmra.mrb[24].mxu1 %vm48_vm0, %v1666_v47 }
 0xba5   :  { %10235 = vmatpush1.bf16.msra.mxu0 %v10234_v63  ;;  %10259 = vmatpush1.bf16.msra.mxu1 %v10258_v42 }
 0xba6   :  { %1853 = vmatprep.mubr.f32.mxu0 %v11096_v21  ;;  %2139 = vmatprep.mubr.f32.mxu1 %v11096_v21 }
 0xba7   :  { %10245 = vmatprep.subr.bf16.mxu0 %v10244_v48 }
 0xba8   :  { %9275 = vmatmul.mubr.msk.f32.vlgmr.msra.gmra.mrb[22].mxu0 %vm48_vm0, %v11349_v40  ;;  %9281 = vmatmul.mubr.msk.f32.vlgmr.msra.gmra.mrb[26].mxu1 %vm48_vm0, %v11349_v40 }
 0xba9   :  { %10247 = vmatpush1.bf16.msra.mxu0 %v10246_v51  ;;  %1859 = vmatprep.mubr.f32.mxu0 %v11096_v21  ;;  %v1896_v51 = vrot.slane %v1883_v20, %v11228_v12 }
 0xbaa   :  { %2145 = vmatprep.mubr.f32.mxu1 %v11096_v21  ;;  %10249 = vmatprep.subr.bf16.mxu0 %v10248_v53 }
 0xbac   :  { %9276 = vmatmul.mubr.msk.f32.gmra.mrb[24].mxu0 %vm48_vm0, %v1666_v47  ;;  %9282 = vmatmul.mubr.msk.f32.gmra.mrb[28].mxu1 %vm48_vm0, %v1666_v47 }
 0xbad   :  { %10251 = vmatpush1.bf16.msra.mxu0 %v10250_v38  ;;  %2046 = vmatprep.mubr.f32.mxu0 %v11096_v21 }
 0xbae   :  { %10261 = vmatprep.subr.bf16.mxu0 %v10260_v3 }
 0xbb0   :  { %9279 = vmatmul.mubr.msk.f32.vlgmr.msra.gmra.mrb[26].mxu0 %vm48_vm0, %v11349_v40 }
 0xbb1   :  { %10263 = vmatpush1.bf16.msra.mxu0 %v10262_v11  ;;  %2052 = vmatprep.mubr.f32.mxu0 %v11096_v21 }
 0xbb2   :  { %10265 = vmatprep.subr.bf16.mxu0 %v10264_v13 }
 0xbb4   :  { %9280 = vmatmul.mubr.msk.f32.gmra.mrb[28].mxu0 %vm48_vm0, %v1666_v47 }
 0xbb5   :  { %10267 = vmatpush1.bf16.msra.mxu0 %v10266_v15  ;;  %2216 = vmatprep.mubr.f32.mxu0 %v11096_v21 }
 0xbb8   :  { %9283 = vmatmul.mubr.msk.f32.vlgmr.msra.gmra.mrb[30].mxu0 %vm48_vm0, %v11349_v40 }
 0xbb9   :  { %2222 = vmatprep.mubr.f32.mxu0 %v11096_v21 }
 0xbbc   :  { %9284 = vmatmul.mubr.msk.f32.gmra.mrb[32].mxu0 %vm48_vm0, %v1666_v47 }
 0xc73   :  { %v1778_v6 = vpop.f32.mrb[18].mxu0  ;;  %v1971_v23 = vpop.f32.mrb[22].mxu1 }
 0xc74   :  { %v1779_v46 = vadd.f32 %v1778_v6, %v1689_v19  ;;  %v1780_v26 = vpop.f32.mrb[19].mxu0  ;;  %v1973_v27 = vpop.f32.mrb[23].mxu1  ;;  %v1972_v31 = vadd.f32 %v1971_v23, %v1888_v25 }
 0xc75   :  { %v1781_v28 = vadd.f32 %v1780_v26, %v1693_v22  ;;  %v1974_v37 = vadd.f32 %v1973_v27, %v1892_v29 }
 0xc76   :  { %9739 = vmatprep.mubr.f32.mxu1 %v1779_v46 }
 0xc77   :  { %v1784_v30 = vpop.f32.mrb[20].mxu0  ;;  %v1977_v10 = vpop.f32.mrb[24].mxu1  ;;  %9746 = vmatprep.mubr.f32.mxu0 %v1781_v28 }
 0xc78   :  { %v1978_v33 = vadd.f32 %v1977_v10, %v1888_v25  ;;  %v1786_v35 = vpop.f32.mrb[21].mxu0  ;;  %v1979_v36 = vpop.f32.mrb[25].mxu1  ;;  %v1785_v9 = vadd.f32 %v1784_v30, %v1689_v19  ;;  %v11410_v30 = vld [vmem:[%s12080_s2 + $0x8] sm:$0xff] }
 0xc79   :  { %v1980_v60 = vadd.f32 %v1979_v36, %v1892_v29  ;;  %v1787_v48 = vadd.f32 %v1786_v35, %v1693_v22 }
 0xc7a   :  { %v10268_v32 = vpack.c.bf16 %v1978_v33, %v1972_v31  ;;  %v11417_v33 = vld [vmem:[%s12080_s2] sm:$0xff] }
 0xc7b   :  { %v10272_v40 = vpack.c.bf16 %v1980_v60, %v1974_v37  ;;  %v1855_v41 = vpop.f32.mrb[22].mxu0  ;;  %v2141_v43 = vpop.f32.mrb[26].mxu1 }
 0xc7c   :  { %v11387_v55 = vpop.f32.mrb[23].mxu0  ;;  %v2143_v61 = vpop.f32.mrb[27].mxu1  ;;  %10269 = vmatprep.subr.bf16.mxu1 %v10268_v32  ;;  %v1856_v50 = vadd.f32 %v1855_v41, %v1697_v24 }
 0xc7d   :  { %10271 = vmatpush3.bf16.xpose.msra.mxu1 %v10268_v32  ;;  %10273 = vmatprep.subr.bf16.mxu0 %v10272_v40 }
 0xc7e   :  { %10275 = vmatpush3.bf16.xpose.msra.mxu0 %v10272_v40 }
 0xc7f   :  { %v1861_v44 = vpop.f32.mrb[24].mxu0  ;;  %v2147_v7 = vpop.f32.mrb[28].mxu1 }
 0xc80   :  { %v11391_v45 = vpack.c.bf16 %v2147_v7, %v2141_v43  ;;  %v11393_v63 = vpop.f32.mrb[25].mxu0  ;;  %v2149_v42 = vpop.f32.mrb[29].mxu1  ;;  %v1862_v15 = vadd.f32 %v1861_v44, %v1697_v24 }
 0xc81   :  { %v10276_v47 = vpack.c.bf16 %v2149_v42, %v2143_v61 }
 0xc83   :  { %v2048_v49 = vpop.f32.mrb[26].mxu0  ;;  %10277 = vmatprep.subr.bf16.mxu1 %v10276_v47 }
 0xc84   :  { %v2050_v53 = vpop.f32.mrb[27].mxu0  ;;  %9740 = vmatmul.mubr.f32.vlgmr.msra.gmra.mrb[30].mxu1 %v1785_v9  ;;  %v2049_v62 = vadd.f32 %v2048_v49, %v1896_v51 }
 0xc85   :  { %v2051_v57 = vadd.f32 %v2050_v53, %v1900_v34  ;;  %9747 = vmatmul.mubr.f32.vlgmr.msra.gmra.mrb[34].mxu0 %v1787_v48  ;;  %10279 = vmatpush3.bf16.msra.mxu1 %v10276_v47 }
 0xc86   :  { %10281 = vmatprep.subr.bf16.mxu1 %v11391_v45  ;;  %9767 = vmatprep.mubr.f32.mxu0 %v1856_v50 }
 0xc87   :  { %v2054_v59 = vpop.f32.mrb[28].mxu0 }
 0xc88   :  { %v2055_v2 = vadd.f32 %v2054_v59, %v1896_v51  ;;  %v2056_v38 = vpop.f32.mrb[29].mxu0 }
 0xc89   :  { %v2057_v3 = vadd.f32 %v2056_v38, %v1900_v34 }
 0xc8a   :  { %v10284_v5 = vpack.c.bf16 %v2055_v2, %v2049_v62 }
 0xc8b   :  { %v11398_v39 = vpack.c.bf16 %v2057_v3, %v2051_v57  ;;  %v2218_v8 = vpop.f32.mrb[30].mxu0 }
 0xc8c   :  { %v2220_v1 = vpop.f32.mrb[31].mxu0  ;;  %10285 = vmatprep.subr.bf16.mxu0 %v10284_v5 }
 0xc8d   :  { %10287 = vmatpush3.bf16.xpose.msra.mxu0 %v10284_v5 }
 0xc8f   :  { %v2224_v11 = vpop.f32.mrb[32].mxu0 }
 0xc90   :  { %v11400_v13 = vpack.c.bf16 %v2224_v11, %v2218_v8  ;;  %v2226_v0 = vpop.f32.mrb[33].mxu0 }
 0xc91   :  { %v11402_v14 = vpack.c.bf16 %v2226_v0, %v2220_v1 }
 0xc94   :  { %9768 = vmatmul.mubr.f32.vlgmr.msra.gmra.mrb[36].mxu0 %v1862_v15 }
 0xd57   :  { %v9741_v19 = vpop.f32.mrb[30].mxu1 }
 0xd58   :  { %v2295_v20 = vpop.f32.mrb[31].mxu1  ;;  %v9748_v22 = vpop.f32.mrb[34].mxu0  ;;  %v2305_v6 = vmul.f32 0.35355338, %v9741_v19 }
 0xd59   :  { %v2406_v23 = vmul.f32 0.35355338, %v9748_v22  ;;  %v2396_v46 = vpop.f32.mrb[35].mxu0  ;;  %v2304_v25 = vmul.f32 0.35355338, %v2295_v20 }
 0xd5a   :  { %v2405_v26 = vmul.f32 0.35355338, %v2396_v46  ;;  %v2307_v10 = vadd.f32 %v11410_v30, %v2305_v6 }
 0xd5b   :  { %v2408_v27 = vadd.f32 %v2406_v23, %v11246_v52  ;;  %v2306_v52 = vadd.f32 %v11417_v33, %v2304_v25 }
 0xd5c   :  { %v2407_v28 = vadd.f32 %v2405_v26, %v11251_v58  ;;  %v2311_v58 = vsel %vm735_vm5, %v2307_v10, -inf }
 0xd5d   :  { %v2412_v29 = vsel %vm735_vm5, %v2408_v27, -inf  ;;  %v2308_v35 = vsel %vm735_vm5, %v2306_v52, -inf }
 0xd5e   :  { %2413 = vmax.xlane.f32.xlu1 %v2412_v29  ;;  %v2409_v31 = vsel %vm735_vm5, %v2407_v28, -inf }
 0xd5f   :  { %2410 = vmax.xlane.f32.xlu0 %v2409_v31 }
 0xd62   :  { %2312 = vmax.xlane.f32.xlu1 %v2311_v58 }
 0xd63   :  { %2309 = vmax.xlane.f32.xlu0 %v2308_v35 }
 0xd67   :  { %v9769_v36 = vpop.f32.mrb[36].mxu0 }
 0xd68   :  { %v2669_v37 = vmul.f32 0.35355338, %v9769_v36  ;;  %v2659_v60 = vpop.f32.mrb[37].mxu0 }
 0xd69   :  { %v2668_v32 = vmul.f32 0.35355338, %v2659_v60 }
 0xd6a   :  { %v2671_v40 = vadd.f32 %v11410_v30, %v2669_v37 }
 0xd6b   :  { %v2670_v41 = vadd.f32 %v11417_v33, %v2668_v32 }
 0xd6c   :  { %v2675_v43 = vsel %vm735_vm5, %v2671_v40, -inf }
 0xd6d   :  { %2676 = vmax.xlane.f32.xlu1 %v2675_v43  ;;  %v2672_v61 = vsel %vm735_vm5, %v2670_v41, -inf  ;;  %v1701_v43 = vrot.slane %v11379_v18, %v11221_v4 }
 0xd6e   :  { %2673 = vmax.xlane.f32.xlu0 %v2672_v61 }
 0xdeb   :  { %v2414_v44 = vpop.xlane.xlu1 %2413 }
 0xdec   :  { %v2416_v7 = vsub.f32 %v2408_v27, %v2414_v44  ;;  %v2411_v24 = vpop.xlane.xlu0 %2410  ;;  %v1858_v44 = vadd.f32 %v11387_v55, %v1701_v43 }
 0xded   :  { %v2415_v42 = vsub.f32 %v2407_v28, %v2411_v24 }
 0xdee   :  { %v2419_v47 = vmul.f32 1.442695, %v2416_v7 }
 0xdef   :  { %v2417_v34 = vmul.f32 1.442695, %v2415_v42  ;;  %v2313_v9 = vpop.xlane.xlu1 %2312 }
 0xdf0   :  { %10799 = vpow2.f32 %v2419_v47  ;;  %v2315_v48 = vsub.f32 %v2307_v10, %v2313_v9  ;;  %v2310_v49 = vpop.xlane.xlu0 %2309 }
 0xdf1   :  { %10801 = vpow2.f32 %v2417_v34  ;;  %v2314_v50 = vsub.f32 %v2306_v52, %v2310_v49 }
 0xdf2   :  { %v2318_v51 = vmul.f32 1.442695, %v2315_v48 }
 0xdf3   :  { %v2316_v53 = vmul.f32 1.442695, %v2314_v50 }
 0xdf4   :  { %10803 = vpow2.f32 %v2318_v51 }
 0xdf5   :  { %10805 = vpow2.f32 %v2316_v53 }
 0xdfa   :  { %v10800_v57 = vpop.eup %10799  ;;  %v2677_v59 = vpop.xlane.xlu1 %2676 }
 0xdfb   :  { %v10802_v62 = vpop.eup %10801  ;;  %v2679_v2 = vsub.f32 %v2671_v40, %v2677_v59  ;;  %v2674_v38 = vpop.xlane.xlu0 %2673  ;;  %v2424_v3 = vsel %vm735_vm5, %v10800_v57, 0.0 }
 0xdfc   :  { %v2678_v5 = vsub.f32 %v2670_v41, %v2674_v38  ;;  %2425 = vadd.xlane.f32.xlu1 %v2424_v3  ;;  %v2421_v8 = vsel %vm735_vm5, %v10802_v62, 0.0 }
 0xdfd   :  { %v2682_v1 = vmul.f32 1.442695, %v2679_v2  ;;  %2422 = vadd.xlane.f32.xlu0 %v2421_v8 }
 0xdfe   :  { %v10804_v11 = vpop.eup %10803  ;;  %v2680_v0 = vmul.f32 1.442695, %v2678_v5  ;;  %v2961_v5 = vld [vmem:[#allocation2 + $0xfa3] ss:$0 sm:$0xff] }
 0xdff   :  { %v10806_v15 = vpop.eup %10805  ;;  %10807 = vpow2.f32 %v2682_v1  ;;  %v2323_v19 = vsel %vm735_vm5, %v10804_v11, 0.0 }
 0xe00   :  { %10809 = vpow2.f32 %v2680_v0  ;;  %2324 = vadd.xlane.f32.xlu1 %v2323_v19  ;;  %v2320_v20 = vsel %vm735_vm5, %v10806_v15, 0.0 }
 0xe01   :  { %2321 = vadd.xlane.f32.xlu0 %v2320_v20 }
 0xe09   :  { %v10808_v22 = vpop.eup %10807 }
 0xe0a   :  { %v10810_v6 = vpop.eup %10809  ;;  %v2687_v23 = vsel %vm735_vm5, %v10808_v22, 0.0 }
 0xe0b   :  { %2688 = vadd.xlane.f32.xlu1 %v2687_v23  ;;  %v2684_v46 = vsel %vm735_vm5, %v10810_v6, 0.0 }
 0xe0c   :  { %2685 = vadd.xlane.f32.xlu0 %v2684_v46 }
 0xe89   :  { %v2426_v25 = vpop.xlane.xlu1 %2425 }
 0xe8a   :  { %10811 = vrcp.f32 %v2426_v25  ;;  %v2423_v26 = vpop.xlane.xlu0 %2422 }
 0xe8b   :  { %10813 = vrcp.f32 %v2423_v26 }
 0xe8d   :  { %v2325_v28 = vpop.xlane.xlu1 %2324 }
 0xe8e   :  { %v2322_v27 = vpop.xlane.xlu0 %2321 }
 0xe8f   :  { %10815 = vrcp.f32 %v2322_v27 }
 0xe90   :  { %10817 = vrcp.f32 %v2325_v28  ;;  %v11481_v28 = vld [vmem:[%s12079_s1 + $0x8] sm:$0xff] }
 0xe94   :  { %v10812_v29 = vpop.eup %10811 }
 0xe95   :  { %v10814_v10 = vpop.eup %10813  ;;  %v2430_v52 = vmul.f32 %v10812_v29, %v10800_v57 }
 0xe96   :  { %v2429_v31 = vmul.f32 %v10814_v10, %v10802_v62  ;;  %v11487_v10 = vld [vmem:[%s12079_s1] sm:$0xff] }
 0xe98   :  { %v2689_v58 = vpop.xlane.xlu1 %2688  ;;  %9753 = vmatprep.mubr.msk.f32.mxu1 %vm735_vm5, %v2429_v31 }
 0xe99   :  { %v10816_v35 = vpop.eup %10815  ;;  %10819 = vrcp.f32 %v2689_v58  ;;  %9754 = vmatmul.mubr.msk.f32.vlgmr.msra.gmra.mrb[32].mxu1 %vm735_vm5, %v2430_v52  ;;  %v2686_v36 = vpop.xlane.xlu0 %2685  ;;  %v3245_v52 = vsel %vm48_vm0, %v11481_v28, 0.0  ;;  %v3242_v58 = vsel %vm48_vm0, %v11487_v10, 0.0 }
 0xe9a   :  { %10283 = vmatpush3.bf16.msra.mxu1 %v11391_v45  ;;  %10821 = vrcp.f32 %v2686_v36  ;;  %v2328_v37 = vmul.f32 %v10816_v35, %v10806_v15  ;;  %v10818_v60 = vpop.eup %10817  ;;  %v3012_v35 = vld [vmem:[#allocation2 + $0x480] sm:$0xff] }
 0xe9b   :  { %10289 = vmatprep.subr.bf16.mxu1 %v11400_v13  ;;  %v2329_v32 = vmul.f32 %v10818_v60, %v10804_v11  ;;  %v3013_v36 = vld [vmem:[#allocation2 + $0x4a0] sm:$0xff] }
 0xe9c   :  { %9760 = vmatprep.mubr.msk.f32.mxu1 %vm735_vm5, %v2328_v37  ;;  %v3014_v37 = vld [vmem:[#allocation2 + $0x4c0] sm:$0xff]  ;;  %v10300_v60 = vpack.c.bf16 %v3013_v36, %v3012_v35  ;;  %v3293_v35 = vld [vmem:[#allocation2 + $0x638] sm:$0xff] }
 0xe9e   :  { %10301 = vmatprep.subr.bf16.mxu0 %v10300_v60 }
 0xe9f   :  { %10303 = vmatpush3.bf16.msra.mxu0 %v10300_v60  ;;  %v3101_v60 = vld [vmem:[#allocation2 + $0x520] sm:$0xff] }
 0xea1   :  { %9761 = vmatmul.mubr.msk.f32.vlgmr.msra.gmra.mrb[32].mxu1 %vm735_vm5, %v2329_v32  ;;  %v3015_v32 = vld [vmem:[#allocation2 + $0x4e0] sm:$0xff] }
 0xea2   :  { %10291 = vmatpush3.bf16.msra.mxu1 %v11400_v13  ;;  %v1864_v13 = vadd.f32 %v11393_v63, %v1701_v43 }
 0xea3   :  { %v10820_v40 = vpop.eup %10819  ;;  %10293 = vmatprep.subr.bf16.mxu1 %v11398_v39 }
 0xea4   :  { %v10822_v41 = vpop.eup %10821  ;;  %v2693_v61 = vmul.f32 %v10820_v40, %v10808_v22  ;;  %v10304_v40 = vpack.c.bf16 %v3015_v32, %v3014_v37  ;;  %v3100_v37 = vld [vmem:[#allocation2 + $0x500] sm:$0xff] }
 0xea5   :  { %v2692_v45 = vmul.f32 %v10822_v41, %v10810_v6  ;;  %v3102_v32 = vld [vmem:[#allocation2 + $0x540] sm:$0xff] }
 0xea6   :  { %10305 = vmatprep.subr.bf16.mxu0 %v10304_v40 }
 0xea7   :  { %9774 = vmatprep.mubr.msk.f32.mxu1 %vm735_vm5, %v2692_v45  ;;  %10307 = vmatpush3.bf16.msra.mxu0 %v10304_v40  ;;  %v10308_v40 = vpack.c.bf16 %v3101_v60, %v3100_v37  ;;  %v3496_v37 = vld [vmem:[#allocation2 + $0x6d8] sm:$0xff] }
 0xea8   :  { %v3500_v60 = vld [vmem:[#allocation2 + $0x6f8] sm:$0xff] }
 0xea9   :  { %9775 = vmatmul.mubr.msk.f32.vlgmr.msra.gmra.mrb[32].mxu1 %vm735_vm5, %v2693_v61  ;;  %10309 = vmatprep.subr.bf16.mxu0 %v10308_v40 }
 0xeaa   :  { %9781 = vmatprep.mubr.f32.mxu1 %v1858_v44 }
 0xeab   :  { %10295 = vmatpush3.bf16.xpose.msra.mxu1 %v11398_v39 }
 0xeac   :  { %10297 = vmatprep.subr.bf16.mxu1 %v11402_v14 }
 0xeb2   :  { %9782 = vmatmul.mubr.f32.vlgmr.msra.gmra.mrb[34].mxu1 %v1864_v13 }
 0xeb3   :  { %10299 = vmatpush3.bf16.msra.mxu1 %v11402_v14 }
 0xf85   :  { %v9783_v7 = vpop.f32.mrb[34].mxu1 }
 0xf86   :  { %v2853_v18 = vmul.f32 0.35355338, %v9783_v7  ;;  %v2843_v24 = vpop.f32.mrb[35].mxu1 }
 0xf87   :  { %v2852_v42 = vmul.f32 0.35355338, %v2843_v24 }
 0xf88   :  { %v2855_v47 = vadd.f32 %v11410_v30, %v2853_v18 }
 0xf89   :  { %v2854_v55 = vadd.f32 %v11417_v33, %v2852_v42 }
 0xf8a   :  { %v2859_v34 = vsel %vm735_vm5, %v2855_v47, -inf }
 0xf8b   :  { %2860 = vmax.xlane.f32.xlu1 %v2859_v34  ;;  %v2856_v39 = vsel %vm735_vm5, %v2854_v55, -inf }
 0xf8c   :  { %2857 = vmax.xlane.f32.xlu0 %v2856_v39 }
0x1018   :  { %v2861_v9 = vpop.xlane.xlu1 %2860 }
0x1019   :  { %v2863_v48 = vsub.f32 %v2855_v47, %v2861_v9  ;;  %v2858_v63 = vpop.xlane.xlu0 %2857 }
0x101a   :  { %v2862_v49 = vsub.f32 %v2854_v55, %v2858_v63 }
0x101b   :  { %v2866_v50 = vmul.f32 1.442695, %v2863_v48 }
0x101c   :  { %v2864_v14 = vmul.f32 1.442695, %v2862_v49 }
0x101d   :  { %10823 = vpow2.f32 %v2866_v50 }
0x101e   :  { %10825 = vpow2.f32 %v2864_v14 }
0x1027   :  { %v10824_v51 = vpop.eup %10823 }
0x1028   :  { %v10826_v53 = vpop.eup %10825  ;;  %v2871_v30 = vsel %vm735_vm5, %v10824_v51, 0.0 }
0x1029   :  { %2872 = vadd.xlane.f32.xlu1 %v2871_v30  ;;  %v2868_v33 = vsel %vm735_vm5, %v10826_v53, 0.0 }
0x102a   :  { %2869 = vadd.xlane.f32.xlu0 %v2868_v33 }
0x10b6   :  { %v2873_v57 = vpop.xlane.xlu1 %2872 }
0x10b7   :  { %10827 = vrcp.f32 %v2873_v57  ;;  %v2870_v59 = vpop.xlane.xlu0 %2869 }
0x10b8   :  { %10829 = vrcp.f32 %v2870_v59 }
0x10c1   :  { %v10828_v62 = vpop.eup %10827 }
0x10c2   :  { %v10830_v2 = vpop.eup %10829  ;;  %v2877_v3 = vmul.f32 %v10828_v62, %v10824_v51 }
0x10c3   :  { %v2876_v38 = vmul.f32 %v10830_v2, %v10826_v53  ;;  %v2966_v2 = vld [vmem:[#allocation2 + $0xfc0] ss:$0 sm:$0xff] }
0x10c5   :  { %9788 = vmatprep.mubr.msk.f32.mxu1 %vm735_vm5, %v2876_v38 }
0x10c6   :  { %9789 = vmatmul.mubr.msk.f32.vlgmr.msra.gmra.mrb[32].mxu1 %vm735_vm5, %v2877_v3 }
0x10c7   :  { %3395 = vmatprep.mubr.f32.mxu1 %v11096_v21 }
0x1199   :  { %v9790_v8 = vpop.f32.mrb[32].mxu1 }
0x119a   :  { %v2963_v1 = vadd.f32 %v9790_v8, %v2961_v5  ;;  %v2950_v11 = vpop.f32.mrb[33].mxu1  ;;  %v2967_v8 = vld [vmem:[#allocation2 + $0xfc1] ss:$0 sm:$0xff] }
0x119b   :  { %v2962_v0 = vadd.f32 %v2961_v5, %v2950_v11 }
0x119c   :  { %v11459_v15 = vadd.f32 %v2963_v1, %v11326_v16 }
0x119d   :  { %v11462_v19 = vadd.f32 %v2962_v0, %v11329_v17 }
0x119e   :  { %v2971_v20 = vsel %vm48_vm0, %v11459_v15, 0.0 }
0x119f   :  { %2972 = vadd.xlane.f32.xlu1 %v2971_v20  ;;  %v2968_v22 = vsel %vm48_vm0, %v11462_v19, 0.0 }
0x11a0   :  { %2969 = vadd.xlane.f32.xlu0 %v2968_v22  ;;  %v3287_v22 = vld [vmem:[#allocation2 + $0x608] sm:$0xff] }
0x122c   :  { %v2973_v6 = vpop.xlane.xlu1 %2972 }
0x122d   :  { %v2975_v23 = vmul.f32 0.03125, %v2973_v6  ;;  %v2970_v46 = vpop.xlane.xlu0 %2969  ;;  %v3291_v6 = vld [vmem:[#allocation2 + $0x628] sm:$0xff] }
0x122e   :  { %v2974_v25 = vmul.f32 0.03125, %v2970_v46  ;;  %v10324_v46 = vpack.c.bf16 %v3291_v6, %v3287_v22  ;;  %v3241_v22 = vld [vmem:[#allocation2 + $0xfe5] ss:$0 sm:$0xff]  ;;  %v3297_v6 = vld [vmem:[#allocation2 + $0x658] sm:$0xff] }
0x122f   :  { %v11469_v26 = vsub.f32 %v11459_v15, %v2975_v23  ;;  %v3286_v23 = vld [vmem:[#allocation2 + $0x600] sm:$0xff] }
0x1230   :  { %v11472_v16 = vsub.f32 %v11462_v19, %v2974_v25  ;;  %v3290_v25 = vld [vmem:[#allocation2 + $0x620] sm:$0xff]  ;;  %10325 = vmatprep.subr.bf16.mxu1 %v10324_v46 }
0x1231   :  { %v2979_v17 = vmul.f32 %v11469_v26, %v11469_v26 }
0x1232   :  { %v2978_v27 = vmul.f32 %v11472_v16, %v11472_v16 }
0x1233   :  { %v2983_v29 = vsel %vm48_vm0, %v2979_v17, 0.0  ;;  %v3295_v17 = vld [vmem:[#allocation2 + $0x648] sm:$0xff] }
0x1234   :  { %2984 = vadd.xlane.f32.xlu1 %v2983_v29  ;;  %v2980_v31 = vsel %vm48_vm0, %v2978_v27, 0.0  ;;  %v3299_v27 = vld [vmem:[#allocation2 + $0x668] sm:$0xff]  ;;  %v10326_v29 = vpack.c.bf16 %v3290_v25, %v3286_v23  ;;  %v3301_v23 = vld [vmem:[#allocation2 + $0x678] sm:$0xff] }
0x1235   :  { %2981 = vadd.xlane.f32.xlu0 %v2980_v31  ;;  %v3294_v31 = vld [vmem:[#allocation2 + $0x640] sm:$0xff] }
0x1236   :  { %10327 = vmatpush1.bf16.msra.mxu1 %v10326_v29  ;;  %v10336_v29 = vpack.c.bf16 %v3301_v23, %v3297_v6  ;;  %v3682_v6 = vld [vmem:[#allocation2 + $0x720] sm:$0xff]  ;;  %v3687_v23 = vld [vmem:[#allocation2 + $0x748] sm:$0xff] }
0x1238   :  { %3246 = vadd.xlane.f32.xlu1 %v3245_v52 }
0x1239   :  { %3243 = vadd.xlane.f32.xlu0 %v3242_v58  ;;  %v3289_v58 = vld [vmem:[#allocation2 + $0x618] sm:$0xff] }
0x123a   :  { %v10332_v36 = vpack.c.bf16 %v3293_v35, %v3289_v58  ;;  %v3487_v35 = vld [vmem:[#allocation2 + $0x690] sm:$0xff] }
0x12c1   :  { %v2985_v41 = vpop.xlane.xlu1 %2984 }
0x12c2   :  { %v2987_v43 = vmul.f32 0.032258064, %v2985_v41  ;;  %v2982_v45 = vpop.xlane.xlu0 %2981  ;;  %v3103_v41 = vld [vmem:[#allocation2 + $0x560] sm:$0xff] }
0x12c3   :  { %v2986_v61 = vmul.f32 0.032258064, %v2982_v45  ;;  %v3104_v45 = vld [vmem:[#allocation2 + $0x580] sm:$0xff] }
0x12c4   :  { %10831 = vrsqrt.f32 %v2987_v43  ;;  %vm2997_vm15 = vcmp.eq.f32.partialorder %v2987_v43, inf  ;;  %v3000_v49 = vand.u32 2147483648, %v2987_v43  ;;  %vm2999_vm1 = vcmp.eq.f32.partialorder %v2987_v43, 0.0 }
0x12c5   :  { %10833 = vrsqrt.f32 %v2986_v61  ;;  %v3247_v44 = vpop.xlane.xlu1 %3246  ;;  %vm2990_vm2 = vcmp.eq.f32.partialorder %v2986_v61, inf  ;;  %v2993_v51 = vand.u32 2147483648, %v2986_v61  ;;  %vm2992_vm3 = vcmp.eq.f32.partialorder %v2986_v61, 0.0 }
0x12c6   :  { %v3249_v13 = vmul.f32 0.03125, %v3247_v44  ;;  %v3244_v7 = vpop.xlane.xlu0 %3243 }
0x12c7   :  { %v3248_v18 = vmul.f32 0.03125, %v3244_v7  ;;  %v3107_v7 = vld [vmem:[#allocation2 + $0x5e0] sm:$0xff] }
0x12c8   :  { %v11495_v24 = vsub.f32 %v11481_v28, %v3249_v13  ;;  %v3106_v13 = vld [vmem:[#allocation2 + $0x5c0] sm:$0xff] }
0x12c9   :  { %v11498_v42 = vsub.f32 %v11487_v10, %v3248_v18  ;;  %v10320_v18 = vpack.c.bf16 %v3107_v7, %v3106_v13  ;;  %v3680_v7 = vld [vmem:[#allocation2 + $0x710] sm:$0xff] }
0x12ca   :  { %v3253_v47 = vmul.f32 %v11495_v24, %v11495_v24 }
0x12cb   :  { %v3252_v55 = vmul.f32 %v11498_v42, %v11498_v42 }
0x12cc   :  { %v3257_v34 = vsel %vm48_vm0, %v3253_v47, 0.0  ;;  %v3486_v47 = vld [vmem:[#allocation2 + $0x688] sm:$0xff] }
0x12cd   :  { %3258 = vadd.xlane.f32.xlu1 %v3257_v34  ;;  %v3254_v39 = vsel %vm48_vm0, %v3252_v55, 0.0  ;;  %v3490_v55 = vld [vmem:[#allocation2 + $0x6a8] sm:$0xff] }
0x12ce   :  { %v10832_v9 = vpop.eup %10831  ;;  %3255 = vadd.xlane.f32.xlu0 %v3254_v39  ;;  %v10340_v34 = vpack.c.bf16 %v3490_v55, %v3486_v47  ;;  %v3689_v47 = vld [vmem:[#allocation2 + $0x758] sm:$0xff] }
0x12cf   :  { %v10834_v48 = vpop.eup %10833  ;;  %v2996_v63 = vmul.f32 %v10832_v9, %v2987_v43  ;;  %v3693_v55 = vld [vmem:[#allocation2 + $0x778] sm:$0xff] }
0x12d0   :  { %v2989_v50 = vmul.f32 %v10834_v48, %v2986_v61 }
0x12d1   :  { %v2998_v14 = vsel %vm2997_vm15, %v2987_v43, %v2996_v63  ;;  %v10312_v43 = vpack.c.bf16 %v3103_v41, %v3102_v32  ;;  %v3495_v41 = vld [vmem:[#allocation2 + $0x6d0] sm:$0xff] }
0x12d2   :  { %v3001_v53 = vsel %vm2999_vm1, %v3000_v49, %v2998_v14  ;;  %v2991_v30 = vsel %vm2990_vm2, %v2986_v61, %v2989_v50  ;;  %v3105_v61 = vld [vmem:[#allocation2 + $0x5a0] sm:$0xff] }
0x12d3   :  { %v3003_v33 = vadd.f32 1e-06, %v3001_v53  ;;  %v2994_v57 = vsel %vm2992_vm3, %v2993_v51, %v2991_v30  ;;  %v10316_v44 = vpack.c.bf16 %v3105_v61, %v3104_v45  ;;  %v3681_v45 = vld [vmem:[#allocation2 + $0x718] sm:$0xff] }
0x12d4   :  { %v3002_v59 = vadd.f32 1e-06, %v2994_v57  ;;  %v3685_v61 = vld [vmem:[#allocation2 + $0x738] sm:$0xff] }
0x12d5   :  { %10835 = vrcp.f32 %v3003_v33  ;;  %v10364_v13 = vpack.c.bf16 %v3685_v61, %v3681_v45  ;;  %v3502_v61 = vld [vmem:[#allocation2 + $0xfc5] ss:$8 sm:$0xf] }
0x12d6   :  { %10837 = vrcp.f32 %v3002_v59 }
0x12df   :  { %v10836_v62 = vpop.eup %10835 }
0x12e0   :  { %v10838_v38 = vpop.eup %10837  ;;  %v3007_v3 = vmul.f32 %v10836_v62, %v11469_v26  ;;  %v10328_v26 = vpack.c.bf16 %v3299_v27, %v3295_v17 }
0x12e1   :  { %v3006_v5 = vmul.f32 %v10838_v38, %v11472_v16  ;;  %v3298_v16 = vld [vmem:[#allocation2 + $0x660] sm:$0xff] }
0x12e2   :  { %v3009_v1 = vmul.f32 %v3007_v3, %v2966_v2  ;;  %v10330_v52 = vpack.c.bf16 %v3298_v16, %v3294_v31  ;;  %10329 = vmatprep.subr.bf16.mxu1 %v10328_v26  ;;  %v3296_v26 = vld [vmem:[#allocation2 + $0x650] sm:$0xff]  ;;  %v3488_v16 = vld [vmem:[#allocation2 + $0x698] sm:$0xff] }
0x12e3   :  { %v3008_v11 = vmul.f32 %v3006_v5, %v2966_v2  ;;  %v3300_v31 = vld [vmem:[#allocation2 + $0x670] sm:$0xff] }
0x12e4   :  { %v3011_v20 = vadd.f32 %v3009_v1, %v2967_v8  ;;  %10331 = vmatpush1.bf16.msra.mxu1 %v10330_v52  ;;  %v3492_v52 = vld [vmem:[#allocation2 + $0x6b8] sm:$0xff] }
0x12e5   :  { %v3010_v0 = vadd.f32 %v3008_v11, %v2967_v8  ;;  %10333 = vmatprep.subr.bf16.mxu1 %v10332_v36  ;;  %v3240_v8 = vld [vmem:[#allocation2 + $0xfe4] ss:$0 sm:$0xff]  ;;  %v3288_v11 = vld [vmem:[#allocation2 + $0x610] sm:$0xff]  ;;  %v10348_v58 = vpack.c.bf16 %v3492_v52, %v3488_v16 }
0x12e6   :  { %v3491_v36 = vld [vmem:[#allocation2 + $0x6b0] sm:$0xff] }
0x12e7   :  { %9799 = vmatprep.mubr.msk.f32.mxu0 %vm48_vm0, %v3010_v0  ;;  %v3292_v0 = vld [vmem:[#allocation2 + $0x630] sm:$0xff]  ;;  %v10350_v32 = vpack.c.bf16 %v3491_v36, %v3487_v35 }
0x12e8   :  { %9800 = vmatmul.mubr.msk.f32.vlgmr.msra.gmra.mrb[38].mxu0 %vm48_vm0, %v3011_v20  ;;  %v10334_v25 = vpack.c.bf16 %v3292_v0, %v3288_v11  ;;  %v3683_v11 = vld [vmem:[#allocation2 + $0x728] sm:$0xff] }
0x12e9   :  { %10311 = vmatpush3.bf16.msra.mxu0 %v10308_v40  ;;  %v10352_v40 = vpack.c.bf16 %v3500_v60, %v3496_v37  ;;  %v11553_v16 = vld [vmem:[#allocation2 + $0xfc4] ss:$8 sm:$0xf] }
0x12ea   :  { %10313 = vmatprep.subr.bf16.mxu0 %v10312_v43  ;;  %v3308_v52 = vrot.slane %v11553_v16, %v11207_v54 }
0x12ed   :  { %10315 = vmatpush3.bf16.msra.mxu0 %v10312_v43  ;;  %v3499_v43 = vld [vmem:[#allocation2 + $0x6f0] sm:$0xff] }
0x12ee   :  { %10317 = vmatprep.subr.bf16.mxu0 %v10316_v44 }
0x12f1   :  { %10319 = vmatpush3.bf16.msra.mxu0 %v10316_v44  ;;  %v10354_v44 = vpack.c.bf16 %v3499_v43, %v3495_v41 }
0x12f2   :  { %10321 = vmatprep.subr.bf16.mxu0 %v10320_v18 }
0x12f5   :  { %10323 = vmatpush3.bf16.msra.mxu0 %v10320_v18  ;;  %v3684_v18 = vld [vmem:[#allocation2 + $0x730] sm:$0xff] }
0x12f6   :  { %10341 = vmatprep.subr.bf16.mxu0 %v10340_v34  ;;  %v10366_v34 = vpack.c.bf16 %v3684_v18, %v3680_v7  ;;  %v3519_v18 = vrot.slane %v3502_v61, %v11221_v4 }
0x135a   :  { %v3259_v39 = vpop.xlane.xlu1 %3258 }
0x135b   :  { %v3261_v9 = vmul.f32 0.032258064, %v3259_v39  ;;  %v3256_v48 = vpop.xlane.xlu0 %3255  ;;  %v10368_v39 = vpack.c.bf16 %v3693_v55, %v3689_v47 }
0x135c   :  { %v3260_v63 = vmul.f32 0.032258064, %v3256_v48  ;;  %v3692_v48 = vld [vmem:[#allocation2 + $0x770] sm:$0xff] }
0x135d   :  { %10839 = vrsqrt.f32 %v3261_v9  ;;  %vm3271_vm4 = vcmp.eq.f32.partialorder %v3261_v9, inf  ;;  %v3274_v50 = vand.u32 2147483648, %v3261_v9  ;;  %vm3273_vm6 = vcmp.eq.f32.partialorder %v3261_v9, 0.0 }
0x135e   :  { %10841 = vrsqrt.f32 %v3260_v63  ;;  %vm3264_vm7 = vcmp.eq.f32.partialorder %v3260_v63, inf  ;;  %v3267_v53 = vand.u32 2147483648, %v3260_v63  ;;  %vm3266_vm8 = vcmp.eq.f32.partialorder %v3260_v63, 0.0 }
0x1367   :  { %v10840_v49 = vpop.eup %10839 }
0x1368   :  { %v10842_v14 = vpop.eup %10841  ;;  %v3270_v51 = vmul.f32 %v10840_v49, %v3261_v9  ;;  %v3016_v49 = vld [vmem:[#allocation2 + $0xfa4] ss:$0 sm:$0xff] }
0x1369   :  { %v3263_v30 = vmul.f32 %v10842_v14, %v3260_v63 }
0x136a   :  { %v3272_v33 = vsel %vm3271_vm4, %v3261_v9, %v3270_v51  ;;  %v3688_v9 = vld [vmem:[#allocation2 + $0x750] sm:$0xff] }
0x136b   :  { %v3275_v57 = vsel %vm3273_vm6, %v3274_v50, %v3272_v33  ;;  %v3265_v59 = vsel %vm3264_vm7, %v3260_v63, %v3263_v30  ;;  %v10370_v63 = vpack.c.bf16 %v3692_v48, %v3688_v9  ;;  %v3489_v30 = vld [vmem:[#allocation2 + $0x6a0] sm:$0xff] }
0x136c   :  { %v3277_v62 = vadd.f32 1e-06, %v3275_v57  ;;  %v3268_v2 = vsel %vm3266_vm8, %v3267_v53, %v3265_v59  ;;  %v3485_v53 = vld [vmem:[#allocation2 + $0x680] sm:$0xff]  ;;  %v3494_v57 = vld [vmem:[#allocation2 + $0x6c8] sm:$0xff] }
0x136d   :  { %v3276_v38 = vadd.f32 1e-06, %v3268_v2  ;;  %v3498_v59 = vld [vmem:[#allocation2 + $0x6e8] sm:$0xff]  ;;  %v10342_v2 = vpack.c.bf16 %v3489_v30, %v3485_v53 }
0x136e   :  { %10843 = vrcp.f32 %v3277_v62 }
0x136f   :  { %10845 = vrcp.f32 %v3276_v38 }
0x1378   :  { %v10844_v3 = vpop.eup %10843 }
0x1379   :  { %v10846_v5 = vpop.eup %10845  ;;  %v3281_v20 = vmul.f32 %v10844_v3, %v11495_v24  ;;  %v10338_v24 = vpack.c.bf16 %v3300_v31, %v3296_v26  ;;  %v10344_v3 = vpack.c.bf16 %v3498_v59, %v3494_v57  ;;  %v3690_v26 = vld [vmem:[#allocation2 + $0x760] sm:$0xff] }
0x137a   :  { %v3280_v1 = vmul.f32 %v10846_v5, %v11498_v42  ;;  %v3493_v5 = vld [vmem:[#allocation2 + $0x6c0] sm:$0xff] }
0x137b   :  { %v3283_v27 = vmul.f32 %v3281_v20, %v3240_v8 }
0x137c   :  { %v3282_v46 = vmul.f32 %v3280_v1, %v3240_v8  ;;  %v3497_v8 = vld [vmem:[#allocation2 + $0x6e0] sm:$0xff]  ;;  %v3679_v1 = vld [vmem:[#allocation2 + $0x708] sm:$0xff] }
0x137d   :  { %v11517_v42 = vadd.f32 %v3283_v27, %v3241_v22  ;;  %v10346_v0 = vpack.c.bf16 %v3497_v8, %v3493_v5  ;;  %v10356_v20 = vpack.c.bf16 %v3683_v11, %v3679_v1 }
0x137e   :  { %v11512_v17 = vadd.f32 %v3282_v46, %v3241_v22  ;;  %v3678_v22 = vld [vmem:[#allocation2 + $0x700] sm:$0xff]  ;;  %v3691_v46 = vld [vmem:[#allocation2 + $0x768] sm:$0xff] }
0x137f   :  { %v10360_v27 = vpack.c.bf16 %v3691_v46, %v3687_v23 }
0x1380   :  { %9297 = vmatmul.mubr.msk.f32.vlgmr.msra.gmra.mrb[36].mxu1 %vm48_vm0, %v11512_v17 }
0x1381   :  { %10335 = vmatpush1.bf16.msra.mxu1 %v10334_v25  ;;  %3401 = vmatprep.mubr.f32.mxu1 %v11096_v21  ;;  %v10358_v25 = vpack.c.bf16 %v3682_v6, %v3678_v22 }
0x1382   :  { %10337 = vmatprep.subr.bf16.mxu1 %v10336_v29  ;;  %v3686_v29 = vld [vmem:[#allocation2 + $0x740] sm:$0xff] }
0x1383   :  { %v10362_v31 = vpack.c.bf16 %v3690_v26, %v3686_v29  ;;  %v3316_v26 = vrot.slane %v11553_v16, %v11228_v12 }
0x1384   :  { %9298 = vmatmul.mubr.msk.f32.gmra.mrb[38].mxu1 %vm48_vm0, %v11517_v42 }
0x1385   :  { %10339 = vmatpush1.bf16.msra.mxu1 %v10338_v24  ;;  %3472 = vmatprep.mubr.f32.mxu1 %v11096_v21  ;;  %v3312_v24 = vrot.slane %v11553_v16, %v11211_v56 }
0x1386   :  { %10349 = vmatprep.subr.bf16.mxu1 %v10348_v58 }
0x1388   :  { %9299 = vmatmul.mubr.msk.f32.vlgmr.msra.gmra.mrb[40].mxu1 %vm48_vm0, %v11512_v17 }
0x1389   :  { %10351 = vmatpush1.bf16.msra.mxu1 %v10350_v32  ;;  %3478 = vmatprep.mubr.f32.mxu1 %v11096_v21 }
0x138a   :  { %10353 = vmatprep.subr.bf16.mxu1 %v10352_v40 }
0x138c   :  { %9300 = vmatmul.mubr.msk.f32.gmra.mrb[42].mxu1 %vm48_vm0, %v11517_v42 }
0x138d   :  { %10355 = vmatpush1.bf16.msra.mxu1 %v10354_v44  ;;  %3665 = vmatprep.mubr.f32.mxu1 %v11096_v21 }
0x138e   :  { %10365 = vmatprep.subr.bf16.mxu1 %v10364_v13  ;;  %v3515_v13 = vrot.slane %v3502_v61, %v11228_v12 }
0x1390   :  { %9303 = vmatmul.mubr.msk.f32.vlgmr.msra.gmra.mrb[44].mxu1 %vm48_vm0, %v11512_v17 }
0x1391   :  { %10367 = vmatpush1.bf16.msra.mxu1 %v10366_v34  ;;  %3671 = vmatprep.mubr.f32.mxu1 %v11096_v21 }
0x1392   :  { %10369 = vmatprep.subr.bf16.mxu1 %v10368_v39 }
0x1394   :  { %9304 = vmatmul.mubr.msk.f32.gmra.mrb[46].mxu1 %vm48_vm0, %v11517_v42 }
0x1395   :  { %10371 = vmatpush1.bf16.msra.mxu1 %v10370_v63  ;;  %3835 = vmatprep.mubr.f32.mxu1 %v11096_v21 }
0x1398   :  { %9307 = vmatmul.mubr.msk.f32.vlgmr.msra.gmra.mrb[48].mxu1 %vm48_vm0, %v11512_v17 }
0x1399   :  { %3841 = vmatprep.mubr.f32.mxu1 %v11096_v21 }
0x139c   :  { %9308 = vmatmul.mubr.msk.f32.gmra.mrb[50].mxu1 %vm48_vm0, %v11517_v42 }
0x13bb   :  { %v9801_v50 = vpop.f32.mrb[38].mxu0 }
0x13bc   :  { %v3095_v14 = vadd.f32 %v9801_v50, %v3016_v49  ;;  %v3089_v51 = vpop.f32.mrb[39].mxu0 }
0x13bd   :  { %v3090_v33 = vadd.f32 %v3089_v51, %v3016_v49 }
0x13be   :  { %v3099_v38 = vmax.f32 %v3095_v14, 0.0 }
0x13bf   :  { %v3098_v62 = vmax.f32 %v3090_v33, 0.0 }
0x13c1   :  { %9818 = vmatprep.mubr.msk.f32.mxu0 %vm1537_vm10, %v3098_v62 }
0x13c2   :  { %9819 = vmatmul.mubr.msk.f32.vlgmr.msra.gmra.mrb[40].mxu0 %vm1537_vm10, %v3099_v38 }
0x13c3   :  { %10343 = vmatpush1.bf16.msra.mxu0 %v10342_v2  ;;  %3588 = vmatprep.mubr.f32.mxu0 %v11096_v21  ;;  %v3507_v2 = vrot.slane %v3502_v61, %v11207_v54 }
0x13c4   :  { %10345 = vmatprep.subr.bf16.mxu0 %v10344_v3  ;;  %v3511_v3 = vrot.slane %v3502_v61, %v11211_v56 }
0x13c7   :  { %10347 = vmatpush1.bf16.msra.mxu0 %v10346_v0 }
0x13c8   :  { %10357 = vmatprep.subr.bf16.mxu0 %v10356_v20 }
0x13ca   :  { %9301 = vmatmul.mubr.msk.f32.vlgmr.msra.gmra.mrb[42].mxu0 %vm48_vm0, %v11512_v17 }
0x13cb   :  { %10359 = vmatpush1.bf16.msra.mxu0 %v10358_v25  ;;  %3594 = vmatprep.mubr.f32.mxu0 %v11096_v21 }
0x13cc   :  { %10361 = vmatprep.subr.bf16.mxu0 %v10360_v27 }
0x13ce   :  { %9302 = vmatmul.mubr.msk.f32.gmra.mrb[44].mxu0 %vm48_vm0, %v11517_v42 }
0x13cf   :  { %10363 = vmatpush1.bf16.msra.mxu0 %v10362_v31  ;;  %3758 = vmatprep.mubr.f32.mxu0 %v11096_v21 }
0x13d2   :  { %9305 = vmatmul.mubr.msk.f32.vlgmr.msra.gmra.mrb[46].mxu0 %vm48_vm0, %v11512_v17 }
0x13d3   :  { %3764 = vmatprep.mubr.f32.mxu0 %v11096_v21 }
0x13d6   :  { %9306 = vmatmul.mubr.msk.f32.gmra.mrb[48].mxu0 %vm48_vm0, %v11517_v42 }
0x1453   :  { %v3397_v58 = vpop.f32.mrb[36].mxu1 }
0x1454   :  { %v3398_v35 = vadd.f32 %v3397_v58, %v3308_v52  ;;  %v3399_v36 = vpop.f32.mrb[37].mxu1 }
0x1455   :  { %v3400_v37 = vadd.f32 %v3399_v36, %v3312_v24 }
0x1456   :  { %9825 = vmatprep.mubr.f32.mxu0 %v3398_v35 }
0x1457   :  { %v3403_v60 = vpop.f32.mrb[38].mxu1  ;;  %9832 = vmatprep.mubr.f32.mxu1 %v3400_v37 }
0x1458   :  { %v3404_v17 = vadd.f32 %v3403_v60, %v3308_v52  ;;  %v3405_v32 = vpop.f32.mrb[39].mxu1 }
0x1459   :  { %v3406_v40 = vadd.f32 %v3405_v32, %v3312_v24  ;;  %v3320_v24 = vrot.slane %v11553_v16, %v11221_v4  ;;  %v41_v32 = vld [vmem:[%s12081_s3 + $0x8] sm:$0xff]  ;;  %v40_v16 = vld [vmem:[%s12081_s3] sm:$0xff] }
0x145b   :  { %v3474_v41 = vpop.f32.mrb[40].mxu1 }
0x145c   :  { %v3476_v42 = vpop.f32.mrb[41].mxu1  ;;  %v3475_v52 = vadd.f32 %v3474_v41, %v3316_v26 }
0x145d   :  { %v3477_v35 = vadd.f32 %v3476_v42, %v3320_v24 }
0x145f   :  { %v3480_v43 = vpop.f32.mrb[42].mxu1 }
0x1460   :  { %v3482_v45 = vpop.f32.mrb[43].mxu1  ;;  %v3481_v58 = vadd.f32 %v3480_v43, %v3316_v26 }
0x1461   :  { %v3483_v36 = vadd.f32 %v3482_v45, %v3320_v24 }
0x1463   :  { %v3667_v44 = vpop.f32.mrb[44].mxu1 }
0x1464   :  { %v3669_v7 = vpop.f32.mrb[45].mxu1  ;;  %v3668_v55 = vadd.f32 %v3667_v44, %v3515_v13 }
0x1465   :  { %v3670_v9 = vadd.f32 %v3669_v7, %v3519_v18 }
0x1467   :  { %v3673_v47 = vpop.f32.mrb[46].mxu1 }
0x1468   :  { %v3674_v34 = vadd.f32 %v3673_v47, %v3515_v13  ;;  %v3675_v39 = vpop.f32.mrb[47].mxu1 }
0x1469   :  { %v3676_v48 = vadd.f32 %v3675_v39, %v3519_v18 }
0x146a   :  { %v10388_v63 = vpack.c.bf16 %v3674_v34, %v3668_v55 }
0x146b   :  { %v10396_v49 = vpack.c.bf16 %v3676_v48, %v3670_v9  ;;  %v3837_v50 = vpop.f32.mrb[48].mxu1 }
0x146c   :  { %v3839_v14 = vpop.f32.mrb[49].mxu1 }
0x146f   :  { %v3843_v51 = vpop.f32.mrb[50].mxu1 }
0x1470   :  { %v11561_v53 = vpack.c.bf16 %v3843_v51, %v3837_v50  ;;  %v3845_v30 = vpop.f32.mrb[51].mxu1 }
0x1471   :  { %v11563_v33 = vpack.c.bf16 %v3845_v30, %v3839_v14 }
0x1495   :  { %v11565_v57 = vpop.f32.mrb[40].mxu0 }
0x1496   :  { %v11567_v59 = vpop.f32.mrb[41].mxu0 }
0x149d   :  { %v3590_v62 = vpop.f32.mrb[42].mxu0 }
0x149e   :  { %v3592_v38 = vpop.f32.mrb[43].mxu0  ;;  %v3591_v8 = vadd.f32 %v3590_v62, %v3507_v2 }
0x149f   :  { %v3593_v0 = vadd.f32 %v3592_v38, %v3511_v3 }
0x14a1   :  { %v3596_v5 = vpop.f32.mrb[44].mxu0 }
0x14a2   :  { %v3597_v1 = vadd.f32 %v3596_v5, %v3507_v2  ;;  %v3598_v11 = vpop.f32.mrb[45].mxu0 }
0x14a3   :  { %v3599_v20 = vadd.f32 %v3598_v11, %v3511_v3 }
0x14a4   :  { %v10372_v22 = vpack.c.bf16 %v3597_v1, %v3591_v8 }
0x14a5   :  { %v10376_v6 = vpack.c.bf16 %v3599_v20, %v3593_v0  ;;  %v3760_v23 = vpop.f32.mrb[46].mxu0 }
0x14a6   :  { %v3762_v46 = vpop.f32.mrb[47].mxu0  ;;  %10373 = vmatprep.subr.bf16.mxu0 %v10372_v22 }
0x14a7   :  { %10375 = vmatpush3.bf16.xpose.msra.mxu0 %v10372_v22  ;;  %10377 = vmatprep.subr.bf16.mxu1 %v10376_v6 }
0x14a8   :  { %10379 = vmatpush3.bf16.xpose.msra.mxu1 %v10376_v6 }
0x14a9   :  { %v3766_v25 = vpop.f32.mrb[48].mxu0  ;;  %10389 = vmatprep.subr.bf16.mxu1 %v10388_v63 }
0x14aa   :  { %v11571_v27 = vpack.c.bf16 %v3766_v25, %v3760_v23  ;;  %v3768_v29 = vpop.f32.mrb[49].mxu0 }
0x14ab   :  { %v10380_v31 = vpack.c.bf16 %v3768_v29, %v3762_v46 }
0x14ad   :  { %10381 = vmatprep.subr.bf16.mxu0 %v10380_v31 }
0x14ae   :  { %9826 = vmatmul.mubr.f32.vlgmr.msra.gmra.mrb[50].mxu0 %v3404_v17 }
0x14af   :  { %9833 = vmatmul.mubr.f32.vlgmr.msra.gmra.mrb[52].mxu1 %v3406_v40  ;;  %10383 = vmatpush3.bf16.msra.mxu0 %v10380_v31 }
0x14b0   :  { %10385 = vmatprep.subr.bf16.mxu0 %v11571_v27  ;;  %10391 = vmatpush3.bf16.xpose.msra.mxu1 %v10388_v63 }
0x14b1   :  { %9853 = vmatprep.mubr.f32.mxu1 %v3475_v52  ;;  %10397 = vmatprep.subr.bf16.mxu1 %v10396_v49 }
0x14b7   :  { %9854 = vmatmul.mubr.f32.vlgmr.msra.gmra.mrb[54].mxu1 %v3481_v58 }
0x14b8   :  { %10399 = vmatpush3.bf16.xpose.msra.mxu1 %v10396_v49  ;;  %9867 = vmatprep.mubr.f32.mxu1 %v3477_v35 }
0x14bf   :  { %9868 = vmatmul.mubr.f32.vlgmr.msra.gmra.mrb[56].mxu1 %v3483_v36 }
0x14c0   :  { %4817 = vmatprep.mubr.f32.mxu1 %v11096_v21 }
0x1581   :  { %v9827_v37 = vpop.f32.mrb[50].mxu0 }
0x1582   :  { %v3914_v60 = vpop.f32.mrb[51].mxu0  ;;  %v9834_v17 = vpop.f32.mrb[52].mxu1  ;;  %v3924_v40 = vmul.f32 0.35355338, %v9827_v37 }
0x1583   :  { %v4025_v41 = vmul.f32 0.35355338, %v9834_v17  ;;  %v4015_v61 = vpop.f32.mrb[53].mxu1  ;;  %v3923_v42 = vmul.f32 0.35355338, %v3914_v60 }
0x1584   :  { %v4024_v43 = vmul.f32 0.35355338, %v4015_v61  ;;  %v3926_v7 = vadd.f32 %v3924_v40, %v41_v32 }
0x1585   :  { %v4027_v45 = vadd.f32 %v4025_v41, %v41_v32  ;;  %v3925_v47 = vadd.f32 %v3923_v42, %v40_v16 }
0x1586   :  { %v4026_v44 = vadd.f32 %v4024_v43, %v40_v16  ;;  %v3930_v9 = vsel %vm735_vm5, %v3926_v7, -inf }
0x1587   :  { %v4031_v13 = vsel %vm735_vm5, %v4027_v45, -inf  ;;  %v3927_v63 = vsel %vm735_vm5, %v3925_v47, -inf }
0x1588   :  { %4032 = vmax.xlane.f32.xlu1 %v4031_v13  ;;  %v4028_v18 = vsel %vm735_vm5, %v4026_v44, -inf }
0x1589   :  { %4029 = vmax.xlane.f32.xlu0 %v4028_v18 }
0x158a   :  { %v9855_v55 = vpop.f32.mrb[54].mxu1 }
0x158b   :  { %v4288_v34 = vmul.f32 0.35355338, %v9855_v55  ;;  %v4278_v39 = vpop.f32.mrb[55].mxu1 }
0x158c   :  { %v4287_v48 = vmul.f32 0.35355338, %v4278_v39  ;;  %3931 = vmax.xlane.f32.xlu1 %v3930_v9 }
0x158d   :  { %3928 = vmax.xlane.f32.xlu0 %v3927_v63  ;;  %v4290_v49 = vadd.f32 %v4288_v34, %v41_v32 }
0x158e   :  { %v4289_v50 = vadd.f32 %v4287_v48, %v40_v16 }
0x158f   :  { %v4294_v14 = vsel %vm735_vm5, %v4290_v49, -inf }
0x1590   :  { %4295 = vmax.xlane.f32.xlu1 %v4294_v14  ;;  %v4291_v51 = vsel %vm735_vm5, %v4289_v50, -inf }
0x1591   :  { %4292 = vmax.xlane.f32.xlu0 %v4291_v51 }
0x1592   :  { %v9869_v30 = vpop.f32.mrb[56].mxu1 }
0x1593   :  { %v4472_v62 = vmul.f32 0.35355338, %v9869_v30  ;;  %v4462_v2 = vpop.f32.mrb[57].mxu1 }
0x1594   :  { %v4471_v38 = vmul.f32 0.35355338, %v4462_v2 }
0x1595   :  { %v4474_v3 = vadd.f32 %v4472_v62, %v41_v32 }
0x1596   :  { %v4473_v5 = vadd.f32 %v4471_v38, %v40_v16 }
0x1597   :  { %v4478_v8 = vsel %vm735_vm5, %v4474_v3, -inf }
0x1598   :  { %4479 = vmax.xlane.f32.xlu1 %v4478_v8  ;;  %v4475_v1 = vsel %vm735_vm5, %v4473_v5, -inf }
0x1599   :  { %4476 = vmax.xlane.f32.xlu0 %v4475_v1 }
0x1615   :  { %v4033_v11 = vpop.xlane.xlu1 %4032 }
0x1616   :  { %v4035_v0 = vsub.f32 %v4027_v45, %v4033_v11  ;;  %v4030_v20 = vpop.xlane.xlu0 %4029 }
0x1617   :  { %v4034_v22 = vsub.f32 %v4026_v44, %v4030_v20 }
0x1618   :  { %v4038_v6 = vmul.f32 1.442695, %v4035_v0 }
0x1619   :  { %v4036_v23 = vmul.f32 1.442695, %v4034_v22  ;;  %v3932_v46 = vpop.xlane.xlu1 %3931 }
0x161a   :  { %10847 = vpow2.f32 %v4038_v6  ;;  %v3934_v25 = vsub.f32 %v3926_v7, %v3932_v46  ;;  %v3929_v29 = vpop.xlane.xlu0 %3928 }
0x161b   :  { %10849 = vpow2.f32 %v4036_v23  ;;  %v3933_v26 = vsub.f32 %v3925_v47, %v3929_v29 }
0x161c   :  { %v3937_v31 = vmul.f32 1.442695, %v3934_v25 }
0x161d   :  { %v3935_v52 = vmul.f32 1.442695, %v3933_v26  ;;  %v4296_v24 = vpop.xlane.xlu1 %4295 }
0x161e   :  { %10851 = vpow2.f32 %v3937_v31  ;;  %v4298_v58 = vsub.f32 %v4290_v49, %v4296_v24  ;;  %v4293_v35 = vpop.xlane.xlu0 %4292 }
0x161f   :  { %10853 = vpow2.f32 %v3935_v52  ;;  %v4297_v36 = vsub.f32 %v4289_v50, %v4293_v35 }
0x1620   :  { %v4301_v37 = vmul.f32 1.442695, %v4298_v58  ;;  %v4580_v58 = vld [vmem:[#allocation2 + $0xfc6] ss:$0 sm:$0xff] }
0x1621   :  { %v4299_v60 = vmul.f32 1.442695, %v4297_v36 }
0x1622   :  { %10855 = vpow2.f32 %v4301_v37 }
0x1623   :  { %10857 = vpow2.f32 %v4299_v60 }
0x1624   :  { %v10848_v17 = vpop.eup %10847 }
0x1625   :  { %v10850_v32 = vpop.eup %10849  ;;  %v4480_v40 = vpop.xlane.xlu1 %4479  ;;  %v4043_v41 = vsel %vm735_vm5, %v10848_v17, 0.0 }
0x1626   :  { %v4482_v61 = vsub.f32 %v4474_v3, %v4480_v40  ;;  %4044 = vadd.xlane.f32.xlu1 %v4043_v41  ;;  %v4477_v16 = vpop.xlane.xlu0 %4476  ;;  %v4040_v42 = vsel %vm735_vm5, %v10850_v32, 0.0 }
0x1627   :  { %v4481_v43 = vsub.f32 %v4473_v5, %v4477_v16  ;;  %4041 = vadd.xlane.f32.xlu0 %v4040_v42 }
0x1628   :  { %v10852_v45 = vpop.eup %10851  ;;  %v4485_v44 = vmul.f32 1.442695, %v4482_v61 }
0x1629   :  { %v10854_v13 = vpop.eup %10853  ;;  %v4483_v7 = vmul.f32 1.442695, %v4481_v43  ;;  %v3942_v18 = vsel %vm735_vm5, %v10852_v45, 0.0 }
0x162a   :  { %10859 = vpow2.f32 %v4485_v44  ;;  %3943 = vadd.xlane.f32.xlu1 %v3942_v18  ;;  %v3939_v47 = vsel %vm735_vm5, %v10854_v13, 0.0 }
0x162b   :  { %10861 = vpow2.f32 %v4483_v7  ;;  %3940 = vadd.xlane.f32.xlu0 %v3939_v47 }
0x162c   :  { %v10856_v55 = vpop.eup %10855 }
0x162d   :  { %v10858_v34 = vpop.eup %10857  ;;  %v4306_v39 = vsel %vm735_vm5, %v10856_v55, 0.0 }
0x162e   :  { %4307 = vadd.xlane.f32.xlu1 %v4306_v39  ;;  %v4303_v9 = vsel %vm735_vm5, %v10858_v34, 0.0 }
0x162f   :  { %4304 = vadd.xlane.f32.xlu0 %v4303_v9 }
0x1634   :  { %v10860_v48 = vpop.eup %10859 }
0x1635   :  { %v10862_v63 = vpop.eup %10861  ;;  %v4490_v49 = vsel %vm735_vm5, %v10860_v48, 0.0 }
0x1636   :  { %4491 = vadd.xlane.f32.xlu1 %v4490_v49  ;;  %v4487_v50 = vsel %vm735_vm5, %v10862_v63, 0.0 }
0x1637   :  { %4488 = vadd.xlane.f32.xlu0 %v4487_v50 }
0x16b3   :  { %v4045_v14 = vpop.xlane.xlu1 %4044 }
0x16b4   :  { %10863 = vrcp.f32 %v4045_v14  ;;  %v4042_v51 = vpop.xlane.xlu0 %4041 }
0x16b5   :  { %10865 = vrcp.f32 %v4042_v51  ;;  %v4632_v51 = vld [vmem:[#allocation2 + $0x788] sm:$0xff] }
0x16b7   :  { %v3944_v62 = vpop.xlane.xlu1 %3943 }
0x16b8   :  { %v3941_v30 = vpop.xlane.xlu0 %3940 }
0x16b9   :  { %10867 = vrcp.f32 %v3941_v30  ;;  %v4636_v30 = vld [vmem:[#allocation2 + $0x7a8] sm:$0xff] }
0x16ba   :  { %10869 = vrcp.f32 %v3944_v62  ;;  %v4634_v62 = vld [vmem:[#allocation2 + $0x798] sm:$0xff] }
0x16bb   :  { %v4308_v1 = vpop.xlane.xlu1 %4307 }
0x16bc   :  { %v4305_v2 = vpop.xlane.xlu0 %4304 }
0x16bd   :  { %10871 = vrcp.f32 %v4305_v2  ;;  %v10404_v2 = vpack.c.bf16 %v4636_v30, %v4632_v51 }
0x16be   :  { %v10864_v38 = vpop.eup %10863  ;;  %10873 = vrcp.f32 %v4308_v1 }
0x16bf   :  { %v10866_v3 = vpop.eup %10865  ;;  %v4049_v8 = vmul.f32 %v10864_v38, %v10848_v17  ;;  %v4638_v38 = vld [vmem:[#allocation2 + $0x7b8] sm:$0xff] }
0x16c0   :  { %v4048_v5 = vmul.f32 %v10866_v3, %v10850_v32  ;;  %v4631_v3 = vld [vmem:[#allocation2 + $0x780] sm:$0xff] }
0x16c2   :  { %9839 = vmatprep.mubr.msk.f32.mxu0 %vm735_vm5, %v4048_v5  ;;  %v4635_v5 = vld [vmem:[#allocation2 + $0x7a0] sm:$0xff] }
0x16c3   :  { %v10868_v11 = vpop.eup %10867  ;;  %9840 = vmatmul.mubr.msk.f32.vlgmr.msra.gmra.mrb[52].mxu0 %vm735_vm5, %v4049_v8  ;;  %v4492_v46 = vpop.xlane.xlu1 %4491  ;;  %v10412_v8 = vpack.c.bf16 %v4638_v38, %v4634_v62  ;;  %v10406_v1 = vpack.c.bf16 %v4635_v5, %v4631_v3 }
0x16c4   :  { %10387 = vmatpush3.bf16.msra.mxu0 %v11571_v27  ;;  %v4489_v0 = vpop.xlane.xlu0 %4488  ;;  %v3947_v20 = vmul.f32 %v10868_v11, %v10854_v13  ;;  %v10870_v22 = vpop.eup %10869  ;;  %v4633_v11 = vld [vmem:[#allocation2 + $0x790] sm:$0xff] }
0x16c5   :  { %10393 = vmatprep.subr.bf16.mxu0 %v11561_v53  ;;  %10875 = vrcp.f32 %v4489_v0  ;;  %v3948_v23 = vmul.f32 %v10870_v22, %v10852_v45  ;;  %v4637_v0 = vld [vmem:[#allocation2 + $0x7b0] sm:$0xff]  ;;  %10413 = vmatprep.subr.bf16.mxu1 %v10412_v8  ;;  %v4640_v22 = vld [vmem:[#allocation2 + $0x7c8] sm:$0xff] }
0x16c6   :  { %9846 = vmatprep.mubr.msk.f32.mxu0 %vm735_vm5, %v3947_v20  ;;  %10877 = vrcp.f32 %v4492_v46  ;;  %v10414_v20 = vpack.c.bf16 %v4637_v0, %v4633_v11 }
0x16c7   :  { %v10872_v6 = vpop.eup %10871 }
0x16c8   :  { %v4311_v25 = vmul.f32 %v10872_v6, %v10858_v34  ;;  %v10874_v27 = vpop.eup %10873  ;;  %v4644_v6 = vld [vmem:[#allocation2 + $0x7e8] sm:$0xff]  ;;  %10415 = vmatpush1.bf16.msra.mxu1 %v10414_v20  ;;  %v4585_v20 = vld [vmem:[#allocation2 + $0xfe6] ss:$0 sm:$0xff] }
0x16c9   :  { %v4312_v26 = vmul.f32 %v10874_v27, %v10856_v55  ;;  %v10408_v46 = vpack.c.bf16 %v4644_v6, %v4640_v22  ;;  %v4639_v27 = vld [vmem:[#allocation2 + $0x7c0] sm:$0xff] }
0x16ca   :  { %v4830_v22 = vld [vmem:[#allocation2 + $0x800] sm:$0xff] }
0x16cb   :  { %9847 = vmatmul.mubr.msk.f32.vlgmr.msra.gmra.mrb[52].mxu0 %vm735_vm5, %v3948_v23  ;;  %v4642_v23 = vld [vmem:[#allocation2 + $0x7d8] sm:$0xff] }
0x16cc   :  { %10395 = vmatpush3.bf16.msra.mxu0 %v11561_v53  ;;  %9860 = vmatprep.mubr.msk.f32.mxu0 %vm735_vm5, %v4311_v25  ;;  %v3108_v53 = vld [vmem:[#allocation2 + $0xfa5] ss:$0 sm:$0xff]  ;;  %v4646_v25 = vld [vmem:[#allocation2 + $0x7f8] sm:$0xff] }
0x16cd   :  { %10401 = vmatprep.subr.bf16.mxu0 %v11563_v33  ;;  %v3187_v36 = vadd.f32 %v11565_v57, %v3108_v53  ;;  %v3182_v17 = vadd.f32 %v11567_v59, %v3108_v53 }
0x16cf   :  { %v10876_v29 = vpop.eup %10875  ;;  %v3191_v61 = vadd.f32 %v3187_v36, %v11459_v15  ;;  %v3190_v16 = vadd.f32 %v3182_v17, %v11462_v19  ;;  %v4833_v36 = vld [vmem:[#allocation2 + $0x818] sm:$0xff] }
0x16d0   :  { %v4495_v31 = vmul.f32 %v10876_v29, %v10862_v63  ;;  %v10878_v52 = vpop.eup %10877  ;;  %v4643_v29 = vld [vmem:[#allocation2 + $0x7e0] sm:$0xff] }
0x16d1   :  { %v4496_v24 = vmul.f32 %v10878_v52, %v10860_v48  ;;  %v3197_v59 = vsel %vm48_vm0, %v3191_v61, 0.0  ;;  %v4641_v52 = vld [vmem:[#allocation2 + $0x7d0] sm:$0xff] }
0x16d3   :  { %9861 = vmatmul.mubr.msk.f32.vlgmr.msra.gmra.mrb[52].mxu0 %vm735_vm5, %v4312_v26  ;;  %v10416_v26 = vpack.c.bf16 %v4646_v25, %v4642_v23  ;;  %v4834_v23 = vld [vmem:[#allocation2 + $0x820] sm:$0xff]  ;;  %v4836_v25 = vld [vmem:[#allocation2 + $0x830] sm:$0xff] }
0x16d4   :  { %10403 = vmatpush3.bf16.msra.mxu0 %v11563_v33  ;;  %9874 = vmatprep.mubr.msk.f32.mxu0 %vm735_vm5, %v4495_v31  ;;  %v10410_v31 = vpack.c.bf16 %v4643_v29, %v4639_v27  ;;  %v4586_v29 = vld [vmem:[#allocation2 + $0xfe7] ss:$0 sm:$0xff] }
0x16d5   :  { %10405 = vmatprep.subr.bf16.mxu0 %v10404_v2  ;;  %10417 = vmatprep.subr.bf16.mxu1 %v10416_v26  ;;  %v4839_v26 = vld [vmem:[#allocation2 + $0x848] sm:$0xff] }
0x16db   :  { %9875 = vmatmul.mubr.msk.f32.vlgmr.msra.gmra.mrb[52].mxu0 %vm735_vm5, %v4496_v24  ;;  %v4645_v24 = vld [vmem:[#allocation2 + $0x7f0] sm:$0xff] }
0x16dc   :  { %4740 = vmatprep.mubr.f32.mxu0 %v11096_v21  ;;  %10407 = vmatpush1.bf16.msra.mxu0 %v10406_v1  ;;  %v10418_v53 = vpack.c.bf16 %v4645_v24, %v4641_v52  ;;  %v4843_v52 = vld [vmem:[#allocation2 + $0x868] sm:$0xff]  ;;  %v4841_v24 = vld [vmem:[#allocation2 + $0x858] sm:$0xff] }
0x16dd   :  { %10409 = vmatprep.subr.bf16.mxu0 %v10408_v46  ;;  %v4832_v46 = vld [vmem:[#allocation2 + $0x810] sm:$0xff] }
0x16de   :  { %10419 = vmatpush1.bf16.msra.mxu1 %v10418_v53  ;;  %v4845_v53 = vld [vmem:[#allocation2 + $0x878] sm:$0xff] }
0x16e0   :  { %10411 = vmatpush1.bf16.msra.mxu0 %v10410_v31 }
0x17ae   :  { %v9876_v35 = vpop.f32.mrb[52].mxu0 }
0x17af   :  { %v4582_v37 = vadd.f32 %v9876_v35, %v4580_v58  ;;  %v4569_v60 = vpop.f32.mrb[53].mxu0  ;;  %v4835_v35 = vld [vmem:[#allocation2 + $0x828] sm:$0xff] }
0x17b0   :  { %v4581_v32 = vadd.f32 %v4580_v58, %v4569_v60  ;;  %v4831_v58 = vld [vmem:[#allocation2 + $0x808] sm:$0xff]  ;;  %v4837_v60 = vld [vmem:[#allocation2 + $0x838] sm:$0xff] }
0x17b1   :  { %v11618_v33 = vadd.f32 %v4582_v37, %v11481_v28  ;;  %v3194_v28 = vsel %vm48_vm0, %v3190_v16, 0.0  ;;  %v10420_v37 = vpack.c.bf16 %v4835_v35, %v4831_v58  ;;  %v10428_v17 = vpack.c.bf16 %v4837_v60, %v4833_v36 }
0x17b2   :  { %v11621_v40 = vadd.f32 %v4581_v32, %v11487_v10  ;;  %v10422_v35 = vpack.c.bf16 %v4834_v23, %v4830_v22  ;;  %v10430_v36 = vpack.c.bf16 %v4836_v25, %v4832_v46  ;;  %v11691_v23 = vld [vmem:[#allocation2 + $0xfc7] ss:$8 sm:$0xf] }
0x17b3   :  { %v4590_v41 = vsel %vm48_vm0, %v11618_v33, 0.0  ;;  %10421 = vmatprep.subr.bf16.mxu0 %v10420_v37  ;;  %10429 = vmatprep.subr.bf16.mxu1 %v10428_v17  ;;  %v4838_v37 = vld [vmem:[#allocation2 + $0x840] sm:$0xff]  ;;  %v4653_v46 = vrot.slane %v11691_v23, %v11207_v54  ;;  %v4657_v25 = vrot.slane %v11691_v23, %v11211_v56 }
0x17b4   :  { %4591 = vadd.xlane.f32.xlu1 %v4590_v41  ;;  %v4587_v57 = vsel %vm48_vm0, %v11621_v40, 0.0 }
0x17b5   :  { %4588 = vadd.xlane.f32.xlu0 %v4587_v57 }
0x17b8   :  { %3198 = vadd.xlane.f32.xlu1 %v3197_v59 }
0x17b9   :  { %3195 = vadd.xlane.f32.xlu0 %v3194_v28 }
0x1841   :  { %v4592_v10 = vpop.xlane.xlu1 %4591 }
0x1842   :  { %v4594_v42 = vmul.f32 0.03125, %v4592_v10  ;;  %v4589_v43 = vpop.xlane.xlu0 %4588 }
0x1843   :  { %v4593_v45 = vmul.f32 0.03125, %v4589_v43 }
0x1844   :  { %v11632_v44 = vsub.f32 %v11618_v33, %v4594_v42 }
0x1845   :  { %v11635_v15 = vsub.f32 %v11621_v40, %v4593_v45  ;;  %v3199_v13 = vpop.xlane.xlu1 %3198 }
0x1846   :  { %v3201_v7 = vmul.f32 0.03125, %v3199_v13  ;;  %v3196_v19 = vpop.xlane.xlu0 %3195  ;;  %v4598_v18 = vmul.f32 %v11632_v44, %v11632_v44 }
0x1847   :  { %v3200_v47 = vmul.f32 0.03125, %v3196_v19  ;;  %v4597_v55 = vmul.f32 %v11635_v15, %v11635_v15 }
0x1848   :  { %v11641_v34 = vsub.f32 %v3191_v61, %v3201_v7  ;;  %v4602_v39 = vsel %vm48_vm0, %v4598_v18, 0.0 }
0x1849   :  { %v11644_v9 = vsub.f32 %v3190_v16, %v3200_v47  ;;  %4603 = vadd.xlane.f32.xlu1 %v4602_v39  ;;  %v4599_v48 = vsel %vm48_vm0, %v4597_v55, 0.0 }
0x184a   :  { %4600 = vadd.xlane.f32.xlu0 %v4599_v48  ;;  %v3205_v63 = vmul.f32 %v11641_v34, %v11641_v34 }
0x184b   :  { %v3204_v49 = vmul.f32 %v11644_v9, %v11644_v9 }
0x184c   :  { %v3209_v50 = vsel %vm48_vm0, %v3205_v63, 0.0 }
0x184d   :  { %3210 = vadd.xlane.f32.xlu1 %v3209_v50  ;;  %v3206_v14 = vsel %vm48_vm0, %v3204_v49, 0.0 }
0x184e   :  { %3207 = vadd.xlane.f32.xlu0 %v3206_v14 }
0x18d6   :  { %v4604_v32 = vpop.xlane.xlu1 %4603 }
0x18d7   :  { %v4606_v41 = vmul.f32 0.032258064, %v4604_v32  ;;  %v4601_v61 = vpop.xlane.xlu0 %4600 }
0x18d8   :  { %v4605_v57 = vmul.f32 0.032258064, %v4601_v61  ;;  %v4844_v61 = vld [vmem:[#allocation2 + $0x870] sm:$0xff] }
0x18d9   :  { %10879 = vrsqrt.f32 %v4606_v41  ;;  %vm4616_vm9 = vcmp.eq.f32.partialorder %v4606_v41, inf  ;;  %v4619_v13 = vand.u32 2147483648, %v4606_v41  ;;  %vm4618_vm11 = vcmp.eq.f32.partialorder %v4606_v41, 0.0 }
0x18da   :  { %10881 = vrsqrt.f32 %v4605_v57  ;;  %v3211_v16 = vpop.xlane.xlu1 %3210  ;;  %vm4609_vm12 = vcmp.eq.f32.partialorder %v4605_v57, inf  ;;  %v4612_v18 = vand.u32 2147483648, %v4605_v57  ;;  %vm4611_vm13 = vcmp.eq.f32.partialorder %v4605_v57, 0.0 }
0x18db   :  { %v3213_v59 = vmul.f32 0.032258064, %v3211_v16  ;;  %v3208_v28 = vpop.xlane.xlu0 %3207  ;;  %v10424_v16 = vpack.c.bf16 %v4843_v52, %v4839_v26 }
0x18dc   :  { %v3212_v10 = vmul.f32 0.032258064, %v3208_v28  ;;  %v5030_v28 = vld [vmem:[#allocation2 + $0x888] sm:$0xff] }
0x18dd   :  { %10883 = vrsqrt.f32 %v3213_v59  ;;  %vm3223_vm14 = vcmp.eq.f32.partialorder %v3213_v59, inf  ;;  %vm3225_vm15 = vcmp.eq.f32.partialorder %v3213_v59, 0.0  ;;  %v3226_v51 = vand.u32 2147483648, %v3213_v59 }
0x18de   :  { %10885 = vrsqrt.f32 %v3212_v10  ;;  %vm3216_vm1 = vcmp.eq.f32.partialorder %v3212_v10, inf  ;;  %v3219_v2 = vand.u32 2147483648, %v3212_v10  ;;  %vm3218_vm2 = vcmp.eq.f32.partialorder %v3212_v10, 0.0 }
0x18e3   :  { %v10880_v42 = vpop.eup %10879 }
0x18e4   :  { %v10882_v43 = vpop.eup %10881  ;;  %v4615_v45 = vmul.f32 %v10880_v42, %v4606_v41  ;;  %v5032_v42 = vld [vmem:[#allocation2 + $0x898] sm:$0xff] }
0x18e5   :  { %v4608_v7 = vmul.f32 %v10882_v43, %v4605_v57  ;;  %v5036_v43 = vld [vmem:[#allocation2 + $0x8b8] sm:$0xff] }
0x18e6   :  { %v4617_v19 = vsel %vm4616_vm9, %v4606_v41, %v4615_v45  ;;  %v4840_v41 = vld [vmem:[#allocation2 + $0x850] sm:$0xff] }
0x18e7   :  { %v10884_v47 = vpop.eup %10883  ;;  %v4620_v55 = vsel %vm4618_vm11, %v4619_v13, %v4617_v19  ;;  %v4610_v39 = vsel %vm4609_vm12, %v4605_v57, %v4608_v7  ;;  %v10434_v45 = vpack.c.bf16 %v4844_v61, %v4840_v41  ;;  %v5029_v13 = vld [vmem:[#allocation2 + $0x880] sm:$0xff] }
0x18e8   :  { %v10886_v48 = vpop.eup %10885  ;;  %v4622_v63 = vadd.f32 1e-06, %v4620_v55  ;;  %v4613_v49 = vsel %vm4611_vm13, %v4612_v18, %v4610_v39  ;;  %v3222_v50 = vmul.f32 %v10884_v47, %v3213_v59  ;;  %v5033_v47 = vld [vmem:[#allocation2 + $0x8a0] sm:$0xff]  ;;  %v5031_v55 = vld [vmem:[#allocation2 + $0x890] sm:$0xff] }
0x18e9   :  { %v4621_v14 = vadd.f32 1e-06, %v4613_v49  ;;  %v3215_v30 = vmul.f32 %v10886_v48, %v3212_v10  ;;  %v5035_v39 = vld [vmem:[#allocation2 + $0x8b0] sm:$0xff]  ;;  %v3193_v48 = vld [vmem:[#allocation2 + $0xfc3] ss:$0 sm:$0xff]  ;;  %v10444_v49 = vpack.c.bf16 %v5036_v43, %v5032_v42 }
0x18ea   :  { %10887 = vrcp.f32 %v4622_v63  ;;  %v3224_v62 = vsel %vm3223_vm14, %v3213_v59, %v3222_v50  ;;  %v3192_v59 = vld [vmem:[#allocation2 + $0xfc2] ss:$0 sm:$0xff]  ;;  %v5038_v50 = vld [vmem:[#allocation2 + $0x8c8] sm:$0xff] }
0x18eb   :  { %10889 = vrcp.f32 %v4621_v14  ;;  %v3227_v38 = vsel %vm3225_vm15, %v3226_v51, %v3224_v62  ;;  %v3217_v3 = vsel %vm3216_vm1, %v3212_v10, %v3215_v30  ;;  %v5034_v10 = vld [vmem:[#allocation2 + $0x8a8] sm:$0xff]  ;;  %v5040_v14 = vld [vmem:[#allocation2 + $0x8d8] sm:$0xff]  ;;  %v10438_v30 = vpack.c.bf16 %v5033_v47, %v5029_v13 }
0x18ec   :  { %v3220_v5 = vsel %vm3218_vm2, %v3219_v2, %v3217_v3  ;;  %v3229_v8 = vadd.f32 1e-06, %v3227_v38  ;;  %v10436_v63 = vpack.c.bf16 %v5034_v10, %v5030_v28  ;;  %v5044_v51 = vld [vmem:[#allocation2 + $0x8f8] sm:$0xff]  ;;  %v10446_v62 = vpack.c.bf16 %v5035_v39, %v5031_v55  ;;  %v5037_v2 = vld [vmem:[#allocation2 + $0x8c0] sm:$0xff] }
0x18ed   :  { %v3228_v1 = vadd.f32 1e-06, %v3220_v5  ;;  %v5041_v5 = vld [vmem:[#allocation2 + $0x8e0] sm:$0xff] }
0x18ef   :  { %10891 = vrcp.f32 %v3228_v1  ;;  %v5043_v1 = vld [vmem:[#allocation2 + $0x8f0] sm:$0xff] }
0x18f0   :  { %10893 = vrcp.f32 %v3229_v8  ;;  %v5039_v8 = vld [vmem:[#allocation2 + $0x8d0] sm:$0xff] }
0x18f1   :  { %v10450_v22 = vpack.c.bf16 %v5043_v1, %v5039_v8 }
0x18f4   :  { %v10888_v11 = vpop.eup %10887 }
0x18f5   :  { %v10890_v0 = vpop.eup %10889  ;;  %v4626_v27 = vmul.f32 %v10888_v11, %v11632_v44  ;;  %v10432_v44 = vpack.c.bf16 %v4845_v53, %v4841_v24 }
0x18f6   :  { %v4625_v6 = vmul.f32 %v10890_v0, %v11635_v15  ;;  %v4842_v15 = vld [vmem:[#allocation2 + $0x860] sm:$0xff]  ;;  %v10448_v0 = vpack.c.bf16 %v5044_v51, %v5040_v14 }
0x18f7   :  { %v4628_v32 = vmul.f32 %v4626_v27, %v4585_v20 }
0x18f8   :  { %v4627_v31 = vmul.f32 %v4625_v6, %v4585_v20  ;;  %v10442_v20 = vpack.c.bf16 %v5041_v5, %v5037_v2  ;;  %v4661_v5 = vrot.slane %v11691_v23, %v11228_v12 }
0x18f9   :  { %v10892_v58 = vpop.eup %10891  ;;  %v4630_v19 = vadd.f32 %v4628_v32, %v4586_v29 }
0x18fa   :  { %v3232_v60 = vmul.f32 %v10892_v58, %v11644_v9  ;;  %v4629_v17 = vadd.f32 %v4627_v31, %v4586_v29  ;;  %v10894_v57 = vpop.eup %10893  ;;  %v10426_v9 = vpack.c.bf16 %v4842_v15, %v4838_v37  ;;  %v4847_v37 = vld [vmem:[#allocation2 + $0xfe0] ss:$8 sm:$0xf] }
0x18fb   :  { %v3233_v7 = vmul.f32 %v10894_v57, %v11641_v34  ;;  %v5042_v34 = vld [vmem:[#allocation2 + $0x8e8] sm:$0xff]  ;;  %v4852_v32 = vrot.slane %v4847_v37, %v11207_v54  ;;  %v4860_v15 = vrot.slane %v4847_v37, %v11228_v12  ;;  %v4856_v57 = vrot.slane %v4847_v37, %v11211_v56 }
0x18fc   :  { %9317 = vmatmul.mubr.msk.f32.vlgmr.msra.gmra.mrb[54].mxu0 %vm48_vm0, %v4629_v17  ;;  %9319 = vmatmul.mubr.msk.f32.vlgmr.msra.gmra.mrb[58].mxu1 %vm48_vm0, %v4629_v17  ;;  %v3234_v18 = vmul.f32 %v3232_v60, %v3192_v59  ;;  %v10440_v11 = vpack.c.bf16 %v5042_v34, %v5038_v50 }
0x18fd   :  { %10423 = vmatpush1.bf16.msra.mxu0 %v10422_v35  ;;  %10431 = vmatpush1.bf16.msra.mxu1 %v10430_v36  ;;  %v3235_v3 = vmul.f32 %v3233_v7, %v3192_v59 }
0x18fe   :  { %4746 = vmatprep.mubr.f32.mxu0 %v11096_v21  ;;  %4823 = vmatprep.mubr.f32.mxu1 %v11096_v21  ;;  %v11665_v38 = vadd.f32 %v3234_v18, %v3193_v48 }
0x18ff   :  { %10425 = vmatprep.subr.bf16.mxu0 %v10424_v16  ;;  %10433 = vmatprep.subr.bf16.mxu1 %v10432_v44  ;;  %v11673_v6 = vadd.f32 %v3235_v3, %v3193_v48  ;;  %v4864_v16 = vrot.slane %v4847_v37, %v11221_v4 }
0x1900   :  { %9318 = vmatmul.mubr.msk.f32.gmra.mrb[56].mxu0 %vm48_vm0, %v4630_v19  ;;  %9320 = vmatmul.mubr.msk.f32.gmra.mrb[60].mxu1 %vm48_vm0, %v4630_v19 }
0x1901   :  { %10427 = vmatpush1.bf16.msra.mxu0 %v10426_v9  ;;  %10435 = vmatpush1.bf16.msra.mxu1 %v10434_v45 }
0x1902   :  { %4939 = vmatprep.mubr.f32.mxu0 %v11096_v21  ;;  %5016 = vmatprep.mubr.f32.mxu1 %v11096_v21 }
0x1903   :  { %10437 = vmatprep.subr.bf16.mxu0 %v10436_v63  ;;  %10445 = vmatprep.subr.bf16.mxu1 %v10444_v49 }
0x1904   :  { %9321 = vmatmul.mubr.msk.f32.vlgmr.msra.gmra.mrb[58].mxu0 %vm48_vm0, %v11665_v38  ;;  %9323 = vmatmul.mubr.msk.f32.vlgmr.msra.gmra.mrb[62].mxu1 %vm48_vm0, %v11665_v38 }
0x1905   :  { %10439 = vmatpush1.bf16.msra.mxu0 %v10438_v30  ;;  %10447 = vmatpush1.bf16.msra.mxu1 %v10446_v62 }
0x1906   :  { %4945 = vmatprep.mubr.f32.mxu0 %v11096_v21  ;;  %5022 = vmatprep.mubr.f32.mxu1 %v11096_v21 }
0x1907   :  { %10441 = vmatprep.subr.bf16.mxu0 %v10440_v11  ;;  %10449 = vmatprep.subr.bf16.mxu1 %v10448_v0 }
0x1908   :  { %9322 = vmatmul.mubr.msk.f32.gmra.mrb[60].mxu0 %vm48_vm0, %v11673_v6  ;;  %9324 = vmatmul.mubr.msk.f32.gmra.mrb[64].mxu1 %vm48_vm0, %v11673_v6 }
0x1909   :  { %10443 = vmatpush1.bf16.msra.mxu0 %v10442_v20  ;;  %10451 = vmatpush1.bf16.msra.mxu1 %v10450_v22  ;;  %v4665_v22 = vrot.slane %v11691_v23, %v11221_v4  ;;  %v42_v23 = vld [vmem:[%s12082_s4] sm:$0xff] }
0x190a   :  { %5109 = vmatprep.mubr.f32.mxu0 %v11096_v21  ;;  %5186 = vmatprep.mubr.f32.mxu1 %v11096_v21 }
0x190c   :  { %9325 = vmatmul.mubr.msk.f32.vlgmr.msra.gmra.mrb[62].mxu0 %vm48_vm0, %v11665_v38  ;;  %9327 = vmatmul.mubr.msk.f32.vlgmr.msra.gmra.mrb[66].mxu1 %vm48_vm0, %v11665_v38 }
0x190d   :  { %5115 = vmatprep.mubr.f32.mxu0 %v11096_v21  ;;  %5192 = vmatprep.mubr.f32.mxu1 %v11096_v21 }
0x1910   :  { %9326 = vmatmul.mubr.msk.f32.gmra.mrb[64].mxu0 %vm48_vm0, %v11673_v6  ;;  %9328 = vmatmul.mubr.msk.f32.gmra.mrb[68].mxu1 %vm48_vm0, %v11673_v6 }
0x19cf   :  { %v4742_v27 = vpop.f32.mrb[54].mxu0  ;;  %v4819_v29 = vpop.f32.mrb[58].mxu1 }
0x19d0   :  { %v4743_v26 = vadd.f32 %v4742_v27, %v4653_v46  ;;  %v4744_v31 = vpop.f32.mrb[55].mxu0  ;;  %v11697_v52 = vpop.f32.mrb[59].mxu1  ;;  %v4820_v20 = vadd.f32 %v4819_v29, %v4661_v5 }
0x19d1   :  { %v4745_v24 = vadd.f32 %v4744_v31, %v4657_v25 }
0x19d2   :  { %9881 = vmatprep.mubr.f32.mxu0 %v4743_v26  ;;  %v4822_v26 = vadd.f32 %v11697_v52, %v4665_v22 }
0x19d3   :  { %v4748_v53 = vpop.f32.mrb[56].mxu0  ;;  %v4825_v58 = vpop.f32.mrb[60].mxu1  ;;  %9888 = vmatprep.mubr.f32.mxu1 %v4745_v24  ;;  %v43_v24 = vld [vmem:[%s12082_s4 + $0x8] sm:$0xff] }
0x19d4   :  { %v4750_v35 = vpop.f32.mrb[57].mxu0  ;;  %v4827_v36 = vpop.f32.mrb[61].mxu1  ;;  %v4749_v11 = vadd.f32 %v4748_v53, %v4653_v46  ;;  %v4826_v27 = vadd.f32 %v4825_v58, %v4661_v5 }
0x19d5   :  { %v4751_v0 = vadd.f32 %v4750_v35, %v4657_v25  ;;  %v4828_v46 = vadd.f32 %v4827_v36, %v4665_v22 }
0x19d7   :  { %v4941_v60 = vpop.f32.mrb[58].mxu0  ;;  %v5018_v17 = vpop.f32.mrb[62].mxu1 }
0x19d8   :  { %v4943_v41 = vpop.f32.mrb[59].mxu0  ;;  %v5020_v61 = vpop.f32.mrb[63].mxu1  ;;  %v4942_v28 = vadd.f32 %v4941_v60, %v4852_v32  ;;  %v5019_v10 = vadd.f32 %v5018_v17, %v4860_v15 }
0x19d9   :  { %v4944_v13 = vadd.f32 %v4943_v41, %v4856_v57  ;;  %v5021_v7 = vadd.f32 %v5020_v61, %v4864_v16 }
0x19db   :  { %v4947_v44 = vpop.f32.mrb[60].mxu0  ;;  %v5024_v59 = vpop.f32.mrb[64].mxu1 }
0x19dc   :  { %v4948_v42 = vadd.f32 %v4947_v44, %v4852_v32  ;;  %v5025_v43 = vadd.f32 %v5024_v59, %v4860_v15  ;;  %v4949_v9 = vpop.f32.mrb[61].mxu0  ;;  %v5026_v45 = vpop.f32.mrb[65].mxu1 }
0x19dd   :  { %v4950_v19 = vadd.f32 %v4949_v9, %v4856_v57  ;;  %v5027_v18 = vadd.f32 %v5026_v45, %v4864_v16 }
0x19de   :  { %v10452_v47 = vpack.c.bf16 %v4948_v42, %v4942_v28  ;;  %v10468_v55 = vpack.c.bf16 %v5025_v43, %v5019_v10 }
0x19df   :  { %v10456_v39 = vpack.c.bf16 %v4950_v19, %v4944_v13  ;;  %v10476_v48 = vpack.c.bf16 %v5027_v18, %v5021_v7  ;;  %v5111_v63 = vpop.f32.mrb[62].mxu0  ;;  %v5188_v49 = vpop.f32.mrb[66].mxu1 }
0x19e0   :  { %v5113_v50 = vpop.f32.mrb[63].mxu0  ;;  %v5190_v34 = vpop.f32.mrb[67].mxu1  ;;  %10453 = vmatprep.subr.bf16.mxu0 %v10452_v47 }
0x19e1   :  { %10455 = vmatpush3.bf16.xpose.msra.mxu0 %v10452_v47  ;;  %10457 = vmatprep.subr.bf16.mxu1 %v10456_v39 }
0x19e2   :  { %10459 = vmatpush3.bf16.xpose.msra.mxu1 %v10456_v39 }
0x19e3   :  { %v5117_v14 = vpop.f32.mrb[64].mxu0  ;;  %v5194_v51 = vpop.f32.mrb[68].mxu1  ;;  %10469 = vmatprep.subr.bf16.mxu1 %v10468_v55 }
0x19e4   :  { %v11703_v30 = vpack.c.bf16 %v5117_v14, %v5111_v63  ;;  %v11705_v62 = vpack.c.bf16 %v5194_v51, %v5188_v49  ;;  %v5119_v2 = vpop.f32.mrb[65].mxu0  ;;  %v5196_v3 = vpop.f32.mrb[69].mxu1 }
0x19e5   :  { %v10460_v8 = vpack.c.bf16 %v5119_v2, %v5113_v50  ;;  %v11709_v1 = vpack.c.bf16 %v5196_v3, %v5190_v34 }
0x19e7   :  { %10461 = vmatprep.subr.bf16.mxu0 %v10460_v8 }
0x19e8   :  { %9882 = vmatmul.mubr.f32.vlgmr.msra.gmra.mrb[66].mxu0 %v4749_v11 }
0x19e9   :  { %9889 = vmatmul.mubr.f32.vlgmr.msra.gmra.mrb[70].mxu1 %v4751_v0  ;;  %10463 = vmatpush3.bf16.msra.mxu0 %v10460_v8 }
0x19ea   :  { %10465 = vmatprep.subr.bf16.mxu0 %v11703_v30  ;;  %10471 = vmatpush3.bf16.xpose.msra.mxu1 %v10468_v55 }
0x19eb   :  { %9909 = vmatprep.mubr.f32.mxu1 %v4820_v20  ;;  %10477 = vmatprep.subr.bf16.mxu1 %v10476_v48 }
0x19f1   :  { %9910 = vmatmul.mubr.f32.vlgmr.msra.gmra.mrb[72].mxu1 %v4826_v27 }
0x19f2   :  { %10479 = vmatpush3.bf16.xpose.msra.mxu1 %v10476_v48  ;;  %9923 = vmatprep.mubr.f32.mxu1 %v4822_v26 }
0x19f9   :  { %9924 = vmatmul.mubr.f32.vlgmr.msra.gmra.mrb[74].mxu1 %v4828_v46 }
0x1abb   :  { %v9883_v25 = vpop.f32.mrb[66].mxu0 }
0x1abc   :  { %v5265_v29 = vpop.f32.mrb[67].mxu0  ;;  %v9890_v31 = vpop.f32.mrb[70].mxu1  ;;  %v5275_v53 = vmul.f32 0.35355338, %v9883_v25 }
0x1abd   :  { %v5376_v35 = vmul.f32 0.35355338, %v9890_v31  ;;  %v5366_v37 = vpop.f32.mrb[71].mxu1  ;;  %v5274_v52 = vmul.f32 0.35355338, %v5265_v29 }
0x1abe   :  { %v5375_v58 = vmul.f32 0.35355338, %v5366_v37  ;;  %v5277_v32 = vadd.f32 %v5275_v53, %v43_v24 }
0x1abf   :  { %v5378_v60 = vadd.f32 %v5376_v35, %v43_v24  ;;  %v5276_v41 = vadd.f32 %v5274_v52, %v42_v23 }
0x1ac0   :  { %v5377_v17 = vadd.f32 %v5375_v58, %v42_v23  ;;  %v5281_v44 = vsel %vm735_vm5, %v5277_v32, -inf }
0x1ac1   :  { %v5382_v36 = vsel %vm735_vm5, %v5378_v60, -inf  ;;  %v5278_v28 = vsel %vm735_vm5, %v5276_v41, -inf }
0x1ac2   :  { %5383 = vmax.xlane.f32.xlu1 %v5382_v36  ;;  %v5379_v15 = vsel %vm735_vm5, %v5377_v17, -inf }
0x1ac3   :  { %5380 = vmax.xlane.f32.xlu0 %v5379_v15 }
0x1ac4   :  { %v9911_v61 = vpop.f32.mrb[72].mxu1 }
0x1ac5   :  { %v5639_v57 = vmul.f32 0.35355338, %v9911_v61  ;;  %v5629_v16 = vpop.f32.mrb[73].mxu1 }
0x1ac6   :  { %v5638_v59 = vmul.f32 0.35355338, %v5629_v16  ;;  %5282 = vmax.xlane.f32.xlu1 %v5281_v44 }
0x1ac7   :  { %5279 = vmax.xlane.f32.xlu0 %v5278_v28  ;;  %v5641_v10 = vadd.f32 %v5639_v57, %v43_v24 }
0x1ac8   :  { %v5640_v42 = vadd.f32 %v5638_v59, %v42_v23 }
0x1ac9   :  { %v5645_v43 = vsel %vm735_vm5, %v5641_v10, -inf }
0x1aca   :  { %5646 = vmax.xlane.f32.xlu1 %v5645_v43  ;;  %v5642_v9 = vsel %vm735_vm5, %v5640_v42, -inf }
0x1acb   :  { %5643 = vmax.xlane.f32.xlu0 %v5642_v9 }
0x1acc   :  { %v9925_v45 = vpop.f32.mrb[74].mxu1 }
0x1acd   :  { %v5823_v13 = vmul.f32 0.35355338, %v9925_v45  ;;  %v5813_v7 = vpop.f32.mrb[75].mxu1 }
0x1ace   :  { %v5822_v19 = vmul.f32 0.35355338, %v5813_v7 }
0x1acf   :  { %v5825_v18 = vadd.f32 %v5823_v13, %v43_v24 }
0x1ad0   :  { %v5824_v47 = vadd.f32 %v5822_v19, %v42_v23 }
0x1ad1   :  { %v5829_v55 = vsel %vm735_vm5, %v5825_v18, -inf }
0x1ad2   :  { %5830 = vmax.xlane.f32.xlu1 %v5829_v55  ;;  %v5826_v39 = vsel %vm735_vm5, %v5824_v47, -inf }
0x1ad3   :  { %5827 = vmax.xlane.f32.xlu0 %v5826_v39 }
0x1b4f   :  { %v5384_v48 = vpop.xlane.xlu1 %5383 }
0x1b50   :  { %v5386_v63 = vsub.f32 %v5378_v60, %v5384_v48  ;;  %v5381_v49 = vpop.xlane.xlu0 %5380 }
0x1b51   :  { %v5385_v50 = vsub.f32 %v5377_v17, %v5381_v49 }
0x1b52   :  { %v5389_v34 = vmul.f32 1.442695, %v5386_v63 }
0x1b53   :  { %v5387_v14 = vmul.f32 1.442695, %v5385_v50  ;;  %v5283_v51 = vpop.xlane.xlu1 %5282 }
0x1b54   :  { %10895 = vpow2.f32 %v5389_v34  ;;  %v5285_v2 = vsub.f32 %v5277_v32, %v5283_v51  ;;  %v5280_v3 = vpop.xlane.xlu0 %5279 }
0x1b55   :  { %10897 = vpow2.f32 %v5387_v14  ;;  %v5284_v5 = vsub.f32 %v5276_v41, %v5280_v3 }
0x1b56   :  { %v5288_v8 = vmul.f32 1.442695, %v5285_v2 }
0x1b57   :  { %v5286_v11 = vmul.f32 1.442695, %v5284_v5  ;;  %v5647_v0 = vpop.xlane.xlu1 %5646 }
0x1b58   :  { %10899 = vpow2.f32 %v5288_v8  ;;  %v5649_v20 = vsub.f32 %v5641_v10, %v5647_v0  ;;  %v5644_v22 = vpop.xlane.xlu0 %5643 }
0x1b59   :  { %10901 = vpow2.f32 %v5286_v11  ;;  %v5648_v27 = vsub.f32 %v5640_v42, %v5644_v22  ;;  %v5931_v11 = vld [vmem:[#allocation2 + $0xfe1] ss:$0 sm:$0xff] }
0x1b5a   :  { %v5652_v26 = vmul.f32 1.442695, %v5649_v20 }
0x1b5b   :  { %v5650_v46 = vmul.f32 1.442695, %v5648_v27 }
0x1b5c   :  { %10903 = vpow2.f32 %v5652_v26 }
0x1b5d   :  { %10905 = vpow2.f32 %v5650_v46 }
0x1b5e   :  { %v10896_v25 = vpop.eup %10895 }
0x1b5f   :  { %v10898_v29 = vpop.eup %10897  ;;  %v5831_v31 = vpop.xlane.xlu1 %5830  ;;  %v5394_v24 = vsel %vm735_vm5, %v10896_v25, 0.0 }
0x1b60   :  { %v5833_v53 = vsub.f32 %v5825_v18, %v5831_v31  ;;  %5395 = vadd.xlane.f32.xlu1 %v5394_v24  ;;  %v5828_v35 = vpop.xlane.xlu0 %5827  ;;  %v5391_v37 = vsel %vm735_vm5, %v10898_v29, 0.0 }
0x1b61   :  { %v5832_v23 = vsub.f32 %v5824_v47, %v5828_v35  ;;  %5392 = vadd.xlane.f32.xlu0 %v5391_v37 }
0x1b62   :  { %v10900_v52 = vpop.eup %10899  ;;  %v5836_v58 = vmul.f32 1.442695, %v5833_v53 }
0x1b63   :  { %v10902_v60 = vpop.eup %10901  ;;  %v5834_v17 = vmul.f32 1.442695, %v5832_v23  ;;  %v5293_v36 = vsel %vm735_vm5, %v10900_v52, 0.0 }
0x1b64   :  { %10907 = vpow2.f32 %v5836_v58  ;;  %5294 = vadd.xlane.f32.xlu1 %v5293_v36  ;;  %v5290_v32 = vsel %vm735_vm5, %v10902_v60, 0.0  ;;  %v5983_v58 = vld [vmem:[#allocation2 + $0x920] sm:$0xff] }
0x1b65   :  { %10909 = vpow2.f32 %v5834_v17  ;;  %5291 = vadd.xlane.f32.xlu0 %v5290_v32  ;;  %v5985_v36 = vld [vmem:[#allocation2 + $0x960] sm:$0xff] }
0x1b66   :  { %v10904_v15 = vpop.eup %10903 }
0x1b67   :  { %v10906_v41 = vpop.eup %10905  ;;  %v5657_v61 = vsel %vm735_vm5, %v10904_v15, 0.0 }
0x1b68   :  { %5658 = vadd.xlane.f32.xlu1 %v5657_v61  ;;  %v5654_v57 = vsel %vm735_vm5, %v10906_v41, 0.0  ;;  %v6072_v61 = vld [vmem:[#allocation2 + $0x9c0] sm:$0xff] }
0x1b69   :  { %5655 = vadd.xlane.f32.xlu0 %v5654_v57 }
0x1b6e   :  { %v10908_v16 = vpop.eup %10907 }
0x1b6f   :  { %v10910_v44 = vpop.eup %10909  ;;  %v5841_v59 = vsel %vm735_vm5, %v10908_v16, 0.0 }
0x1b70   :  { %5842 = vadd.xlane.f32.xlu1 %v5841_v59  ;;  %v5838_v28 = vsel %vm735_vm5, %v10910_v44, 0.0  ;;  %v6074_v59 = vld [vmem:[#allocation2 + $0xa00] sm:$0xff] }
0x1b71   :  { %5839 = vadd.xlane.f32.xlu0 %v5838_v28  ;;  %v6075_v28 = vld [vmem:[#allocation2 + $0xa20] sm:$0xff] }
0x1bed   :  { %v5396_v10 = vpop.xlane.xlu1 %5395 }
0x1bee   :  { %10911 = vrcp.f32 %v5396_v10  ;;  %v5393_v42 = vpop.xlane.xlu0 %5392  ;;  %v10500_v10 = vpack.c.bf16 %v6075_v28, %v6074_v59  ;;  %v6209_v28 = vld [vmem:[#allocation2 + $0xa88] sm:$0xff] }
0x1bef   :  { %10913 = vrcp.f32 %v5393_v42 }
0x1bf1   :  { %v5295_v9 = vpop.xlane.xlu1 %5294 }
0x1bf2   :  { %v5292_v43 = vpop.xlane.xlu0 %5291 }
0x1bf3   :  { %10915 = vrcp.f32 %v5292_v43 }
0x1bf4   :  { %10917 = vrcp.f32 %v5295_v9 }
0x1bf5   :  { %v5659_v47 = vpop.xlane.xlu1 %5658 }
0x1bf6   :  { %v5656_v45 = vpop.xlane.xlu0 %5655 }
0x1bf7   :  { %10919 = vrcp.f32 %v5656_v45 }
0x1bf8   :  { %v10912_v13 = vpop.eup %10911  ;;  %10921 = vrcp.f32 %v5659_v47 }
0x1bf9   :  { %v10914_v7 = vpop.eup %10913  ;;  %v5400_v18 = vmul.f32 %v10912_v13, %v10896_v25 }
0x1bfa   :  { %v5399_v19 = vmul.f32 %v10914_v7, %v10898_v29 }
0x1bfc   :  { %9895 = vmatprep.mubr.msk.f32.mxu0 %vm735_vm5, %v5399_v19 }
0x1bfd   :  { %v10916_v55 = vpop.eup %10915  ;;  %9896 = vmatmul.mubr.msk.f32.vlgmr.msra.gmra.mrb[68].mxu0 %vm735_vm5, %v5400_v18  ;;  %v5843_v34 = vpop.xlane.xlu1 %5842 }
0x1bfe   :  { %10467 = vmatpush3.bf16.msra.mxu0 %v11703_v30  ;;  %v5840_v39 = vpop.xlane.xlu0 %5839  ;;  %v5298_v48 = vmul.f32 %v10916_v55, %v10902_v60  ;;  %v10918_v63 = vpop.eup %10917  ;;  %v5984_v60 = vld [vmem:[#allocation2 + $0x940] sm:$0xff] }
0x1bff   :  { %10473 = vmatprep.subr.bf16.mxu0 %v11705_v62  ;;  %10923 = vrcp.f32 %v5840_v39  ;;  %v5299_v50 = vmul.f32 %v10918_v63, %v10900_v52  ;;  %v5982_v52 = vld [vmem:[#allocation2 + $0x900] sm:$0xff]  ;;  %v10488_v32 = vpack.c.bf16 %v5985_v36, %v5984_v60 }
0x1c00   :  { %9902 = vmatprep.mubr.msk.f32.mxu0 %vm735_vm5, %v5298_v48  ;;  %10925 = vrcp.f32 %v5843_v34  ;;  %v10484_v17 = vpack.c.bf16 %v5983_v58, %v5982_v52 }
0x1c01   :  { %v10920_v49 = vpop.eup %10919 }
0x1c02   :  { %v5662_v14 = vmul.f32 %v10920_v49, %v10906_v41  ;;  %v10922_v30 = vpop.eup %10921  ;;  %v6071_v41 = vld [vmem:[#allocation2 + $0x9a0] sm:$0xff] }
0x1c03   :  { %v5663_v2 = vmul.f32 %v10922_v30, %v10904_v15  ;;  %v6070_v15 = vld [vmem:[#allocation2 + $0x980] sm:$0xff] }
0x1c04   :  { %v10492_v57 = vpack.c.bf16 %v6071_v41, %v6070_v15  ;;  %v5936_v30 = vld [vmem:[#allocation2 + $0x1000] ss:$0 sm:$0xff] }
0x1c05   :  { %9903 = vmatmul.mubr.msk.f32.vlgmr.msra.gmra.mrb[68].mxu0 %vm735_vm5, %v5299_v50 }
0x1c06   :  { %10475 = vmatpush3.bf16.msra.mxu0 %v11705_v62  ;;  %9916 = vmatprep.mubr.msk.f32.mxu0 %vm735_vm5, %v5662_v14 }
0x1c07   :  { %10481 = vmatprep.subr.bf16.mxu0 %v11709_v1  ;;  %10493 = vmatprep.subr.bf16.mxu1 %v10492_v57 }
0x1c08   :  { %10495 = vmatpush3.bf16.msra.mxu1 %v10492_v57 }
0x1c09   :  { %v10924_v51 = vpop.eup %10923 }
0x1c0a   :  { %v5846_v3 = vmul.f32 %v10924_v51, %v10910_v44  ;;  %v10926_v5 = vpop.eup %10925 }
0x1c0b   :  { %v5847_v8 = vmul.f32 %v10926_v5, %v10908_v16  ;;  %v6073_v16 = vld [vmem:[#allocation2 + $0x9e0] sm:$0xff] }
0x1c0c   :  { %v10496_v44 = vpack.c.bf16 %v6073_v16, %v6072_v61  ;;  %v5937_v5 = vld [vmem:[#allocation2 + $0x1001] ss:$0 sm:$0xff] }
0x1c0d   :  { %9917 = vmatmul.mubr.msk.f32.vlgmr.msra.gmra.mrb[68].mxu0 %vm735_vm5, %v5663_v2 }
0x1c0e   :  { %10483 = vmatpush3.bf16.msra.mxu0 %v11709_v1  ;;  %9930 = vmatprep.mubr.msk.f32.mxu0 %vm735_vm5, %v5846_v3 }
0x1c0f   :  { %10485 = vmatprep.subr.bf16.mxu0 %v10484_v17  ;;  %10497 = vmatprep.subr.bf16.mxu1 %v10496_v44 }
0x1c10   :  { %10499 = vmatpush3.bf16.msra.mxu1 %v10496_v44 }
0x1c11   :  { %10501 = vmatprep.subr.bf16.mxu1 %v10500_v10 }
0x1c14   :  { %10503 = vmatpush3.bf16.msra.mxu1 %v10500_v10  ;;  %v6213_v10 = vld [vmem:[#allocation2 + $0xaa8] sm:$0xff] }
0x1c15   :  { %9931 = vmatmul.mubr.msk.f32.vlgmr.msra.gmra.mrb[68].mxu0 %vm735_vm5, %v5847_v8 }
0x1c16   :  { %10487 = vmatpush3.bf16.msra.mxu0 %v10484_v17 }
0x1c17   :  { %10489 = vmatprep.subr.bf16.mxu0 %v10488_v32 }
0x1c1a   :  { %10491 = vmatpush3.bf16.msra.mxu0 %v10488_v32 }
0x1ce8   :  { %v9932_v62 = vpop.f32.mrb[68].mxu0 }
0x1ce9   :  { %v5933_v0 = vadd.f32 %v9932_v62, %v5931_v11  ;;  %v5920_v20 = vpop.f32.mrb[69].mxu0 }
0x1cea   :  { %v5932_v22 = vadd.f32 %v5931_v11, %v5920_v20  ;;  %v6076_v20 = vld [vmem:[#allocation2 + $0xa40] sm:$0xff] }
0x1ceb   :  { %v11751_v27 = vadd.f32 %v5933_v0, %v11618_v33 }
0x1cec   :  { %v11754_v26 = vadd.f32 %v5932_v22, %v11621_v40  ;;  %v6077_v22 = vld [vmem:[#allocation2 + $0xa60] sm:$0xff] }
0x1ced   :  { %v5941_v1 = vsel %vm48_vm0, %v11751_v27, 0.0 }
0x1cee   :  { %5942 = vadd.xlane.f32.xlu1 %v5941_v1  ;;  %v5938_v46 = vsel %vm48_vm0, %v11754_v26, 0.0  ;;  %v10504_v1 = vpack.c.bf16 %v6077_v22, %v6076_v20  ;;  %v6605_v20 = vld [vmem:[#allocation2 + $0xba8] sm:$0xff] }
0x1cef   :  { %5939 = vadd.xlane.f32.xlu0 %v5938_v46  ;;  %v5986_v46 = vld [vmem:[#allocation2 + $0xfe2] ss:$0 sm:$0xff] }
0x1cf0   :  { %10505 = vmatprep.subr.bf16.mxu1 %v10504_v1 }
0x1cf1   :  { %10507 = vmatpush3.bf16.msra.mxu1 %v10504_v1 }
0x1d7b   :  { %v5943_v25 = vpop.xlane.xlu1 %5942 }
0x1d7c   :  { %v5945_v29 = vmul.f32 0.03125, %v5943_v25  ;;  %v5940_v31 = vpop.xlane.xlu0 %5939 }
0x1d7d   :  { %v5944_v24 = vmul.f32 0.03125, %v5940_v31 }
0x1d7e   :  { %v5947_v53 = vsub.f32 %v11751_v27, %v5945_v29 }
0x1d7f   :  { %v5946_v33 = vsub.f32 %v11754_v26, %v5944_v24 }
0x1d80   :  { %v5949_v35 = vmul.f32 %v5947_v53, %v5947_v53 }
0x1d81   :  { %v5948_v37 = vmul.f32 %v5946_v33, %v5946_v33 }
0x1d82   :  { %v5953_v40 = vsel %vm48_vm0, %v5949_v35, 0.0  ;;  %v6078_v35 = vld [vmem:[#allocation2 + $0xfe3] ss:$0 sm:$0xff] }
0x1d83   :  { %5954 = vadd.xlane.f32.xlu1 %v5953_v40  ;;  %v5950_v23 = vsel %vm48_vm0, %v5948_v37, 0.0 }
0x1d84   :  { %5951 = vadd.xlane.f32.xlu0 %v5950_v23 }
0x1e10   :  { %v5955_v42 = vpop.xlane.xlu1 %5954 }
0x1e11   :  { %v5957_v43 = vmul.f32 0.032258064, %v5955_v42  ;;  %v5952_v9 = vpop.xlane.xlu0 %5951  ;;  %v6408_v42 = vld [vmem:[#allocation2 + $0xb08] sm:$0xff] }
0x1e12   :  { %v5956_v45 = vmul.f32 0.032258064, %v5952_v9  ;;  %v6412_v9 = vld [vmem:[#allocation2 + $0xb28] sm:$0xff] }
0x1e13   :  { %10927 = vrsqrt.f32 %v5957_v43  ;;  %vm5967_vm3 = vcmp.eq.f32.partialorder %v5957_v43, inf  ;;  %v5970_v18 = vand.u32 2147483648, %v5957_v43  ;;  %vm5969_vm4 = vcmp.eq.f32.partialorder %v5957_v43, 0.0 }
0x1e14   :  { %10929 = vrsqrt.f32 %v5956_v45  ;;  %vm5960_vm6 = vcmp.eq.f32.partialorder %v5956_v45, inf  ;;  %v5963_v39 = vand.u32 2147483648, %v5956_v45  ;;  %vm5962_vm7 = vcmp.eq.f32.partialorder %v5956_v45, 0.0 }
0x1e1d   :  { %v10928_v13 = vpop.eup %10927 }
0x1e1e   :  { %v10930_v7 = vpop.eup %10929  ;;  %v5966_v19 = vmul.f32 %v10928_v13, %v5957_v43  ;;  %v6212_v13 = vld [vmem:[#allocation2 + $0xaa0] sm:$0xff] }
0x1e1f   :  { %v5959_v47 = vmul.f32 %v10930_v7, %v5956_v45  ;;  %v10524_v7 = vpack.c.bf16 %v6412_v9, %v6408_v42  ;;  %v6163_v42 = vld [vmem:[#allocation2 + $0x1023] ss:$0 sm:$0xff] }
0x1e20   :  { %v5968_v55 = vsel %vm5967_vm3, %v5957_v43, %v5966_v19  ;;  %v10508_v43 = vpack.c.bf16 %v6213_v10, %v6209_v28  ;;  %v6604_v28 = vld [vmem:[#allocation2 + $0xba0] sm:$0xff] }
0x1e21   :  { %v5971_v48 = vsel %vm5969_vm4, %v5970_v18, %v5968_v55  ;;  %v5961_v63 = vsel %vm5960_vm6, %v5956_v45, %v5959_v47  ;;  %v6208_v45 = vld [vmem:[#allocation2 + $0xa80] sm:$0xff]  ;;  %v6217_v55 = vld [vmem:[#allocation2 + $0xac8] sm:$0xff]  ;;  %10525 = vmatprep.subr.bf16.mxu1 %v10524_v7 }
0x1e22   :  { %v5973_v49 = vadd.f32 1e-06, %v5971_v48  ;;  %v5964_v50 = vsel %vm5962_vm7, %v5963_v39, %v5961_v63  ;;  %v10510_v19 = vpack.c.bf16 %v6212_v13, %v6208_v45  ;;  %v6407_v18 = vld [vmem:[#allocation2 + $0xb00] sm:$0xff]  ;;  %10509 = vmatprep.subr.bf16.mxu0 %v10508_v43  ;;  %v6221_v48 = vld [vmem:[#allocation2 + $0xae8] sm:$0xff]  ;;  %v6219_v43 = vld [vmem:[#allocation2 + $0xad8] sm:$0xff] }
0x1e23   :  { %v5972_v34 = vadd.f32 1e-06, %v5964_v50  ;;  %v6411_v47 = vld [vmem:[#allocation2 + $0xb20] sm:$0xff]  ;;  %v6416_v63 = vld [vmem:[#allocation2 + $0xb48] sm:$0xff]  ;;  %v10512_v50 = vpack.c.bf16 %v6221_v48, %v6217_v55  ;;  %v6223_v45 = vld [vmem:[#allocation2 + $0xaf8] sm:$0xff] }
0x1e24   :  { %10931 = vrcp.f32 %v5973_v49  ;;  %v10526_v39 = vpack.c.bf16 %v6411_v47, %v6407_v18  ;;  %v6420_v49 = vld [vmem:[#allocation2 + $0xb68] sm:$0xff]  ;;  %v6218_v47 = vld [vmem:[#allocation2 + $0xad0] sm:$0xff] }
0x1e25   :  { %10933 = vrcp.f32 %v5972_v34  ;;  %v10528_v34 = vpack.c.bf16 %v6420_v49, %v6416_v63  ;;  %v6609_v13 = vld [vmem:[#allocation2 + $0xbc8] sm:$0xff]  ;;  %v6222_v48 = vld [vmem:[#allocation2 + $0xaf0] sm:$0xff]  ;;  %v6608_v63 = vld [vmem:[#allocation2 + $0xbc0] sm:$0xff]  ;;  %v10520_v49 = vpack.c.bf16 %v6223_v45, %v6219_v43 }
0x1e26   :  { %v6613_v7 = vld [vmem:[#allocation2 + $0xbe8] sm:$0xff] }
0x1e2e   :  { %v10932_v14 = vpop.eup %10931 }
0x1e2f   :  { %v10934_v51 = vpop.eup %10933  ;;  %v5977_v2 = vmul.f32 %v10932_v14, %v5947_v53  ;;  %v6216_v14 = vld [vmem:[#allocation2 + $0xac0] sm:$0xff] }
0x1e30   :  { %v5976_v3 = vmul.f32 %v10934_v51, %v5946_v33  ;;  %v6415_v51 = vld [vmem:[#allocation2 + $0xb40] sm:$0xff] }
0x1e31   :  { %v5979_v8 = vmul.f32 %v5977_v2, %v5936_v30 }
0x1e32   :  { %v5978_v11 = vmul.f32 %v5976_v3, %v5936_v30  ;;  %v6220_v30 = vld [vmem:[#allocation2 + $0xae0] sm:$0xff] }
0x1e33   :  { %v5981_v0 = vadd.f32 %v5979_v8, %v5937_v5  ;;  %v10514_v2 = vpack.c.bf16 %v6220_v30, %v6216_v14  ;;  %v6419_v3 = vld [vmem:[#allocation2 + $0xb60] sm:$0xff]  ;;  %v6211_v8 = vld [vmem:[#allocation2 + $0xa98] sm:$0xff]  ;;  %v10522_v14 = vpack.c.bf16 %v6222_v48, %v6218_v47 }
0x1e34   :  { %v5980_v62 = vadd.f32 %v5978_v11, %v5937_v5  ;;  %v10530_v5 = vpack.c.bf16 %v6419_v3, %v6415_v51  ;;  %v6215_v11 = vld [vmem:[#allocation2 + $0xab8] sm:$0xff]  ;;  %v6413_v3 = vld [vmem:[#allocation2 + $0xb30] sm:$0xff] }
0x1e36   :  { %9941 = vmatprep.mubr.msk.f32.mxu0 %vm48_vm0, %v5980_v62  ;;  %v6601_v62 = vld [vmem:[#allocation2 + $0xb88] sm:$0xff] }
0x1e37   :  { %9942 = vmatmul.mubr.msk.f32.vlgmr.msra.gmra.mrb[70].mxu0 %vm48_vm0, %v5981_v0  ;;  %v10516_v0 = vpack.c.bf16 %v6215_v11, %v6211_v8  ;;  %v10540_v22 = vpack.c.bf16 %v6605_v20, %v6601_v62  ;;  %v6418_v8 = vld [vmem:[#allocation2 + $0xb58] sm:$0xff]  ;;  %v6417_v20 = vld [vmem:[#allocation2 + $0xb50] sm:$0xff] }
0x1e38   :  { %6317 = vmatprep.mubr.f32.mxu0 %v11096_v21  ;;  %10511 = vmatpush1.bf16.msra.mxu0 %v10510_v19  ;;  %v6422_v11 = vld [vmem:[#allocation2 + $0xb78] sm:$0xff] }
0x1e39   :  { %10513 = vmatprep.subr.bf16.mxu0 %v10512_v50  ;;  %v10544_v50 = vpack.c.bf16 %v6613_v7, %v6609_v13 }
0x1e3c   :  { %10515 = vmatpush1.bf16.msra.mxu0 %v10514_v2  ;;  %v6409_v2 = vld [vmem:[#allocation2 + $0xb10] sm:$0xff] }
0x1e3d   :  { %10517 = vmatprep.subr.bf16.mxu0 %v10516_v0  ;;  %v10534_v62 = vpack.c.bf16 %v6413_v3, %v6409_v2  ;;  %v10536_v0 = vpack.c.bf16 %v6422_v11, %v6418_v8 }
0x1f0a   :  { %v9943_v25 = vpop.f32.mrb[70].mxu0 }
0x1f0b   :  { %v6065_v29 = vadd.f32 %v9943_v25, %v5986_v46  ;;  %v6059_v31 = vpop.f32.mrb[71].mxu0 }
0x1f0c   :  { %v6060_v24 = vadd.f32 %v6059_v31, %v5986_v46 }
0x1f0d   :  { %v6069_v33 = vmax.f32 %v6065_v29, 0.0 }
0x1f0e   :  { %v6068_v53 = vmax.f32 %v6060_v24, 0.0 }
0x1f10   :  { %9960 = vmatprep.mubr.msk.f32.mxu1 %vm1537_vm10, %v6068_v53 }
0x1f11   :  { %9961 = vmatmul.mubr.msk.f32.vlgmr.msra.gmra.mrb[76].mxu1 %vm1537_vm10, %v6069_v33 }
0x1f12   :  { %6510 = vmatprep.mubr.f32.mxu1 %v11096_v21  ;;  %10527 = vmatpush1.bf16.msra.mxu1 %v10526_v39 }
0x1f13   :  { %10529 = vmatprep.subr.bf16.mxu1 %v10528_v34  ;;  %v6414_v34 = vld [vmem:[#allocation2 + $0xb38] sm:$0xff] }
0x1f16   :  { %10531 = vmatpush1.bf16.msra.mxu1 %v10530_v5 }
0x1f17   :  { %10541 = vmatprep.subr.bf16.mxu1 %v10540_v22  ;;  %v6421_v22 = vld [vmem:[#allocation2 + $0xb70] sm:$0xff] }
0x1fe4   :  { %v9962_v37 = vpop.f32.mrb[76].mxu1 }
0x1fe5   :  { %v6157_v40 = vadd.f32 %v9962_v37, %v6078_v35  ;;  %v6151_v23 = vpop.f32.mrb[77].mxu1 }
0x1fe6   :  { %v6152_v52 = vadd.f32 %v6151_v23, %v6078_v35 }
0x1fe7   :  { %v11771_v58 = vadd.f32 %v6157_v40, %v11751_v27 }
0x1fe8   :  { %v11774_v60 = vadd.f32 %v6152_v52, %v11754_v26 }
0x1fe9   :  { %v6167_v17 = vsel %vm48_vm0, %v11771_v58, 0.0 }
0x1fea   :  { %6168 = vadd.xlane.f32.xlu1 %v6167_v17  ;;  %v6164_v36 = vsel %vm48_vm0, %v11774_v60, 0.0 }
0x1feb   :  { %6165 = vadd.xlane.f32.xlu0 %v6164_v36 }
0x2077   :  { %v6169_v32 = vpop.xlane.xlu1 %6168 }
0x2078   :  { %v6171_v15 = vmul.f32 0.03125, %v6169_v32  ;;  %v6166_v41 = vpop.xlane.xlu0 %6165 }
0x2079   :  { %v6170_v61 = vmul.f32 0.03125, %v6166_v41 }
0x207a   :  { %v11781_v57 = vsub.f32 %v11771_v58, %v6171_v15 }
0x207b   :  { %v11784_v27 = vsub.f32 %v11774_v60, %v6170_v61  ;;  %v6162_v61 = vld [vmem:[#allocation2 + $0x1022] ss:$0 sm:$0xff] }
0x207c   :  { %v6175_v26 = vmul.f32 %v11781_v57, %v11781_v57 }
0x207d   :  { %v6174_v16 = vmul.f32 %v11784_v27, %v11784_v27 }
0x207e   :  { %v6179_v44 = vsel %vm48_vm0, %v6175_v26, 0.0  ;;  %v6210_v26 = vld [vmem:[#allocation2 + $0xa90] sm:$0xff] }
0x207f   :  { %6180 = vadd.xlane.f32.xlu1 %v6179_v44  ;;  %v6176_v59 = vsel %vm48_vm0, %v6174_v16, 0.0  ;;  %v6214_v44 = vld [vmem:[#allocation2 + $0xab0] sm:$0xff] }
0x2080   :  { %6177 = vadd.xlane.f32.xlu0 %v6176_v59  ;;  %v6600_v59 = vld [vmem:[#allocation2 + $0xb80] sm:$0xff]  ;;  %v10518_v19 = vpack.c.bf16 %v6214_v44, %v6210_v26 }
0x2081   :  { %v10542_v18 = vpack.c.bf16 %v6604_v28, %v6600_v59 }
0x210c   :  { %v6181_v1 = vpop.xlane.xlu1 %6180 }
0x210d   :  { %v6183_v46 = vmul.f32 0.032258064, %v6181_v1  ;;  %v6178_v25 = vpop.xlane.xlu0 %6177  ;;  %v6603_v1 = vld [vmem:[#allocation2 + $0xb98] sm:$0xff] }
0x210e   :  { %v6182_v29 = vmul.f32 0.032258064, %v6178_v25  ;;  %v10538_v25 = vpack.c.bf16 %v6421_v22, %v6417_v20 }
0x210f   :  { %10935 = vrsqrt.f32 %v6183_v46  ;;  %vm6193_vm8 = vcmp.eq.f32.partialorder %v6183_v46, inf  ;;  %v6196_v33 = vand.u32 2147483648, %v6183_v46  ;;  %vm6195_vm9 = vcmp.eq.f32.partialorder %v6183_v46, 0.0 }
0x2110   :  { %10937 = vrsqrt.f32 %v6182_v29  ;;  %vm6186_vm11 = vcmp.eq.f32.partialorder %v6182_v29, inf  ;;  %v6189_v40 = vand.u32 2147483648, %v6182_v29  ;;  %vm6188_vm12 = vcmp.eq.f32.partialorder %v6182_v29, 0.0 }
0x2119   :  { %v10936_v31 = vpop.eup %10935 }
0x211a   :  { %v10938_v24 = vpop.eup %10937  ;;  %v6192_v53 = vmul.f32 %v10936_v31, %v6183_v46  ;;  %v6602_v31 = vld [vmem:[#allocation2 + $0xb90] sm:$0xff] }
0x211b   :  { %v6185_v35 = vmul.f32 %v10938_v24, %v6182_v29  ;;  %v6606_v24 = vld [vmem:[#allocation2 + $0xbb0] sm:$0xff] }
0x211c   :  { %v6194_v37 = vsel %vm6193_vm8, %v6183_v46, %v6192_v53  ;;  %v6607_v46 = vld [vmem:[#allocation2 + $0xbb8] sm:$0xff] }
0x211d   :  { %v6197_v23 = vsel %vm6195_vm9, %v6196_v33, %v6194_v37  ;;  %v6187_v52 = vsel %vm6186_vm11, %v6182_v29, %v6185_v35  ;;  %v10548_v29 = vpack.c.bf16 %v6607_v46, %v6603_v1  ;;  %v6611_v53 = vld [vmem:[#allocation2 + $0xbd8] sm:$0xff]  ;;  %v10550_v35 = vpack.c.bf16 %v6606_v24, %v6602_v31 }
0x211e   :  { %v6199_v17 = vadd.f32 1e-06, %v6197_v23  ;;  %v6190_v36 = vsel %vm6188_vm12, %v6189_v40, %v6187_v52  ;;  %v6615_v33 = vld [vmem:[#allocation2 + $0xbf8] sm:$0xff]  ;;  %v6610_v40 = vld [vmem:[#allocation2 + $0xbd0] sm:$0xff] }
0x211f   :  { %v6198_v32 = vadd.f32 1e-06, %v6190_v36  ;;  %v10552_v37 = vpack.c.bf16 %v6615_v33, %v6611_v53  ;;  %v6614_v23 = vld [vmem:[#allocation2 + $0xbf0] sm:$0xff] }
0x2120   :  { %10939 = vrcp.f32 %v6199_v17  ;;  %v10554_v52 = vpack.c.bf16 %v6614_v23, %v6610_v40  ;;  %v11824_v17 = vld [vmem:[#allocation2 + $0x1002] ss:$8 sm:$0xf] }
0x2121   :  { %10941 = vrcp.f32 %v6198_v32  ;;  %v6230_v36 = vrot.slane %v11824_v17, %v11207_v54  ;;  %v6424_v32 = vld [vmem:[#allocation2 + $0x1003] ss:$8 sm:$0xf] }
0x2122   :  { %v6441_v2 = vrot.slane %v6424_v32, %v11221_v4 }
0x212a   :  { %v10940_v15 = vpop.eup %10939 }
0x212b   :  { %v10942_v41 = vpop.eup %10941  ;;  %v6203_v10 = vmul.f32 %v10940_v15, %v11781_v57  ;;  %v6410_v57 = vld [vmem:[#allocation2 + $0xb18] sm:$0xff]  ;;  %v6234_v15 = vrot.slane %v11824_v17, %v11211_v56 }
0x212c   :  { %v6202_v16 = vmul.f32 %v10942_v41, %v11784_v27  ;;  %v6612_v27 = vld [vmem:[#allocation2 + $0xbe0] sm:$0xff]  ;;  %v10532_v5 = vpack.c.bf16 %v6414_v34, %v6410_v57  ;;  %v6238_v57 = vrot.slane %v11824_v17, %v11228_v12 }
0x212d   :  { %v6205_v39 = vmul.f32 %v6203_v10, %v6162_v61  ;;  %v10546_v30 = vpack.c.bf16 %v6612_v27, %v6608_v63  ;;  %v6433_v10 = vrot.slane %v6424_v32, %v11211_v56 }
0x212e   :  { %v6204_v9 = vmul.f32 %v6202_v16, %v6162_v61  ;;  %v6429_v16 = vrot.slane %v6424_v32, %v11207_v54 }
0x212f   :  { %v6207_v51 = vadd.f32 %v6205_v39, %v6163_v42 }
0x2130   :  { %v11794_v55 = vadd.f32 %v6204_v9, %v6163_v42 }
0x2132   :  { %9341 = vmatmul.mubr.msk.f32.vlgmr.msra.gmra.mrb[72].mxu0 %vm48_vm0, %v11794_v55  ;;  %9345 = vmatmul.mubr.msk.f32.vlgmr.msra.gmra.mrb[78].mxu1 %vm48_vm0, %v11794_v55 }
0x2133   :  { %10519 = vmatpush1.bf16.msra.mxu0 %v10518_v19  ;;  %10543 = vmatpush1.bf16.msra.mxu1 %v10542_v18 }
0x2134   :  { %6323 = vmatprep.mubr.f32.mxu0 %v11096_v21  ;;  %6516 = vmatprep.mubr.f32.mxu1 %v11096_v21 }
0x2135   :  { %10521 = vmatprep.subr.bf16.mxu0 %v10520_v49  ;;  %10545 = vmatprep.subr.bf16.mxu1 %v10544_v50 }
0x2136   :  { %9342 = vmatmul.mubr.msk.f32.gmra.mrb[74].mxu0 %vm48_vm0, %v6207_v51  ;;  %9346 = vmatmul.mubr.msk.f32.gmra.mrb[80].mxu1 %vm48_vm0, %v6207_v51 }
0x2137   :  { %10523 = vmatpush1.bf16.msra.mxu0 %v10522_v14  ;;  %10547 = vmatpush1.bf16.msra.mxu1 %v10546_v30 }
0x2138   :  { %6394 = vmatprep.mubr.f32.mxu0 %v11096_v21  ;;  %6680 = vmatprep.mubr.f32.mxu1 %v11096_v21 }
0x2139   :  { %10533 = vmatprep.subr.bf16.mxu0 %v10532_v5 }
0x213a   :  { %9343 = vmatmul.mubr.msk.f32.vlgmr.msra.gmra.mrb[76].mxu0 %vm48_vm0, %v11794_v55  ;;  %9349 = vmatmul.mubr.msk.f32.vlgmr.msra.gmra.mrb[82].mxu1 %vm48_vm0, %v11794_v55 }
0x213b   :  { %10535 = vmatpush1.bf16.msra.mxu0 %v10534_v62  ;;  %6400 = vmatprep.mubr.f32.mxu0 %v11096_v21  ;;  %v6437_v62 = vrot.slane %v6424_v32, %v11228_v12 }
0x213c   :  { %6686 = vmatprep.mubr.f32.mxu1 %v11096_v21  ;;  %10537 = vmatprep.subr.bf16.mxu0 %v10536_v0 }
0x213e   :  { %9344 = vmatmul.mubr.msk.f32.gmra.mrb[78].mxu0 %vm48_vm0, %v6207_v51  ;;  %9350 = vmatmul.mubr.msk.f32.gmra.mrb[84].mxu1 %vm48_vm0, %v6207_v51 }
0x213f   :  { %10539 = vmatpush1.bf16.msra.mxu0 %v10538_v25  ;;  %6587 = vmatprep.mubr.f32.mxu0 %v11096_v21 }
0x2140   :  { %10549 = vmatprep.subr.bf16.mxu0 %v10548_v29 }
0x2142   :  { %9347 = vmatmul.mubr.msk.f32.vlgmr.msra.gmra.mrb[80].mxu0 %vm48_vm0, %v11794_v55 }
0x2143   :  { %10551 = vmatpush1.bf16.msra.mxu0 %v10550_v35  ;;  %6593 = vmatprep.mubr.f32.mxu0 %v11096_v21 }
0x2144   :  { %10553 = vmatprep.subr.bf16.mxu0 %v10552_v37 }
0x2146   :  { %9348 = vmatmul.mubr.msk.f32.gmra.mrb[82].mxu0 %vm48_vm0, %v6207_v51 }
0x2147   :  { %10555 = vmatpush1.bf16.msra.mxu0 %v10554_v52  ;;  %6757 = vmatprep.mubr.f32.mxu0 %v11096_v21 }
0x214a   :  { %9351 = vmatmul.mubr.msk.f32.vlgmr.msra.gmra.mrb[84].mxu0 %vm48_vm0, %v11794_v55 }
0x214b   :  { %6763 = vmatprep.mubr.f32.mxu0 %v11096_v21 }
0x214e   :  { %9352 = vmatmul.mubr.msk.f32.gmra.mrb[86].mxu0 %vm48_vm0, %v6207_v51 }
0x2205   :  { %v6319_v41 = vpop.f32.mrb[72].mxu0  ;;  %v6512_v61 = vpop.f32.mrb[78].mxu1 }
0x2206   :  { %v6320_v26 = vadd.f32 %v6319_v41, %v6230_v36  ;;  %v6321_v44 = vpop.f32.mrb[73].mxu0  ;;  %v6514_v59 = vpop.f32.mrb[79].mxu1  ;;  %v6513_v9 = vadd.f32 %v6512_v61, %v6429_v16 }
0x2207   :  { %v6322_v28 = vadd.f32 %v6321_v44, %v6234_v15  ;;  %v6515_v19 = vadd.f32 %v6514_v59, %v6433_v10  ;;  %v11853_v59 = vld [vmem:[%s12081_s3 + $0x8] sm:$0xff] }
0x2208   :  { %9967 = vmatprep.mubr.f32.mxu1 %v6320_v26 }
0x2209   :  { %v6325_v42 = vpop.f32.mrb[74].mxu0  ;;  %v6518_v43 = vpop.f32.mrb[80].mxu1  ;;  %9974 = vmatprep.mubr.f32.mxu0 %v6322_v28 }
0x220a   :  { %v6519_v45 = vadd.f32 %v6518_v43, %v6429_v16  ;;  %v6327_v13 = vpop.f32.mrb[75].mxu0  ;;  %v6520_v7 = vpop.f32.mrb[81].mxu1  ;;  %v6326_v3 = vadd.f32 %v6325_v42, %v6230_v36 }
0x220b   :  { %v6521_v18 = vadd.f32 %v6520_v7, %v6433_v10  ;;  %v6328_v5 = vadd.f32 %v6327_v13, %v6234_v15  ;;  %v11859_v10 = vld [vmem:[%s12081_s3] sm:$0xff] }
0x220c   :  { %v10556_v47 = vpack.c.bf16 %v6519_v45, %v6513_v9 }
0x220d   :  { %v10560_v55 = vpack.c.bf16 %v6521_v18, %v6515_v19  ;;  %v6396_v39 = vpop.f32.mrb[76].mxu0  ;;  %v6682_v48 = vpop.f32.mrb[82].mxu1 }
0x220e   :  { %v11832_v63 = vpop.f32.mrb[77].mxu0  ;;  %v6684_v27 = vpop.f32.mrb[83].mxu1  ;;  %10557 = vmatprep.subr.bf16.mxu1 %v10556_v47  ;;  %v6397_v11 = vadd.f32 %v6396_v39, %v6238_v57 }
0x220f   :  { %10559 = vmatpush3.bf16.xpose.msra.mxu1 %v10556_v47  ;;  %10561 = vmatprep.subr.bf16.mxu0 %v10560_v55 }
0x2210   :  { %10563 = vmatpush3.bf16.xpose.msra.mxu0 %v10560_v55 }
0x2211   :  { %v6402_v49 = vpop.f32.mrb[78].mxu0  ;;  %v6688_v50 = vpop.f32.mrb[84].mxu1 }
0x2212   :  { %v11836_v34 = vpack.c.bf16 %v6688_v50, %v6682_v48  ;;  %v11838_v14 = vpop.f32.mrb[79].mxu0  ;;  %v6690_v30 = vpop.f32.mrb[85].mxu1  ;;  %v6403_v52 = vadd.f32 %v6402_v49, %v6238_v57 }
0x2213   :  { %v10564_v51 = vpack.c.bf16 %v6690_v30, %v6684_v27 }
0x2215   :  { %v6589_v8 = vpop.f32.mrb[80].mxu0  ;;  %10565 = vmatprep.subr.bf16.mxu1 %v10564_v51 }
0x2216   :  { %v6591_v0 = vpop.f32.mrb[81].mxu0  ;;  %9968 = vmatmul.mubr.f32.vlgmr.msra.gmra.mrb[86].mxu1 %v6326_v3  ;;  %v6590_v1 = vadd.f32 %v6589_v8, %v6437_v62 }
0x2217   :  { %v6592_v20 = vadd.f32 %v6591_v0, %v6441_v2  ;;  %9975 = vmatmul.mubr.f32.vlgmr.msra.gmra.mrb[88].mxu0 %v6328_v5  ;;  %10567 = vmatpush3.bf16.msra.mxu1 %v10564_v51 }
0x2218   :  { %10569 = vmatprep.subr.bf16.mxu1 %v11836_v34  ;;  %9995 = vmatprep.mubr.f32.mxu0 %v6397_v11 }
0x2219   :  { %v6595_v22 = vpop.f32.mrb[82].mxu0 }
0x221a   :  { %v6596_v46 = vadd.f32 %v6595_v22, %v6437_v62  ;;  %v6597_v25 = vpop.f32.mrb[83].mxu0 }
0x221b   :  { %v6598_v29 = vadd.f32 %v6597_v25, %v6441_v2 }
0x221c   :  { %v10572_v31 = vpack.c.bf16 %v6596_v46, %v6590_v1 }
0x221d   :  { %v11843_v24 = vpack.c.bf16 %v6598_v29, %v6592_v20  ;;  %v6759_v53 = vpop.f32.mrb[84].mxu0 }
0x221e   :  { %v6761_v33 = vpop.f32.mrb[85].mxu0  ;;  %10573 = vmatprep.subr.bf16.mxu0 %v10572_v31 }
0x221f   :  { %10575 = vmatpush3.bf16.xpose.msra.mxu0 %v10572_v31 }
0x2221   :  { %v6765_v35 = vpop.f32.mrb[86].mxu0 }
0x2222   :  { %v11845_v37 = vpack.c.bf16 %v6765_v35, %v6759_v53  ;;  %v6767_v40 = vpop.f32.mrb[87].mxu0 }
0x2223   :  { %v11847_v23 = vpack.c.bf16 %v6767_v40, %v6761_v33 }
0x2226   :  { %9996 = vmatmul.mubr.f32.vlgmr.msra.gmra.mrb[90].mxu0 %v6403_v52 }
0x2227   :  { %7662 = vmatprep.mubr.f32.mxu0 %v11096_v21 }
0x22e9   :  { %v9969_v36 = vpop.f32.mrb[86].mxu1 }
0x22ea   :  { %v6836_v32 = vpop.f32.mrb[87].mxu1  ;;  %v9976_v15 = vpop.f32.mrb[88].mxu0  ;;  %v6846_v41 = vmul.f32 0.35355338, %v9969_v36 }
0x22eb   :  { %v6947_v61 = vmul.f32 0.35355338, %v9976_v15  ;;  %v6937_v26 = vpop.f32.mrb[89].mxu0  ;;  %v6845_v16 = vmul.f32 0.35355338, %v6836_v32 }
0x22ec   :  { %v6946_v44 = vmul.f32 0.35355338, %v6937_v26  ;;  %v6848_v43 = vadd.f32 %v11853_v59, %v6846_v41 }
0x22ed   :  { %v6949_v28 = vadd.f32 %v11853_v59, %v6947_v61  ;;  %v6847_v45 = vadd.f32 %v11859_v10, %v6845_v16 }
0x22ee   :  { %v6948_v42 = vadd.f32 %v11859_v10, %v6946_v44  ;;  %v6852_v7 = vsel %vm735_vm5, %v6848_v43, -inf }
0x22ef   :  { %v6953_v9 = vsel %vm735_vm5, %v6949_v28, -inf  ;;  %v6849_v19 = vsel %vm735_vm5, %v6847_v45, -inf }
0x22f0   :  { %6954 = vmax.xlane.f32.xlu1 %v6953_v9  ;;  %v6950_v13 = vsel %vm735_vm5, %v6948_v42, -inf }
0x22f1   :  { %6951 = vmax.xlane.f32.xlu0 %v6950_v13 }
0x22f4   :  { %6853 = vmax.xlane.f32.xlu1 %v6852_v7 }
0x22f5   :  { %6850 = vmax.xlane.f32.xlu0 %v6849_v19 }
0x22f9   :  { %v9997_v18 = vpop.f32.mrb[90].mxu0 }
0x22fa   :  { %v7210_v47 = vmul.f32 0.35355338, %v9997_v18  ;;  %v7200_v55 = vpop.f32.mrb[91].mxu0 }
0x22fb   :  { %v7209_v39 = vmul.f32 0.35355338, %v7200_v55 }
0x22fc   :  { %v7212_v48 = vadd.f32 %v11853_v59, %v7210_v47 }
0x22fd   :  { %v7211_v27 = vadd.f32 %v11859_v10, %v7209_v39 }
0x22fe   :  { %v7216_v49 = vsel %vm735_vm5, %v7212_v48, -inf }
0x22ff   :  { %7217 = vmax.xlane.f32.xlu1 %v7216_v49  ;;  %v7213_v50 = vsel %vm735_vm5, %v7211_v27, -inf }
0x2300   :  { %7214 = vmax.xlane.f32.xlu0 %v7213_v50 }
0x237d   :  { %v6955_v57 = vpop.xlane.xlu1 %6954 }
0x237e   :  { %v6957_v30 = vsub.f32 %v6949_v28, %v6955_v57  ;;  %v6952_v51 = vpop.xlane.xlu0 %6951  ;;  %v6242_v57 = vrot.slane %v11824_v17, %v11221_v4 }
0x237f   :  { %v6956_v2 = vsub.f32 %v6948_v42, %v6952_v51 }
0x2380   :  { %v6960_v3 = vmul.f32 1.442695, %v6957_v30  ;;  %v6399_v51 = vadd.f32 %v11832_v63, %v6242_v57 }
0x2381   :  { %v6958_v5 = vmul.f32 1.442695, %v6956_v2  ;;  %v6854_v8 = vpop.xlane.xlu1 %6853 }
0x2382   :  { %10943 = vpow2.f32 %v6960_v3  ;;  %v6856_v11 = vsub.f32 %v6848_v43, %v6854_v8  ;;  %v6851_v62 = vpop.xlane.xlu0 %6850 }
0x2383   :  { %10945 = vpow2.f32 %v6958_v5  ;;  %v6855_v0 = vsub.f32 %v6847_v45, %v6851_v62 }
0x2384   :  { %v6859_v20 = vmul.f32 1.442695, %v6856_v11 }
0x2385   :  { %v6857_v22 = vmul.f32 1.442695, %v6855_v0 }
0x2386   :  { %10947 = vpow2.f32 %v6859_v20 }
0x2387   :  { %10949 = vpow2.f32 %v6857_v22 }
0x238c   :  { %v10944_v1 = vpop.eup %10943  ;;  %v7218_v46 = vpop.xlane.xlu1 %7217 }
0x238d   :  { %v10946_v25 = vpop.eup %10945  ;;  %v7220_v29 = vsub.f32 %v7212_v48, %v7218_v46  ;;  %v7215_v31 = vpop.xlane.xlu0 %7214  ;;  %v6965_v53 = vsel %vm735_vm5, %v10944_v1, 0.0 }
0x238e   :  { %v7219_v33 = vsub.f32 %v7211_v27, %v7215_v31  ;;  %6966 = vadd.xlane.f32.xlu1 %v6965_v53  ;;  %v6962_v35 = vsel %vm735_vm5, %v10946_v25, 0.0 }
0x238f   :  { %v7223_v40 = vmul.f32 1.442695, %v7220_v29  ;;  %6963 = vadd.xlane.f32.xlu0 %v6962_v35  ;;  %v7757_v29 = vld [vmem:[#allocation2 + $0xca8] sm:$0xff]  ;;  %v7752_v35 = vld [vmem:[#allocation2 + $0xc80] sm:$0xff] }
0x2390   :  { %v10948_v52 = vpop.eup %10947  ;;  %v7221_v36 = vmul.f32 1.442695, %v7219_v33 }
0x2391   :  { %v10950_v32 = vpop.eup %10949  ;;  %10951 = vpow2.f32 %v7223_v40  ;;  %v6864_v15 = vsel %vm735_vm5, %v10948_v52, 0.0  ;;  %v7756_v40 = vld [vmem:[#allocation2 + $0xca0] sm:$0xff] }
0x2392   :  { %10953 = vpow2.f32 %v7221_v36  ;;  %6865 = vadd.xlane.f32.xlu1 %v6864_v15  ;;  %v6861_v41 = vsel %vm735_vm5, %v10950_v32, 0.0  ;;  %v7761_v36 = vld [vmem:[#allocation2 + $0xcc8] sm:$0xff] }
0x2393   :  { %6862 = vadd.xlane.f32.xlu0 %v6861_v41 }
0x239b   :  { %v10952_v61 = vpop.eup %10951 }
0x239c   :  { %v10954_v26 = vpop.eup %10953  ;;  %v7228_v16 = vsel %vm735_vm5, %v10952_v61, 0.0 }
0x239d   :  { %7229 = vadd.xlane.f32.xlu1 %v7228_v16  ;;  %v7225_v44 = vsel %vm735_vm5, %v10954_v26, 0.0 }
0x239e   :  { %7226 = vadd.xlane.f32.xlu0 %v7225_v44  ;;  %v7760_v44 = vld [vmem:[#allocation2 + $0xcc0] sm:$0xff] }
0x241b   :  { %v6967_v28 = vpop.xlane.xlu1 %6966 }
0x241c   :  { %10955 = vrcp.f32 %v6967_v28  ;;  %v6964_v42 = vpop.xlane.xlu0 %6963  ;;  %v7764_v28 = vld [vmem:[#allocation2 + $0xce0] sm:$0xff] }
0x241d   :  { %10957 = vrcp.f32 %v6964_v42  ;;  %v7946_v42 = vld [vmem:[#allocation2 + $0xd08] sm:$0xff] }
0x241f   :  { %v6866_v9 = vpop.xlane.xlu1 %6865 }
0x2420   :  { %v6863_v43 = vpop.xlane.xlu0 %6862 }
0x2421   :  { %10959 = vrcp.f32 %v6863_v43  ;;  %v7950_v43 = vld [vmem:[#allocation2 + $0xd28] sm:$0xff] }
0x2422   :  { %10961 = vrcp.f32 %v6866_v9  ;;  %v10610_v9 = vpack.c.bf16 %v7764_v28, %v7760_v44  ;;  %v7557_v44 = vld [vmem:[#allocation2 + $0xc20] sm:$0xff]  ;;  %v7562_v28 = vld [vmem:[#allocation2 + $0xc48] sm:$0xff] }
0x2426   :  { %v10956_v45 = vpop.eup %10955 }
0x2427   :  { %v10958_v13 = vpop.eup %10957  ;;  %v6971_v19 = vmul.f32 %v10956_v45, %v10944_v1  ;;  %v10620_v45 = vpack.c.bf16 %v7950_v43, %v7946_v42  ;;  %v7566_v42 = vld [vmem:[#allocation2 + $0xc68] sm:$0xff] }
0x2428   :  { %v6970_v7 = vmul.f32 %v10958_v13, %v10946_v25  ;;  %v7753_v25 = vld [vmem:[#allocation2 + $0xc88] sm:$0xff]  ;;  %v7945_v13 = vld [vmem:[#allocation2 + $0xd00] sm:$0xff] }
0x2429   :  { %v10604_v31 = vpack.c.bf16 %v7757_v29, %v7753_v25 }
0x242a   :  { %v7230_v18 = vpop.xlane.xlu1 %7229  ;;  %9981 = vmatprep.mubr.msk.f32.mxu1 %vm735_vm5, %v6970_v7  ;;  %v7949_v7 = vld [vmem:[#allocation2 + $0xd20] sm:$0xff] }
0x242b   :  { %v10960_v47 = vpop.eup %10959  ;;  %10963 = vrcp.f32 %v7230_v18  ;;  %9982 = vmatmul.mubr.msk.f32.vlgmr.msra.gmra.mrb[88].mxu1 %vm735_vm5, %v6971_v19  ;;  %v7227_v55 = vpop.xlane.xlu0 %7226  ;;  %v7954_v19 = vld [vmem:[#allocation2 + $0xd48] sm:$0xff] }
0x242c   :  { %10571 = vmatpush3.bf16.msra.mxu1 %v11836_v34  ;;  %10965 = vrcp.f32 %v7227_v55  ;;  %v6869_v39 = vmul.f32 %v10960_v47, %v10950_v32  ;;  %v10962_v48 = vpop.eup %10961  ;;  %v7765_v32 = vld [vmem:[#allocation2 + $0xce8] sm:$0xff]  ;;  %v10622_v47 = vpack.c.bf16 %v7949_v7, %v7945_v13  ;;  %v7565_v13 = vld [vmem:[#allocation2 + $0xc60] sm:$0xff]  ;;  %v7556_v7 = vld [vmem:[#allocation2 + $0xc18] sm:$0xff] }
0x242d   :  { %10577 = vmatprep.subr.bf16.mxu1 %v11845_v37  ;;  %v6870_v27 = vmul.f32 %v10962_v48, %v10948_v52  ;;  %v10608_v16 = vpack.c.bf16 %v7765_v32, %v7761_v36  ;;  %v7958_v18 = vld [vmem:[#allocation2 + $0xd68] sm:$0xff]  ;;  %v7957_v48 = vld [vmem:[#allocation2 + $0xd60] sm:$0xff] }
0x242e   :  { %9988 = vmatprep.mubr.msk.f32.mxu1 %vm735_vm5, %v6869_v39  ;;  %v10624_v55 = vpack.c.bf16 %v7958_v18, %v7954_v19  ;;  %v7953_v39 = vld [vmem:[#allocation2 + $0xd40] sm:$0xff]  ;;  %v7560_v19 = vld [vmem:[#allocation2 + $0xc38] sm:$0xff] }
0x2433   :  { %9989 = vmatmul.mubr.msk.f32.vlgmr.msra.gmra.mrb[88].mxu1 %vm735_vm5, %v6870_v27  ;;  %v10626_v27 = vpack.c.bf16 %v7957_v48, %v7953_v39 }
0x2434   :  { %10579 = vmatpush3.bf16.msra.mxu1 %v11845_v37  ;;  %v6405_v37 = vadd.f32 %v11838_v14, %v6242_v57 }
0x2435   :  { %v10964_v49 = vpop.eup %10963  ;;  %10581 = vmatprep.subr.bf16.mxu1 %v11843_v24 }
0x2436   :  { %v10966_v50 = vpop.eup %10965  ;;  %v7234_v30 = vmul.f32 %v10964_v49, %v10952_v61  ;;  %v10606_v61 = vpack.c.bf16 %v7756_v40, %v7752_v35  ;;  %v7502_v49 = vld [vmem:[#allocation2 + $0x1004] ss:$0 sm:$0xff] }
0x2437   :  { %v7233_v34 = vmul.f32 %v10966_v50, %v10954_v26 }
0x2439   :  { %10002 = vmatprep.mubr.msk.f32.mxu1 %vm735_vm5, %v7233_v34 }
0x243b   :  { %10003 = vmatmul.mubr.msk.f32.vlgmr.msra.gmra.mrb[88].mxu1 %vm735_vm5, %v7234_v30 }
0x243c   :  { %10009 = vmatprep.mubr.f32.mxu1 %v6399_v51 }
0x243d   :  { %10583 = vmatpush3.bf16.xpose.msra.mxu1 %v11843_v24 }
0x243e   :  { %10585 = vmatprep.subr.bf16.mxu1 %v11847_v23 }
0x2444   :  { %10010 = vmatmul.mubr.f32.vlgmr.msra.gmra.mrb[90].mxu1 %v6405_v37 }
0x2445   :  { %10587 = vmatpush3.bf16.msra.mxu1 %v11847_v23 }
0x2446   :  { %10605 = vmatprep.subr.bf16.mxu1 %v10604_v31 }
0x2517   :  { %v10011_v2 = vpop.f32.mrb[90].mxu1 }
0x2518   :  { %v7394_v17 = vmul.f32 0.35355338, %v10011_v2  ;;  %v7384_v3 = vpop.f32.mrb[91].mxu1 }
0x2519   :  { %v7393_v5 = vmul.f32 0.35355338, %v7384_v3 }
0x251a   :  { %v7396_v8 = vadd.f32 %v11853_v59, %v7394_v17  ;;  %v11923_v17 = vld [vmem:[#allocation2 + $0x1006] ss:$8 sm:$0xf] }
0x251b   :  { %v7395_v63 = vadd.f32 %v11859_v10, %v7393_v5 }
0x251c   :  { %v7400_v11 = vsel %vm735_vm5, %v7396_v8, -inf }
0x251d   :  { %7401 = vmax.xlane.f32.xlu1 %v7400_v11  ;;  %v7397_v24 = vsel %vm735_vm5, %v7395_v63, -inf }
0x251e   :  { %7398 = vmax.xlane.f32.xlu0 %v7397_v24 }
0x25aa   :  { %v7402_v62 = vpop.xlane.xlu1 %7401 }
0x25ab   :  { %v7404_v0 = vsub.f32 %v7396_v8, %v7402_v62  ;;  %v7399_v14 = vpop.xlane.xlu0 %7398  ;;  %v7774_v8 = vrot.slane %v11923_v17, %v11207_v54 }
0x25ac   :  { %v7403_v20 = vsub.f32 %v7395_v63, %v7399_v14 }
0x25ad   :  { %v7407_v22 = vmul.f32 1.442695, %v7404_v0 }
0x25ae   :  { %v7405_v23 = vmul.f32 1.442695, %v7403_v20 }
0x25af   :  { %10967 = vpow2.f32 %v7407_v22 }
0x25b0   :  { %10969 = vpow2.f32 %v7405_v23 }
0x25b9   :  { %v10968_v1 = vpop.eup %10967 }
0x25ba   :  { %v10970_v46 = vpop.eup %10969  ;;  %v7412_v59 = vsel %vm735_vm5, %v10968_v1, 0.0 }
0x25bb   :  { %7413 = vadd.xlane.f32.xlu1 %v7412_v59  ;;  %v7409_v10 = vsel %vm735_vm5, %v10970_v46, 0.0 }
0x25bc   :  { %7410 = vadd.xlane.f32.xlu0 %v7409_v10 }
0x2648   :  { %v7414_v53 = vpop.xlane.xlu1 %7413 }
0x2649   :  { %10971 = vrcp.f32 %v7414_v53  ;;  %v7411_v33 = vpop.xlane.xlu0 %7410 }
0x264a   :  { %10973 = vrcp.f32 %v7411_v33 }
0x2653   :  { %v10972_v52 = vpop.eup %10971 }
0x2654   :  { %v10974_v15 = vpop.eup %10973  ;;  %v7418_v26 = vmul.f32 %v10972_v52, %v10968_v1 }
0x2655   :  { %v7417_v41 = vmul.f32 %v10974_v15, %v10970_v46 }
0x2657   :  { %10016 = vmatprep.mubr.msk.f32.mxu1 %vm735_vm5, %v7417_v41  ;;  %v7554_v41 = vld [vmem:[#allocation2 + $0xc08] sm:$0xff] }
0x2658   :  { %10017 = vmatmul.mubr.msk.f32.vlgmr.msra.gmra.mrb[88].mxu1 %vm735_vm5, %v7418_v26  ;;  %v7553_v26 = vld [vmem:[#allocation2 + $0xc00] sm:$0xff] }
0x2659   :  { %10607 = vmatpush1.bf16.msra.mxu1 %v10606_v61  ;;  %7855 = vmatprep.mubr.f32.mxu1 %v11096_v21  ;;  %v7558_v61 = vld [vmem:[#allocation2 + $0xc28] sm:$0xff]  ;;  %v10590_v43 = vpack.c.bf16 %v7557_v44, %v7553_v26  ;;  %v7754_v26 = vld [vmem:[#allocation2 + $0xc90] sm:$0xff]  ;;  %v7763_v44 = vld [vmem:[#allocation2 + $0xcd8] sm:$0xff] }
0x265a   :  { %10609 = vmatprep.subr.bf16.mxu1 %v10608_v16  ;;  %v10588_v16 = vpack.c.bf16 %v7558_v61, %v7554_v41  ;;  %v7759_v41 = vld [vmem:[#allocation2 + $0xcb8] sm:$0xff] }
0x265c   :  { %10589 = vmatprep.subr.bf16.mxu0 %v10588_v16  ;;  %v7758_v16 = vld [vmem:[#allocation2 + $0xcb0] sm:$0xff] }
0x265d   :  { %10611 = vmatpush1.bf16.msra.mxu1 %v10610_v9  ;;  %v10592_v9 = vpack.c.bf16 %v7566_v42, %v7562_v28  ;;  %10591 = vmatpush1.bf16.msra.mxu0 %v10590_v43  ;;  %v7767_v28 = vld [vmem:[#allocation2 + $0xcf8] sm:$0xff]  ;;  %v10614_v42 = vpack.c.bf16 %v7758_v16, %v7754_v26 }
0x265e   :  { %10621 = vmatprep.subr.bf16.mxu1 %v10620_v45  ;;  %v7561_v45 = vld [vmem:[#allocation2 + $0xc40] sm:$0xff]  ;;  %v10616_v43 = vpack.c.bf16 %v7767_v28, %v7763_v44 }
0x265f   :  { %v10594_v18 = vpack.c.bf16 %v7565_v13, %v7561_v45  ;;  %10593 = vmatprep.subr.bf16.mxu0 %v10592_v9  ;;  %v7762_v9 = vld [vmem:[#allocation2 + $0xcd0] sm:$0xff]  ;;  %v7948_v13 = vld [vmem:[#allocation2 + $0xd18] sm:$0xff] }
0x2660   :  { %9365 = vmatmul.mubr.msk.f32.vlgmr.msra.gmra.mrb[92].mxu1 %vm48_vm0, %v11665_v38  ;;  %v7766_v45 = vld [vmem:[#allocation2 + $0xcf0] sm:$0xff] }
0x2661   :  { %10623 = vmatpush1.bf16.msra.mxu1 %v10622_v47  ;;  %7861 = vmatprep.mubr.f32.mxu1 %v11096_v21  ;;  %v10596_v47 = vpack.c.bf16 %v7560_v19, %v7556_v7  ;;  %v7952_v7 = vld [vmem:[#allocation2 + $0xd38] sm:$0xff]  ;;  %v10618_v19 = vpack.c.bf16 %v7766_v45, %v7762_v9  ;;  %v11996_v45 = vld [vmem:[%s12082_s4] sm:$0xff] }
0x2662   :  { %10625 = vmatprep.subr.bf16.mxu1 %v10624_v55  ;;  %10595 = vmatpush1.bf16.msra.mxu0 %v10594_v18  ;;  %v10628_v18 = vpack.c.bf16 %v7952_v7, %v7948_v13 }
0x2663   :  { %10597 = vmatprep.subr.bf16.mxu0 %v10596_v47  ;;  %v7947_v47 = vld [vmem:[#allocation2 + $0xd10] sm:$0xff] }
0x2664   :  { %9366 = vmatmul.mubr.msk.f32.gmra.mrb[94].mxu1 %vm48_vm0, %v11673_v6 }
0x2665   :  { %10627 = vmatpush1.bf16.msra.mxu1 %v10626_v27  ;;  %8025 = vmatprep.mubr.f32.mxu1 %v11096_v21 }
0x2668   :  { %9369 = vmatmul.mubr.msk.f32.vlgmr.msra.gmra.mrb[96].mxu1 %vm48_vm0, %v11665_v38 }
0x2669   :  { %8031 = vmatprep.mubr.f32.mxu1 %v11096_v21 }
0x266c   :  { %9370 = vmatmul.mubr.msk.f32.gmra.mrb[98].mxu1 %vm48_vm0, %v11673_v6 }
0x272b   :  { %v10018_v50 = vpop.f32.mrb[88].mxu1 }
0x272c   :  { %v7504_v57 = vadd.f32 %v10018_v50, %v7502_v49  ;;  %v7491_v34 = vpop.f32.mrb[89].mxu1 }
0x272d   :  { %v7503_v30 = vadd.f32 %v7502_v49, %v7491_v34 }
0x272e   :  { %v11916_v51 = vadd.f32 %v7504_v57, %v11771_v58  ;;  %v7778_v58 = vrot.slane %v11923_v17, %v11211_v56 }
0x272f   :  { %v11919_v37 = vadd.f32 %v7503_v30, %v11774_v60 }
0x2730   :  { %v7512_v2 = vsel %vm48_vm0, %v11916_v51, 0.0 }
0x2731   :  { %7513 = vadd.xlane.f32.xlu1 %v7512_v2  ;;  %v7509_v3 = vsel %vm48_vm0, %v11919_v37, 0.0 }
0x2732   :  { %7510 = vadd.xlane.f32.xlu0 %v7509_v3 }
0x2733   :  { %v7857_v5 = vpop.f32.mrb[92].mxu1 }
0x2734   :  { %v7859_v63 = vpop.f32.mrb[93].mxu1  ;;  %v7858_v11 = vadd.f32 %v7857_v5, %v7774_v8 }
0x2735   :  { %v7860_v0 = vadd.f32 %v7859_v63, %v7778_v58 }
0x2737   :  { %v7863_v60 = vpop.f32.mrb[94].mxu1 }
0x2738   :  { %v7864_v24 = vadd.f32 %v7863_v60, %v7774_v8  ;;  %v7865_v62 = vpop.f32.mrb[95].mxu1 }
0x2739   :  { %v7866_v14 = vadd.f32 %v7865_v62, %v7778_v58  ;;  %v7507_v62 = vld [vmem:[#allocation2 + $0x1024] ss:$0 sm:$0xff] }
0x273a   :  { %v10636_v20 = vpack.c.bf16 %v7864_v24, %v7858_v11 }
0x273b   :  { %v11931_v22 = vpack.c.bf16 %v7866_v14, %v7860_v0  ;;  %v8027_v23 = vpop.f32.mrb[96].mxu1  ;;  %v7555_v14 = vld [vmem:[#allocation2 + $0xc10] sm:$0xff] }
0x273c   :  { %v8029_v1 = vpop.f32.mrb[97].mxu1  ;;  %10637 = vmatprep.subr.bf16.mxu1 %v10636_v20 }
0x273d   :  { %10639 = vmatpush3.bf16.xpose.msra.mxu1 %v10636_v20  ;;  %v7559_v20 = vld [vmem:[#allocation2 + $0xc30] sm:$0xff] }
0x273f   :  { %v8033_v46 = vpop.f32.mrb[98].mxu1 }
0x2740   :  { %v11933_v59 = vpack.c.bf16 %v8033_v46, %v8027_v23  ;;  %v8035_v10 = vpop.f32.mrb[99].mxu1  ;;  %v7564_v46 = vld [vmem:[#allocation2 + $0xc58] sm:$0xff] }
0x2741   :  { %v11935_v25 = vpack.c.bf16 %v8035_v10, %v8029_v1  ;;  %v7508_v1 = vld [vmem:[#allocation2 + $0x1025] ss:$0 sm:$0xff]  ;;  %v7568_v10 = vld [vmem:[#allocation2 + $0xc78] sm:$0xff] }
0x2743   :  { %10645 = vmatprep.subr.bf16.mxu1 %v11935_v25 }
0x27be   :  { %v7514_v29 = vpop.xlane.xlu1 %7513 }
0x27bf   :  { %v7516_v31 = vmul.f32 0.03125, %v7514_v29  ;;  %v7511_v53 = vpop.xlane.xlu0 %7510 }
0x27c0   :  { %v7515_v33 = vmul.f32 0.03125, %v7511_v53 }
0x27c1   :  { %v7518_v35 = vsub.f32 %v11916_v51, %v7516_v31  ;;  %v10598_v31 = vpack.c.bf16 %v7559_v20, %v7555_v14  ;;  %v7782_v14 = vrot.slane %v11923_v17, %v11228_v12 }
0x27c2   :  { %v7517_v40 = vsub.f32 %v11919_v37, %v7515_v33  ;;  %v10600_v33 = vpack.c.bf16 %v7568_v10, %v7564_v46 }
0x27c3   :  { %v7520_v52 = vmul.f32 %v7518_v35, %v7518_v35 }
0x27c4   :  { %v7519_v36 = vmul.f32 %v7517_v40, %v7517_v40 }
0x27c5   :  { %v7524_v32 = vsel %vm48_vm0, %v7520_v52, 0.0 }
0x27c6   :  { %7525 = vadd.xlane.f32.xlu1 %v7524_v32  ;;  %v7521_v15 = vsel %vm48_vm0, %v7519_v36, 0.0  ;;  %v7563_v36 = vld [vmem:[#allocation2 + $0xc50] sm:$0xff] }
0x27c7   :  { %7522 = vadd.xlane.f32.xlu0 %v7521_v15  ;;  %v7567_v32 = vld [vmem:[#allocation2 + $0xc70] sm:$0xff]  ;;  %v7755_v15 = vld [vmem:[#allocation2 + $0xc98] sm:$0xff] }
0x27c8   :  { %v10612_v61 = vpack.c.bf16 %v7759_v41, %v7755_v15 }
0x2853   :  { %v7526_v55 = vpop.xlane.xlu1 %7525 }
0x2854   :  { %v7528_v39 = vmul.f32 0.032258064, %v7526_v55  ;;  %v7523_v48 = vpop.xlane.xlu0 %7522  ;;  %v7951_v55 = vld [vmem:[#allocation2 + $0xd30] sm:$0xff] }
0x2855   :  { %v7527_v27 = vmul.f32 0.032258064, %v7523_v48  ;;  %v7960_v48 = vld [vmem:[#allocation2 + $0xd78] sm:$0xff] }
0x2856   :  { %10975 = vrsqrt.f32 %v7528_v39  ;;  %vm7538_vm13 = vcmp.eq.f32.partialorder %v7528_v39, inf  ;;  %v7541_v34 = vand.u32 2147483648, %v7528_v39  ;;  %vm7540_vm14 = vcmp.eq.f32.partialorder %v7528_v39, 0.0 }
0x2857   :  { %10977 = vrsqrt.f32 %v7527_v27  ;;  %vm7531_vm15 = vcmp.eq.f32.partialorder %v7527_v27, inf  ;;  %v7534_v3 = vand.u32 2147483648, %v7527_v27  ;;  %vm7533_vm1 = vcmp.eq.f32.partialorder %v7527_v27, 0.0 }
0x2860   :  { %v10976_v49 = vpop.eup %10975 }
0x2861   :  { %v10978_v50 = vpop.eup %10977  ;;  %v7537_v57 = vmul.f32 %v10976_v49, %v7528_v39 }
0x2862   :  { %v7530_v30 = vmul.f32 %v10978_v50, %v7527_v27  ;;  %v7955_v50 = vld [vmem:[#allocation2 + $0xd50] sm:$0xff] }
0x2863   :  { %v7539_v2 = vsel %vm7538_vm13, %v7528_v39, %v7537_v57  ;;  %v7956_v39 = vld [vmem:[#allocation2 + $0xd58] sm:$0xff]  ;;  %v7959_v57 = vld [vmem:[#allocation2 + $0xd70] sm:$0xff] }
0x2864   :  { %v7542_v5 = vsel %vm7540_vm14, %v7541_v34, %v7539_v2  ;;  %v7532_v8 = vsel %vm7531_vm15, %v7527_v27, %v7530_v30  ;;  %v10630_v27 = vpack.c.bf16 %v7951_v55, %v7947_v47  ;;  %v10632_v49 = vpack.c.bf16 %v7960_v48, %v7956_v39  ;;  %v11963_v30 = vld [vmem:[#allocation2 + $0x1005] ss:$8 sm:$0xf] }
0x2865   :  { %v7544_v63 = vadd.f32 1e-06, %v7542_v5  ;;  %v7535_v58 = vsel %vm7533_vm1, %v7534_v3, %v7532_v8  ;;  %v10634_v34 = vpack.c.bf16 %v7959_v57, %v7955_v50  ;;  %v7575_v2 = vrot.slane %v11963_v30, %v11207_v54 }
0x2866   :  { %v7543_v60 = vadd.f32 1e-06, %v7535_v58  ;;  %v7579_v3 = vrot.slane %v11963_v30, %v11211_v56 }
0x2867   :  { %10979 = vrcp.f32 %v7544_v63 }
0x2868   :  { %10981 = vrcp.f32 %v7543_v60 }
0x2871   :  { %v10980_v11 = vpop.eup %10979 }
0x2872   :  { %v10982_v24 = vpop.eup %10981  ;;  %v7548_v23 = vmul.f32 %v10980_v11, %v7518_v35 }
0x2873   :  { %v7547_v0 = vmul.f32 %v10982_v24, %v7517_v40  ;;  %v10602_v40 = vpack.c.bf16 %v7567_v32, %v7563_v36 }
0x2874   :  { %v7550_v52 = vmul.f32 %v7548_v23, %v7507_v62  ;;  %v7786_v23 = vrot.slane %v11923_v17, %v11221_v4 }
0x2875   :  { %v7549_v29 = vmul.f32 %v7547_v0, %v7507_v62 }
0x2876   :  { %v7552_v35 = vadd.f32 %v7550_v52, %v7508_v1 }
0x2877   :  { %v7551_v53 = vadd.f32 %v7549_v29, %v7508_v1 }
0x2879   :  { %9361 = vmatmul.mubr.msk.f32.vlgmr.msra.gmra.mrb[92].mxu0 %vm48_vm0, %v7551_v53 }
0x287a   :  { %10599 = vmatpush1.bf16.msra.mxu0 %v10598_v31  ;;  %7668 = vmatprep.mubr.f32.mxu0 %v11096_v21 }
0x287b   :  { %10601 = vmatprep.subr.bf16.mxu0 %v10600_v33 }
0x287d   :  { %9362 = vmatmul.mubr.msk.f32.gmra.mrb[94].mxu0 %vm48_vm0, %v7552_v35 }
0x287e   :  { %10603 = vmatpush1.bf16.msra.mxu0 %v10602_v40  ;;  %7739 = vmatprep.mubr.f32.mxu0 %v11096_v21 }
0x287f   :  { %10613 = vmatprep.subr.bf16.mxu0 %v10612_v61 }
0x2881   :  { %9363 = vmatmul.mubr.msk.f32.vlgmr.msra.gmra.mrb[96].mxu0 %vm48_vm0, %v7551_v53 }
0x2882   :  { %10615 = vmatpush1.bf16.msra.mxu0 %v10614_v42  ;;  %7745 = vmatprep.mubr.f32.mxu0 %v11096_v21 }
0x2883   :  { %10617 = vmatprep.subr.bf16.mxu0 %v10616_v43  ;;  %v11990_v43 = vld [vmem:[%s12082_s4 + $0x8] sm:$0xff]  ;;  %s11097_s4 = smov [#allocation5]  }
0x2884   :  { %s9237_s14 = sshll.u32 %s11097_s4, 4  ;;  %s9238_s14 = int_to_ptr.vmem [resolvable:$true] %s9237_s14 }
0x2885   :  { %9364 = vmatmul.mubr.msk.f32.gmra.mrb[98].mxu0 %vm48_vm0, %v7552_v35  ;;  %s11067_s0 = scalar_lea.vmem %s9238_s14, 256  ;;  %p11072_p9 = scmp.lt.s32.totalorder %s9238_s14, %s9238_s14 }
0x2886   :  { %10619 = vmatpush1.bf16.msra.mxu0 %v10618_v19  ;;  %7932 = vmatprep.mubr.f32.mxu0 %v11096_v21  ;;  %p11068_p8 = scmp.ne.s32.totalorder %s9238_s14, %s11067_s0  ;;  %p11073_p10 = scmp.lt.s32.totalorder %s11067_s0, %s11067_s0 }
0x2887   :  { %10629 = vmatprep.subr.bf16.mxu0 %v10628_v18 }
0x2888   :  { %p11074_p11 = por %p11073_p10, %p11072_p9 }
0x2889   :  { %9367 = vmatmul.mubr.msk.f32.vlgmr.msra.gmra.mrb[100].mxu0 %vm48_vm0, %v11665_v38 }
0x288a   :  { %10631 = vmatpush1.bf16.msra.mxu0 %v10630_v27  ;;  %7938 = vmatprep.mubr.f32.mxu0 %v11096_v21  ;;  %p11075_p12 = pnand %p11074_p11, %p11068_p8 }
0x288b   :  { %10633 = vmatprep.subr.bf16.mxu0 %v10632_v49 }
0x288d   :  { %9368 = vmatmul.mubr.msk.f32.gmra.mrb[102].mxu0 %vm48_vm0, %v11673_v6 }
0x288e   :  { %10635 = vmatpush1.bf16.msra.mxu0 %v10634_v34  ;;  %8102 = vmatprep.mubr.f32.mxu0 %v11096_v21 }
0x288f   :  { %10641 = vmatprep.subr.bf16.mxu0 %v11931_v22 }
0x2891   :  { %9371 = vmatmul.mubr.msk.f32.vlgmr.msra.gmra.mrb[104].mxu0 %vm48_vm0, %v11665_v38 }
0x2892   :  { %8108 = vmatprep.mubr.f32.mxu0 %v11096_v21 }
0x2895   :  { %9372 = vmatmul.mubr.msk.f32.gmra.mrb[106].mxu0 %vm48_vm0, %v11673_v6  ;;  %v7583_v6 = vrot.slane %v11963_v30, %v11228_v12 }
0x2897   :  { %10643 = vmatpush3.bf16.xpose.msra.mxu0 %v11931_v22 }
0x294c   :  { %v7664_v5 = vpop.f32.mrb[92].mxu0 }
0x294d   :  { %v7665_v8 = vadd.f32 %v7664_v5, %v7575_v2  ;;  %v7666_v63 = vpop.f32.mrb[93].mxu0 }
0x294e   :  { %v7667_v58 = vadd.f32 %v7666_v63, %v7579_v3 }
0x294f   :  { %10023 = vmatprep.mubr.f32.mxu1 %v7665_v8 }
0x2950   :  { %v7670_v38 = vpop.f32.mrb[94].mxu0  ;;  %10030 = vmatprep.mubr.f32.mxu0 %v7667_v58 }
0x2951   :  { %v7671_v21 = vadd.f32 %v7670_v38, %v7575_v2  ;;  %v7672_v60 = vpop.f32.mrb[95].mxu0 }
0x2952   :  { %v7673_v22 = vadd.f32 %v7672_v60, %v7579_v3 }
0x2953   :  { %10024 = vmatmul.mubr.f32.vlgmr.msra.gmra.mrb[100].mxu1 %v7671_v21 }
0x2954   :  { %10647 = vmatpush3.bf16.msra.mxu1 %v11935_v25  ;;  %v7741_v54 = vpop.f32.mrb[96].mxu0  ;;  %10031 = vmatmul.mubr.f32.vlgmr.msra.gmra.mrb[108].mxu0 %v7673_v22 }
0x2955   :  { %v7742_v11 = vadd.f32 %v7741_v54, %v7583_v6  ;;  %10649 = vmatprep.subr.bf16.mxu1 %v11933_v59  ;;  %v11973_v56 = vpop.f32.mrb[97].mxu0 }
0x2957   :  { %10051 = vmatprep.mubr.f32.mxu0 %v7742_v11 }
0x2958   :  { %v7747_v24 = vpop.f32.mrb[98].mxu0 }
0x2959   :  { %v11975_v62 = vpop.f32.mrb[99].mxu0  ;;  %v7748_v17 = vadd.f32 %v7747_v24, %v7583_v6 }
0x295c   :  { %v7934_v0 = vpop.f32.mrb[100].mxu0 }
0x295d   :  { %v7936_v20 = vpop.f32.mrb[101].mxu0  ;;  %v7935_v1 = vadd.f32 %v7934_v0, %v7782_v14 }
0x295e   :  { %v7937_v29 = vadd.f32 %v7936_v20, %v7786_v23 }
0x2960   :  { %v7940_v25 = vpop.f32.mrb[102].mxu0 }
0x2961   :  { %v7941_v46 = vadd.f32 %v7940_v25, %v7782_v14  ;;  %v7942_v10 = vpop.f32.mrb[103].mxu0 }
0x2962   :  { %v7943_v31 = vadd.f32 %v7942_v10, %v7786_v23 }
0x2963   :  { %v10652_v53 = vpack.c.bf16 %v7941_v46, %v7935_v1 }
0x2964   :  { %v11981_v33 = vpack.c.bf16 %v7943_v31, %v7937_v29  ;;  %v8104_v52 = vpop.f32.mrb[104].mxu0 }
0x2965   :  { %v8106_v36 = vpop.f32.mrb[105].mxu0  ;;  %10653 = vmatprep.subr.bf16.mxu0 %v10652_v53 }
0x2966   :  { %10655 = vmatpush3.bf16.xpose.msra.mxu0 %v10652_v53 }
0x2968   :  { %v8110_v32 = vpop.f32.mrb[106].mxu0 }
0x2969   :  { %v11983_v15 = vpack.c.bf16 %v8110_v32, %v8104_v52  ;;  %v8112_v12 = vpop.f32.mrb[107].mxu0 }
0x296a   :  { %v11985_v41 = vpack.c.bf16 %v8112_v12, %v8106_v36 }
0x296d   :  { %10052 = vmatmul.mubr.f32.vlgmr.msra.gmra.mrb[110].mxu0 %v7748_v17 }
0x2a26   :  { %v10025_v40 = vpop.f32.mrb[100].mxu1 }
0x2a27   :  { %v8181_v35 = vpop.f32.mrb[101].mxu1  ;;  %v10032_v61 = vpop.f32.mrb[108].mxu0  ;;  %v8191_v26 = vmul.f32 0.35355338, %v10025_v40 }
0x2a28   :  { %v8292_v16 = vmul.f32 0.35355338, %v10032_v61  ;;  %v8282_v44 = vpop.f32.mrb[109].mxu0  ;;  %v8190_v28 = vmul.f32 0.35355338, %v8181_v35 }
0x2a29   :  { %v8291_v42 = vmul.f32 0.35355338, %v8282_v44  ;;  %v8193_v7 = vadd.f32 %v11990_v43, %v8191_v26 }
0x2a2a   :  { %v8294_v9 = vadd.f32 %v11990_v43, %v8292_v16  ;;  %v8192_v18 = vadd.f32 %v11996_v45, %v8190_v28 }
0x2a2b   :  { %v8293_v13 = vadd.f32 %v11996_v45, %v8291_v42  ;;  %v8197_v55 = vsel %vm735_vm5, %v8193_v7, -inf }
0x2a2c   :  { %v8298_v19 = vsel %vm735_vm5, %v8294_v9, -inf  ;;  %v8194_v39 = vsel %vm735_vm5, %v8192_v18, -inf }
0x2a2d   :  { %8299 = vmax.xlane.f32.xlu1 %v8298_v19  ;;  %v8295_v47 = vsel %vm735_vm5, %v8293_v13, -inf }
0x2a2e   :  { %8296 = vmax.xlane.f32.xlu0 %v8295_v47 }
0x2a31   :  { %8198 = vmax.xlane.f32.xlu1 %v8197_v55 }
0x2a32   :  { %8195 = vmax.xlane.f32.xlu0 %v8194_v39 }
0x2a40   :  { %v10053_v48 = vpop.f32.mrb[110].mxu0 }
0x2a41   :  { %v8555_v27 = vmul.f32 0.35355338, %v10053_v48  ;;  %v8545_v49 = vpop.f32.mrb[111].mxu0 }
0x2a42   :  { %v8554_v50 = vmul.f32 0.35355338, %v8545_v49 }
0x2a43   :  { %v8557_v57 = vadd.f32 %v11990_v43, %v8555_v27 }
0x2a44   :  { %v8556_v34 = vadd.f32 %v11996_v45, %v8554_v50 }
0x2a45   :  { %v8561_v2 = vsel %vm735_vm5, %v8557_v57, -inf }
0x2a46   :  { %8562 = vmax.xlane.f32.xlu1 %v8561_v2  ;;  %v8558_v3 = vsel %vm735_vm5, %v8556_v34, -inf }
0x2a47   :  { %8559 = vmax.xlane.f32.xlu0 %v8558_v3 }
0x2aba   :  { %v8300_v5 = vpop.xlane.xlu1 %8299 }
0x2abb   :  { %v8302_v8 = vsub.f32 %v8294_v9, %v8300_v5  ;;  %v8297_v63 = vpop.xlane.xlu0 %8296 }
0x2abc   :  { %v8301_v58 = vsub.f32 %v8293_v13, %v8297_v63 }
0x2abd   :  { %v8305_v38 = vmul.f32 1.442695, %v8302_v8 }
0x2abe   :  { %v8303_v21 = vmul.f32 1.442695, %v8301_v58  ;;  %v8199_v60 = vpop.xlane.xlu1 %8198 }
0x2abf   :  { %10983 = vpow2.f32 %v8305_v38  ;;  %v8201_v6 = vsub.f32 %v8193_v7, %v8199_v60  ;;  %v8196_v22 = vpop.xlane.xlu0 %8195 }
0x2ac0   :  { %10985 = vpow2.f32 %v8303_v21  ;;  %v8200_v54 = vsub.f32 %v8192_v18, %v8196_v22 }
0x2ac1   :  { %v8204_v11 = vmul.f32 1.442695, %v8201_v6 }
0x2ac2   :  { %v8202_v24 = vmul.f32 1.442695, %v8200_v54 }
0x2ac3   :  { %10987 = vpow2.f32 %v8204_v11 }
0x2ac4   :  { %10989 = vpow2.f32 %v8202_v24 }
0x2ac9   :  { %v10984_v0 = vpop.eup %10983 }
0x2aca   :  { %v10986_v14 = vpop.eup %10985  ;;  %v8310_v20 = vsel %vm735_vm5, %v10984_v0, 0.0 }
0x2acb   :  { %8311 = vadd.xlane.f32.xlu1 %v8310_v20  ;;  %v8307_v23 = vsel %vm735_vm5, %v10986_v14, 0.0 }
0x2acc   :  { %8308 = vadd.xlane.f32.xlu0 %v8307_v23 }
0x2acd   :  { %v10988_v25 = vpop.eup %10987 }
0x2ace   :  { %v10990_v1 = vpop.eup %10989  ;;  %v8209_v46 = vsel %vm735_vm5, %v10988_v25, 0.0 }
0x2acf   :  { %8210 = vadd.xlane.f32.xlu1 %v8209_v46  ;;  %v8206_v10 = vsel %vm735_vm5, %v10990_v1, 0.0 }
0x2ad0   :  { %8207 = vadd.xlane.f32.xlu0 %v8206_v10 }
0x2ad3   :  { %v8563_v29 = vpop.xlane.xlu1 %8562 }
0x2ad4   :  { %v8565_v31 = vsub.f32 %v8557_v57, %v8563_v29  ;;  %v8560_v53 = vpop.xlane.xlu0 %8559 }
0x2ad5   :  { %v8564_v52 = vsub.f32 %v8556_v34, %v8560_v53 }
0x2ad6   :  { %v8568_v36 = vmul.f32 1.442695, %v8565_v31 }
0x2ad7   :  { %v8566_v32 = vmul.f32 1.442695, %v8564_v52 }
0x2ad8   :  { %10991 = vpow2.f32 %v8568_v36 }
0x2ad9   :  { %10993 = vpow2.f32 %v8566_v32 }
0x2ae2   :  { %v10992_v12 = vpop.eup %10991 }
0x2ae3   :  { %v10994_v17 = vpop.eup %10993  ;;  %v8573_v40 = vsel %vm735_vm5, %v10992_v12, 0.0 }
0x2ae4   :  { %8574 = vadd.xlane.f32.xlu1 %v8573_v40  ;;  %v8570_v35 = vsel %vm735_vm5, %v10994_v17, 0.0 }
0x2ae5   :  { %8571 = vadd.xlane.f32.xlu0 %v8570_v35 }
0x2b58   :  { %v8312_v61 = vpop.xlane.xlu1 %8311 }
0x2b59   :  { %10995 = vrcp.f32 %v8312_v61  ;;  %v8309_v26 = vpop.xlane.xlu0 %8308  ;;  %v8898_v61 = vld [vmem:[#allocation2 + $0xd80] sm:$0xff] }
0x2b5a   :  { %10997 = vrcp.f32 %v8309_v26  ;;  %v8899_v26 = vld [vmem:[#allocation2 + $0xda0] sm:$0xff] }
0x2b5c   :  { %v8211_v44 = vpop.xlane.xlu1 %8210 }
0x2b5d   :  { %v8208_v16 = vpop.xlane.xlu0 %8207 }
0x2b5e   :  { %10999 = vrcp.f32 %v8208_v16  ;;  %v8900_v16 = vld [vmem:[#allocation2 + $0xdc0] sm:$0xff] }
0x2b5f   :  { %11001 = vrcp.f32 %v8211_v44  ;;  %v10668_v44 = vpack.c.bf16 %v8899_v26, %v8898_v61 }
0x2b61   :  { %10669 = vmatprep.subr.bf16.mxu0 %v10668_v44 }
0x2b62   :  { %10671 = vmatpush3.bf16.msra.mxu0 %v10668_v44 }
0x2b63   :  { %v10996_v28 = vpop.eup %10995 }
0x2b64   :  { %v10998_v42 = vpop.eup %10997  ;;  %v8316_v13 = vmul.f32 %v10996_v28, %v10984_v0  ;;  %v8901_v28 = vld [vmem:[#allocation2 + $0xde0] sm:$0xff] }
0x2b65   :  { %v8315_v9 = vmul.f32 %v10998_v42, %v10986_v14  ;;  %v8847_v14 = vld [vmem:[#allocation2 + $0x1007] ss:$0 sm:$0xff]  ;;  %v10672_v42 = vpack.c.bf16 %v8901_v28, %v8900_v16 }
0x2b67   :  { %10037 = vmatprep.mubr.msk.f32.mxu1 %vm735_vm5, %v8315_v9  ;;  %10673 = vmatprep.subr.bf16.mxu0 %v10672_v42  ;;  %v8986_v9 = vld [vmem:[#allocation2 + $0xe00] sm:$0xff] }
0x2b68   :  { %v11000_v7 = vpop.eup %10999  ;;  %10038 = vmatmul.mubr.msk.f32.vlgmr.msra.gmra.mrb[102].mxu1 %vm735_vm5, %v8316_v13  ;;  %10675 = vmatpush3.bf16.msra.mxu0 %v10672_v42  ;;  %v8987_v13 = vld [vmem:[#allocation2 + $0xe20] sm:$0xff] }
0x2b69   :  { %10651 = vmatpush3.bf16.msra.mxu1 %v11933_v59  ;;  %v8214_v19 = vmul.f32 %v11000_v7, %v10990_v1  ;;  %v11002_v18 = vpop.eup %11001  ;;  %v7587_v59 = vrot.slane %v11963_v30, %v11221_v4  ;;  %v10676_v7 = vpack.c.bf16 %v8987_v13, %v8986_v9  ;;  %v9125_v13 = vld [vmem:[#allocation2 + $0xf20] sm:$0xff] }
0x2b6a   :  { %10657 = vmatprep.subr.bf16.mxu1 %v11983_v15  ;;  %v8215_v47 = vmul.f32 %v11002_v18, %v10988_v25 }
0x2b6b   :  { %10044 = vmatprep.mubr.msk.f32.mxu1 %vm735_vm5, %v8214_v19  ;;  %v7744_v57 = vadd.f32 %v11973_v56, %v7587_v59  ;;  %10677 = vmatprep.subr.bf16.mxu0 %v10676_v7 }
0x2b70   :  { %10045 = vmatmul.mubr.msk.f32.vlgmr.msra.gmra.mrb[102].mxu1 %vm735_vm5, %v8215_v47 }
0x2b71   :  { %10659 = vmatpush3.bf16.msra.mxu1 %v11983_v15  ;;  %v8575_v55 = vpop.xlane.xlu1 %8574  ;;  %v7750_v15 = vadd.f32 %v11975_v62, %v7587_v59 }
0x2b72   :  { %11003 = vrcp.f32 %v8575_v55  ;;  %10661 = vmatprep.subr.bf16.mxu1 %v11981_v33  ;;  %v8572_v39 = vpop.xlane.xlu0 %8571 }
0x2b73   :  { %11005 = vrcp.f32 %v8572_v39 }
0x2b7c   :  { %v11004_v48 = vpop.eup %11003 }
0x2b7d   :  { %v11006_v27 = vpop.eup %11005  ;;  %v8579_v50 = vmul.f32 %v11004_v48, %v10992_v12 }
0x2b7e   :  { %v8578_v49 = vmul.f32 %v11006_v27, %v10994_v17 }
0x2b80   :  { %10058 = vmatprep.mubr.msk.f32.mxu1 %vm735_vm5, %v8578_v49 }
0x2b81   :  { %10059 = vmatmul.mubr.msk.f32.vlgmr.msra.gmra.mrb[102].mxu1 %vm735_vm5, %v8579_v50 }
0x2b82   :  { %10663 = vmatpush3.bf16.xpose.msra.mxu1 %v11981_v33  ;;  %10065 = vmatprep.mubr.f32.mxu1 %v7744_v57 }
0x2b83   :  { %10665 = vmatprep.subr.bf16.mxu1 %v11985_v41 }
0x2b89   :  { %10066 = vmatmul.mubr.f32.vlgmr.msra.gmra.mrb[104].mxu1 %v7750_v15 }
0x2b8a   :  { %10667 = vmatpush3.bf16.msra.mxu1 %v11985_v41 }
0x2c5c   :  { %v10067_v4 = vpop.f32.mrb[104].mxu1 }
0x2c5d   :  { %v8739_v30 = vmul.f32 0.35355338, %v10067_v4  ;;  %v8729_v34 = vpop.f32.mrb[105].mxu1 }
0x2c5e   :  { %v8738_v2 = vmul.f32 0.35355338, %v8729_v34 }
0x2c5f   :  { %v8741_v56 = vadd.f32 %v11990_v43, %v8739_v30 }
0x2c60   :  { %v8740_v3 = vadd.f32 %v11996_v45, %v8738_v2 }
0x2c61   :  { %v8745_v5 = vsel %vm735_vm5, %v8741_v56, -inf }
0x2c62   :  { %8746 = vmax.xlane.f32.xlu1 %v8745_v5  ;;  %v8742_v33 = vsel %vm735_vm5, %v8740_v3, -inf }
0x2c63   :  { %8743 = vmax.xlane.f32.xlu0 %v8742_v33 }
0x2cef   :  { %v8747_v8 = vpop.xlane.xlu1 %8746 }
0x2cf0   :  { %v8749_v63 = vsub.f32 %v8741_v56, %v8747_v8  ;;  %v8744_v62 = vpop.xlane.xlu0 %8743 }
0x2cf1   :  { %v8748_v58 = vsub.f32 %v8740_v3, %v8744_v62  ;;  %v8852_v3 = vld [vmem:[#allocation2 + $0x1026] ss:$0 sm:$0xff] }
0x2cf2   :  { %v8752_v38 = vmul.f32 1.442695, %v8749_v63  ;;  %v8853_v63 = vld [vmem:[#allocation2 + $0x1027] ss:$0 sm:$0xff] }
0x2cf3   :  { %v8750_v41 = vmul.f32 1.442695, %v8748_v58 }
0x2cf4   :  { %11007 = vpow2.f32 %v8752_v38  ;;  %v8988_v38 = vld [vmem:[#allocation2 + $0xe40] sm:$0xff] }
0x2cf5   :  { %11009 = vpow2.f32 %v8750_v41  ;;  %v8989_v41 = vld [vmem:[#allocation2 + $0xe60] sm:$0xff] }
0x2cfe   :  { %v11008_v21 = vpop.eup %11007 }
0x2cff   :  { %v11010_v60 = vpop.eup %11009  ;;  %v8757_v43 = vsel %vm735_vm5, %v11008_v21, 0.0 }
0x2d00   :  { %8758 = vadd.xlane.f32.xlu1 %v8757_v43  ;;  %v8754_v45 = vsel %vm735_vm5, %v11010_v60, 0.0  ;;  %v10680_v43 = vpack.c.bf16 %v8989_v41, %v8988_v38  ;;  %v9079_v38 = vld [vmem:[#allocation2 + $0x1041] ss:$0 sm:$0xff] }
0x2d01   :  { %8755 = vadd.xlane.f32.xlu0 %v8754_v45  ;;  %v8990_v45 = vld [vmem:[#allocation2 + $0xe80] sm:$0xff] }
0x2d8d   :  { %v8759_v6 = vpop.xlane.xlu1 %8758 }
0x2d8e   :  { %11011 = vrcp.f32 %v8759_v6  ;;  %v8756_v22 = vpop.xlane.xlu0 %8755  ;;  %v8991_v6 = vld [vmem:[#allocation2 + $0xea0] sm:$0xff] }
0x2d8f   :  { %11013 = vrcp.f32 %v8756_v22  ;;  %v10684_v22 = vpack.c.bf16 %v8991_v6, %v8990_v45  ;;  %v9128_v45 = vld [vmem:[#allocation2 + $0x1042] ss:$0 sm:$0xff] }
0x2d98   :  { %v11012_v54 = vpop.eup %11011 }
0x2d99   :  { %v11014_v11 = vpop.eup %11013  ;;  %v8763_v0 = vmul.f32 %v11012_v54, %v11008_v21  ;;  %v8992_v54 = vld [vmem:[#allocation2 + $0xec0] sm:$0xff] }
0x2d9a   :  { %v8762_v24 = vmul.f32 %v11014_v11, %v11010_v60  ;;  %v8993_v11 = vld [vmem:[#allocation2 + $0xee0] sm:$0xff] }
0x2d9c   :  { %10072 = vmatprep.mubr.msk.f32.mxu1 %vm735_vm5, %v8762_v24  ;;  %v10688_v24 = vpack.c.bf16 %v8993_v11, %v8992_v54 }
0x2d9d   :  { %10073 = vmatmul.mubr.msk.f32.vlgmr.msra.gmra.mrb[102].mxu1 %vm735_vm5, %v8763_v0  ;;  %v8902_v0 = vld [vmem:[#allocation2 + $0x1020] ss:$0 sm:$0xff] }
0x2e70   :  { %v10074_v20 = vpop.f32.mrb[102].mxu1 }
0x2e71   :  { %v8849_v23 = vadd.f32 %v10074_v20, %v8847_v14  ;;  %v8836_v25 = vpop.f32.mrb[103].mxu1 }
0x2e72   :  { %v8848_v1 = vadd.f32 %v8847_v14, %v8836_v25 }
0x2e73   :  { %v12041_v46 = vadd.f32 %v8849_v23, %v11916_v51 }
0x2e74   :  { %v12044_v10 = vadd.f32 %v8848_v1, %v11919_v37 }
0x2e75   :  { %v8857_v29 = vsel %vm48_vm0, %v12041_v46, 0.0 }
0x2e76   :  { %8858 = vadd.xlane.f32.xlu1 %v8857_v29  ;;  %v8854_v31 = vsel %vm48_vm0, %v12044_v10, 0.0 }
0x2e77   :  { %8855 = vadd.xlane.f32.xlu0 %v8854_v31  ;;  %v8994_v31 = vld [vmem:[#allocation2 + $0x1021] ss:$0 sm:$0xff] }
0x2f03   :  { %v8859_v53 = vpop.xlane.xlu1 %8858 }
0x2f04   :  { %v8861_v52 = vmul.f32 0.03125, %v8859_v53  ;;  %v8856_v36 = vpop.xlane.xlu0 %8855 }
0x2f05   :  { %v8860_v32 = vmul.f32 0.03125, %v8856_v36 }
0x2f06   :  { %v8863_v12 = vsub.f32 %v12041_v46, %v8861_v52 }
0x2f07   :  { %v8862_v51 = vsub.f32 %v12044_v10, %v8860_v32 }
0x2f08   :  { %v8865_v17 = vmul.f32 %v8863_v12, %v8863_v12 }
0x2f09   :  { %v8864_v40 = vmul.f32 %v8862_v51, %v8862_v51 }
0x2f0a   :  { %v8869_v37 = vsel %vm48_vm0, %v8865_v17, 0.0 }
0x2f0b   :  { %8870 = vadd.xlane.f32.xlu1 %v8869_v37  ;;  %v8866_v35 = vsel %vm48_vm0, %v8864_v40, 0.0 }
0x2f0c   :  { %8867 = vadd.xlane.f32.xlu0 %v8866_v35 }
0x2f98   :  { %v8871_v19 = vpop.xlane.xlu1 %8870 }
0x2f99   :  { %v8873_v18 = vmul.f32 0.032258064, %v8871_v19  ;;  %v8868_v47 = vpop.xlane.xlu0 %8867 }
0x2f9a   :  { %v8872_v55 = vmul.f32 0.032258064, %v8868_v47 }
0x2f9b   :  { %11015 = vrsqrt.f32 %v8873_v18  ;;  %vm8883_vm5 = vcmp.eq.f32.partialorder %v8873_v18, inf  ;;  %v8886_v27 = vand.u32 2147483648, %v8873_v18  ;;  %vm8885_vm2 = vcmp.eq.f32.partialorder %v8873_v18, 0.0 }
0x2f9c   :  { %11017 = vrsqrt.f32 %v8872_v55  ;;  %vm8876_vm3 = vcmp.eq.f32.partialorder %v8872_v55, inf  ;;  %v8879_v57 = vand.u32 2147483648, %v8872_v55  ;;  %vm8878_vm4 = vcmp.eq.f32.partialorder %v8872_v55, 0.0 }
0x2fa5   :  { %v11016_v39 = vpop.eup %11015 }
0x2fa6   :  { %v11018_v48 = vpop.eup %11017  ;;  %v8882_v59 = vmul.f32 %v11016_v39, %v8873_v18 }
0x2fa7   :  { %v8875_v49 = vmul.f32 %v11018_v48, %v8872_v55 }
0x2fa8   :  { %v8884_v50 = vsel %vm8883_vm5, %v8873_v18, %v8882_v59  ;;  %v9127_v18 = vld [vmem:[#allocation2 + $0xf60] sm:$0xff] }
0x2fa9   :  { %v8887_v15 = vsel %vm8885_vm2, %v8886_v27, %v8884_v50  ;;  %v8877_v4 = vsel %vm8876_vm3, %v8872_v55, %v8875_v49 }
0x2faa   :  { %v8889_v30 = vadd.f32 1e-06, %v8887_v15  ;;  %v8880_v34 = vsel %vm8878_vm4, %v8879_v57, %v8877_v4 }
0x2fab   :  { %v8888_v2 = vadd.f32 1e-06, %v8880_v34 }
0x2fac   :  { %11019 = vrcp.f32 %v8889_v30 }
0x2fad   :  { %11021 = vrcp.f32 %v8888_v2 }
0x2fb6   :  { %v11020_v56 = vpop.eup %11019 }
0x2fb7   :  { %v11022_v5 = vpop.eup %11021  ;;  %v8893_v33 = vmul.f32 %v11020_v56, %v8863_v12 }
0x2fb8   :  { %v8892_v8 = vmul.f32 %v11022_v5, %v8862_v51 }
0x2fb9   :  { %v8895_v62 = vmul.f32 %v8893_v33, %v8852_v3 }
0x2fba   :  { %v8894_v58 = vmul.f32 %v8892_v8, %v8852_v3  ;;  %v9078_v8 = vld [vmem:[#allocation2 + $0x1040] ss:$0 sm:$0xff] }
0x2fbb   :  { %v8897_v60 = vadd.f32 %v8895_v62, %v8853_v63 }
0x2fbc   :  { %v8896_v21 = vadd.f32 %v8894_v58, %v8853_v63 }
0x2fbe   :  { %10083 = vmatprep.mubr.msk.f32.mxu0 %vm48_vm0, %v8896_v21 }
0x2fbf   :  { %10084 = vmatmul.mubr.msk.f32.vlgmr.msra.gmra.mrb[112].mxu0 %vm48_vm0, %v8897_v60 }
0x2fc0   :  { %10679 = vmatpush3.bf16.msra.mxu0 %v10676_v7  ;;  %v9126_v7 = vld [vmem:[#allocation2 + $0xf40] sm:$0xff] }
0x2fc1   :  { %10681 = vmatprep.subr.bf16.mxu0 %v10680_v43  ;;  %v10696_v47 = vpack.c.bf16 %v9127_v18, %v9126_v7 }
0x2fc4   :  { %10683 = vmatpush3.bf16.msra.mxu0 %v10680_v43 }
0x2fc5   :  { %10685 = vmatprep.subr.bf16.mxu0 %v10684_v22 }
0x2fc8   :  { %10687 = vmatpush3.bf16.msra.mxu0 %v10684_v22 }
0x2fc9   :  { %10689 = vmatprep.subr.bf16.mxu0 %v10688_v24 }
0x2fcc   :  { %10691 = vmatpush3.bf16.msra.mxu0 %v10688_v24 }
0x3092   :  { %v10085_v14 = vpop.f32.mrb[112].mxu0 }
0x3093   :  { %v8981_v20 = vadd.f32 %v10085_v14, %v8902_v0  ;;  %v8975_v23 = vpop.f32.mrb[113].mxu0 }
0x3094   :  { %v8976_v25 = vadd.f32 %v8975_v23, %v8902_v0 }
0x3095   :  { %v8985_v29 = vmax.f32 %v8981_v20, 0.0 }
0x3096   :  { %v8984_v1 = vmax.f32 %v8976_v25, 0.0 }
0x3098   :  { %10102 = vmatprep.mubr.msk.f32.mxu0 %vm1537_vm10, %v8984_v1 }
0x3099   :  { %10103 = vmatmul.mubr.msk.f32.vlgmr.msra.gmra.mrb[114].mxu0 %vm1537_vm10, %v8985_v29 }
0x316c   :  { %v10104_v53 = vpop.f32.mrb[114].mxu0 }
0x316d   :  { %v9073_v52 = vadd.f32 %v10104_v53, %v8994_v31  ;;  %v9067_v36 = vpop.f32.mrb[115].mxu0 }
0x316e   :  { %v9068_v32 = vadd.f32 %v9067_v36, %v8994_v31 }
0x316f   :  { %v9077_v12 = vadd.f32 %v9073_v52, %v12041_v46 }
0x3170   :  { %v9076_v51 = vadd.f32 %v9068_v32, %v12044_v10  ;;  %v9124_v10 = vld [vmem:[#allocation2 + $0xf00] sm:$0xff] }
0x3171   :  { %v9083_v17 = vsel %vm48_vm0, %v9077_v12, 0.0  ;;  %v10692_v19 = vpack.c.bf16 %v9125_v13, %v9124_v10 }
0x3172   :  { %9084 = vadd.xlane.f32.xlu1 %v9083_v17  ;;  %v9080_v40 = vsel %vm48_vm0, %v9076_v51, 0.0 }
0x3173   :  { %9081 = vadd.xlane.f32.xlu0 %v9080_v40  ;;  %10693 = vmatprep.subr.bf16.mxu1 %v10692_v19 }
0x3174   :  { %10695 = vmatpush3.bf16.msra.mxu1 %v10692_v19 }
0x3175   :  { %10697 = vmatprep.subr.bf16.mxu1 %v10696_v47 }
0x3178   :  { %10699 = vmatpush3.bf16.msra.mxu1 %v10696_v47 }
0x31ff   :  { %v9085_v37 = vpop.xlane.xlu1 %9084 }
0x3200   :  { %v9087_v35 = vmul.f32 0.03125, %v9085_v37  ;;  %v9082_v61 = vpop.xlane.xlu0 %9081 }
0x3201   :  { %v9086_v26 = vmul.f32 0.03125, %v9082_v61 }
0x3202   :  { %v9089_v16 = vsub.f32 %v9077_v12, %v9087_v35 }
0x3203   :  { %v9088_v44 = vsub.f32 %v9076_v51, %v9086_v26 }
0x3204   :  { %v9091_v28 = vmul.f32 %v9089_v16, %v9089_v16 }
0x3205   :  { %v9090_v42 = vmul.f32 %v9088_v44, %v9088_v44 }
0x3206   :  { %v9095_v9 = vsel %vm48_vm0, %v9091_v28, 0.0 }
0x3207   :  { %9096 = vadd.xlane.f32.xlu1 %v9095_v9  ;;  %v9092_v46 = vsel %vm48_vm0, %v9090_v42, 0.0 }
0x3208   :  { %9093 = vadd.xlane.f32.xlu0 %v9092_v46 }
0x3294   :  { %v9097_v55 = vpop.xlane.xlu1 %9096 }
0x3295   :  { %v9099_v39 = vmul.f32 0.032258064, %v9097_v55  ;;  %v9094_v48 = vpop.xlane.xlu0 %9093 }
0x3296   :  { %v9098_v59 = vmul.f32 0.032258064, %v9094_v48 }
0x3297   :  { %11023 = vrsqrt.f32 %v9099_v39  ;;  %vm9109_vm10 = vcmp.eq.f32.partialorder %v9099_v39, inf  ;;  %v9112_v57 = vand.u32 2147483648, %v9099_v39  ;;  %vm9111_vm6 = vcmp.eq.f32.partialorder %v9099_v39, 0.0 }
0x3298   :  { %11025 = vrsqrt.f32 %v9098_v59  ;;  %vm9102_vm7 = vcmp.eq.f32.partialorder %v9098_v59, inf  ;;  %v9105_v30 = vand.u32 2147483648, %v9098_v59  ;;  %vm9104_vm8 = vcmp.eq.f32.partialorder %v9098_v59, 0.0 }
0x32a1   :  { %v11024_v27 = vpop.eup %11023 }
0x32a2   :  { %v11026_v49 = vpop.eup %11025  ;;  %v9108_v50 = vmul.f32 %v11024_v27, %v9099_v39 }
0x32a3   :  { %v9101_v15 = vmul.f32 %v11026_v49, %v9098_v59 }
0x32a4   :  { %v9110_v4 = vsel %vm9109_vm10, %v9099_v39, %v9108_v50 }
0x32a5   :  { %v9113_v34 = vsel %vm9111_vm6, %v9112_v57, %v9110_v4  ;;  %v9103_v2 = vsel %vm9102_vm7, %v9098_v59, %v9101_v15 }
0x32a6   :  { %v9115_v56 = vadd.f32 1e-06, %v9113_v34  ;;  %v9106_v3 = vsel %vm9104_vm8, %v9105_v30, %v9103_v2 }
0x32a7   :  { %v9114_v5 = vadd.f32 1e-06, %v9106_v3 }
0x32a8   :  { %11027 = vrcp.f32 %v9115_v56 }
0x32a9   :  { %11029 = vrcp.f32 %v9114_v5 }
0x32b2   :  { %v11028_v33 = vpop.eup %11027 }
0x32b3   :  { %v11030_v63 = vpop.eup %11029  ;;  %v9119_v62 = vmul.f32 %v11028_v33, %v9089_v16 }
0x32b4   :  { %v9118_v58 = vmul.f32 %v11030_v63, %v9088_v44 }
0x32b5   :  { %v9121_v41 = vmul.f32 %v9119_v62, %v9078_v8 }
0x32b6   :  { %v9120_v21 = vmul.f32 %v9118_v58, %v9078_v8 }
0x32b7   :  { %v9123_v43 = vadd.f32 %v9121_v41, %v9079_v38 }
0x32b8   :  { %v9122_v60 = vadd.f32 %v9120_v21, %v9079_v38 }
0x32ba   :  { %10113 = vmatprep.mubr.msk.f32.mxu1 %vm48_vm0, %v9122_v60 }
0x32bb   :  { %10114 = vmatmul.mubr.msk.f32.vlgmr.msra.gmra.mrb[106].mxu1 %vm48_vm0, %v9123_v43 }
0x338e   :  { %v10115_v6 = vpop.f32.mrb[106].mxu1 }
0x338f   :  { %v9207_v22 = vadd.f32 %v10115_v6, %v9128_v45  ;;  %v9201_v54 = vpop.f32.mrb[107].mxu1 }
0x3390   :  { %v9202_v11 = vadd.f32 %v9201_v54, %v9128_v45 }
0x3391   :  { %9212 = vmax.xlane.f32.xlu1 %v9207_v22 }
0x3392   :  { %9210 = vmax.xlane.f32.xlu0 %v9202_v11 }
0x341e   :  { %v9213_v24 = vpop.xlane.xlu1 %9212 }
0x341f   :  { %v9215_v0 = vsub.f32 %v9207_v22, %v9213_v24  ;;  %v9211_v14 = vpop.xlane.xlu0 %9210 }
0x3420   :  { %v9214_v20 = vsub.f32 %v9202_v11, %v9211_v14 }
0x3421   :  { %v9218_v23 = vmul.f32 1.442695, %v9215_v0 }
0x3422   :  { %v9216_v25 = vmul.f32 1.442695, %v9214_v20 }
0x3423   :  { %11031 = vpow2.f32 %v9218_v23 }
0x3424   :  { %11033 = vpow2.f32 %v9216_v25 }
0x342d   :  { %v11032_v1 = vpop.eup %11031 }
0x342e   :  { %v11034_v29 = vpop.eup %11033  ;;  %9222 = vadd.xlane.f32.xlu1 %v11032_v1 }
0x342f   :  { %9220 = vadd.xlane.f32.xlu0 %v11034_v29 }
0x34bb   :  { %v9223_v31 = vpop.xlane.xlu1 %9222 }
0x34bc   :  { %11035 = vlog2.f32 %v9223_v31  ;;  %v9221_v53 = vpop.xlane.xlu0 %9220 }
0x34bd   :  { %11037 = vlog2.f32 %v9221_v53 }
0x34c6   :  { %v11036_v52 = vpop.eup %11035 }
0x34c7   :  { %v11038_v36 = vpop.eup %11037  ;;  %v9227_v32 = vmul.f32 0.6931472, %v11036_v52 }
0x34c8   :  { %v9225_v12 = vmul.f32 0.6931472, %v11038_v36 }
0x34c9   :  { %v9229_v51 = vsub.f32 %v9215_v0, %v9227_v32 }
0x34ca   :  { %v9228_v17 = vsub.f32 %v9214_v20, %v9225_v12 }
0x34cb   :  { %9231 = vst [vmem:[#allocation5 + $0x8] sm:$0xff] %v9229_v51 }
0x34cc   :  { %9230 = vst [vmem:[#allocation5] sm:$0xff] %v9228_v17 }
0x34cd   :  { %11078 = shalt.err (!%p11075_p12)
}
0x34ce   :  { %s11079_s16 = scalar_lea.hbm %s12084_s6, 256 }
0x34cf   :  { %p11080_p13 = scmp.ne.s32.totalorder %s12084_s6, %s11079_s16  ;;  %p11083_p0 = scmp.lt.u32.totalorder %s11079_s16, %s12084_s6 }
0x34d1   :  { %p11085_p1 = pnand %p11083_p0, %p11080_p13 }
0x34d3   :  { %11088 = shalt.err (!%p11085_p1)
}
0x34d4   :  { %s11098_s2 = smov 128   ;;  %s11099_s21 = smov 8  }
0x34d5   :  { %9243 = dma.vmem_to_hbm [thread:$0]  %s9238_s14, 256, %s12084_s6, [#allocation4], %s11098_s2, %s11098_s2, %s11099_s21  }
0x34d6   :  { %11091 = dma.done.wait [#allocation4], 256  }
0x34d7   :  { %11092 = vsyncadd [#allocation4], 4294967040 }
0x34d8   :  { %9247 = vsyncpa [#allocation3], 1 }
0x34d9   :  { %9248 = vsyncpa [#allocation4], 1 }

</bundles_post_ra>
